<compile_context>
chip_gen: v6e
topology: v6e:2x2x1
jax: 0.10.0
libtpu: 0.0.40
codegen_flags: <defaults>
</compile_context>

<pallas_src>
import functools
import math

import jax
import jax.numpy as jnp
from jax import lax
from jax.experimental import pallas as pl
from jax.experimental.pallas import tpu as pltpu

F32 = jnp.float32
BF16 = jnp.bfloat16

# ---------------- model dimensions (small, structurally consistent) ----------
B, C, S = 2, 4, 16          # batch, num_choices, sequence length
BC = B * C                  # flattened (batch*choices)
T = BC * S                  # total tokens = 128
H = 64                      # electra hidden size (reduced from electra-large 1024)
NHEADS, DH = 4, 16          # electra attention heads / head dim
INTER = 128                 # electra FFN intermediate
VOCAB, NLAYERS = 100, 2
GCN_IN, GCN_H = 300, 128    # GATConv(300,128) -> GATConv(128,128)
MERGE = 512                 # merge_fc1 output, SelfAttention(512, 8)
ATTN_HEADS = 8
ADH = MERGE // ATTN_HEADS
NODES_PER_GRAPH = 8
N_NODES = C * NODES_PER_GRAPH
NEG = -1e9


# ---------------- shared in-kernel helpers ------------------------------------
def _gelu(x):
    # tanh-approximate GELU
    return 0.5 * x * (1.0 + jnp.tanh(0.7978845608028654 * (x + 0.044715 * x * x * x)))


def _ln(x, g, b):
    mu = jnp.mean(x, axis=-1, keepdims=True)
    var = jnp.mean(jnp.square(x - mu), axis=-1, keepdims=True)
    return (x - mu) * lax.rsqrt(var + 1e-12) * g + b


def _full_spec(shape):
    nd = len(shape)
    return pl.BlockSpec(tuple(shape), lambda i: (0,) * nd)


def _layer_spec(shape):
    nd = len(shape)
    return pl.BlockSpec((1,) + tuple(shape[1:]), lambda i: (i,) + (0,) * (nd - 1))


# ---------------- kernel 1: fused Electra encoder (grid over layers) ----------
def _encoder_kernel(bias_ref, h0_ref, eg_ref, eb_ref,
                    wqkv_ref, bqkv_ref, wo_ref, bo_ref,
                    l1g_ref, l1b_ref, w1_ref, b1_ref,
                    w2_ref, b2_ref, l2g_ref, l2b_ref,
                    out_ref, h_scr):
    l = pl.program_id(0)

    @pl.when(l == 0)
    def _():
        # embedding layernorm folded into the first layer step
        h_scr[...] = _ln(h0_ref[...], eg_ref[...], eb_ref[...])

    h = h_scr[...]                                              # (T, H) f32
    bias = bias_ref[...]                                        # (T, T) additive mask

    # packed QKV projection: (T,H) @ (H,3H)
    qkv = jnp.dot(h.astype(BF16), wqkv_ref[0],
                  preferred_element_type=F32) + bqkv_ref[0]
    qkvb = qkv.astype(BF16)
    wo = wo_ref[0]                                              # (H, H) bf16
    scale = 1.0 / math.sqrt(DH)

    # per-head attention; heads folded directly into the output projection
    attn = jnp.zeros((T, H), F32)
    for n in range(NHEADS):
        qn = qkvb[:, n * DH:(n + 1) * DH]
        kn = qkvb[:, H + n * DH:H + (n + 1) * DH]
        vn = qkvb[:, 2 * H + n * DH:2 * H + (n + 1) * DH]
        s = lax.dot_general(qn, kn, (((1,), (1,)), ((), ())),
                            preferred_element_type=F32) * scale + bias
        s = s - jnp.max(s, axis=-1, keepdims=True)
        p = jnp.exp(s)
        p = p / jnp.sum(p, axis=-1, keepdims=True)
        ctx = jnp.dot(p.astype(BF16), vn, preferred_element_type=F32)
        attn = attn + jnp.dot(ctx.astype(BF16), wo[n * DH:(n + 1) * DH, :],
                              preferred_element_type=F32)
    attn = attn + bo_ref[0]

    h1 = _ln(h + attn, l1g_ref[0], l1b_ref[0])

    ff = _gelu(jnp.dot(h1.astype(BF16), w1_ref[0],
                       preferred_element_type=F32) + b1_ref[0])
    ff = jnp.dot(ff.astype(BF16), w2_ref[0],
                 preferred_element_type=F32) + b2_ref[0]
    h2 = _ln(h1 + ff, l2g_ref[0], l2b_ref[0])

    h_scr[...] = h2
    out_ref[...] = h2


def electra_encoder_layers(h0, attn_bias, Pe):
    in_arrays = [attn_bias, h0, Pe["emb_ln_g"], Pe["emb_ln_b"],
                 Pe["wqkv"], Pe["bqkv"], Pe["wo"], Pe["bo"],
                 Pe["ln1_g"], Pe["ln1_b"], Pe["w1"], Pe["b1"],
                 Pe["w2"], Pe["b2"], Pe["ln2_g"], Pe["ln2_b"]]
    in_specs = ([_full_spec(a.shape) for a in in_arrays[:4]]
                + [_layer_spec(a.shape) for a in in_arrays[4:]])
    return pl.pallas_call(
        _encoder_kernel,
        out_shape=jax.ShapeDtypeStruct((T, H), F32),
        grid=(NLAYERS,),
        in_specs=in_specs,
        out_specs=_full_spec((T, H)),
        scratch_shapes=[pltpu.VMEM((T, H), F32)],
        compiler_params=pltpu.CompilerParams(dimension_semantics=("arbitrary",)),
    )(*in_arrays)


# ---------------- kernel 2: fused GAT branch (grid over graphs, parallel) -----
def _gcn_kernel(x_ref, adjb_ref, pool_ref,
                w1_ref, a1_ref, b1_ref, w2_ref, a2_ref, b2_ref, out_ref):
    adjb = adjb_ref[...]                                        # (N, N) additive

    def gat(h_in, w_r, a_r, b_r):
        # PyG GATConv (heads=1, negative_slope=0.2, self-loops in adj, bias after agg)
        h = jnp.dot(h_in.astype(BF16), w_r[...], preferred_element_type=F32)   # (N,F)
        a = a_r[...]                                            # (2,F): row0=src, row1=dst
        e_dst = jnp.sum(h * a[1:2, :], axis=-1, keepdims=True)  # (N,1)
        e_src = lax.dot_general(a[0:1, :], h, (((1,), (1,)), ((), ())),
                                preferred_element_type=F32)     # (1,N)
        e = e_dst + e_src                                       # (N,N)
        e = jnp.where(e > 0, e, 0.2 * e) + adjb                 # LeakyReLU + edge mask
        e = e - jnp.max(e, axis=-1, keepdims=True)
        p = jnp.exp(e)
        p = p / jnp.sum(p, axis=-1, keepdims=True)
        return jnp.dot(p.astype(BF16), h.astype(BF16),
                       preferred_element_type=F32) + b_r[...]

    h1 = _gelu(gat(x_ref[0], w1_ref, a1_ref, b1_ref))           # dropout: eval -> identity
    node_logits = gat(h1, w2_ref, a2_ref, b2_ref)               # (N, GCN_H)
    # masked-mean pooling of goal nodes per sub-graph: (C,N)@(N,GCN_H)
    out_ref[0] = jnp.dot(pool_ref[...], node_logits, preferred_element_type=F32)


def gcn_fused(x_nodes, adj_bias, pool, Pg):
    def g0(shape):
        nd = len(shape)
        return pl.BlockSpec(tuple(shape), lambda b: (0,) * nd)
    return pl.pallas_call(
        _gcn_kernel,
        out_shape=jax.ShapeDtypeStruct((B, C, GCN_H), F32),
        grid=(B,),
        in_specs=[pl.BlockSpec((1, N_NODES, GCN_IN), lambda b: (b, 0, 0)),
                  g0(adj_bias.shape), g0(pool.shape),
                  g0(Pg["gat1_w"].shape), g0(Pg["gat1_a"].shape), g0(Pg["gat1_b"].shape),
                  g0(Pg["gat2_w"].shape), g0(Pg["gat2_a"].shape), g0(Pg["gat2_b"].shape)],
        out_specs=pl.BlockSpec((1, C, GCN_H), lambda b: (b, 0, 0)),
        compiler_params=pltpu.CompilerParams(dimension_semantics=("parallel",)),
    )(x_nodes, adj_bias, pool,
      Pg["gat1_w"], Pg["gat1_a"], Pg["gat1_b"],
      Pg["gat2_w"], Pg["gat2_a"], Pg["gat2_b"])


# ---------------- kernel 3: fused merge_fc1 + SelfAttention(512,8) + gelu -----
def _merge_kernel(x_ref, cbias_ref, mw_ref, mb_ref,
                  wqkv_ref, bqkv_ref, wo_ref, bo_ref, out_ref):
    m = jnp.dot(x_ref[...].astype(BF16), mw_ref[...],
                preferred_element_type=F32) + mb_ref[...]        # (BC, MERGE)
    qkv = jnp.dot(m.astype(BF16), wqkv_ref[...],
                  preferred_element_type=F32) + bqkv_ref[...]    # (BC, 3*MERGE)
    qkvb = qkv.astype(BF16)
    wo = wo_ref[...]
    bias = cbias_ref[...]                                        # (BC, BC) additive
    scale = 1.0 / math.sqrt(ADH)

    acc = jnp.zeros((BC, MERGE), F32)
    for n in range(ATTN_HEADS):
        qn = qkvb[:, n * ADH:(n + 1) * ADH]
        kn = qkvb[:, MERGE + n * ADH:MERGE + (n + 1) * ADH]
        vn = qkvb[:, 2 * MERGE + n * ADH:2 * MERGE + (n + 1) * ADH]
        s = lax.dot_general(qn, kn, (((1,), (1,)), ((), ())),
                            preferred_element_type=F32) * scale + bias
        s = s - jnp.max(s, axis=-1, keepdims=True)
        p = jnp.exp(s)
        p = p / jnp.sum(p, axis=-1, keepdims=True)
        ctx = jnp.dot(p.astype(BF16), vn, preferred_element_type=F32)
        acc = acc + jnp.dot(ctx.astype(BF16), wo[n * ADH:(n + 1) * ADH, :],
                            preferred_element_type=F32)
    out_ref[...] = _gelu(acc + bo_ref[...])                      # dropout: eval -> identity


def merge_self_attention(merge_in, cbias, P):
    ins = [merge_in, cbias, P["merge_w"], P["merge_b"],
           P["attn_wqkv"], P["attn_bqkv"], P["attn_wo"], P["attn_bo"]]
    return pl.pallas_call(
        _merge_kernel,
        out_shape=jax.ShapeDtypeStruct((BC, MERGE), F32),
        grid=(1,),
        in_specs=[_full_spec(a.shape) for a in ins],
        out_specs=_full_spec((BC, MERGE)),
    )(*ins)


# ---------------- plain-JAX glue ----------------------------------------------
def cross_entropy(logits, labels):
    logp = jax.nn.log_softmax(logits.astype(F32), axis=-1)
    return -jnp.mean(jnp.take_along_axis(logp, labels[:, None], axis=-1))


def gelu_jax(x):
    return jax.nn.gelu(x, approximate=True)


def gat_goal_forward(input_ids, attention_mask, position_ids, labels,
                     x_nodes, adj, pool, ys, params):
    Pe = params["electra"]
    ids = input_ids.reshape(BC, S)
    am = attention_mask.reshape(BC, S).astype(F32)
    pos = position_ids.reshape(BC, S)
    tok = jnp.zeros_like(ids)

    # embeddings (gather in plain JAX); LN is fused into encoder step 0
    emb = (jnp.take(Pe["word_emb"], ids, axis=0)
           + jnp.take(Pe["pos_emb"], pos, axis=0)
           + jnp.take(Pe["type_emb"], tok, axis=0))              # (BC,S,H)
    h0 = emb.reshape(T, H).astype(F32)

    # additive attention bias: block-diagonal over sequences + key padding mask
    seg = jnp.repeat(jnp.arange(BC, dtype=jnp.int32), S)         # (T,)
    keep = (seg[:, None] == seg[None, :]) & (am.reshape(T)[None, :] > 0.5)
    attn_bias = jnp.where(keep, 0.0, NEG).astype(F32)            # (T,T)

    hout = electra_encoder_layers(h0, attn_bias, Pe)             # (T,H)

    # SequenceSummary (first token + proj + gelu) and tiny (H,1) head in plain JAX
    first = hout.reshape(BC, S, H)[:, 0, :]
    pooled = gelu_jax(first @ Pe["sum_w"] + Pe["sum_b"])         # (BC,H)
    logits = pooled @ Pe["cls_w"] + Pe["cls_b"]                  # (BC,1)
    e_loss = cross_entropy(logits.reshape(B, C), labels)
    electra_logits = pooled.reshape(B, C, H)

    # ---- GAT branch (batched over the B graphs, fused) ----
    Pg = params["gcn"]
    adj_bias = jnp.where(adj > 0, 0.0, NEG).astype(F32)
    gcn_pooled = gcn_fused(x_nodes, adj_bias, pool, Pg)          # (B,C,GCN_H)
    gscores = (gelu_jax(gcn_pooled) @ Pg["fc1_w"] + Pg["fc1_b"]).reshape(B, C)
    gcn_loss = cross_entropy(gscores, jnp.argmax(ys, axis=1))    # mean of per-graph losses

    loss = e_loss + gcn_loss

    # ---- merge + self-attention over the num_choices axis ----
    merge_in = jnp.concatenate([electra_logits, gcn_pooled], axis=2).reshape(BC, H + GCN_H)
    cseg = jnp.repeat(jnp.arange(B, dtype=jnp.int32), C)
    cbias = jnp.where(cseg[:, None] == cseg[None, :], 0.0, NEG).astype(F32)
    merged = merge_self_attention(merge_in, cbias, params)       # (BC, MERGE)

    final_in = jnp.concatenate([electra_logits.reshape(BC, H), merged], axis=1)
    scores = (final_in @ params["fc3_w"] + params["fc3_b"]).reshape(B, C)
    loss = loss + cross_entropy(scores, labels)
    return loss, scores


# ---------------- deterministic parameter / input construction ---------------
def init_params(key):
    keys = iter(jax.random.split(key, 32))

    def w(shape, dtype=F32):
        return (jax.random.normal(next(keys), shape, F32) * 0.02).astype(dtype)

    electra = dict(
        word_emb=w((VOCAB, H)), pos_emb=w((S, H)), type_emb=w((2, H)),
        emb_ln_g=jnp.ones((1, H), F32), emb_ln_b=jnp.zeros((1, H), F32),
        # per-layer weights stacked over a leading layer axis; matmul weights bf16
        wqkv=w((NLAYERS, H, 3 * H), BF16), bqkv=jnp.zeros((NLAYERS, 1, 3 * H), F32),
        wo=w((NLAYERS, H, H), BF16),       bo=jnp.zeros((NLAYERS, 1, H), F32),
        ln1_g=jnp.ones((NLAYERS, 1, H), F32), ln1_b=jnp.zeros((NLAYERS, 1, H), F32),
        w1=w((NLAYERS, H, INTER), BF16),   b1=jnp.zeros((NLAYERS, 1, INTER), F32),
        w2=w((NLAYERS, INTER, H), BF16),   b2=jnp.zeros((NLAYERS, 1, H), F32),
        ln2_g=jnp.ones((NLAYERS, 1, H), F32), ln2_b=jnp.zeros((NLAYERS, 1, H), F32),
        sum_w=w((H, H)), sum_b=jnp.zeros((H,), F32),
        cls_w=w((H, 1)), cls_b=jnp.zeros((1,), F32),
    )
    gcn = dict(
        gat1_w=w((GCN_IN, GCN_H), BF16), gat1_a=w((2, GCN_H)),
        gat1_b=jnp.zeros((1, GCN_H), F32),
        gat2_w=w((GCN_H, GCN_H), BF16),  gat2_a=w((2, GCN_H)),
        gat2_b=jnp.zeros((1, GCN_H), F32),
        fc1_w=w((GCN_H, 1)), fc1_b=jnp.zeros((1,), F32),
    )
    params = dict(
        electra=electra, gcn=gcn,
        merge_w=w((H + GCN_H, MERGE), BF16), merge_b=jnp.zeros((1, MERGE), F32),
        attn_wqkv=w((MERGE, 3 * MERGE), BF16), attn_bqkv=jnp.zeros((1, 3 * MERGE), F32),
        attn_wo=w((MERGE, MERGE), BF16),       attn_bo=jnp.zeros((1, MERGE), F32),
        fc3_w=w((MERGE + H, 1)), fc3_b=jnp.zeros((1,), F32),
    )
    return params


def make_inputs(key):
    k_ids, k_lab, kx, ky = jax.random.split(key, 4)
    input_ids = jax.random.randint(k_ids, (B, C, S), 0, VOCAB, dtype=jnp.int32)
    attention_mask = jnp.ones((B, C, S), jnp.int32)
    position_ids = jnp.broadcast_to(jnp.arange(S, dtype=jnp.int32), (B, C, S))
    labels = jax.random.randint(k_lab, (B,), 0, C, dtype=jnp.int32)

    g_id = jnp.arange(N_NODES) // NODES_PER_GRAPH
    adj = (g_id[:, None] == g_id[None, :]).astype(F32)    # within-graph adjacency (incl. self-loops)
    goal = (jnp.arange(N_NODES) % NODES_PER_GRAPH) < 2    # data.pos: "goal" nodes
    mask = (g_id[None, :] == jnp.arange(C)[:, None]) & goal[None, :]
    maskf = mask.astype(F32)
    pool = maskf / jnp.sum(maskf, axis=1, keepdims=True)  # (C, N_NODES) masked-mean matrix

    x_nodes = jax.random.normal(kx, (B, N_NODES, GCN_IN), F32)
    ys = jax.random.normal(ky, (B, C), F32)               # data.y -> argmax label per graph
    return input_ids, attention_mask, position_ids, labels, x_nodes, adj, pool, ys


if __name__ == "__main__":
    params = init_params(jax.random.PRNGKey(0))
    (input_ids, attention_mask, position_ids, labels,
     x_nodes, adj, pool, ys) = make_inputs(jax.random.PRNGKey(0))

    fwd = jax.jit(functools.partial(gat_goal_forward, params=params))
    loss, scores = fwd(input_ids, attention_mask, position_ids, labels,
                       x_nodes, adj, pool, ys)
    jax.block_until_ready((loss, scores))
    assert scores.shape == (B, C) and loss.shape == ()
    print("KERNEL_OK")
</pallas_src>

<mosaic_0001>
module attributes {stable_mosaic.version = 11 : i64} {
  func.func @_merge_kernel(%arg0: i32, %arg1: memref<8x192xf32, #tpu.memory_space<vmem>>, %arg2: memref<8x8xf32, #tpu.memory_space<vmem>>, %arg3: memref<192x512xbf16, #tpu.memory_space<vmem>>, %arg4: memref<1x512xf32, #tpu.memory_space<vmem>>, %arg5: memref<512x1536xbf16, #tpu.memory_space<vmem>>, %arg6: memref<1x1536xf32, #tpu.memory_space<vmem>>, %arg7: memref<512x512xbf16, #tpu.memory_space<vmem>>, %arg8: memref<1x512xf32, #tpu.memory_space<vmem>>, %arg9: memref<8x512xf32, #tpu.memory_space<vmem>>) attributes {dimension_semantics = [#tpu.dimension_semantics<arbitrary>], iteration_bounds = array<i64: 1>, scalar_prefetch = 0 : i64, scratch_operands = 0 : i64, tpu.core_type = #tpu.core_type<tc>, window_params = [{pipeline_mode = #tpu.pipeline_mode<synchronous>, transform_indices = @transform_0, window_bounds = array<i64: 8, 192>}, {pipeline_mode = #tpu.pipeline_mode<synchronous>, transform_indices = @transform_1, window_bounds = array<i64: 8, 8>}, {pipeline_mode = #tpu.pipeline_mode<synchronous>, transform_indices = @transform_2, window_bounds = array<i64: 192, 512>}, {pipeline_mode = #tpu.pipeline_mode<synchronous>, transform_indices = @transform_3, window_bounds = array<i64: 1, 512>}, {pipeline_mode = #tpu.pipeline_mode<synchronous>, transform_indices = @transform_4, window_bounds = array<i64: 512, 1536>}, {pipeline_mode = #tpu.pipeline_mode<synchronous>, transform_indices = @transform_5, window_bounds = array<i64: 1, 1536>}, {pipeline_mode = #tpu.pipeline_mode<synchronous>, transform_indices = @transform_6, window_bounds = array<i64: 512, 512>}, {pipeline_mode = #tpu.pipeline_mode<synchronous>, transform_indices = @transform_7, window_bounds = array<i64: 1, 512>}, {pipeline_mode = #tpu.pipeline_mode<synchronous>, transform_indices = @transform_8, window_bounds = array<i64: 8, 512>}]} {
    %c0 = arith.constant 0 : index
    %c0_0 = arith.constant 0 : index
    %0 = vector.load %arg1[%c0, %c0_0] : memref<8x192xf32, #tpu.memory_space<vmem>>, vector<8x192xf32>
    %1 = arith.truncf %0 : vector<8x192xf32> to vector<8x192xbf16>
    %c0_1 = arith.constant 0 : index
    %c0_2 = arith.constant 0 : index
    %2 = vector.load %arg3[%c0_1, %c0_2] : memref<192x512xbf16, #tpu.memory_space<vmem>>, vector<192x512xbf16>
    %cst = arith.constant dense<0.000000e+00> : vector<8x512xf32>
    %3 = tpu.matmul %1, %2, %cst {dimension_numbers = #tpu.dot_dimension_numbers<[1], [0], [0], [1], [0, 0, 1, 1], [], []>} : vector<8x192xbf16>, vector<192x512xbf16>, vector<8x512xf32> -> vector<8x512xf32>
    %c0_3 = arith.constant 0 : index
    %c0_4 = arith.constant 0 : index
    %4 = vector.load %arg4[%c0_3, %c0_4] : memref<1x512xf32, #tpu.memory_space<vmem>>, vector<1x512xf32>
    %5 = vector.broadcast %4 : vector<1x512xf32> to vector<8x512xf32>
    %6 = arith.addf %3, %5 : vector<8x512xf32>
    %7 = arith.truncf %6 : vector<8x512xf32> to vector<8x512xbf16>
    %c0_5 = arith.constant 0 : index
    %c0_6 = arith.constant 0 : index
    %8 = vector.load %arg5[%c0_5, %c0_6] : memref<512x1536xbf16, #tpu.memory_space<vmem>>, vector<512x1536xbf16>
    %cst_7 = arith.constant dense<0.000000e+00> : vector<8x1536xf32>
    %9 = tpu.matmul %7, %8, %cst_7 {dimension_numbers = #tpu.dot_dimension_numbers<[1], [0], [0], [1], [0, 0, 1, 1], [], []>} : vector<8x512xbf16>, vector<512x1536xbf16>, vector<8x1536xf32> -> vector<8x1536xf32>
    %c0_8 = arith.constant 0 : index
    %c0_9 = arith.constant 0 : index
    %10 = vector.load %arg6[%c0_8, %c0_9] : memref<1x1536xf32, #tpu.memory_space<vmem>>, vector<1x1536xf32>
    %11 = vector.broadcast %10 : vector<1x1536xf32> to vector<8x1536xf32>
    %12 = arith.addf %9, %11 : vector<8x1536xf32>
    %13 = arith.truncf %12 : vector<8x1536xf32> to vector<8x1536xbf16>
    %c0_10 = arith.constant 0 : index
    %c0_11 = arith.constant 0 : index
    %14 = vector.load %arg7[%c0_10, %c0_11] : memref<512x512xbf16, #tpu.memory_space<vmem>>, vector<512x512xbf16>
    %c0_12 = arith.constant 0 : index
    %c0_13 = arith.constant 0 : index
    %15 = vector.load %arg2[%c0_12, %c0_13] : memref<8x8xf32, #tpu.memory_space<vmem>>, vector<8x8xf32>
    %cst_14 = arith.constant 0.000000e+00 : f32
    %16 = vector.broadcast %cst_14 : f32 to vector<8x512xf32>
    %17 = vector.extract_strided_slice %13 {offsets = [0, 0], sizes = [8, 64], strides = [1, 1]} : vector<8x1536xbf16> to vector<8x64xbf16>
    %18 = vector.extract_strided_slice %13 {offsets = [0, 512], sizes = [8, 64], strides = [1, 1]} : vector<8x1536xbf16> to vector<8x64xbf16>
    %19 = vector.extract_strided_slice %13 {offsets = [0, 1024], sizes = [8, 64], strides = [1, 1]} : vector<8x1536xbf16> to vector<8x64xbf16>
    %cst_15 = arith.constant dense<0.000000e+00> : vector<8x8xf32>
    %20 = tpu.matmul %17, %18, %cst_15 {dimension_numbers = #tpu.dot_dimension_numbers<[1], [1], [0], [0], [0, 0, 1, 0], [], []>} : vector<8x64xbf16>, vector<8x64xbf16>, vector<8x8xf32> -> vector<8x8xf32>
    %cst_16 = arith.constant 1.250000e-01 : f32
    %21 = vector.broadcast %cst_16 : f32 to vector<8x8xf32>
    %22 = arith.mulf %20, %21 : vector<8x8xf32>
    %23 = arith.addf %22, %15 : vector<8x8xf32>
    %cst_17 = arith.constant dense<0xFF800000> : vector<8xf32>
    %24 = vector.multi_reduction <maximumf>, %23, %cst_17 [1] : vector<8x8xf32> to vector<8xf32>
    %25 = vector.shape_cast %24 : vector<8xf32> to vector<8x1xf32>
    %26 = vector.broadcast %25 : vector<8x1xf32> to vector<8x8xf32>
    %27 = arith.subf %23, %26 : vector<8x8xf32>
    %28 = math.exp %27 : vector<8x8xf32>
    %cst_18 = arith.constant dense<0.000000e+00> : vector<8xf32>
    %29 = vector.multi_reduction <add>, %28, %cst_18 [1] : vector<8x8xf32> to vector<8xf32>
    %30 = vector.shape_cast %29 : vector<8xf32> to vector<8x1xf32>
    %31 = vector.broadcast %30 : vector<8x1xf32> to vector<8x8xf32>
    %32 = arith.divf %28, %31 : vector<8x8xf32>
    %33 = arith.truncf %32 : vector<8x8xf32> to vector<8x8xbf16>
    %cst_19 = arith.constant dense<0.000000e+00> : vector<8x64xf32>
    %34 = tpu.matmul %33, %19, %cst_19 {dimension_numbers = #tpu.dot_dimension_numbers<[1], [0], [0], [1], [0, 0, 1, 1], [], []>} : vector<8x8xbf16>, vector<8x64xbf16>, vector<8x64xf32> -> vector<8x64xf32>
    %35 = arith.truncf %34 : vector<8x64xf32> to vector<8x64xbf16>
    %36 = vector.extract_strided_slice %14 {offsets = [0, 0], sizes = [64, 512], strides = [1, 1]} : vector<512x512xbf16> to vector<64x512xbf16>
    %cst_20 = arith.constant dense<0.000000e+00> : vector<8x512xf32>
    %37 = tpu.matmul %35, %36, %cst_20 {dimension_numbers = #tpu.dot_dimension_numbers<[1], [0], [0], [1], [0, 0, 1, 1], [], []>} : vector<8x64xbf16>, vector<64x512xbf16>, vector<8x512xf32> -> vector<8x512xf32>
    %38 = arith.addf %16, %37 : vector<8x512xf32>
    %39 = vector.extract_strided_slice %13 {offsets = [0, 64], sizes = [8, 64], strides = [1, 1]} : vector<8x1536xbf16> to vector<8x64xbf16>
    %40 = vector.extract_strided_slice %13 {offsets = [0, 576], sizes = [8, 64], strides = [1, 1]} : vector<8x1536xbf16> to vector<8x64xbf16>
    %41 = vector.extract_strided_slice %13 {offsets = [0, 1088], sizes = [8, 64], strides = [1, 1]} : vector<8x1536xbf16> to vector<8x64xbf16>
    %cst_21 = arith.constant dense<0.000000e+00> : vector<8x8xf32>
    %42 = tpu.matmul %39, %40, %cst_21 {dimension_numbers = #tpu.dot_dimension_numbers<[1], [1], [0], [0], [0, 0, 1, 0], [], []>} : vector<8x64xbf16>, vector<8x64xbf16>, vector<8x8xf32> -> vector<8x8xf32>
    %cst_22 = arith.constant 1.250000e-01 : f32
    %43 = vector.broadcast %cst_22 : f32 to vector<8x8xf32>
    %44 = arith.mulf %42, %43 : vector<8x8xf32>
    %45 = arith.addf %44, %15 : vector<8x8xf32>
    %cst_23 = arith.constant dense<0xFF800000> : vector<8xf32>
    %46 = vector.multi_reduction <maximumf>, %45, %cst_23 [1] : vector<8x8xf32> to vector<8xf32>
    %47 = vector.shape_cast %46 : vector<8xf32> to vector<8x1xf32>
    %48 = vector.broadcast %47 : vector<8x1xf32> to vector<8x8xf32>
    %49 = arith.subf %45, %48 : vector<8x8xf32>
    %50 = math.exp %49 : vector<8x8xf32>
    %cst_24 = arith.constant dense<0.000000e+00> : vector<8xf32>
    %51 = vector.multi_reduction <add>, %50, %cst_24 [1] : vector<8x8xf32> to vector<8xf32>
    %52 = vector.shape_cast %51 : vector<8xf32> to vector<8x1xf32>
    %53 = vector.broadcast %52 : vector<8x1xf32> to vector<8x8xf32>
    %54 = arith.divf %50, %53 : vector<8x8xf32>
    %55 = arith.truncf %54 : vector<8x8xf32> to vector<8x8xbf16>
    %cst_25 = arith.constant dense<0.000000e+00> : vector<8x64xf32>
    %56 = tpu.matmul %55, %41, %cst_25 {dimension_numbers = #tpu.dot_dimension_numbers<[1], [0], [0], [1], [0, 0, 1, 1], [], []>} : vector<8x8xbf16>, vector<8x64xbf16>, vector<8x64xf32> -> vector<8x64xf32>
    %57 = arith.truncf %56 : vector<8x64xf32> to vector<8x64xbf16>
    %58 = vector.extract_strided_slice %14 {offsets = [64, 0], sizes = [64, 512], strides = [1, 1]} : vector<512x512xbf16> to vector<64x512xbf16>
    %cst_26 = arith.constant dense<0.000000e+00> : vector<8x512xf32>
    %59 = tpu.matmul %57, %58, %cst_26 {dimension_numbers = #tpu.dot_dimension_numbers<[1], [0], [0], [1], [0, 0, 1, 1], [], []>} : vector<8x64xbf16>, vector<64x512xbf16>, vector<8x512xf32> -> vector<8x512xf32>
    %60 = arith.addf %38, %59 : vector<8x512xf32>
    %61 = vector.extract_strided_slice %13 {offsets = [0, 128], sizes = [8, 64], strides = [1, 1]} : vector<8x1536xbf16> to vector<8x64xbf16>
    %62 = vector.extract_strided_slice %13 {offsets = [0, 640], sizes = [8, 64], strides = [1, 1]} : vector<8x1536xbf16> to vector<8x64xbf16>
    %63 = vector.extract_strided_slice %13 {offsets = [0, 1152], sizes = [8, 64], strides = [1, 1]} : vector<8x1536xbf16> to vector<8x64xbf16>
    %cst_27 = arith.constant dense<0.000000e+00> : vector<8x8xf32>
    %64 = tpu.matmul %61, %62, %cst_27 {dimension_numbers = #tpu.dot_dimension_numbers<[1], [1], [0], [0], [0, 0, 1, 0], [], []>} : vector<8x64xbf16>, vector<8x64xbf16>, vector<8x8xf32> -> vector<8x8xf32>
    %cst_28 = arith.constant 1.250000e-01 : f32
    %65 = vector.broadcast %cst_28 : f32 to vector<8x8xf32>
    %66 = arith.mulf %64, %65 : vector<8x8xf32>
    %67 = arith.addf %66, %15 : vector<8x8xf32>
    %cst_29 = arith.constant dense<0xFF800000> : vector<8xf32>
    %68 = vector.multi_reduction <maximumf>, %67, %cst_29 [1] : vector<8x8xf32> to vector<8xf32>
    %69 = vector.shape_cast %68 : vector<8xf32> to vector<8x1xf32>
    %70 = vector.broadcast %69 : vector<8x1xf32> to vector<8x8xf32>
    %71 = arith.subf %67, %70 : vector<8x8xf32>
    %72 = math.exp %71 : vector<8x8xf32>
    %cst_30 = arith.constant dense<0.000000e+00> : vector<8xf32>
    %73 = vector.multi_reduction <add>, %72, %cst_30 [1] : vector<8x8xf32> to vector<8xf32>
    %74 = vector.shape_cast %73 : vector<8xf32> to vector<8x1xf32>
    %75 = vector.broadcast %74 : vector<8x1xf32> to vector<8x8xf32>
    %76 = arith.divf %72, %75 : vector<8x8xf32>
    %77 = arith.truncf %76 : vector<8x8xf32> to vector<8x8xbf16>
    %cst_31 = arith.constant dense<0.000000e+00> : vector<8x64xf32>
    %78 = tpu.matmul %77, %63, %cst_31 {dimension_numbers = #tpu.dot_dimension_numbers<[1], [0], [0], [1], [0, 0, 1, 1], [], []>} : vector<8x8xbf16>, vector<8x64xbf16>, vector<8x64xf32> -> vector<8x64xf32>
    %79 = arith.truncf %78 : vector<8x64xf32> to vector<8x64xbf16>
    %80 = vector.extract_strided_slice %14 {offsets = [128, 0], sizes = [64, 512], strides = [1, 1]} : vector<512x512xbf16> to vector<64x512xbf16>
    %cst_32 = arith.constant dense<0.000000e+00> : vector<8x512xf32>
    %81 = tpu.matmul %79, %80, %cst_32 {dimension_numbers = #tpu.dot_dimension_numbers<[1], [0], [0], [1], [0, 0, 1, 1], [], []>} : vector<8x64xbf16>, vector<64x512xbf16>, vector<8x512xf32> -> vector<8x512xf32>
    %82 = arith.addf %60, %81 : vector<8x512xf32>
    %83 = vector.extract_strided_slice %13 {offsets = [0, 192], sizes = [8, 64], strides = [1, 1]} : vector<8x1536xbf16> to vector<8x64xbf16>
    %84 = vector.extract_strided_slice %13 {offsets = [0, 704], sizes = [8, 64], strides = [1, 1]} : vector<8x1536xbf16> to vector<8x64xbf16>
    %85 = vector.extract_strided_slice %13 {offsets = [0, 1216], sizes = [8, 64], strides = [1, 1]} : vector<8x1536xbf16> to vector<8x64xbf16>
    %cst_33 = arith.constant dense<0.000000e+00> : vector<8x8xf32>
    %86 = tpu.matmul %83, %84, %cst_33 {dimension_numbers = #tpu.dot_dimension_numbers<[1], [1], [0], [0], [0, 0, 1, 0], [], []>} : vector<8x64xbf16>, vector<8x64xbf16>, vector<8x8xf32> -> vector<8x8xf32>
    %cst_34 = arith.constant 1.250000e-01 : f32
    %87 = vector.broadcast %cst_34 : f32 to vector<8x8xf32>
    %88 = arith.mulf %86, %87 : vector<8x8xf32>
    %89 = arith.addf %88, %15 : vector<8x8xf32>
    %cst_35 = arith.constant dense<0xFF800000> : vector<8xf32>
    %90 = vector.multi_reduction <maximumf>, %89, %cst_35 [1] : vector<8x8xf32> to vector<8xf32>
    %91 = vector.shape_cast %90 : vector<8xf32> to vector<8x1xf32>
    %92 = vector.broadcast %91 : vector<8x1xf32> to vector<8x8xf32>
    %93 = arith.subf %89, %92 : vector<8x8xf32>
    %94 = math.exp %93 : vector<8x8xf32>
    %cst_36 = arith.constant dense<0.000000e+00> : vector<8xf32>
    %95 = vector.multi_reduction <add>, %94, %cst_36 [1] : vector<8x8xf32> to vector<8xf32>
    %96 = vector.shape_cast %95 : vector<8xf32> to vector<8x1xf32>
    %97 = vector.broadcast %96 : vector<8x1xf32> to vector<8x8xf32>
    %98 = arith.divf %94, %97 : vector<8x8xf32>
    %99 = arith.truncf %98 : vector<8x8xf32> to vector<8x8xbf16>
    %cst_37 = arith.constant dense<0.000000e+00> : vector<8x64xf32>
    %100 = tpu.matmul %99, %85, %cst_37 {dimension_numbers = #tpu.dot_dimension_numbers<[1], [0], [0], [1], [0, 0, 1, 1], [], []>} : vector<8x8xbf16>, vector<8x64xbf16>, vector<8x64xf32> -> vector<8x64xf32>
    %101 = arith.truncf %100 : vector<8x64xf32> to vector<8x64xbf16>
    %102 = vector.extract_strided_slice %14 {offsets = [192, 0], sizes = [64, 512], strides = [1, 1]} : vector<512x512xbf16> to vector<64x512xbf16>
    %cst_38 = arith.constant dense<0.000000e+00> : vector<8x512xf32>
    %103 = tpu.matmul %101, %102, %cst_38 {dimension_numbers = #tpu.dot_dimension_numbers<[1], [0], [0], [1], [0, 0, 1, 1], [], []>} : vector<8x64xbf16>, vector<64x512xbf16>, vector<8x512xf32> -> vector<8x512xf32>
    %104 = arith.addf %82, %103 : vector<8x512xf32>
    %105 = vector.extract_strided_slice %13 {offsets = [0, 256], sizes = [8, 64], strides = [1, 1]} : vector<8x1536xbf16> to vector<8x64xbf16>
    %106 = vector.extract_strided_slice %13 {offsets = [0, 768], sizes = [8, 64], strides = [1, 1]} : vector<8x1536xbf16> to vector<8x64xbf16>
    %107 = vector.extract_strided_slice %13 {offsets = [0, 1280], sizes = [8, 64], strides = [1, 1]} : vector<8x1536xbf16> to vector<8x64xbf16>
    %cst_39 = arith.constant dense<0.000000e+00> : vector<8x8xf32>
    %108 = tpu.matmul %105, %106, %cst_39 {dimension_numbers = #tpu.dot_dimension_numbers<[1], [1], [0], [0], [0, 0, 1, 0], [], []>} : vector<8x64xbf16>, vector<8x64xbf16>, vector<8x8xf32> -> vector<8x8xf32>
    %cst_40 = arith.constant 1.250000e-01 : f32
    %109 = vector.broadcast %cst_40 : f32 to vector<8x8xf32>
    %110 = arith.mulf %108, %109 : vector<8x8xf32>
    %111 = arith.addf %110, %15 : vector<8x8xf32>
    %cst_41 = arith.constant dense<0xFF800000> : vector<8xf32>
    %112 = vector.multi_reduction <maximumf>, %111, %cst_41 [1] : vector<8x8xf32> to vector<8xf32>
    %113 = vector.shape_cast %112 : vector<8xf32> to vector<8x1xf32>
    %114 = vector.broadcast %113 : vector<8x1xf32> to vector<8x8xf32>
    %115 = arith.subf %111, %114 : vector<8x8xf32>
    %116 = math.exp %115 : vector<8x8xf32>
    %cst_42 = arith.constant dense<0.000000e+00> : vector<8xf32>
    %117 = vector.multi_reduction <add>, %116, %cst_42 [1] : vector<8x8xf32> to vector<8xf32>
    %118 = vector.shape_cast %117 : vector<8xf32> to vector<8x1xf32>
    %119 = vector.broadcast %118 : vector<8x1xf32> to vector<8x8xf32>
    %120 = arith.divf %116, %119 : vector<8x8xf32>
    %121 = arith.truncf %120 : vector<8x8xf32> to vector<8x8xbf16>
    %cst_43 = arith.constant dense<0.000000e+00> : vector<8x64xf32>
    %122 = tpu.matmul %121, %107, %cst_43 {dimension_numbers = #tpu.dot_dimension_numbers<[1], [0], [0], [1], [0, 0, 1, 1], [], []>} : vector<8x8xbf16>, vector<8x64xbf16>, vector<8x64xf32> -> vector<8x64xf32>
    %123 = arith.truncf %122 : vector<8x64xf32> to vector<8x64xbf16>
    %124 = vector.extract_strided_slice %14 {offsets = [256, 0], sizes = [64, 512], strides = [1, 1]} : vector<512x512xbf16> to vector<64x512xbf16>
    %cst_44 = arith.constant dense<0.000000e+00> : vector<8x512xf32>
    %125 = tpu.matmul %123, %124, %cst_44 {dimension_numbers = #tpu.dot_dimension_numbers<[1], [0], [0], [1], [0, 0, 1, 1], [], []>} : vector<8x64xbf16>, vector<64x512xbf16>, vector<8x512xf32> -> vector<8x512xf32>
    %126 = arith.addf %104, %125 : vector<8x512xf32>
    %127 = vector.extract_strided_slice %13 {offsets = [0, 320], sizes = [8, 64], strides = [1, 1]} : vector<8x1536xbf16> to vector<8x64xbf16>
    %128 = vector.extract_strided_slice %13 {offsets = [0, 832], sizes = [8, 64], strides = [1, 1]} : vector<8x1536xbf16> to vector<8x64xbf16>
    %129 = vector.extract_strided_slice %13 {offsets = [0, 1344], sizes = [8, 64], strides = [1, 1]} : vector<8x1536xbf16> to vector<8x64xbf16>
    %cst_45 = arith.constant dense<0.000000e+00> : vector<8x8xf32>
    %130 = tpu.matmul %127, %128, %cst_45 {dimension_numbers = #tpu.dot_dimension_numbers<[1], [1], [0], [0], [0, 0, 1, 0], [], []>} : vector<8x64xbf16>, vector<8x64xbf16>, vector<8x8xf32> -> vector<8x8xf32>
    %cst_46 = arith.constant 1.250000e-01 : f32
    %131 = vector.broadcast %cst_46 : f32 to vector<8x8xf32>
    %132 = arith.mulf %130, %131 : vector<8x8xf32>
    %133 = arith.addf %132, %15 : vector<8x8xf32>
    %cst_47 = arith.constant dense<0xFF800000> : vector<8xf32>
    %134 = vector.multi_reduction <maximumf>, %133, %cst_47 [1] : vector<8x8xf32> to vector<8xf32>
    %135 = vector.shape_cast %134 : vector<8xf32> to vector<8x1xf32>
    %136 = vector.broadcast %135 : vector<8x1xf32> to vector<8x8xf32>
    %137 = arith.subf %133, %136 : vector<8x8xf32>
    %138 = math.exp %137 : vector<8x8xf32>
    %cst_48 = arith.constant dense<0.000000e+00> : vector<8xf32>
    %139 = vector.multi_reduction <add>, %138, %cst_48 [1] : vector<8x8xf32> to vector<8xf32>
    %140 = vector.shape_cast %139 : vector<8xf32> to vector<8x1xf32>
    %141 = vector.broadcast %140 : vector<8x1xf32> to vector<8x8xf32>
    %142 = arith.divf %138, %141 : vector<8x8xf32>
    %143 = arith.truncf %142 : vector<8x8xf32> to vector<8x8xbf16>
    %cst_49 = arith.constant dense<0.000000e+00> : vector<8x64xf32>
    %144 = tpu.matmul %143, %129, %cst_49 {dimension_numbers = #tpu.dot_dimension_numbers<[1], [0], [0], [1], [0, 0, 1, 1], [], []>} : vector<8x8xbf16>, vector<8x64xbf16>, vector<8x64xf32> -> vector<8x64xf32>
    %145 = arith.truncf %144 : vector<8x64xf32> to vector<8x64xbf16>
    %146 = vector.extract_strided_slice %14 {offsets = [320, 0], sizes = [64, 512], strides = [1, 1]} : vector<512x512xbf16> to vector<64x512xbf16>
    %cst_50 = arith.constant dense<0.000000e+00> : vector<8x512xf32>
    %147 = tpu.matmul %145, %146, %cst_50 {dimension_numbers = #tpu.dot_dimension_numbers<[1], [0], [0], [1], [0, 0, 1, 1], [], []>} : vector<8x64xbf16>, vector<64x512xbf16>, vector<8x512xf32> -> vector<8x512xf32>
    %148 = arith.addf %126, %147 : vector<8x512xf32>
    %149 = vector.extract_strided_slice %13 {offsets = [0, 384], sizes = [8, 64], strides = [1, 1]} : vector<8x1536xbf16> to vector<8x64xbf16>
    %150 = vector.extract_strided_slice %13 {offsets = [0, 896], sizes = [8, 64], strides = [1, 1]} : vector<8x1536xbf16> to vector<8x64xbf16>
    %151 = vector.extract_strided_slice %13 {offsets = [0, 1408], sizes = [8, 64], strides = [1, 1]} : vector<8x1536xbf16> to vector<8x64xbf16>
    %cst_51 = arith.constant dense<0.000000e+00> : vector<8x8xf32>
    %152 = tpu.matmul %149, %150, %cst_51 {dimension_numbers = #tpu.dot_dimension_numbers<[1], [1], [0], [0], [0, 0, 1, 0], [], []>} : vector<8x64xbf16>, vector<8x64xbf16>, vector<8x8xf32> -> vector<8x8xf32>
    %cst_52 = arith.constant 1.250000e-01 : f32
    %153 = vector.broadcast %cst_52 : f32 to vector<8x8xf32>
    %154 = arith.mulf %152, %153 : vector<8x8xf32>
    %155 = arith.addf %154, %15 : vector<8x8xf32>
    %cst_53 = arith.constant dense<0xFF800000> : vector<8xf32>
    %156 = vector.multi_reduction <maximumf>, %155, %cst_53 [1] : vector<8x8xf32> to vector<8xf32>
    %157 = vector.shape_cast %156 : vector<8xf32> to vector<8x1xf32>
    %158 = vector.broadcast %157 : vector<8x1xf32> to vector<8x8xf32>
    %159 = arith.subf %155, %158 : vector<8x8xf32>
    %160 = math.exp %159 : vector<8x8xf32>
    %cst_54 = arith.constant dense<0.000000e+00> : vector<8xf32>
    %161 = vector.multi_reduction <add>, %160, %cst_54 [1] : vector<8x8xf32> to vector<8xf32>
    %162 = vector.shape_cast %161 : vector<8xf32> to vector<8x1xf32>
    %163 = vector.broadcast %162 : vector<8x1xf32> to vector<8x8xf32>
    %164 = arith.divf %160, %163 : vector<8x8xf32>
    %165 = arith.truncf %164 : vector<8x8xf32> to vector<8x8xbf16>
    %cst_55 = arith.constant dense<0.000000e+00> : vector<8x64xf32>
    %166 = tpu.matmul %165, %151, %cst_55 {dimension_numbers = #tpu.dot_dimension_numbers<[1], [0], [0], [1], [0, 0, 1, 1], [], []>} : vector<8x8xbf16>, vector<8x64xbf16>, vector<8x64xf32> -> vector<8x64xf32>
    %167 = arith.truncf %166 : vector<8x64xf32> to vector<8x64xbf16>
    %168 = vector.extract_strided_slice %14 {offsets = [384, 0], sizes = [64, 512], strides = [1, 1]} : vector<512x512xbf16> to vector<64x512xbf16>
    %cst_56 = arith.constant dense<0.000000e+00> : vector<8x512xf32>
    %169 = tpu.matmul %167, %168, %cst_56 {dimension_numbers = #tpu.dot_dimension_numbers<[1], [0], [0], [1], [0, 0, 1, 1], [], []>} : vector<8x64xbf16>, vector<64x512xbf16>, vector<8x512xf32> -> vector<8x512xf32>
    %170 = arith.addf %148, %169 : vector<8x512xf32>
    %171 = vector.extract_strided_slice %13 {offsets = [0, 448], sizes = [8, 64], strides = [1, 1]} : vector<8x1536xbf16> to vector<8x64xbf16>
    %172 = vector.extract_strided_slice %13 {offsets = [0, 960], sizes = [8, 64], strides = [1, 1]} : vector<8x1536xbf16> to vector<8x64xbf16>
    %173 = vector.extract_strided_slice %13 {offsets = [0, 1472], sizes = [8, 64], strides = [1, 1]} : vector<8x1536xbf16> to vector<8x64xbf16>
    %cst_57 = arith.constant dense<0.000000e+00> : vector<8x8xf32>
    %174 = tpu.matmul %171, %172, %cst_57 {dimension_numbers = #tpu.dot_dimension_numbers<[1], [1], [0], [0], [0, 0, 1, 0], [], []>} : vector<8x64xbf16>, vector<8x64xbf16>, vector<8x8xf32> -> vector<8x8xf32>
    %cst_58 = arith.constant 1.250000e-01 : f32
    %175 = vector.broadcast %cst_58 : f32 to vector<8x8xf32>
    %176 = arith.mulf %174, %175 : vector<8x8xf32>
    %177 = arith.addf %176, %15 : vector<8x8xf32>
    %cst_59 = arith.constant dense<0xFF800000> : vector<8xf32>
    %178 = vector.multi_reduction <maximumf>, %177, %cst_59 [1] : vector<8x8xf32> to vector<8xf32>
    %179 = vector.shape_cast %178 : vector<8xf32> to vector<8x1xf32>
    %180 = vector.broadcast %179 : vector<8x1xf32> to vector<8x8xf32>
    %181 = arith.subf %177, %180 : vector<8x8xf32>
    %182 = math.exp %181 : vector<8x8xf32>
    %cst_60 = arith.constant dense<0.000000e+00> : vector<8xf32>
    %183 = vector.multi_reduction <add>, %182, %cst_60 [1] : vector<8x8xf32> to vector<8xf32>
    %184 = vector.shape_cast %183 : vector<8xf32> to vector<8x1xf32>
    %185 = vector.broadcast %184 : vector<8x1xf32> to vector<8x8xf32>
    %186 = arith.divf %182, %185 : vector<8x8xf32>
    %187 = arith.truncf %186 : vector<8x8xf32> to vector<8x8xbf16>
    %cst_61 = arith.constant dense<0.000000e+00> : vector<8x64xf32>
    %188 = tpu.matmul %187, %173, %cst_61 {dimension_numbers = #tpu.dot_dimension_numbers<[1], [0], [0], [1], [0, 0, 1, 1], [], []>} : vector<8x8xbf16>, vector<8x64xbf16>, vector<8x64xf32> -> vector<8x64xf32>
    %189 = arith.truncf %188 : vector<8x64xf32> to vector<8x64xbf16>
    %190 = vector.extract_strided_slice %14 {offsets = [448, 0], sizes = [64, 512], strides = [1, 1]} : vector<512x512xbf16> to vector<64x512xbf16>
    %cst_62 = arith.constant dense<0.000000e+00> : vector<8x512xf32>
    %191 = tpu.matmul %189, %190, %cst_62 {dimension_numbers = #tpu.dot_dimension_numbers<[1], [0], [0], [1], [0, 0, 1, 1], [], []>} : vector<8x64xbf16>, vector<64x512xbf16>, vector<8x512xf32> -> vector<8x512xf32>
    %192 = arith.addf %170, %191 : vector<8x512xf32>
    %c0_63 = arith.constant 0 : index
    %c0_64 = arith.constant 0 : index
    %193 = vector.load %arg8[%c0_63, %c0_64] : memref<1x512xf32, #tpu.memory_space<vmem>>, vector<1x512xf32>
    %194 = vector.broadcast %193 : vector<1x512xf32> to vector<8x512xf32>
    %195 = arith.addf %192, %194 : vector<8x512xf32>
    %cst_65 = arith.constant 5.000000e-01 : f32
    %196 = vector.broadcast %cst_65 : f32 to vector<8x512xf32>
    %197 = arith.mulf %196, %195 : vector<8x512xf32>
    %cst_66 = arith.constant 4.471500e-02 : f32
    %198 = vector.broadcast %cst_66 : f32 to vector<8x512xf32>
    %199 = arith.mulf %198, %195 : vector<8x512xf32>
    %200 = arith.mulf %199, %195 : vector<8x512xf32>
    %201 = arith.mulf %200, %195 : vector<8x512xf32>
    %202 = arith.addf %195, %201 : vector<8x512xf32>
    %cst_67 = arith.constant 0.797884583 : f32
    %203 = vector.broadcast %cst_67 : f32 to vector<8x512xf32>
    %204 = arith.mulf %203, %202 : vector<8x512xf32>
    %205 = math.tanh %204 : vector<8x512xf32>
    %cst_68 = arith.constant 1.000000e+00 : f32
    %206 = vector.broadcast %cst_68 : f32 to vector<8x512xf32>
    %207 = arith.addf %206, %205 : vector<8x512xf32>
    %208 = arith.mulf %197, %207 : vector<8x512xf32>
    %c0_69 = arith.constant 0 : index
    %c0_70 = arith.constant 0 : index
    %209 = vector.load %arg9[%c0_69, %c0_70] : memref<8x512xf32, #tpu.memory_space<vmem>>, vector<8x512xf32>
    tpu.vector_store %arg9[%c0_69, %c0_70], %208 {strides = array<i32>} : memref<8x512xf32, #tpu.memory_space<vmem>>, vector<8x512xf32>,
    return
  }
  func.func @transform_0(%arg0: i32) -> (i32, i32) {
    %c0_i32 = arith.constant 0 : i32
    %c0_i32_0 = arith.constant 0 : i32
    %c0_i32_1 = arith.constant 0 : i32
    return %c0_i32, %c0_i32_0 : i32, i32
  }
  func.func @transform_1(%arg0: i32) -> (i32, i32) {
    %c0_i32 = arith.constant 0 : i32
    %c0_i32_0 = arith.constant 0 : i32
    %c0_i32_1 = arith.constant 0 : i32
    return %c0_i32, %c0_i32_0 : i32, i32
  }
  func.func @transform_2(%arg0: i32) -> (i32, i32) {
    %c0_i32 = arith.constant 0 : i32
    %c0_i32_0 = arith.constant 0 : i32
    %c0_i32_1 = arith.constant 0 : i32
    return %c0_i32, %c0_i32_0 : i32, i32
  }
  func.func @transform_3(%arg0: i32) -> (i32, i32) {
    %c0_i32 = arith.constant 0 : i32
    %c0_i32_0 = arith.constant 0 : i32
    %c0_i32_1 = arith.constant 0 : i32
    return %c0_i32, %c0_i32_0 : i32, i32
  }
  func.func @transform_4(%arg0: i32) -> (i32, i32) {
    %c0_i32 = arith.constant 0 : i32
    %c0_i32_0 = arith.constant 0 : i32
    %c0_i32_1 = arith.constant 0 : i32
    return %c0_i32, %c0_i32_0 : i32, i32
  }
  func.func @transform_5(%arg0: i32) -> (i32, i32) {
    %c0_i32 = arith.constant 0 : i32
    %c0_i32_0 = arith.constant 0 : i32
    %c0_i32_1 = arith.constant 0 : i32
    return %c0_i32, %c0_i32_0 : i32, i32
  }
  func.func @transform_6(%arg0: i32) -> (i32, i32) {
    %c0_i32 = arith.constant 0 : i32
    %c0_i32_0 = arith.constant 0 : i32
    %c0_i32_1 = arith.constant 0 : i32
    return %c0_i32, %c0_i32_0 : i32, i32
  }
  func.func @transform_7(%arg0: i32) -> (i32, i32) {
    %c0_i32 = arith.constant 0 : i32
    %c0_i32_0 = arith.constant 0 : i32
    %c0_i32_1 = arith.constant 0 : i32
    return %c0_i32, %c0_i32_0 : i32, i32
  }
  func.func @transform_8(%arg0: i32) -> (i32, i32) {
    %c0_i32 = arith.constant 0 : i32
    %c0_i32_0 = arith.constant 0 : i32
    %c0_i32_1 = arith.constant 0 : i32
    return %c0_i32, %c0_i32_0 : i32, i32
  }
}

module attributes {stable_mosaic.version = 11 : i64} {
  func.func @_encoder_kernel(%arg0: i32, %arg1: memref<128x128xf32, #tpu.memory_space<vmem>>, %arg2: memref<128x64xf32, #tpu.memory_space<vmem>>, %arg3: memref<1x64xf32, #tpu.memory_space<vmem>>, %arg4: memref<1x64xf32, #tpu.memory_space<vmem>>, %arg5: memref<1x64x192xbf16, #tpu.memory_space<vmem>>, %arg6: memref<1x1x192xf32, #tpu.memory_space<vmem>>, %arg7: memref<1x64x64xbf16, #tpu.memory_space<vmem>>, %arg8: memref<1x1x64xf32, #tpu.memory_space<vmem>>, %arg9: memref<1x1x64xf32, #tpu.memory_space<vmem>>, %arg10: memref<1x1x64xf32, #tpu.memory_space<vmem>>, %arg11: memref<1x64x128xbf16, #tpu.memory_space<vmem>>, %arg12: memref<1x1x128xf32, #tpu.memory_space<vmem>>, %arg13: memref<1x128x64xbf16, #tpu.memory_space<vmem>>, %arg14: memref<1x1x64xf32, #tpu.memory_space<vmem>>, %arg15: memref<1x1x64xf32, #tpu.memory_space<vmem>>, %arg16: memref<1x1x64xf32, #tpu.memory_space<vmem>>, %arg17: memref<128x64xf32, #tpu.memory_space<vmem>>, %arg18: memref<128x64xf32, #tpu.memory_space<vmem>>) attributes {dimension_semantics = [#tpu.dimension_semantics<arbitrary>], iteration_bounds = array<i64: 2>, scalar_prefetch = 0 : i64, scratch_operands = 1 : i64, tpu.core_type = #tpu.core_type<tc>, window_params = [{pipeline_mode = #tpu.pipeline_mode<synchronous>, transform_indices = @transform_0, window_bounds = array<i64: 128, 128>}, {pipeline_mode = #tpu.pipeline_mode<synchronous>, transform_indices = @transform_1, window_bounds = array<i64: 128, 64>}, {pipeline_mode = #tpu.pipeline_mode<synchronous>, transform_indices = @transform_2, window_bounds = array<i64: 1, 64>}, {pipeline_mode = #tpu.pipeline_mode<synchronous>, transform_indices = @transform_3, window_bounds = array<i64: 1, 64>}, {transform_indices = @transform_4, window_bounds = array<i64: 1, 64, 192>}, {transform_indices = @transform_5, window_bounds = array<i64: 1, 1, 192>}, {transform_indices = @transform_6, window_bounds = array<i64: 1, 64, 64>}, {transform_indices = @transform_7, window_bounds = array<i64: 1, 1, 64>}, {transform_indices = @transform_8, window_bounds = array<i64: 1, 1, 64>}, {transform_indices = @transform_9, window_bounds = array<i64: 1, 1, 64>}, {transform_indices = @transform_10, window_bounds = array<i64: 1, 64, 128>}, {transform_indices = @transform_11, window_bounds = array<i64: 1, 1, 128>}, {transform_indices = @transform_12, window_bounds = array<i64: 1, 128, 64>}, {transform_indices = @transform_13, window_bounds = array<i64: 1, 1, 64>}, {transform_indices = @transform_14, window_bounds = array<i64: 1, 1, 64>}, {transform_indices = @transform_15, window_bounds = array<i64: 1, 1, 64>}, {pipeline_mode = #tpu.pipeline_mode<synchronous>, transform_indices = @transform_16, window_bounds = array<i64: 128, 64>}]} {
    %c0_i32 = arith.constant 0 : i32
    %0 = arith.cmpi eq, %arg0, %c0_i32 : i32
    %1 = arith.extui %0 : i1 to i32
    %c0_i32_0 = arith.constant 0 : i32
    %2 = arith.cmpi ne, %1, %c0_i32_0 : i32
    scf.if %2 {
      %c0_85 = arith.constant 0 : index
      %c0_86 = arith.constant 0 : index
      %194 = vector.load %arg2[%c0_85, %c0_86] : memref<128x64xf32, #tpu.memory_space<vmem>>, vector<128x64xf32>
      %c0_87 = arith.constant 0 : index
      %c0_88 = arith.constant 0 : index
      %195 = vector.load %arg3[%c0_87, %c0_88] : memref<1x64xf32, #tpu.memory_space<vmem>>, vector<1x64xf32>
      %c0_89 = arith.constant 0 : index
      %c0_90 = arith.constant 0 : index
      %196 = vector.load %arg4[%c0_89, %c0_90] : memref<1x64xf32, #tpu.memory_space<vmem>>, vector<1x64xf32>
      %cst_91 = arith.constant dense<0.000000e+00> : vector<128xf32>
      %197 = vector.multi_reduction <add>, %194, %cst_91 [1] : vector<128x64xf32> to vector<128xf32>
      %198 = vector.shape_cast %197 : vector<128xf32> to vector<128x1xf32>
      %cst_92 = arith.constant 6.400000e+01 : f32
      %199 = vector.broadcast %cst_92 : f32 to vector<128x1xf32>
      %200 = arith.divf %198, %199 : vector<128x1xf32>
      %201 = vector.broadcast %200 : vector<128x1xf32> to vector<128x64xf32>
      %202 = arith.subf %194, %201 : vector<128x64xf32>
      %203 = arith.mulf %202, %202 : vector<128x64xf32>
      %cst_93 = arith.constant dense<0.000000e+00> : vector<128xf32>
      %204 = vector.multi_reduction <add>, %203, %cst_93 [1] : vector<128x64xf32> to vector<128xf32>
      %205 = vector.shape_cast %204 : vector<128xf32> to vector<128x1xf32>
      %cst_94 = arith.constant 6.400000e+01 : f32
      %206 = vector.broadcast %cst_94 : f32 to vector<128x1xf32>
      %207 = arith.divf %205, %206 : vector<128x1xf32>
      %208 = vector.broadcast %200 : vector<128x1xf32> to vector<128x64xf32>
      %209 = arith.subf %194, %208 : vector<128x64xf32>
      %cst_95 = arith.constant 9.99999996E-13 : f32
      %210 = vector.broadcast %cst_95 : f32 to vector<128x1xf32>
      %211 = arith.addf %207, %210 : vector<128x1xf32>
      %212 = math.rsqrt %211 : vector<128x1xf32>
      %213 = vector.broadcast %212 : vector<128x1xf32> to vector<128x64xf32>
      %214 = arith.mulf %209, %213 : vector<128x64xf32>
      %215 = vector.broadcast %195 : vector<1x64xf32> to vector<128x64xf32>
      %216 = arith.mulf %214, %215 : vector<128x64xf32>
      %217 = vector.broadcast %196 : vector<1x64xf32> to vector<128x64xf32>
      %218 = arith.addf %216, %217 : vector<128x64xf32>
      %c0_96 = arith.constant 0 : index
      %c0_97 = arith.constant 0 : index
      %219 = vector.load %arg18[%c0_96, %c0_97] : memref<128x64xf32, #tpu.memory_space<vmem>>, vector<128x64xf32>
      tpu.vector_store %arg18[%c0_96, %c0_97], %218 {strides = array<i32>} : memref<128x64xf32, #tpu.memory_space<vmem>>, vector<128x64xf32>,
    } else {
    }
    %c0 = arith.constant 0 : index
    %c0_1 = arith.constant 0 : index
    %3 = vector.load %arg18[%c0, %c0_1] : memref<128x64xf32, #tpu.memory_space<vmem>>, vector<128x64xf32>
    %c0_2 = arith.constant 0 : index
    %c0_3 = arith.constant 0 : index
    %4 = vector.load %arg1[%c0_2, %c0_3] : memref<128x128xf32, #tpu.memory_space<vmem>>, vector<128x128xf32>
    %5 = arith.truncf %3 : vector<128x64xf32> to vector<128x64xbf16>
    %c0_4 = arith.constant 0 : index
    %c0_5 = arith.constant 0 : index
    %c0_6 = arith.constant 0 : index
    %6 = vector.load %arg5[%c0_4, %c0_5, %c0_6] : memref<1x64x192xbf16, #tpu.memory_space<vmem>>, vector<1x64x192xbf16>
    %7 = vector.shape_cast %6 : vector<1x64x192xbf16> to vector<64x192xbf16>
    %cst = arith.constant dense<0.000000e+00> : vector<128x192xf32>
    %8 = tpu.matmul %5, %7, %cst {dimension_numbers = #tpu.dot_dimension_numbers<[1], [0], [0], [1], [0, 0, 1, 1], [], []>} : vector<128x64xbf16>, vector<64x192xbf16>, vector<128x192xf32> -> vector<128x192xf32>
    %c0_7 = arith.constant 0 : index
    %c0_8 = arith.constant 0 : index
    %c0_9 = arith.constant 0 : index
    %9 = vector.load %arg6[%c0_7, %c0_8, %c0_9] : memref<1x1x192xf32, #tpu.memory_space<vmem>>, vector<1x1x192xf32>
    %10 = vector.shape_cast %9 : vector<1x1x192xf32> to vector<1x192xf32>
    %11 = vector.broadcast %10 : vector<1x192xf32> to vector<128x192xf32>
    %12 = arith.addf %8, %11 : vector<128x192xf32>
    %13 = arith.truncf %12 : vector<128x192xf32> to vector<128x192xbf16>
    %c0_10 = arith.constant 0 : index
    %c0_11 = arith.constant 0 : index
    %c0_12 = arith.constant 0 : index
    %14 = vector.load %arg7[%c0_10, %c0_11, %c0_12] : memref<1x64x64xbf16, #tpu.memory_space<vmem>>, vector<1x64x64xbf16>
    %15 = vector.shape_cast %14 : vector<1x64x64xbf16> to vector<64x64xbf16>
    %cst_13 = arith.constant 0.000000e+00 : f32
    %16 = vector.broadcast %cst_13 : f32 to vector<128x64xf32>
    %17 = vector.extract_strided_slice %13 {offsets = [0, 0], sizes = [128, 16], strides = [1, 1]} : vector<128x192xbf16> to vector<128x16xbf16>
    %18 = vector.extract_strided_slice %13 {offsets = [0, 64], sizes = [128, 16], strides = [1, 1]} : vector<128x192xbf16> to vector<128x16xbf16>
    %19 = vector.extract_strided_slice %13 {offsets = [0, 128], sizes = [128, 16], strides = [1, 1]} : vector<128x192xbf16> to vector<128x16xbf16>
    %cst_14 = arith.constant dense<0.000000e+00> : vector<128x128xf32>
    %20 = tpu.matmul %17, %18, %cst_14 {dimension_numbers = #tpu.dot_dimension_numbers<[1], [1], [0], [0], [0, 0, 1, 0], [], []>} : vector<128x16xbf16>, vector<128x16xbf16>, vector<128x128xf32> -> vector<128x128xf32>
    %cst_15 = arith.constant 2.500000e-01 : f32
    %21 = vector.broadcast %cst_15 : f32 to vector<128x128xf32>
    %22 = arith.mulf %20, %21 : vector<128x128xf32>
    %23 = arith.addf %22, %4 : vector<128x128xf32>
    %cst_16 = arith.constant dense<0xFF800000> : vector<128xf32>
    %24 = vector.multi_reduction <maximumf>, %23, %cst_16 [1] : vector<128x128xf32> to vector<128xf32>
    %25 = vector.shape_cast %24 : vector<128xf32> to vector<128x1xf32>
    %26 = vector.broadcast %25 : vector<128x1xf32> to vector<128x128xf32>
    %27 = arith.subf %23, %26 : vector<128x128xf32>
    %28 = math.exp %27 : vector<128x128xf32>
    %cst_17 = arith.constant dense<0.000000e+00> : vector<128xf32>
    %29 = vector.multi_reduction <add>, %28, %cst_17 [1] : vector<128x128xf32> to vector<128xf32>
    %30 = vector.shape_cast %29 : vector<128xf32> to vector<128x1xf32>
    %31 = vector.broadcast %30 : vector<128x1xf32> to vector<128x128xf32>
    %32 = arith.divf %28, %31 : vector<128x128xf32>
    %33 = arith.truncf %32 : vector<128x128xf32> to vector<128x128xbf16>
    %cst_18 = arith.constant dense<0.000000e+00> : vector<128x16xf32>
    %34 = tpu.matmul %33, %19, %cst_18 {dimension_numbers = #tpu.dot_dimension_numbers<[1], [0], [0], [1], [0, 0, 1, 1], [], []>} : vector<128x128xbf16>, vector<128x16xbf16>, vector<128x16xf32> -> vector<128x16xf32>
    %35 = arith.truncf %34 : vector<128x16xf32> to vector<128x16xbf16>
    %36 = vector.extract_strided_slice %15 {offsets = [0, 0], sizes = [16, 64], strides = [1, 1]} : vector<64x64xbf16> to vector<16x64xbf16>
    %cst_19 = arith.constant dense<0.000000e+00> : vector<128x64xf32>
    %37 = tpu.matmul %35, %36, %cst_19 {dimension_numbers = #tpu.dot_dimension_numbers<[1], [0], [0], [1], [0, 0, 1, 1], [], []>} : vector<128x16xbf16>, vector<16x64xbf16>, vector<128x64xf32> -> vector<128x64xf32>
    %38 = arith.addf %16, %37 : vector<128x64xf32>
    %39 = vector.extract_strided_slice %13 {offsets = [0, 16], sizes = [128, 16], strides = [1, 1]} : vector<128x192xbf16> to vector<128x16xbf16>
    %40 = vector.extract_strided_slice %13 {offsets = [0, 80], sizes = [128, 16], strides = [1, 1]} : vector<128x192xbf16> to vector<128x16xbf16>
    %41 = vector.extract_strided_slice %13 {offsets = [0, 144], sizes = [128, 16], strides = [1, 1]} : vector<128x192xbf16> to vector<128x16xbf16>
    %cst_20 = arith.constant dense<0.000000e+00> : vector<128x128xf32>
    %42 = tpu.matmul %39, %40, %cst_20 {dimension_numbers = #tpu.dot_dimension_numbers<[1], [1], [0], [0], [0, 0, 1, 0], [], []>} : vector<128x16xbf16>, vector<128x16xbf16>, vector<128x128xf32> -> vector<128x128xf32>
    %cst_21 = arith.constant 2.500000e-01 : f32
    %43 = vector.broadcast %cst_21 : f32 to vector<128x128xf32>
    %44 = arith.mulf %42, %43 : vector<128x128xf32>
    %45 = arith.addf %44, %4 : vector<128x128xf32>
    %cst_22 = arith.constant dense<0xFF800000> : vector<128xf32>
    %46 = vector.multi_reduction <maximumf>, %45, %cst_22 [1] : vector<128x128xf32> to vector<128xf32>
    %47 = vector.shape_cast %46 : vector<128xf32> to vector<128x1xf32>
    %48 = vector.broadcast %47 : vector<128x1xf32> to vector<128x128xf32>
    %49 = arith.subf %45, %48 : vector<128x128xf32>
    %50 = math.exp %49 : vector<128x128xf32>
    %cst_23 = arith.constant dense<0.000000e+00> : vector<128xf32>
    %51 = vector.multi_reduction <add>, %50, %cst_23 [1] : vector<128x128xf32> to vector<128xf32>
    %52 = vector.shape_cast %51 : vector<128xf32> to vector<128x1xf32>
    %53 = vector.broadcast %52 : vector<128x1xf32> to vector<128x128xf32>
    %54 = arith.divf %50, %53 : vector<128x128xf32>
    %55 = arith.truncf %54 : vector<128x128xf32> to vector<128x128xbf16>
    %cst_24 = arith.constant dense<0.000000e+00> : vector<128x16xf32>
    %56 = tpu.matmul %55, %41, %cst_24 {dimension_numbers = #tpu.dot_dimension_numbers<[1], [0], [0], [1], [0, 0, 1, 1], [], []>} : vector<128x128xbf16>, vector<128x16xbf16>, vector<128x16xf32> -> vector<128x16xf32>
    %57 = arith.truncf %56 : vector<128x16xf32> to vector<128x16xbf16>
    %58 = vector.extract_strided_slice %15 {offsets = [16, 0], sizes = [16, 64], strides = [1, 1]} : vector<64x64xbf16> to vector<16x64xbf16>
    %cst_25 = arith.constant dense<0.000000e+00> : vector<128x64xf32>
    %59 = tpu.matmul %57, %58, %cst_25 {dimension_numbers = #tpu.dot_dimension_numbers<[1], [0], [0], [1], [0, 0, 1, 1], [], []>} : vector<128x16xbf16>, vector<16x64xbf16>, vector<128x64xf32> -> vector<128x64xf32>
    %60 = arith.addf %38, %59 : vector<128x64xf32>
    %61 = vector.extract_strided_slice %13 {offsets = [0, 32], sizes = [128, 16], strides = [1, 1]} : vector<128x192xbf16> to vector<128x16xbf16>
    %62 = vector.extract_strided_slice %13 {offsets = [0, 96], sizes = [128, 16], strides = [1, 1]} : vector<128x192xbf16> to vector<128x16xbf16>
    %63 = vector.extract_strided_slice %13 {offsets = [0, 160], sizes = [128, 16], strides = [1, 1]} : vector<128x192xbf16> to vector<128x16xbf16>
    %cst_26 = arith.constant dense<0.000000e+00> : vector<128x128xf32>
    %64 = tpu.matmul %61, %62, %cst_26 {dimension_numbers = #tpu.dot_dimension_numbers<[1], [1], [0], [0], [0, 0, 1, 0], [], []>} : vector<128x16xbf16>, vector<128x16xbf16>, vector<128x128xf32> -> vector<128x128xf32>
    %cst_27 = arith.constant 2.500000e-01 : f32
    %65 = vector.broadcast %cst_27 : f32 to vector<128x128xf32>
    %66 = arith.mulf %64, %65 : vector<128x128xf32>
    %67 = arith.addf %66, %4 : vector<128x128xf32>
    %cst_28 = arith.constant dense<0xFF800000> : vector<128xf32>
    %68 = vector.multi_reduction <maximumf>, %67, %cst_28 [1] : vector<128x128xf32> to vector<128xf32>
    %69 = vector.shape_cast %68 : vector<128xf32> to vector<128x1xf32>
    %70 = vector.broadcast %69 : vector<128x1xf32> to vector<128x128xf32>
    %71 = arith.subf %67, %70 : vector<128x128xf32>
    %72 = math.exp %71 : vector<128x128xf32>
    %cst_29 = arith.constant dense<0.000000e+00> : vector<128xf32>
    %73 = vector.multi_reduction <add>, %72, %cst_29 [1] : vector<128x128xf32> to vector<128xf32>
    %74 = vector.shape_cast %73 : vector<128xf32> to vector<128x1xf32>
    %75 = vector.broadcast %74 : vector<128x1xf32> to vector<128x128xf32>
    %76 = arith.divf %72, %75 : vector<128x128xf32>
    %77 = arith.truncf %76 : vector<128x128xf32> to vector<128x128xbf16>
    %cst_30 = arith.constant dense<0.000000e+00> : vector<128x16xf32>
    %78 = tpu.matmul %77, %63, %cst_30 {dimension_numbers = #tpu.dot_dimension_numbers<[1], [0], [0], [1], [0, 0, 1, 1], [], []>} : vector<128x128xbf16>, vector<128x16xbf16>, vector<128x16xf32> -> vector<128x16xf32>
    %79 = arith.truncf %78 : vector<128x16xf32> to vector<128x16xbf16>
    %80 = vector.extract_strided_slice %15 {offsets = [32, 0], sizes = [16, 64], strides = [1, 1]} : vector<64x64xbf16> to vector<16x64xbf16>
    %cst_31 = arith.constant dense<0.000000e+00> : vector<128x64xf32>
    %81 = tpu.matmul %79, %80, %cst_31 {dimension_numbers = #tpu.dot_dimension_numbers<[1], [0], [0], [1], [0, 0, 1, 1], [], []>} : vector<128x16xbf16>, vector<16x64xbf16>, vector<128x64xf32> -> vector<128x64xf32>
    %82 = arith.addf %60, %81 : vector<128x64xf32>
    %83 = vector.extract_strided_slice %13 {offsets = [0, 48], sizes = [128, 16], strides = [1, 1]} : vector<128x192xbf16> to vector<128x16xbf16>
    %84 = vector.extract_strided_slice %13 {offsets = [0, 112], sizes = [128, 16], strides = [1, 1]} : vector<128x192xbf16> to vector<128x16xbf16>
    %85 = vector.extract_strided_slice %13 {offsets = [0, 176], sizes = [128, 16], strides = [1, 1]} : vector<128x192xbf16> to vector<128x16xbf16>
    %cst_32 = arith.constant dense<0.000000e+00> : vector<128x128xf32>
    %86 = tpu.matmul %83, %84, %cst_32 {dimension_numbers = #tpu.dot_dimension_numbers<[1], [1], [0], [0], [0, 0, 1, 0], [], []>} : vector<128x16xbf16>, vector<128x16xbf16>, vector<128x128xf32> -> vector<128x128xf32>
    %cst_33 = arith.constant 2.500000e-01 : f32
    %87 = vector.broadcast %cst_33 : f32 to vector<128x128xf32>
    %88 = arith.mulf %86, %87 : vector<128x128xf32>
    %89 = arith.addf %88, %4 : vector<128x128xf32>
    %cst_34 = arith.constant dense<0xFF800000> : vector<128xf32>
    %90 = vector.multi_reduction <maximumf>, %89, %cst_34 [1] : vector<128x128xf32> to vector<128xf32>
    %91 = vector.shape_cast %90 : vector<128xf32> to vector<128x1xf32>
    %92 = vector.broadcast %91 : vector<128x1xf32> to vector<128x128xf32>
    %93 = arith.subf %89, %92 : vector<128x128xf32>
    %94 = math.exp %93 : vector<128x128xf32>
    %cst_35 = arith.constant dense<0.000000e+00> : vector<128xf32>
    %95 = vector.multi_reduction <add>, %94, %cst_35 [1] : vector<128x128xf32> to vector<128xf32>
    %96 = vector.shape_cast %95 : vector<128xf32> to vector<128x1xf32>
    %97 = vector.broadcast %96 : vector<128x1xf32> to vector<128x128xf32>
    %98 = arith.divf %94, %97 : vector<128x128xf32>
    %99 = arith.truncf %98 : vector<128x128xf32> to vector<128x128xbf16>
    %cst_36 = arith.constant dense<0.000000e+00> : vector<128x16xf32>
    %100 = tpu.matmul %99, %85, %cst_36 {dimension_numbers = #tpu.dot_dimension_numbers<[1], [0], [0], [1], [0, 0, 1, 1], [], []>} : vector<128x128xbf16>, vector<128x16xbf16>, vector<128x16xf32> -> vector<128x16xf32>
    %101 = arith.truncf %100 : vector<128x16xf32> to vector<128x16xbf16>
    %102 = vector.extract_strided_slice %15 {offsets = [48, 0], sizes = [16, 64], strides = [1, 1]} : vector<64x64xbf16> to vector<16x64xbf16>
    %cst_37 = arith.constant dense<0.000000e+00> : vector<128x64xf32>
    %103 = tpu.matmul %101, %102, %cst_37 {dimension_numbers = #tpu.dot_dimension_numbers<[1], [0], [0], [1], [0, 0, 1, 1], [], []>} : vector<128x16xbf16>, vector<16x64xbf16>, vector<128x64xf32> -> vector<128x64xf32>
    %104 = arith.addf %82, %103 : vector<128x64xf32>
    %c0_38 = arith.constant 0 : index
    %c0_39 = arith.constant 0 : index
    %c0_40 = arith.constant 0 : index
    %105 = vector.load %arg8[%c0_38, %c0_39, %c0_40] : memref<1x1x64xf32, #tpu.memory_space<vmem>>, vector<1x1x64xf32>
    %106 = vector.shape_cast %105 : vector<1x1x64xf32> to vector<1x64xf32>
    %107 = vector.broadcast %106 : vector<1x64xf32> to vector<128x64xf32>
    %108 = arith.addf %104, %107 : vector<128x64xf32>
    %109 = arith.addf %3, %108 : vector<128x64xf32>
    %c0_41 = arith.constant 0 : index
    %c0_42 = arith.constant 0 : index
    %c0_43 = arith.constant 0 : index
    %110 = vector.load %arg9[%c0_41, %c0_42, %c0_43] : memref<1x1x64xf32, #tpu.memory_space<vmem>>, vector<1x1x64xf32>
    %111 = vector.shape_cast %110 : vector<1x1x64xf32> to vector<1x64xf32>
    %c0_44 = arith.constant 0 : index
    %c0_45 = arith.constant 0 : index
    %c0_46 = arith.constant 0 : index
    %112 = vector.load %arg10[%c0_44, %c0_45, %c0_46] : memref<1x1x64xf32, #tpu.memory_space<vmem>>, vector<1x1x64xf32>
    %113 = vector.shape_cast %112 : vector<1x1x64xf32> to vector<1x64xf32>
    %cst_47 = arith.constant dense<0.000000e+00> : vector<128xf32>
    %114 = vector.multi_reduction <add>, %109, %cst_47 [1] : vector<128x64xf32> to vector<128xf32>
    %115 = vector.shape_cast %114 : vector<128xf32> to vector<128x1xf32>
    %cst_48 = arith.constant 6.400000e+01 : f32
    %116 = vector.broadcast %cst_48 : f32 to vector<128x1xf32>
    %117 = arith.divf %115, %116 : vector<128x1xf32>
    %118 = vector.broadcast %117 : vector<128x1xf32> to vector<128x64xf32>
    %119 = arith.subf %109, %118 : vector<128x64xf32>
    %120 = arith.mulf %119, %119 : vector<128x64xf32>
    %cst_49 = arith.constant dense<0.000000e+00> : vector<128xf32>
    %121 = vector.multi_reduction <add>, %120, %cst_49 [1] : vector<128x64xf32> to vector<128xf32>
    %122 = vector.shape_cast %121 : vector<128xf32> to vector<128x1xf32>
    %cst_50 = arith.constant 6.400000e+01 : f32
    %123 = vector.broadcast %cst_50 : f32 to vector<128x1xf32>
    %124 = arith.divf %122, %123 : vector<128x1xf32>
    %125 = vector.broadcast %117 : vector<128x1xf32> to vector<128x64xf32>
    %126 = arith.subf %109, %125 : vector<128x64xf32>
    %cst_51 = arith.constant 9.99999996E-13 : f32
    %127 = vector.broadcast %cst_51 : f32 to vector<128x1xf32>
    %128 = arith.addf %124, %127 : vector<128x1xf32>
    %129 = math.rsqrt %128 : vector<128x1xf32>
    %130 = vector.broadcast %129 : vector<128x1xf32> to vector<128x64xf32>
    %131 = arith.mulf %126, %130 : vector<128x64xf32>
    %132 = vector.broadcast %111 : vector<1x64xf32> to vector<128x64xf32>
    %133 = arith.mulf %131, %132 : vector<128x64xf32>
    %134 = vector.broadcast %113 : vector<1x64xf32> to vector<128x64xf32>
    %135 = arith.addf %133, %134 : vector<128x64xf32>
    %136 = arith.truncf %135 : vector<128x64xf32> to vector<128x64xbf16>
    %c0_52 = arith.constant 0 : index
    %c0_53 = arith.constant 0 : index
    %c0_54 = arith.constant 0 : index
    %137 = vector.load %arg11[%c0_52, %c0_53, %c0_54] : memref<1x64x128xbf16, #tpu.memory_space<vmem>>, vector<1x64x128xbf16>
    %138 = vector.shape_cast %137 : vector<1x64x128xbf16> to vector<64x128xbf16>
    %cst_55 = arith.constant dense<0.000000e+00> : vector<128x128xf32>
    %139 = tpu.matmul %136, %138, %cst_55 {dimension_numbers = #tpu.dot_dimension_numbers<[1], [0], [0], [1], [0, 0, 1, 1], [], []>} : vector<128x64xbf16>, vector<64x128xbf16>, vector<128x128xf32> -> vector<128x128xf32>
    %c0_56 = arith.constant 0 : index
    %c0_57 = arith.constant 0 : index
    %c0_58 = arith.constant 0 : index
    %140 = vector.load %arg12[%c0_56, %c0_57, %c0_58] : memref<1x1x128xf32, #tpu.memory_space<vmem>>, vector<1x1x128xf32>
    %141 = vector.shape_cast %140 : vector<1x1x128xf32> to vector<1x128xf32>
    %142 = vector.broadcast %141 : vector<1x128xf32> to vector<128x128xf32>
    %143 = arith.addf %139, %142 : vector<128x128xf32>
    %cst_59 = arith.constant 5.000000e-01 : f32
    %144 = vector.broadcast %cst_59 : f32 to vector<128x128xf32>
    %145 = arith.mulf %144, %143 : vector<128x128xf32>
    %cst_60 = arith.constant 4.471500e-02 : f32
    %146 = vector.broadcast %cst_60 : f32 to vector<128x128xf32>
    %147 = arith.mulf %146, %143 : vector<128x128xf32>
    %148 = arith.mulf %147, %143 : vector<128x128xf32>
    %149 = arith.mulf %148, %143 : vector<128x128xf32>
    %150 = arith.addf %143, %149 : vector<128x128xf32>
    %cst_61 = arith.constant 0.797884583 : f32
    %151 = vector.broadcast %cst_61 : f32 to vector<128x128xf32>
    %152 = arith.mulf %151, %150 : vector<128x128xf32>
    %153 = math.tanh %152 : vector<128x128xf32>
    %cst_62 = arith.constant 1.000000e+00 : f32
    %154 = vector.broadcast %cst_62 : f32 to vector<128x128xf32>
    %155 = arith.addf %154, %153 : vector<128x128xf32>
    %156 = arith.mulf %145, %155 : vector<128x128xf32>
    %157 = arith.truncf %156 : vector<128x128xf32> to vector<128x128xbf16>
    %c0_63 = arith.constant 0 : index
    %c0_64 = arith.constant 0 : index
    %c0_65 = arith.constant 0 : index
    %158 = vector.load %arg13[%c0_63, %c0_64, %c0_65] : memref<1x128x64xbf16, #tpu.memory_space<vmem>>, vector<1x128x64xbf16>
    %159 = vector.shape_cast %158 : vector<1x128x64xbf16> to vector<128x64xbf16>
    %cst_66 = arith.constant dense<0.000000e+00> : vector<128x64xf32>
    %160 = tpu.matmul %157, %159, %cst_66 {dimension_numbers = #tpu.dot_dimension_numbers<[1], [0], [0], [1], [0, 0, 1, 1], [], []>} : vector<128x128xbf16>, vector<128x64xbf16>, vector<128x64xf32> -> vector<128x64xf32>
    %c0_67 = arith.constant 0 : index
    %c0_68 = arith.constant 0 : index
    %c0_69 = arith.constant 0 : index
    %161 = vector.load %arg14[%c0_67, %c0_68, %c0_69] : memref<1x1x64xf32, #tpu.memory_space<vmem>>, vector<1x1x64xf32>
    %162 = vector.shape_cast %161 : vector<1x1x64xf32> to vector<1x64xf32>
    %163 = vector.broadcast %162 : vector<1x64xf32> to vector<128x64xf32>
    %164 = arith.addf %160, %163 : vector<128x64xf32>
    %165 = arith.addf %135, %164 : vector<128x64xf32>
    %c0_70 = arith.constant 0 : index
    %c0_71 = arith.constant 0 : index
    %c0_72 = arith.constant 0 : index
    %166 = vector.load %arg15[%c0_70, %c0_71, %c0_72] : memref<1x1x64xf32, #tpu.memory_space<vmem>>, vector<1x1x64xf32>
    %167 = vector.shape_cast %166 : vector<1x1x64xf32> to vector<1x64xf32>
    %c0_73 = arith.constant 0 : index
    %c0_74 = arith.constant 0 : index
    %c0_75 = arith.constant 0 : index
    %168 = vector.load %arg16[%c0_73, %c0_74, %c0_75] : memref<1x1x64xf32, #tpu.memory_space<vmem>>, vector<1x1x64xf32>
    %169 = vector.shape_cast %168 : vector<1x1x64xf32> to vector<1x64xf32>
    %cst_76 = arith.constant dense<0.000000e+00> : vector<128xf32>
    %170 = vector.multi_reduction <add>, %165, %cst_76 [1] : vector<128x64xf32> to vector<128xf32>
    %171 = vector.shape_cast %170 : vector<128xf32> to vector<128x1xf32>
    %cst_77 = arith.constant 6.400000e+01 : f32
    %172 = vector.broadcast %cst_77 : f32 to vector<128x1xf32>
    %173 = arith.divf %171, %172 : vector<128x1xf32>
    %174 = vector.broadcast %173 : vector<128x1xf32> to vector<128x64xf32>
    %175 = arith.subf %165, %174 : vector<128x64xf32>
    %176 = arith.mulf %175, %175 : vector<128x64xf32>
    %cst_78 = arith.constant dense<0.000000e+00> : vector<128xf32>
    %177 = vector.multi_reduction <add>, %176, %cst_78 [1] : vector<128x64xf32> to vector<128xf32>
    %178 = vector.shape_cast %177 : vector<128xf32> to vector<128x1xf32>
    %cst_79 = arith.constant 6.400000e+01 : f32
    %179 = vector.broadcast %cst_79 : f32 to vector<128x1xf32>
    %180 = arith.divf %178, %179 : vector<128x1xf32>
    %181 = vector.broadcast %173 : vector<128x1xf32> to vector<128x64xf32>
    %182 = arith.subf %165, %181 : vector<128x64xf32>
    %cst_80 = arith.constant 9.99999996E-13 : f32
    %183 = vector.broadcast %cst_80 : f32 to vector<128x1xf32>
    %184 = arith.addf %180, %183 : vector<128x1xf32>
    %185 = math.rsqrt %184 : vector<128x1xf32>
    %186 = vector.broadcast %185 : vector<128x1xf32> to vector<128x64xf32>
    %187 = arith.mulf %182, %186 : vector<128x64xf32>
    %188 = vector.broadcast %167 : vector<1x64xf32> to vector<128x64xf32>
    %189 = arith.mulf %187, %188 : vector<128x64xf32>
    %190 = vector.broadcast %169 : vector<1x64xf32> to vector<128x64xf32>
    %191 = arith.addf %189, %190 : vector<128x64xf32>
    %c0_81 = arith.constant 0 : index
    %c0_82 = arith.constant 0 : index
    %192 = vector.load %arg18[%c0_81, %c0_82] : memref<128x64xf32, #tpu.memory_space<vmem>>, vector<128x64xf32>
    tpu.vector_store %arg18[%c0_81, %c0_82], %191 {strides = array<i32>} : memref<128x64xf32, #tpu.memory_space<vmem>>, vector<128x64xf32>,
    %c0_83 = arith.constant 0 : index
    %c0_84 = arith.constant 0 : index
    %193 = vector.load %arg17[%c0_83, %c0_84] : memref<128x64xf32, #tpu.memory_space<vmem>>, vector<128x64xf32>
    tpu.vector_store %arg17[%c0_83, %c0_84], %191 {strides = array<i32>} : memref<128x64xf32, #tpu.memory_space<vmem>>, vector<128x64xf32>,
    return
  }
  func.func @transform_0(%arg0: i32) -> (i32, i32) {
    %c0_i32 = arith.constant 0 : i32
    %c0_i32_0 = arith.constant 0 : i32
    %c0_i32_1 = arith.constant 0 : i32
    return %c0_i32, %c0_i32_0 : i32, i32
  }
  func.func @transform_1(%arg0: i32) -> (i32, i32) {
    %c0_i32 = arith.constant 0 : i32
    %c0_i32_0 = arith.constant 0 : i32
    %c0_i32_1 = arith.constant 0 : i32
    return %c0_i32, %c0_i32_0 : i32, i32
  }
  func.func @transform_2(%arg0: i32) -> (i32, i32) {
    %c0_i32 = arith.constant 0 : i32
    %c0_i32_0 = arith.constant 0 : i32
    %c0_i32_1 = arith.constant 0 : i32
    return %c0_i32, %c0_i32_0 : i32, i32
  }
  func.func @transform_3(%arg0: i32) -> (i32, i32) {
    %c0_i32 = arith.constant 0 : i32
    %c0_i32_0 = arith.constant 0 : i32
    %c0_i32_1 = arith.constant 0 : i32
    return %c0_i32, %c0_i32_0 : i32, i32
  }
  func.func @transform_4(%arg0: i32) -> (i32, i32, i32) {
    %c0_i32 = arith.constant 0 : i32
    %c0_i32_0 = arith.constant 0 : i32
    %c0_i32_1 = arith.constant 0 : i32
    return %arg0, %c0_i32, %c0_i32_0 : i32, i32, i32
  }
  func.func @transform_5(%arg0: i32) -> (i32, i32, i32) {
    %c0_i32 = arith.constant 0 : i32
    %c0_i32_0 = arith.constant 0 : i32
    %c0_i32_1 = arith.constant 0 : i32
    return %arg0, %c0_i32, %c0_i32_0 : i32, i32, i32
  }
  func.func @transform_6(%arg0: i32) -> (i32, i32, i32) {
    %c0_i32 = arith.constant 0 : i32
    %c0_i32_0 = arith.constant 0 : i32
    %c0_i32_1 = arith.constant 0 : i32
    return %arg0, %c0_i32, %c0_i32_0 : i32, i32, i32
  }
  func.func @transform_7(%arg0: i32) -> (i32, i32, i32) {
    %c0_i32 = arith.constant 0 : i32
    %c0_i32_0 = arith.constant 0 : i32
    %c0_i32_1 = arith.constant 0 : i32
    return %arg0, %c0_i32, %c0_i32_0 : i32, i32, i32
  }
  func.func @transform_8(%arg0: i32) -> (i32, i32, i32) {
    %c0_i32 = arith.constant 0 : i32
    %c0_i32_0 = arith.constant 0 : i32
    %c0_i32_1 = arith.constant 0 : i32
    return %arg0, %c0_i32, %c0_i32_0 : i32, i32, i32
  }
  func.func @transform_9(%arg0: i32) -> (i32, i32, i32) {
    %c0_i32 = arith.constant 0 : i32
    %c0_i32_0 = arith.constant 0 : i32
    %c0_i32_1 = arith.constant 0 : i32
    return %arg0, %c0_i32, %c0_i32_0 : i32, i32, i32
  }
  func.func @transform_10(%arg0: i32) -> (i32, i32, i32) {
    %c0_i32 = arith.constant 0 : i32
    %c0_i32_0 = arith.constant 0 : i32
    %c0_i32_1 = arith.constant 0 : i32
    return %arg0, %c0_i32, %c0_i32_0 : i32, i32, i32
  }
  func.func @transform_11(%arg0: i32) -> (i32, i32, i32) {
    %c0_i32 = arith.constant 0 : i32
    %c0_i32_0 = arith.constant 0 : i32
    %c0_i32_1 = arith.constant 0 : i32
    return %arg0, %c0_i32, %c0_i32_0 : i32, i32, i32
  }
  func.func @transform_12(%arg0: i32) -> (i32, i32, i32) {
    %c0_i32 = arith.constant 0 : i32
    %c0_i32_0 = arith.constant 0 : i32
    %c0_i32_1 = arith.constant 0 : i32
    return %arg0, %c0_i32, %c0_i32_0 : i32, i32, i32
  }
  func.func @transform_13(%arg0: i32) -> (i32, i32, i32) {
    %c0_i32 = arith.constant 0 : i32
    %c0_i32_0 = arith.constant 0 : i32
    %c0_i32_1 = arith.constant 0 : i32
    return %arg0, %c0_i32, %c0_i32_0 : i32, i32, i32
  }
  func.func @transform_14(%arg0: i32) -> (i32, i32, i32) {
    %c0_i32 = arith.constant 0 : i32
    %c0_i32_0 = arith.constant 0 : i32
    %c0_i32_1 = arith.constant 0 : i32
    return %arg0, %c0_i32, %c0_i32_0 : i32, i32, i32
  }
  func.func @transform_15(%arg0: i32) -> (i32, i32, i32) {
    %c0_i32 = arith.constant 0 : i32
    %c0_i32_0 = arith.constant 0 : i32
    %c0_i32_1 = arith.constant 0 : i32
    return %arg0, %c0_i32, %c0_i32_0 : i32, i32, i32
  }
  func.func @transform_16(%arg0: i32) -> (i32, i32) {
    %c0_i32 = arith.constant 0 : i32
    %c0_i32_0 = arith.constant 0 : i32
    %c0_i32_1 = arith.constant 0 : i32
    return %c0_i32, %c0_i32_0 : i32, i32
  }
}

module attributes {stable_mosaic.version = 11 : i64} {
  func.func @_gcn_kernel(%arg0: i32, %arg1: memref<1x32x300xf32, #tpu.memory_space<vmem>>, %arg2: memref<32x32xf32, #tpu.memory_space<vmem>>, %arg3: memref<4x32xf32, #tpu.memory_space<vmem>>, %arg4: memref<300x128xbf16, #tpu.memory_space<vmem>>, %arg5: memref<2x128xf32, #tpu.memory_space<vmem>>, %arg6: memref<1x128xf32, #tpu.memory_space<vmem>>, %arg7: memref<128x128xbf16, #tpu.memory_space<vmem>>, %arg8: memref<2x128xf32, #tpu.memory_space<vmem>>, %arg9: memref<1x128xf32, #tpu.memory_space<vmem>>, %arg10: memref<1x4x128xf32, #tpu.memory_space<vmem>>) attributes {dimension_semantics = [#tpu.dimension_semantics<parallel>], iteration_bounds = array<i64: 2>, scalar_prefetch = 0 : i64, scratch_operands = 0 : i64, tpu.core_type = #tpu.core_type<tc>, window_params = [{transform_indices = @transform_0, window_bounds = array<i64: 1, 32, 300>}, {pipeline_mode = #tpu.pipeline_mode<synchronous>, transform_indices = @transform_1, window_bounds = array<i64: 32, 32>}, {pipeline_mode = #tpu.pipeline_mode<synchronous>, transform_indices = @transform_2, window_bounds = array<i64: 4, 32>}, {pipeline_mode = #tpu.pipeline_mode<synchronous>, transform_indices = @transform_3, window_bounds = array<i64: 300, 128>}, {pipeline_mode = #tpu.pipeline_mode<synchronous>, transform_indices = @transform_4, window_bounds = array<i64: 2, 128>}, {pipeline_mode = #tpu.pipeline_mode<synchronous>, transform_indices = @transform_5, window_bounds = array<i64: 1, 128>}, {pipeline_mode = #tpu.pipeline_mode<synchronous>, transform_indices = @transform_6, window_bounds = array<i64: 128, 128>}, {pipeline_mode = #tpu.pipeline_mode<synchronous>, transform_indices = @transform_7, window_bounds = array<i64: 2, 128>}, {pipeline_mode = #tpu.pipeline_mode<synchronous>, transform_indices = @transform_8, window_bounds = array<i64: 1, 128>}, {transform_indices = @transform_9, window_bounds = array<i64: 1, 4, 128>}]} {
    %c0 = arith.constant 0 : index
    %c0_0 = arith.constant 0 : index
    %0 = vector.load %arg2[%c0, %c0_0] : memref<32x32xf32, #tpu.memory_space<vmem>>, vector<32x32xf32>
    %c0_1 = arith.constant 0 : index
    %c0_2 = arith.constant 0 : index
    %c0_3 = arith.constant 0 : index
    %1 = vector.load %arg1[%c0_1, %c0_2, %c0_3] : memref<1x32x300xf32, #tpu.memory_space<vmem>>, vector<1x32x300xf32>
    %2 = vector.shape_cast %1 : vector<1x32x300xf32> to vector<32x300xf32>
    %3 = arith.truncf %2 : vector<32x300xf32> to vector<32x300xbf16>
    %c0_4 = arith.constant 0 : index
    %c0_5 = arith.constant 0 : index
    %4 = vector.load %arg4[%c0_4, %c0_5] : memref<300x128xbf16, #tpu.memory_space<vmem>>, vector<300x128xbf16>
    %cst = arith.constant dense<0.000000e+00> : vector<32x128xf32>
    %5 = tpu.matmul %3, %4, %cst {dimension_numbers = #tpu.dot_dimension_numbers<[1], [0], [0], [1], [0, 0, 1, 1], [], []>} : vector<32x300xbf16>, vector<300x128xbf16>, vector<32x128xf32> -> vector<32x128xf32>
    %c0_6 = arith.constant 0 : index
    %c0_7 = arith.constant 0 : index
    %6 = vector.load %arg5[%c0_6, %c0_7] : memref<2x128xf32, #tpu.memory_space<vmem>>, vector<2x128xf32>
    %7 = vector.extract_strided_slice %6 {offsets = [1, 0], sizes = [1, 128], strides = [1, 1]} : vector<2x128xf32> to vector<1x128xf32>
    %8 = vector.broadcast %7 : vector<1x128xf32> to vector<32x128xf32>
    %9 = arith.mulf %5, %8 : vector<32x128xf32>
    %cst_8 = arith.constant dense<0.000000e+00> : vector<32xf32>
    %10 = vector.multi_reduction <add>, %9, %cst_8 [1] : vector<32x128xf32> to vector<32xf32>
    %11 = vector.shape_cast %10 : vector<32xf32> to vector<32x1xf32>
    %12 = vector.extract_strided_slice %6 {offsets = [0, 0], sizes = [1, 128], strides = [1, 1]} : vector<2x128xf32> to vector<1x128xf32>
    %cst_9 = arith.constant dense<0.000000e+00> : vector<1x32xf32>
    %13 = tpu.matmul %12, %5, %cst_9 {dimension_numbers = #tpu.dot_dimension_numbers<[1], [1], [0], [0], [0, 0, 1, 0], [], []>} : vector<1x128xf32>, vector<32x128xf32>, vector<1x32xf32> -> vector<1x32xf32>
    %14 = vector.broadcast %11 : vector<32x1xf32> to vector<32x32xf32>
    %15 = vector.broadcast %13 : vector<1x32xf32> to vector<32x32xf32>
    %16 = arith.addf %14, %15 : vector<32x32xf32>
    %cst_10 = arith.constant 0.000000e+00 : f32
    %17 = vector.broadcast %cst_10 : f32 to vector<32x32xf32>
    %18 = arith.cmpf ogt, %16, %17 : vector<32x32xf32>
    %cst_11 = arith.constant 2.000000e-01 : f32
    %19 = vector.broadcast %cst_11 : f32 to vector<32x32xf32>
    %20 = arith.mulf %19, %16 : vector<32x32xf32>
    %21 = arith.select %18, %16, %20 : vector<32x32xi1>, vector<32x32xf32>
    %22 = arith.addf %21, %0 : vector<32x32xf32>
    %cst_12 = arith.constant dense<0xFF800000> : vector<32xf32>
    %23 = vector.multi_reduction <maximumf>, %22, %cst_12 [1] : vector<32x32xf32> to vector<32xf32>
    %24 = vector.shape_cast %23 : vector<32xf32> to vector<32x1xf32>
    %25 = vector.broadcast %24 : vector<32x1xf32> to vector<32x32xf32>
    %26 = arith.subf %22, %25 : vector<32x32xf32>
    %27 = math.exp %26 : vector<32x32xf32>
    %cst_13 = arith.constant dense<0.000000e+00> : vector<32xf32>
    %28 = vector.multi_reduction <add>, %27, %cst_13 [1] : vector<32x32xf32> to vector<32xf32>
    %29 = vector.shape_cast %28 : vector<32xf32> to vector<32x1xf32>
    %30 = vector.broadcast %29 : vector<32x1xf32> to vector<32x32xf32>
    %31 = arith.divf %27, %30 : vector<32x32xf32>
    %32 = arith.truncf %31 : vector<32x32xf32> to vector<32x32xbf16>
    %33 = arith.truncf %5 : vector<32x128xf32> to vector<32x128xbf16>
    %cst_14 = arith.constant dense<0.000000e+00> : vector<32x128xf32>
    %34 = tpu.matmul %32, %33, %cst_14 {dimension_numbers = #tpu.dot_dimension_numbers<[1], [0], [0], [1], [0, 0, 1, 1], [], []>} : vector<32x32xbf16>, vector<32x128xbf16>, vector<32x128xf32> -> vector<32x128xf32>
    %c0_15 = arith.constant 0 : index
    %c0_16 = arith.constant 0 : index
    %35 = vector.load %arg6[%c0_15, %c0_16] : memref<1x128xf32, #tpu.memory_space<vmem>>, vector<1x128xf32>
    %36 = vector.broadcast %35 : vector<1x128xf32> to vector<32x128xf32>
    %37 = arith.addf %34, %36 : vector<32x128xf32>
    %cst_17 = arith.constant 5.000000e-01 : f32
    %38 = vector.broadcast %cst_17 : f32 to vector<32x128xf32>
    %39 = arith.mulf %38, %37 : vector<32x128xf32>
    %cst_18 = arith.constant 4.471500e-02 : f32
    %40 = vector.broadcast %cst_18 : f32 to vector<32x128xf32>
    %41 = arith.mulf %40, %37 : vector<32x128xf32>
    %42 = arith.mulf %41, %37 : vector<32x128xf32>
    %43 = arith.mulf %42, %37 : vector<32x128xf32>
    %44 = arith.addf %37, %43 : vector<32x128xf32>
    %cst_19 = arith.constant 0.797884583 : f32
    %45 = vector.broadcast %cst_19 : f32 to vector<32x128xf32>
    %46 = arith.mulf %45, %44 : vector<32x128xf32>
    %47 = math.tanh %46 : vector<32x128xf32>
    %cst_20 = arith.constant 1.000000e+00 : f32
    %48 = vector.broadcast %cst_20 : f32 to vector<32x128xf32>
    %49 = arith.addf %48, %47 : vector<32x128xf32>
    %50 = arith.mulf %39, %49 : vector<32x128xf32>
    %51 = arith.truncf %50 : vector<32x128xf32> to vector<32x128xbf16>
    %c0_21 = arith.constant 0 : index
    %c0_22 = arith.constant 0 : index
    %52 = vector.load %arg7[%c0_21, %c0_22] : memref<128x128xbf16, #tpu.memory_space<vmem>>, vector<128x128xbf16>
    %cst_23 = arith.constant dense<0.000000e+00> : vector<32x128xf32>
    %53 = tpu.matmul %51, %52, %cst_23 {dimension_numbers = #tpu.dot_dimension_numbers<[1], [0], [0], [1], [0, 0, 1, 1], [], []>} : vector<32x128xbf16>, vector<128x128xbf16>, vector<32x128xf32> -> vector<32x128xf32>
    %c0_24 = arith.constant 0 : index
    %c0_25 = arith.constant 0 : index
    %54 = vector.load %arg8[%c0_24, %c0_25] : memref<2x128xf32, #tpu.memory_space<vmem>>, vector<2x128xf32>
    %55 = vector.extract_strided_slice %54 {offsets = [1, 0], sizes = [1, 128], strides = [1, 1]} : vector<2x128xf32> to vector<1x128xf32>
    %56 = vector.broadcast %55 : vector<1x128xf32> to vector<32x128xf32>
    %57 = arith.mulf %53, %56 : vector<32x128xf32>
    %cst_26 = arith.constant dense<0.000000e+00> : vector<32xf32>
    %58 = vector.multi_reduction <add>, %57, %cst_26 [1] : vector<32x128xf32> to vector<32xf32>
    %59 = vector.shape_cast %58 : vector<32xf32> to vector<32x1xf32>
    %60 = vector.extract_strided_slice %54 {offsets = [0, 0], sizes = [1, 128], strides = [1, 1]} : vector<2x128xf32> to vector<1x128xf32>
    %cst_27 = arith.constant dense<0.000000e+00> : vector<1x32xf32>
    %61 = tpu.matmul %60, %53, %cst_27 {dimension_numbers = #tpu.dot_dimension_numbers<[1], [1], [0], [0], [0, 0, 1, 0], [], []>} : vector<1x128xf32>, vector<32x128xf32>, vector<1x32xf32> -> vector<1x32xf32>
    %62 = vector.broadcast %59 : vector<32x1xf32> to vector<32x32xf32>
    %63 = vector.broadcast %61 : vector<1x32xf32> to vector<32x32xf32>
    %64 = arith.addf %62, %63 : vector<32x32xf32>
    %cst_28 = arith.constant 0.000000e+00 : f32
    %65 = vector.broadcast %cst_28 : f32 to vector<32x32xf32>
    %66 = arith.cmpf ogt, %64, %65 : vector<32x32xf32>
    %cst_29 = arith.constant 2.000000e-01 : f32
    %67 = vector.broadcast %cst_29 : f32 to vector<32x32xf32>
    %68 = arith.mulf %67, %64 : vector<32x32xf32>
    %69 = arith.select %66, %64, %68 : vector<32x32xi1>, vector<32x32xf32>
    %70 = arith.addf %69, %0 : vector<32x32xf32>
    %cst_30 = arith.constant dense<0xFF800000> : vector<32xf32>
    %71 = vector.multi_reduction <maximumf>, %70, %cst_30 [1] : vector<32x32xf32> to vector<32xf32>
    %72 = vector.shape_cast %71 : vector<32xf32> to vector<32x1xf32>
    %73 = vector.broadcast %72 : vector<32x1xf32> to vector<32x32xf32>
    %74 = arith.subf %70, %73 : vector<32x32xf32>
    %75 = math.exp %74 : vector<32x32xf32>
    %cst_31 = arith.constant dense<0.000000e+00> : vector<32xf32>
    %76 = vector.multi_reduction <add>, %75, %cst_31 [1] : vector<32x32xf32> to vector<32xf32>
    %77 = vector.shape_cast %76 : vector<32xf32> to vector<32x1xf32>
    %78 = vector.broadcast %77 : vector<32x1xf32> to vector<32x32xf32>
    %79 = arith.divf %75, %78 : vector<32x32xf32>
    %80 = arith.truncf %79 : vector<32x32xf32> to vector<32x32xbf16>
    %81 = arith.truncf %53 : vector<32x128xf32> to vector<32x128xbf16>
    %cst_32 = arith.constant dense<0.000000e+00> : vector<32x128xf32>
    %82 = tpu.matmul %80, %81, %cst_32 {dimension_numbers = #tpu.dot_dimension_numbers<[1], [0], [0], [1], [0, 0, 1, 1], [], []>} : vector<32x32xbf16>, vector<32x128xbf16>, vector<32x128xf32> -> vector<32x128xf32>
    %c0_33 = arith.constant 0 : index
    %c0_34 = arith.constant 0 : index
    %83 = vector.load %arg9[%c0_33, %c0_34] : memref<1x128xf32, #tpu.memory_space<vmem>>, vector<1x128xf32>
    %84 = vector.broadcast %83 : vector<1x128xf32> to vector<32x128xf32>
    %85 = arith.addf %82, %84 : vector<32x128xf32>
    %c0_35 = arith.constant 0 : index
    %c0_36 = arith.constant 0 : index
    %86 = vector.load %arg3[%c0_35, %c0_36] : memref<4x32xf32, #tpu.memory_space<vmem>>, vector<4x32xf32>
    %cst_37 = arith.constant dense<0.000000e+00> : vector<4x128xf32>
    %87 = tpu.matmul %86, %85, %cst_37 {dimension_numbers = #tpu.dot_dimension_numbers<[1], [0], [0], [1], [0, 0, 1, 1], [], []>} : vector<4x32xf32>, vector<32x128xf32>, vector<4x128xf32> -> vector<4x128xf32>
    %c0_38 = arith.constant 0 : index
    %c0_39 = arith.constant 0 : index
    %c0_40 = arith.constant 0 : index
    %88 = vector.load %arg10[%c0_38, %c0_39, %c0_40] : memref<1x4x128xf32, #tpu.memory_space<vmem>>, vector<1x4x128xf32>
    %89 = vector.shape_cast %88 : vector<1x4x128xf32> to vector<4x128xf32>
    %90 = vector.shape_cast %87 : vector<4x128xf32> to vector<1x4x128xf32>
    tpu.vector_store %arg10[%c0_38, %c0_39, %c0_40], %90 {strides = array<i32>} : memref<1x4x128xf32, #tpu.memory_space<vmem>>, vector<1x4x128xf32>,
    return
  }
  func.func @transform_0(%arg0: i32) -> (i32, i32, i32) {
    %c0_i32 = arith.constant 0 : i32
    %c0_i32_0 = arith.constant 0 : i32
    %c0_i32_1 = arith.constant 0 : i32
    return %arg0, %c0_i32, %c0_i32_0 : i32, i32, i32
  }
  func.func @transform_1(%arg0: i32) -> (i32, i32) {
    %c0_i32 = arith.constant 0 : i32
    %c0_i32_0 = arith.constant 0 : i32
    %c0_i32_1 = arith.constant 0 : i32
    return %c0_i32, %c0_i32_0 : i32, i32
  }
  func.func @transform_2(%arg0: i32) -> (i32, i32) {
    %c0_i32 = arith.constant 0 : i32
    %c0_i32_0 = arith.constant 0 : i32
    %c0_i32_1 = arith.constant 0 : i32
    return %c0_i32, %c0_i32_0 : i32, i32
  }
  func.func @transform_3(%arg0: i32) -> (i32, i32) {
    %c0_i32 = arith.constant 0 : i32
    %c0_i32_0 = arith.constant 0 : i32
    %c0_i32_1 = arith.constant 0 : i32
    return %c0_i32, %c0_i32_0 : i32, i32
  }
  func.func @transform_4(%arg0: i32) -> (i32, i32) {
    %c0_i32 = arith.constant 0 : i32
    %c0_i32_0 = arith.constant 0 : i32
    %c0_i32_1 = arith.constant 0 : i32
    return %c0_i32, %c0_i32_0 : i32, i32
  }
  func.func @transform_5(%arg0: i32) -> (i32, i32) {
    %c0_i32 = arith.constant 0 : i32
    %c0_i32_0 = arith.constant 0 : i32
    %c0_i32_1 = arith.constant 0 : i32
    return %c0_i32, %c0_i32_0 : i32, i32
  }
  func.func @transform_6(%arg0: i32) -> (i32, i32) {
    %c0_i32 = arith.constant 0 : i32
    %c0_i32_0 = arith.constant 0 : i32
    %c0_i32_1 = arith.constant 0 : i32
    return %c0_i32, %c0_i32_0 : i32, i32
  }
  func.func @transform_7(%arg0: i32) -> (i32, i32) {
    %c0_i32 = arith.constant 0 : i32
    %c0_i32_0 = arith.constant 0 : i32
    %c0_i32_1 = arith.constant 0 : i32
    return %c0_i32, %c0_i32_0 : i32, i32
  }
  func.func @transform_8(%arg0: i32) -> (i32, i32) {
    %c0_i32 = arith.constant 0 : i32
    %c0_i32_0 = arith.constant 0 : i32
    %c0_i32_1 = arith.constant 0 : i32
    return %c0_i32, %c0_i32_0 : i32, i32
  }
  func.func @transform_9(%arg0: i32) -> (i32, i32, i32) {
    %c0_i32 = arith.constant 0 : i32
    %c0_i32_0 = arith.constant 0 : i32
    %c0_i32_1 = arith.constant 0 : i32
    return %arg0, %c0_i32, %c0_i32_0 : i32, i32, i32
  }
}

</mosaic_0001>

<bundles_post_ra>
// kernel: eq.17
= control target key start
LH: loop header
LB: loop body
LE: loop exit
PB: predicated region body
PF: predicated region fallthrough
CT: control target
= control target key end

     0   :  { %s69_s10 = smov 112   ;;  %s70_s11 = smov 80   ;;  %vm3_vm0 = vcmask 130048   ;;  %vm9_vm1 = vcmask 1048448   ;;  %vm15_vm2 = vcmask 917248   ;;  %vm21_vm3 = vcmask 786048   ;;  %s113_s0 = inlined_call_operand.vmem [shape: s32[8,16], index: 0, kind: input, shape index: {}]   ;;  %s114_s1 = inlined_call_operand.vmem [shape: s32[128], index: 1, kind: output, shape index: {}]  }
   0x1   :  { %v55_v0 = vld [vmem:[%s113_s0 + $0x7] sm:$0x1]   ;;  %v57_v1 = vld [vmem:[%s113_s0 + $0x5] sm:$0x1]   ;;  %v56_v2 = vld [vmem:[%s113_s0 + $0x6] sm:$0x1]  }
   0x2   :  { %7 = vrot.lane.b32.xlu0 %v55_v0, %s69_s10  ;;  %19 = vrot.lane.b32.xlu1 %v57_v1, %s70_s11  ;;  %v58_v3 = vld [vmem:[%s113_s0 + $0x4] sm:$0x1]   ;;  %v2_v4 = vld [vmem:[%s113_s0] sm:$0x1]   ;;  %s71_s18 = smov 96   ;;  %s72_s19 = smov 64  }
   0x3   :  { %4 = vst.msk [vmem:[#allocation0] sm:$0x1] %vm3_vm0, %v2_v4   ;;  %v59_v5 = vld [vmem:[%s113_s0 + $0x3] sm:$0x1]   ;;  %v60_v6 = vld [vmem:[%s113_s0 + $0x2] sm:$0x1]  }
   0x4   :  { %s73_s24 = smov 48   ;;  %s74_s25 = smov 32   ;;  %v61_v7 = vld [vmem:[%s113_s0 + $0x1] sm:$0x1]   ;;  %vm27_vm4 = vcmask 654848   ;;  %vm33_vm5 = vcmask 523648  }
   0x5   :  { %s75_s0 = smov 16   ;;  %vm39_vm6 = vcmask 392448   ;;  %vm45_vm7 = vcmask 261248  }
   0x6   :  { %13 = vrot.lane.b32.xlu0 %v56_v2, %s71_s18  ;;  %25 = vrot.lane.b32.xlu1 %v58_v3, %s72_s19 }
   0xa   :  { %31 = vrot.lane.b32.xlu0 %v59_v5, %s73_s24  ;;  %37 = vrot.lane.b32.xlu1 %v60_v6, %s74_s25 }
   0xe   :  { %43 = vrot.lane.b32.xlu0 %v61_v7, %s75_s0 }
  0x74   :  { %v8_v8 = vpop.permute.xlu0 %7   ;;  %v20_v9 = vpop.permute.xlu1 %19  }
  0x75   :  { %10 = vst.msk [vmem:[#allocation0] sm:$0x1] %vm9_vm1, %v8_v8  }
  0x78   :  { %v14_v10 = vpop.permute.xlu0 %13   ;;  %v26_v11 = vpop.permute.xlu1 %25  }
  0x79   :  { %16 = vst.msk [vmem:[#allocation0] sm:$0x1] %vm15_vm2, %v14_v10  }
  0x7a   :  { %22 = vst.msk [vmem:[#allocation0] sm:$0x1] %vm21_vm3, %v20_v9  }
  0x7b   :  { %28 = vst.msk [vmem:[#allocation0] sm:$0x1] %vm27_vm4, %v26_v11  }
  0x7c   :  { %v32_v12 = vpop.permute.xlu0 %31   ;;  %v38_v13 = vpop.permute.xlu1 %37  }
  0x7d   :  { %34 = vst.msk [vmem:[#allocation0] sm:$0x1] %vm33_vm5, %v32_v12  }
  0x7e   :  { %40 = vst.msk [vmem:[#allocation0] sm:$0x1] %vm39_vm6, %v38_v13  }
  0x80   :  { %v44_v14 = vpop.permute.xlu0 %43  }
  0x81   :  { %46 = vst.msk [vmem:[#allocation0] sm:$0x1] %vm45_vm7, %v44_v14  }
  0x88   :  { %v51_v15 = vld [vmem:[#allocation0] sm:$0x1] }
  0x89   :  { %54 = vst [vmem:[%s114_s1] sm:$0x1] %v51_v15 }

// kernel: eq.24
= control target key start
LH: loop header
LB: loop body
LE: loop exit
PB: predicated region body
PF: predicated region fallthrough
CT: control target
= control target key end

     0   :  { %vm8_vm0 = vcmask 31744   ;;  %vm14_vm1 = vcmask 64544   ;;  %s42_s0 = inlined_call_operand.vmem [shape: s32[2,4], index: 0, kind: input, shape index: {}]   ;;  %s43_s1 = inlined_call_operand.vmem [shape: s32[8], index: 1, kind: output, shape index: {}]  }
   0x1   :  { %v5_v0 = vld [vmem:[%s42_s0] sm:$0x3]  ;;  %s25_s0 = smov 4  }
   0x2   :  { %6 = vst [vmem:[#allocation1] sm:$0x3] %v5_v0 }
   0x9   :  { %v11_v1 = vld [vmem:[#allocation1 + $0x1] sm:$0x1]   ;;  %v7_v2 = vld [vmem:[#allocation1] sm:$0x1]  }
   0xa   :  { %12 = vrot.lane.b32.xlu0 %v11_v1, %s25_s0  ;;  %9 = vst.msk [vmem:[#allocation0] sm:$0x1] %vm8_vm0, %v7_v2  }
  0x7c   :  { %v13_v3 = vpop.permute.xlu0 %12  }
  0x7d   :  { %15 = vst.msk [vmem:[#allocation0] sm:$0x1] %vm14_vm1, %v13_v3  }
  0x84   :  { %v20_v4 = vld [vmem:[#allocation0] sm:$0x1] }
  0x85   :  { %23 = vst [vmem:[%s43_s1] sm:$0x1] %v20_v4 }

// kernel: gat_goal_forward.4
= control target key start
LH: loop header
LB: loop body
LE: loop exit
PB: predicated region body
PF: predicated region fallthrough
CT: control target
= control target key end

     0   :  { %14 = vsyncpa [#allocation3], 0  ;;  %s2394_s0 = inlined_call_operand.hbm [shape: f32[2,32,300], index: 0, kind: input, shape index: {}]   ;;  %s2395_s1 = inlined_call_operand.vmem [shape: f32[32,32], index: 1, kind: input, shape index: {}]   ;;  %s2396_s2 = inlined_call_operand.hbm [shape: f32[4,32], index: 2, kind: input, shape index: {}]   ;;  %s2397_s3 = inlined_call_operand.hbm [shape: bf16[300,128], index: 3, kind: input, shape index: {}]   ;;  %s2398_s4 = inlined_call_operand.hbm [shape: f32[2,128], index: 4, kind: input, shape index: {}]   ;;  %s2399_s5 = inlined_call_operand.vmem [shape: f32[1,128], index: 5, kind: input, shape index: {}, may-alias: {5,8}]   ;;  %s2400_s6 = inlined_call_operand.hbm [shape: bf16[128,128], index: 6, kind: input, shape index: {}]   ;;  %s2401_s7 = inlined_call_operand.hbm [shape: f32[2,128], index: 7, kind: input, shape index: {}]   ;;  %s2402_s8 = inlined_call_operand.vmem [shape: f32[1,128], index: 8, kind: input, shape index: {}, may-alias: {5,8}]   ;;  %s2403_s9 = inlined_call_operand.vmem [shape: f32[2,4,128], index: 9, kind: output, shape index: {}]  }
   0x1   :  { %16 = vsyncpa [#allocation3 + $0x1], 0 }
   0x2   :  { %17 = vsyncpa [#allocation5], 0 }
   0x3   :  { %18 = vsyncpa [#allocation8], 0 }
   0x4   :  { %19 = vsyncpa [#allocation11], 0  ;;  %s2117_s30 = smov 0   ;;  %s2119_s10 = smov 0  }
   0x5   :  { %s2121_s11 = smov 0   ;;  %s2123_s12 = smov 0  }
   0x6 LB: > { %s2055_s13 = smov [#allocation4]   ;;  %s2138_s15 = sadd.s32 4294967295, %s2053_s12   ;;  %s2053_s12 = sphi %s2123_s12, %s2424_s12   ;;  %s2049_s11 = sphi %s2121_s11, %s2423_s11   ;;  %s2045_s10 = sphi %s2119_s10, %s2422_s10   ;;  %s2041_s30 = sphi %s2117_s30, %s2421_s30  }
   0x7   : > { %s266_s14 = sshll.u32 %s2055_s13, 4  ;;  %p1484_p0 = scmp.ge.s32.totalorder %s2053_s12, 1  ;;  %s267_s14 = int_to_ptr.vmem [resolvable:$true] %s266_s14 }
   0x8   : > { %p2404_p1 = scmp.eq.s32.totalorder %s2138_s15, 0  ;;  %p250_p2 = scmp.lt.s32.totalorder %s2053_s12, 3 }
   0x9   : > { %s2056_s17 = smov [#allocation7]   ;;  %s2057_s19 = smov [#allocation6]  }
   0xa   : > { %p2143_p3 = pnand %p1484_p0, %p250_p2  ;;  %s290_s18 = sshll.u32 %s2056_s17, 4  ;;  %s291_s18 = int_to_ptr.vmem [resolvable:$true] %s290_s18 }
   0xb   : > { %s276_s20 = sshll.u32 %s2057_s19, 4  ;;  %s1860_s23 = scalar_lea.vmem %s267_s14, 64  ;;  %s2155_s20 = int_to_ptr.vmem [resolvable:$true] %s276_s20 }
   0xc   : > { %s2407_s16 = scalar_select %p2143_p3, 1, 0 }
   0xd   : > { %p1708_p4 = pneg %p2143_p3  ;;  %p1861_p7 = scmp.ne.s32.totalorder %s267_s14, %s1860_s23 }
   0xe   : > { %p1868_p10 = scmp.lt.s32.totalorder %s267_s14, %s267_s14  ;;  %p1869_p11 = scmp.lt.s32.totalorder %s1860_s23, %s1860_s23 }
   0xf   : > { %p2151_p5 = pnand %p1708_p4, %p2404_p1 }
  0x10   : > { %p1870_p12 = por %p1869_p11, %p1868_p10 }
  0x11   : > { %p2159_p6 = pneg %p2151_p5 }
  0x13   : > { %p1863_p8 = pnand %p1861_p7, %p2159_p6 }
  0x15   : > { %p1864_p9 = pneg %p1863_p8 }
  0x17   : > { %p1871_p13 = pnand %p1870_p12, %p1864_p9 }
  0x19   : > { %1874 = shalt.err (!%p1871_p13)
}
  0x1a   : > { %1711 = dma.hbm_to_vmem [thread:$0]  (!%p2151_p5), %s2396_s2, 64, %s267_s14, [#allocation5]  }
  0x1b   : > { %s1886_s26 = scalar_lea.vmem %s291_s18, 32  ;;  %p1894_p1 = scmp.lt.s32.totalorder %s291_s18, %s291_s18 }
  0x1c   : > { %p1887_p0 = scmp.ne.s32.totalorder %s291_s18, %s1886_s26  ;;  %p1895_p7 = scmp.lt.s32.totalorder %s1886_s26, %s1886_s26 }
  0x1e   : > { %p1889_p2 = pnand %p1887_p0, %p2159_p6  ;;  %p1896_p8 = por %p1895_p7, %p1894_p1 }
  0x20   : > { %p1890_p4 = pneg %p1889_p2 }
  0x22   : > { %p1897_p3 = pnand %p1896_p8, %p1890_p4 }
  0x24   : > { %1900 = shalt.err (!%p1897_p3)
}
  0x25   : > { %1717 = dma.hbm_to_vmem [thread:$0]  (!%p2151_p5), %s2398_s4, 32, %s291_s18, [#allocation8]  }
  0x26   : > { %s1912_s29 = scalar_lea.vmem %s2155_s20, 2432  ;;  %p1920_p12 = scmp.lt.s32.totalorder %s2155_s20, %s2155_s20 }
  0x27   : > { %p1913_p9 = scmp.ne.s32.totalorder %s2155_s20, %s1912_s29  ;;  %p1921_p1 = scmp.lt.s32.totalorder %s1912_s29, %s1912_s29 }
  0x29   : > { %p1915_p10 = pnand %p1913_p9, %p2159_p6  ;;  %p1922_p13 = por %p1921_p1, %p1920_p12 }
  0x2b   : > { %p1916_p11 = pneg %p1915_p10 }
  0x2d   : > { %p1923_p3 = pnand %p1922_p13, %p1916_p11 }
  0x2f   : > { %1926 = shalt.err (!%p1923_p3)
}
  0x30   : > { %s2058_s13 = smov 64   ;;  %s2059_s14 = smov 4  }
  0x31   : > { %1714 = dma.hbm_to_vmem [thread:$0]  (!%p2151_p5), %s2397_s3, 2432, %s2155_s20, [#allocation5], %s2058_s13, %s2058_s13, %s2059_s14  }
  0x32   : > { %s2060_s18 = smov [#allocation9]   ;;  %s2061_s24 = smov [#allocation10]  }
  0x33   : > { %s303_s23 = sshll.u32 %s2060_s18, 4  ;;  %s317_s25 = sshll.u32 %s2061_s24, 4  ;;  %s304_s23 = int_to_ptr.vmem [resolvable:$true] %s303_s23  ;;  %s318_s25 = int_to_ptr.vmem [resolvable:$true] %s317_s25 }
  0x34   : > { %s1938_s26 = scalar_lea.vmem %s304_s23, 1024  ;;  %p1946_p7 = scmp.lt.s32.totalorder %s304_s23, %s304_s23 }
  0x35   : > { %p1939_p0 = scmp.ne.s32.totalorder %s304_s23, %s1938_s26  ;;  %p1947_p8 = scmp.lt.s32.totalorder %s1938_s26, %s1938_s26 }
  0x37   : > { %p1941_p2 = pnand %p1939_p0, %p2159_p6  ;;  %p1948_p9 = por %p1947_p8, %p1946_p7 }
  0x39   : > { %p1942_p4 = pneg %p1941_p2 }
  0x3b   : > { %p1949_p10 = pnand %p1948_p9, %p1942_p4 }
  0x3d   : > { %1952 = shalt.err (!%p1949_p10)
}
  0x3e   : > { %1720 = dma.hbm_to_vmem [thread:$0]  (!%p2151_p5), %s2400_s6, 1024, %s304_s23, [#allocation8], %s2058_s13, %s2058_s13, %s2059_s14  }
  0x3f   : > { %s1964_s20 = scalar_lea.vmem %s318_s25, 32  ;;  %p1972_p13 = scmp.lt.s32.totalorder %s318_s25, %s318_s25 }
  0x40   : > { %p1965_p11 = scmp.ne.s32.totalorder %s318_s25, %s1964_s20  ;;  %p1973_p3 = scmp.lt.s32.totalorder %s1964_s20, %s1964_s20 }
  0x42   : > { %p1967_p12 = pnand %p1965_p11, %p2159_p6  ;;  %p1974_p0 = por %p1973_p3, %p1972_p13 }
  0x44   : > { %p1968_p1 = pneg %p1967_p12 }
  0x46   : > { %p1975_p2 = pnand %p1974_p0, %p1968_p1 }
  0x48   : > { %1978 = shalt.err (!%p1975_p2)
}
  0x49   : > { %1723 = dma.hbm_to_vmem [thread:$0]  (!%p2151_p5), %s2401_s7, 32, %s318_s25, [#allocation11]  }
  0x4a   : > { %s2204_s22 = sadd.s32 1, %s2053_s12   ;;  %s32_s13 = sadd.s32 1, %s2049_s11 }
  0x4b   : > { %s29_s21 = ssub.s32 %s2053_s12, %s2204_s22  ;;  %p39_p4 = scmp.ne.s32.totalorder %s2049_s11, %s2045_s10 }
  0x4c   : > { %p30_p6 = scmp.eq.s32.totalorder %s29_s21, 0  ;;  %p40_p7 = scmp.eq.s32.totalorder %s2053_s12, 0 }
  0x4d   : > { %p45_p8 = scmp.ne.s32.totalorder %s2045_s10, %s2041_s30  ;;  %p2410_p10 = scmp.eq.s32.totalorder %s2138_s15, 0 }
  0x4e   : > { %s2215_s14 = scalar_select %p30_p6, %s2049_s11, %s32_s13  }
  0x4f   : > { %p41_p9 = por %p40_p7, %p39_p4  ;;  %p2219_p11 = por %p2410_p10, %p45_p8 }
  0x50   : > { %p1733_p12 = scmp.lt.s32.totalorder %s2053_s12, 2  ;;  %s331_s18 = sand.u32 1, %s2049_s11  }
  0x51   : > { %s2411_s19 = scalar_select %p2219_p11, 1, 0 }
  0x52   : > { %s1683_s23 = smul.u32 96, %s331_s18  ;;  %p2226_p5 = pnand %p1733_p12, %p41_p9 }
  0x53   : > { %s1684_s24 = smul.u32 1536, %s2053_s12  ;;  %s2237_s29 = scalar_lea.sflag [#allocation3], %s331_s18 }
  0x54   : > { %s335_s28 = scalar_lea.vmem [#allocation2], %s1683_s23  ;;  %p1981_p13 = pneg %p2226_p5 }
  0x55   : > { %s2233_s30 = scalar_lea.hbm %s2394_s0, %s1684_s24  ;;  %s342_s20 = sshll.u32 %s335_s28, 4  ;;  %s2235_s20 = int_to_ptr.vmem [resolvable:$true] %s342_s20 }
  0x56   : > { %s1979_s12 = scalar_lea.hbm %s2233_s30, 1536  ;;  %s1984_s13 = scalar_lea.hbm %s2394_s0, 3072 }
  0x57   : > { %p1980_p1 = scmp.ne.s32.totalorder %s2233_s30, %s1979_s12  ;;  %p1985_p2 = scmp.lt.s32.totalorder %s2233_s30, %s2394_s0 }
  0x58   : > { %p1986_p6 = scmp.lt.s32.totalorder %s1984_s13, %s1979_s12 }
  0x59   : > { %p1982_p3 = pnand %p1981_p13, %p1980_p1 }
  0x5a   : > { %p1987_p4 = por %p1986_p6, %p1985_p2 }
  0x5b   : > { %p1983_p0 = pneg %p1982_p3 }
  0x5d   : > { %p1988_p7 = pnand %p1987_p4, %p1983_p0 }
  0x5f   : > { %1991 = shalt.err (!%p1988_p7)
}
  0x60   : > { %s1992_s18 = scalar_lea.vmem %s2235_s20, 1536  ;;  %s2062_s23 = smov [#allocation2]  }
  0x61   : > { %p1993_p8 = scmp.ne.s32.totalorder %s2235_s20, %s1992_s18  ;;  %s1997_s27 = sshll.u32 %s2062_s23, 4  ;;  %s1998_s27 = int_to_ptr.vmem [resolvable:$false] %s1997_s27 }
  0x62   : > { %s1999_s28 = scalar_lea.vmem %s1998_s27, 3072  ;;  %p2000_p12 = scmp.lt.s32.totalorder %s2235_s20, %s1998_s27 }
  0x63   : > { %p1995_p9 = pnand %p1993_p8, %p1981_p13  ;;  %p2001_p1 = scmp.lt.s32.totalorder %s1999_s28, %s1992_s18 }
  0x65   : > { %p1996_p10 = pneg %p1995_p9  ;;  %p2002_p3 = por %p2001_p1, %p2000_p12 }
  0x67   : > { %p2003_p11 = pnand %p2002_p3, %p1996_p10 }
  0x69   : > { %2006 = shalt.err (!%p2003_p11)
}
  0x6a   : > { %s2063_s12 = smov 384   ;;  %s2064_s17 = smov 24  }
  0x6b   : > { %1727 = dma.hbm_to_vmem [thread:$0]  (!%p2226_p5), %s2233_s30, 1536, %s2235_s20, %s2237_s29, %s2063_s12, %s2063_s12, %s2064_s17  }
  0x6c   : > { %p2413_p13 = scmp.ne.s32.totalorder %s2407_s16, 0 }
  0x6d   : > { %s356_s21 = sand.u32 (!%p2413_p13), 1, %s2045_s10   ;;  %p2414_p0 = scmp.ne.s32.totalorder (!%p2413_p13), %s2411_s19, 0 }
  0x6e   : > { %354 = sbr.rel (%p2413_p13) target bundleno = 2272 (0x8e0), region = 56  ;;  %s357_s24 = scalar_lea.sflag (!%p2413_p13), [#allocation3], %s356_s21 }
  0x6f   : > { %s1685_s13 = smul.u32 (!%p2413_p13), 96, %s356_s21 }
  0x71   : > { %s2261_s26 = scalar_lea.vmem (!%p2413_p13), [#allocation2], %s1685_s13 }
  0x73   : > { %2024 = dma.done.wait (%p2414_p0), %s357_s24, 1536  }
  0x74   : > { %2026 = vsyncadd (%p2414_p0), %s357_s24, 4294965760  ;;  %p2415_p11 = scmp.eq.s32.totalorder %s2138_s15, 0 }
  0x76   : > { %2028 = dma.done.wait (%p2415_p11), [#allocation5], 2496   ;;  %p2416_p5 = pmov %p2415_p11 }
  0x78   : > { %2030 = vsyncadd (%p2416_p5), [#allocation5], 4294964800  ;;  %p2417_p2 = pmov %p2416_p5 }
  0x7a   : > { %2032 = dma.done.wait (%p2417_p2), [#allocation8], 1056   ;;  %p2418_p6 = pmov %p2417_p2 }
  0x7b   : > { %p2419_p4 = pmov %p2417_p2 }
  0x7c   : > { %2034 = vsyncadd (%p2418_p6), [#allocation8], 4294966240 }
  0x7d   : > { %2036 = dma.done.wait (%p2419_p4), [#allocation11], 32   ;;  %p2420_p7 = pmov %p2417_p2 }
  0x7e   : > { %v1782_v0 = vld [vmem:[#allocation6 + $0x78] sm:$0xff]   ;;  %v1784_v2 = vld [vmem:[#allocation6 + $0x70] sm:$0xff]   ;;  %v1786_v4 = vld [vmem:[#allocation6 + $0x68] sm:$0xff]   ;;  %vm599_vm0 = vcmask 1045504   ;;  %vm592_vm1 = vcmask 359424   ;;  %v2065_v38 = vmov 0.0   ;;  %v702_v39 = vlaneseq }
  0x7f   : > { %2038 = vsyncadd (%p2420_p7), [#allocation11], 4294967264  ;;  %v1783_v1 = vld [vmem:[#allocation6 + $0x38] sm:$0xff]   ;;  %1537 = vmatprep.subr.bf16.mxu0 %v1782_v0  ;;  %v1785_v3 = vld [vmem:[#allocation6 + $0x30] sm:$0xff]   ;;  %vm2066_vm2 = vmmov 0   ;;  %vm812_vm7 = vcmask 261120  }
  0x80   : > { %1538 = vmatpush3.bf16.msra.mxu0 %v1783_v1  ;;  %v1787_v5 = vld [vmem:[#allocation6 + $0x28] sm:$0xff]   ;;  %v1788_v6 = vld [vmem:[#allocation6 + $0x60] sm:$0xff]   ;;  %v1790_v8 = vld [vmem:[#allocation6 + $0x58] sm:$0xff]   ;;  %v2294_v41 = vshrl.u32 %v702_v39, 7  ;;  %p414_p8 = scmp.lt.s32.totalorder %s2138_s15, 1 }
  0x81   : > { %1539 = vmatprep.subr.bf16.mxu0 %v1784_v2  ;;  %v1789_v7 = vld [vmem:[#allocation6 + $0x20] sm:$0xff]   ;;  %v1794_v9 = vld [vmem:[#allocation6 + $0x90] sm:$0x3f]   ;;  %v1791_v10 = vld [vmem:[#allocation6 + $0x18] sm:$0xff]  }
  0x82   : > { %1682 = vmatprep.subr.msk.bf16.mxu1 %vm599_vm0, %v1794_v9  ;;  %v601_v11 = vsel %vm599_vm0, %v1794_v9, 0  ;;  %v1797_v12 = vld [vmem:[#allocation6 + $0x88] sm:$0xff]   ;;  %v1792_v13 = vld [vmem:[#allocation6 + $0x50] sm:$0xff]   ;;  %v1800_v14 = vld [vmem:[#allocation6 + $0x80] sm:$0xff]   ;;  %v704_v43 = vsub.s32 1, %v2294_v41  ;;  %s2426_s15 = smov (!%p414_p8, %s2138_s15), 1 }
  0x83   : > { %1604 = vmatpush3.bf16.msra.mxu1 %v601_v11  ;;  %v1793_v15 = vld [vmem:[#allocation6 + $0x10] sm:$0xff]   ;;  %v424_v16 = vld [vmem:[%s2261_s26 + $0x8] sm:$0xff]  ;;  %v427_v17 = vld [vmem:[%s2261_s26 + $0x20] sm:$0xff]  ;;  %s1498_s21 = sshll.u32 %s2426_s15, 2 }
  0x84   : > { %1540 = vmatpush3.bf16.msra.mxu0 %v1785_v3  ;;  %1605 = vmatprep.subr.bf16.mxu1 %v1797_v12  ;;  %v1795_v18 = vld [vmem:[#allocation6 + $0x48] sm:$0xff]   ;;  %v436_v19 = vpack.c.bf16 %v427_v17, %v424_v16  ;;  %v431_v23 = vld [vmem:[%s2261_s26 + $0x40] sm:$0xff]  ;;  %v434_v24 = vld [vmem:[%s2261_s26 + $0x58] sm:$0xff] }
  0x85   : > { %1541 = vmatprep.subr.bf16.mxu0 %v1786_v4  ;;  %v425_v20 = vld [vmem:[%s2261_s26 + $0x10] sm:$0xff]  ;;  %v428_v21 = vld [vmem:[%s2261_s26 + $0x28] sm:$0xff]  ;;  %v440_v27 = vpack.c.bf16 %v434_v24, %v431_v23  ;;  %v423_v29 = vld [vmem:[%s2261_s26] sm:$0xff] }
  0x86   : > { %v437_v22 = vpack.c.bf16 %v428_v21, %v425_v20  ;;  %v1796_v25 = vld [vmem:[#allocation6 + $0x8] sm:$0xff]   ;;  %v1798_v26 = vld [vmem:[#allocation6 + $0x40] sm:$0xff]   ;;  %635 = vmatprep.mubr.bf16.mxu0 %v436_v19  ;;  %v426_v30 = vld [vmem:[%s2261_s26 + $0x18] sm:$0xff] }
  0x87   : > { %1606 = vmatpush3.bf16.msra.mxu1 %v1797_v12  ;;  %v1799_v28 = vld [vmem:[#allocation6] sm:$0xff]   ;;  %v430_v31 = vld [vmem:[%s2261_s26 + $0x38] sm:$0xff]  ;;  %v433_v32 = vld [vmem:[%s2261_s26 + $0x50] sm:$0xff]  ;;  %v435_v33 = vpack.c.bf16 %v426_v30, %v423_v29 }
  0x88   : > { %1542 = vmatpush3.bf16.msra.mxu0 %v1787_v5  ;;  %1607 = vmatprep.subr.bf16.mxu1 %v1800_v14  ;;  %v439_v34 = vpack.c.bf16 %v433_v32, %v430_v31  ;;  %v429_v35 = vld [vmem:[%s2261_s26 + $0x30] sm:$0xff]  ;;  %v432_v36 = vld [vmem:[%s2261_s26 + $0x48] sm:$0xff]  ;;  %v701_v45 = vld [vmem:[#allocation7] sm:$0x3]  ;;  %s417_s26 = scalar_lea.vmem %s2403_s9, %s1498_s21 }
  0x89   : > { %1543 = vmatprep.subr.bf16.mxu0 %v1788_v6  ;;  %1609 = vmatprep.mubr.msk.bf16.mxu1 %vm592_vm1, %v437_v22  ;;  %v438_v37 = vpack.c.bf16 %v432_v36, %v429_v35  ;;  %v705_v49 = vrot.slane %v701_v45, %v704_v43  ;;  %v2314_v19 = vld [vmem:[%s2395_s1] sm:$0xff] }
  0x8b   : > { %1608 = vmatpush3.bf16.msra.mxu1 %v1800_v14 }
  0x8c   : > { %1544 = vmatpush3.bf16.msra.mxu0 %v1789_v7  ;;  %1613 = vmatprep.subr.mxu1 %v2065_v38 }
  0x8d   : > { %1545 = vmatprep.subr.bf16.mxu0 %v1790_v8  ;;  %v790_v8 = vsub.s32 0, %v2294_v41 }
  0x8e   : > { %1610 = vmatmul.mubr.msk.bf16.vlgmr.msra.gmra.mxu1 %vm592_vm1, %v440_v27  ;;  %v2324_v27 = vld [vmem:[%s2395_s1 + $0x10] sm:$0xff] }
  0x8f   : > { %1621 = vmatprep.mubr.msk.f32.mxu1 %vm2066_vm2, %v2065_v38 }
  0x90   : > { %1546 = vmatpush3.bf16.msra.mxu0 %v1791_v10 }
  0x91   : > { %1547 = vmatprep.subr.bf16.mxu0 %v1792_v13 }
  0x94   : > { %1548 = vmatpush3.bf16.msra.mxu0 %v1793_v15 }
  0x95   : > { %1549 = vmatprep.subr.bf16.mxu0 %v1795_v18  ;;  %v2309_v18 = vld [vmem:[%s2395_s1 + $0x8] sm:$0xff] }
  0x98   : > { %1550 = vmatpush3.bf16.msra.mxu0 %v1796_v25 }
  0x99   : > { %1551 = vmatprep.subr.bf16.mxu0 %v1798_v26  ;;  %v2319_v26 = vld [vmem:[%s2395_s1 + $0x18] sm:$0xff] }
  0x9c   : > { %1552 = vmatpush3.bf16.msra.mxu0 %v1799_v28 }
  0x9f   : > { %636 = vmatmul.mubr.bf16.vlgmr.msra.gmra.mxu0 %v435_v33 }
  0xa0   : > { %643 = vmatprep.mubr.bf16.mxu0 %v439_v34 }
  0xa7   : > { %644 = vmatmul.mubr.bf16.gmra.mxu0 %v438_v37 }
 0x14e   : > { %v1611_v40 = vpop.f32.mrf.mxu1 }
 0x150   : > { %v686_v42 = vpop.f32.mrf.mxu1 }
 0x152   : > { %v1612_v47 = vpop.f32.mrf.mxu1 }
 0x154   : > { %v689_v53 = vpop.f32.mrf.mxu1 }
 0x15f   : > { %v1553_v44 = vpop.f32.mrf.mxu0 }
 0x161   : > { %v1554_v46 = vpop.f32.mrf.mxu0 }
 0x162   : > { %v1555_v48 = vadd.f32 %v1554_v46, %v1553_v44 }
 0x163   : > { %v1556_v50 = vpop.f32.mrf.mxu0 }
 0x164   : > { %v687_v51 = vadd.f32 %v1555_v48, %v686_v42 }
 0x165   : > { %v1557_v52 = vpop.f32.mrf.mxu0 }
 0x166   : > { %v1558_v54 = vadd.f32 %v1557_v52, %v1556_v50  ;;  %v706_v55 = vmul.f32 %v705_v49, %v687_v51 }
 0x167   : > { %v1559_v56 = vpop.f32.mrf.mxu0 }
 0x168   : > { %v690_v57 = vadd.f32 %v1558_v54, %v689_v53  ;;  %710 = vadd.xlane.f32.xlu0 %v706_v55 }
 0x169   : > { %v1560_v58 = vpop.f32.mrf.mxu0 }
 0x16a   : > { %v1561_v59 = vadd.f32 %v1560_v58, %v1559_v56  ;;  %v707_v60 = vmul.f32 %v705_v49, %v690_v57  ;;  %v859_v5 = vpack.c.bf16 %v690_v57, %v687_v51 }
 0x16b   : > { %v1562_v61 = vpop.f32.mrf.mxu0 }
 0x16c   : > { %v695_v62 = vadd.f32 %v1611_v40, %v1561_v59  ;;  %712 = vadd.xlane.f32.xlu0 %v707_v60 }
 0x16d   : > { %v1563_v63 = vpop.f32.mrf.mxu0 }
 0x16e   : > { %v1564_v0 = vadd.f32 %v1563_v63, %v1562_v61  ;;  %v708_v1 = vmul.f32 %v705_v49, %v695_v62 }
 0x170   : > { %v698_v2 = vadd.f32 %v1612_v47, %v1564_v0  ;;  %714 = vadd.xlane.f32.xlu1 %v708_v1 }
 0x172   : > { %1614 = vmatpush3.xpose.msra.mxu1 %v698_v2  ;;  %v709_v3 = vmul.f32 %v705_v49, %v698_v2  ;;  %v860_v4 = vpack.c.bf16 %v698_v2, %v695_v62 }
 0x173   : > { %1615 = vmatprep.subr.mxu1 %v2065_v38 }
 0x174   : > { %716 = vadd.xlane.f32.xlu1 %v709_v3 }
 0x176   : > { %1616 = vmatpush3.xpose.msra.mxu1 %v695_v62 }
 0x177   : > { %1617 = vmatprep.subr.mxu1 %v2065_v38 }
 0x17a   : > { %1618 = vmatpush3.xpose.msra.mxu1 %v690_v57 }
 0x17b   : > { %1619 = vmatprep.subr.mxu1 %v2065_v38 }
 0x17e   : > { %1620 = vmatpush3.xpose.msra.mxu1 %v687_v51 }
 0x17f   : > { %1624 = vmatprep.subr.bf16.mxu1 %v860_v4 }
 0x181   : > { %1622 = vmatmul.mubr.f32.vlgmr.msra.gmra.mxu1 %v701_v45 }
 0x182   : > { %1625 = vmatpush3.bf16.msra.mxu1 %v860_v4 }
 0x183   : > { %1626 = vmatprep.subr.bf16.mxu1 %v859_v5 }
 0x186   : > { %1627 = vmatpush3.bf16.msra.mxu1 %v859_v5 }
 0x187   : > { %1652 = vmatprep.subr.mxu1 %v2065_v38 }
 0x1f1   : > { %v711_v6 = vpop.xlane.xlu0 %710 }
 0x1f5   : > { %v713_v10 = vpop.xlane.xlu0 %712 }
 0x1f9   : > { %v715_v7 = vpop.xlane.xlu1 %714 }
 0x1fd   : > { %v717_v12 = vpop.xlane.xlu1 %716 }
 0x241   : > { %v784_v9 = vpop.f32.mrf.mxu1 }
 0x242   : > { %v791_v11 = vrot.slane %v784_v9, %v790_v8 }
 0x243   : > { %v1623_v13 = vpop.f32.mrf.mxu1 }
 0x244   : > { %v793_v14 = vadd.f32 %v791_v11, %v713_v10  ;;  %v792_v15 = vadd.f32 %v791_v11, %v711_v6  ;;  %v795_v16 = vadd.f32 %v791_v11, %v717_v12  ;;  %v794_v17 = vadd.f32 %v791_v11, %v715_v7  ;;  %v1801_v12 = vld [vmem:[#allocation9 + $0x38] sm:$0xff]   ;;  %v1802_v13 = vld [vmem:[#allocation9 + $0x30] sm:$0xff]  }
 0x245   : > { %1632 = vmatprep.subr.bf16.mxu0 %v1801_v12 }
 0x246   : > { %vm797_vm3 = vcmp.gt.f32.partialorder %v793_v14, 0.0  ;;  %v801_v20 = vmul.f32 0.2, %v793_v14  ;;  %vm796_vm4 = vcmp.gt.f32.partialorder %v792_v15, 0.0  ;;  %v800_v21 = vmul.f32 0.2, %v792_v15  ;;  %1633 = vmatpush3.bf16.msra.mxu0 %v1801_v12 }
 0x247   : > { %vm799_vm5 = vcmp.gt.f32.partialorder %v795_v16, 0.0  ;;  %v803_v22 = vmul.f32 0.2, %v795_v16  ;;  %vm798_vm6 = vcmp.gt.f32.partialorder %v794_v17, 0.0  ;;  %v802_v23 = vmul.f32 0.2, %v794_v17  ;;  %1634 = vmatprep.subr.bf16.mxu0 %v1802_v13 }
 0x248   : > { %v805_v24 = vsel %vm797_vm3, %v793_v14, %v801_v20  ;;  %v804_v25 = vsel %vm796_vm4, %v792_v15, %v800_v21  ;;  %v1803_v14 = vld [vmem:[#allocation9 + $0x28] sm:$0xff]   ;;  %v1804_v15 = vld [vmem:[#allocation9 + $0x20] sm:$0xff]  }
 0x249   : > { %v809_v28 = vadd.f32 %v805_v24, %v2309_v18  ;;  %v808_v29 = vadd.f32 %v804_v25, %v2314_v19  ;;  %v807_v30 = vsel %vm799_vm5, %v795_v16, %v803_v22  ;;  %v806_v31 = vsel %vm798_vm6, %v794_v17, %v802_v23  ;;  %v1805_v16 = vld [vmem:[#allocation9 + $0x18] sm:$0xff]   ;;  %v1806_v17 = vld [vmem:[#allocation9 + $0x10] sm:$0xff]   ;;  %v1807_v20 = vld [vmem:[#allocation9 + $0x8] sm:$0xff]  }
 0x24a   : > { %v811_v34 = vadd.f32 %v807_v30, %v2319_v26  ;;  %v810_v35 = vadd.f32 %v806_v31, %v2324_v27  ;;  %1635 = vmatpush3.bf16.msra.mxu0 %v1802_v13  ;;  %v1808_v21 = vld [vmem:[#allocation9] sm:$0xff]  }
 0x24b   : > { %v816_v32 = vsel %vm812_vm7, %v809_v28, -inf  ;;  %v813_v33 = vsel %vm812_vm7, %v808_v29, -inf  ;;  %1636 = vmatprep.subr.bf16.mxu0 %v1803_v14  ;;  %v1520_v22 = vld [vmem:[%s2399_s5] ss:$0 sm:$0xff] }
 0x24c   : > { %817 = vmax.xlane.f32.xlu1 %v816_v32  ;;  %814 = vmax.xlane.f32.xlu0 %v813_v33  ;;  %v822_v36 = vsel %vm812_vm7, %v811_v34, -inf  ;;  %v819_v37 = vsel %vm812_vm7, %v810_v35, -inf }
 0x24e   : > { %1637 = vmatpush3.bf16.msra.mxu0 %v1803_v14 }
 0x24f   : > { %1638 = vmatprep.subr.bf16.mxu0 %v1804_v15 }
 0x250   : > { %823 = vmax.xlane.f32.xlu1 %v822_v36  ;;  %820 = vmax.xlane.f32.xlu0 %v819_v37 }
 0x252   : > { %1639 = vmatpush3.bf16.msra.mxu0 %v1804_v15 }
 0x253   : > { %1640 = vmatprep.subr.bf16.mxu0 %v1805_v16 }
 0x256   : > { %1641 = vmatpush3.bf16.msra.mxu0 %v1805_v16 }
 0x257   : > { %1642 = vmatprep.subr.bf16.mxu0 %v1806_v17 }
 0x25a   : > { %1643 = vmatpush3.bf16.msra.mxu0 %v1806_v17 }
 0x25b   : > { %1644 = vmatprep.subr.bf16.mxu0 %v1807_v20 }
 0x25e   : > { %1645 = vmatpush3.bf16.msra.mxu0 %v1807_v20 }
 0x25f   : > { %1646 = vmatprep.subr.bf16.mxu0 %v1808_v21 }
 0x262   : > { %1647 = vmatpush3.bf16.msra.mxu0 %v1808_v21 }
 0x2d5   : > { %v818_v39 = vpop.xlane.xlu1 %817  ;;  %v815_v40 = vpop.xlane.xlu0 %814 }
 0x2d6   : > { %v826_v42 = vsub.f32 %v809_v28, %v818_v39  ;;  %v825_v44 = vsub.f32 %v808_v29, %v815_v40 }
 0x2d8   : > { %v831_v45 = vmul.f32 1.442695, %v826_v42  ;;  %v829_v46 = vmul.f32 1.442695, %v825_v44 }
 0x2d9   : > { %v824_v47 = vpop.xlane.xlu1 %823  ;;  %v821_v48 = vpop.xlane.xlu0 %820 }
 0x2da   : > { %1809 = vpow2.f32 %v831_v45  ;;  %v828_v49 = vsub.f32 %v811_v34, %v824_v47  ;;  %v827_v50 = vsub.f32 %v810_v35, %v821_v48 }
 0x2db   : > { %1811 = vpow2.f32 %v829_v46 }
 0x2dc   : > { %v835_v51 = vmul.f32 1.442695, %v828_v49  ;;  %v833_v52 = vmul.f32 1.442695, %v827_v50 }
 0x2de   : > { %1813 = vpow2.f32 %v835_v51 }
 0x2df   : > { %1815 = vpow2.f32 %v833_v52 }
 0x2e7   : > { %v1810_v53 = vpop.eup %1809 }
 0x2e8   : > { %v1812_v54 = vpop.eup %1811  ;;  %v840_v55 = vsel %vm812_vm7, %v1810_v53, 0.0 }
 0x2e9   : > { %841 = vadd.xlane.f32.xlu1 %v840_v55  ;;  %v837_v56 = vsel %vm812_vm7, %v1812_v54, 0.0 }
 0x2ea   : > { %838 = vadd.xlane.f32.xlu0 %v837_v56 }
 0x2eb   : > { %v1814_v57 = vpop.eup %1813 }
 0x2ec   : > { %v1816_v58 = vpop.eup %1815  ;;  %v846_v59 = vsel %vm812_vm7, %v1814_v57, 0.0 }
 0x2ed   : > { %847 = vadd.xlane.f32.xlu1 %v846_v59  ;;  %v843_v60 = vsel %vm812_vm7, %v1816_v58, 0.0 }
 0x2ee   : > { %844 = vadd.xlane.f32.xlu0 %v843_v60 }
 0x372   : > { %v842_v61 = vpop.xlane.xlu1 %841 }
 0x373   : > { %1817 = vrcp.f32 %v842_v61  ;;  %v839_v62 = vpop.xlane.xlu0 %838 }
 0x374   : > { %1819 = vrcp.f32 %v839_v62 }
 0x376   : > { %v848_v63 = vpop.xlane.xlu1 %847 }
 0x377   : > { %1821 = vrcp.f32 %v848_v63  ;;  %v845_v0 = vpop.xlane.xlu0 %844 }
 0x378   : > { %1823 = vrcp.f32 %v845_v0 }
 0x380   : > { %v1818_v1 = vpop.eup %1817 }
 0x381   : > { %v1820_v2 = vpop.eup %1819  ;;  %v852_v3 = vmul.f32 %v1818_v1, %v1810_v53 }
 0x382   : > { %v850_v4 = vmul.f32 %v1820_v2, %v1812_v54 }
 0x384   : > { %v1822_v5 = vpop.eup %1821  ;;  %v857_v6 = vpack.c.bf16 %v852_v3, %v850_v4 }
 0x385   : > { %v1824_v7 = vpop.eup %1823  ;;  %v856_v9 = vmul.f32 %v1822_v5, %v1814_v57 }
 0x386   : > { %1628 = vmatprep.mubr.msk.bf16.mxu1 %vm812_vm7, %v857_v6  ;;  %v854_v10 = vmul.f32 %v1824_v7, %v1816_v58 }
 0x388   : > { %v858_v11 = vpack.c.bf16 %v856_v9, %v854_v10 }
 0x38a   : > { %1629 = vmatmul.mubr.msk.bf16.vlgmr.msra.gmra.mxu1 %vm812_vm7, %v858_v11  ;;  %v1074_v11 = vld [vmem:[#allocation10] sm:$0x3] }
 0x38b   : > { %1660 = vmatprep.mubr.msk.f32.mxu1 %vm2066_vm2, %v2065_v38  ;;  %v1078_v13 = vrot.slane %v1074_v11, %v704_v43 }
 0x44a   : > { %v1630_v23 = vpop.f32.mrf.mxu1 }
 0x44b   : > { %v917_v24 = vadd.f32 %v1630_v23, %v1520_v22 }
 0x44c   : > { %v908_v25 = vpop.f32.mrf.mxu1 }
 0x44d   : > { %v929_v28 = vmul.f32 0.044715, %v917_v24  ;;  %v909_v29 = vadd.f32 %v1520_v22, %v908_v25  ;;  %v925_v3 = vmul.f32 0.5, %v917_v24 }
 0x44e   : > { %v1631_v30 = vpop.f32.mrf.mxu1 }
 0x44f   : > { %v933_v31 = vmul.f32 %v929_v28, %v917_v24  ;;  %v927_v32 = vmul.f32 0.044715, %v909_v29  ;;  %v920_v33 = vadd.f32 %v1631_v30, %v1520_v22  ;;  %v923_v0 = vmul.f32 0.5, %v909_v29 }
 0x450   : > { %v911_v34 = vpop.f32.mrf.mxu1 }
 0x451   : > { %v937_v35 = vmul.f32 %v933_v31, %v917_v24  ;;  %v931_v36 = vmul.f32 %v927_v32, %v909_v29  ;;  %v930_v37 = vmul.f32 0.044715, %v920_v33  ;;  %v912_v39 = vadd.f32 %v1520_v22, %v911_v34 }
 0x452   : > { %v926_v62 = vmul.f32 0.5, %v920_v33 }
 0x453   : > { %v941_v40 = vadd.f32 %v937_v35, %v917_v24  ;;  %v935_v42 = vmul.f32 %v931_v36, %v909_v29  ;;  %v934_v44 = vmul.f32 %v930_v37, %v920_v33  ;;  %v928_v45 = vmul.f32 0.044715, %v912_v39 }
 0x454   : > { %v924_v1 = vmul.f32 0.5, %v912_v39 }
 0x455   : > { %v945_v46 = vmul.f32 0.7978846, %v941_v40  ;;  %v938_v47 = vmul.f32 %v934_v44, %v920_v33  ;;  %v939_v48 = vadd.f32 %v935_v42, %v909_v29  ;;  %v932_v49 = vmul.f32 %v928_v45, %v912_v39 }
 0x457   : > { %v942_v50 = vadd.f32 %v938_v47, %v920_v33  ;;  %v943_v51 = vmul.f32 0.7978846, %v939_v48  ;;  %v936_v52 = vmul.f32 %v932_v49, %v912_v39  ;;  %1825 = vtanh.f32 %v945_v46 }
 0x459   : > { %v946_v53 = vmul.f32 0.7978846, %v942_v50  ;;  %v940_v54 = vadd.f32 %v936_v52, %v912_v39  ;;  %1827 = vtanh.f32 %v943_v51 }
 0x45b   : > { %1829 = vtanh.f32 %v946_v53  ;;  %v944_v55 = vmul.f32 0.7978846, %v940_v54 }
 0x45d   : > { %1831 = vtanh.f32 %v944_v55 }
 0x464   : > { %v1826_v56 = vpop.eup %1825 }
 0x465   : > { %v953_v63 = vadd.f32 1.0, %v1826_v56 }
 0x466   : > { %v1828_v57 = vpop.eup %1827 }
 0x467   : > { %v951_v60 = vadd.f32 1.0, %v1828_v57  ;;  %v957_v7 = vmul.f32 %v953_v63, %v925_v3 }
 0x468   : > { %v1830_v58 = vpop.eup %1829 }
 0x469   : > { %v954_v59 = vadd.f32 1.0, %v1830_v58  ;;  %v955_v5 = vmul.f32 %v951_v60, %v923_v0 }
 0x46a   : > { %v1832_v61 = vpop.eup %1831 }
 0x46b   : > { %v952_v2 = vadd.f32 1.0, %v1832_v61  ;;  %v958_v4 = vmul.f32 %v954_v59, %v926_v62 }
 0x46d   : > { %v956_v6 = vmul.f32 %v952_v2, %v924_v1  ;;  %v960_v10 = vpack.c.bf16 %v958_v4, %v957_v7 }
 0x46f   : > { %v959_v9 = vpack.c.bf16 %v956_v6, %v955_v5 }
 0x471   : > { %1648 = vmatprep.mubr.bf16.mxu0 %v959_v9 }
 0x472   : > { %1649 = vmatmul.mubr.bf16.vlgmr.msra.gmra.mxu0 %v960_v10 }
 0x532   : > { %v1650_v12 = vpop.f32.mrf.mxu0 }
 0x533   : > { %v1081_v20 = vmul.f32 %v1650_v12, %v1078_v13 }
 0x534   : > { %v1059_v14 = vpop.f32.mrf.mxu0 }
 0x535   : > { %v1079_v15 = vmul.f32 %v1078_v13, %v1059_v14 }
 0x536   : > { %v1651_v16 = vpop.f32.mrf.mxu0 }
 0x537   : > { %1083 = vadd.xlane.f32.xlu0 %v1079_v15  ;;  %1653 = vmatpush3.xpose.msra.mxu1 %v1651_v16  ;;  %v1082_v22 = vmul.f32 %v1651_v16, %v1078_v13  ;;  %v1232_v43 = vpack.c.bf16 %v1651_v16, %v1650_v12 }
 0x538   : > { %v1062_v17 = vpop.f32.mrf.mxu0  ;;  %1654 = vmatprep.subr.mxu1 %v2065_v38 }
 0x539   : > { %v1080_v21 = vmul.f32 %v1078_v13, %v1062_v17  ;;  %v1231_v23 = vpack.c.bf16 %v1062_v17, %v1059_v14 }
 0x53b   : > { %1087 = vadd.xlane.f32.xlu0 %v1081_v20  ;;  %1655 = vmatpush3.xpose.msra.mxu1 %v1650_v12 }
 0x53c   : > { %1085 = vadd.xlane.f32.xlu1 %v1080_v21  ;;  %1656 = vmatprep.subr.mxu1 %v2065_v38 }
 0x53f   : > { %1657 = vmatpush3.xpose.msra.mxu1 %v1062_v17 }
 0x540   : > { %1089 = vadd.xlane.f32.xlu1 %v1082_v22  ;;  %1658 = vmatprep.subr.mxu1 %v2065_v38 }
 0x543   : > { %1659 = vmatpush3.xpose.msra.mxu1 %v1059_v14 }
 0x544   : > { %1663 = vmatprep.subr.bf16.mxu1 %v1232_v43 }
 0x546   : > { %1661 = vmatmul.mubr.f32.vlgmr.msra.gmra.mxu1 %v1074_v11 }
 0x547   : > { %1664 = vmatpush3.bf16.msra.mxu1 %v1232_v43 }
 0x548   : > { %1665 = vmatprep.subr.bf16.mxu1 %v1231_v23 }
 0x54b   : > { %1666 = vmatpush3.bf16.msra.mxu1 %v1231_v23 }
 0x54c   : > { %1671 = vmatprep.subr.mxu1 %v2065_v38 }
 0x5c0   : > { %v1084_v24 = vpop.xlane.xlu0 %1083 }
 0x5c4   : > { %v1088_v29 = vpop.xlane.xlu0 %1087 }
 0x5c5   : > { %v1086_v25 = vpop.xlane.xlu1 %1085 }
 0x5c9   : > { %v1090_v31 = vpop.xlane.xlu1 %1089 }
 0x606   : > { %v1157_v28 = vpop.f32.mrf.mxu1 }
 0x607   : > { %v1164_v30 = vrot.slane %v1157_v28, %v790_v8 }
 0x608   : > { %v1662_v32 = vpop.f32.mrf.mxu1 }
 0x609   : > { %v1165_v33 = vadd.f32 %v1164_v30, %v1084_v24  ;;  %v1166_v34 = vadd.f32 %v1164_v30, %v1086_v25  ;;  %v1167_v35 = vadd.f32 %v1164_v30, %v1088_v29  ;;  %v1168_v36 = vadd.f32 %v1164_v30, %v1090_v31  ;;  %v1531_v24 = vld [vmem:[%s2402_s8] ss:$0 sm:$0xff] }
 0x60b   : > { %vm1169_vm8 = vcmp.gt.f32.partialorder %v1165_v33, 0.0  ;;  %v1173_v37 = vmul.f32 0.2, %v1165_v33  ;;  %vm1170_vm9 = vcmp.gt.f32.partialorder %v1166_v34, 0.0  ;;  %v1174_v39 = vmul.f32 0.2, %v1166_v34 }
 0x60c   : > { %vm1171_vm10 = vcmp.gt.f32.partialorder %v1167_v35, 0.0  ;;  %v1175_v40 = vmul.f32 0.2, %v1167_v35  ;;  %vm1172_vm11 = vcmp.gt.f32.partialorder %v1168_v36, 0.0  ;;  %v1176_v42 = vmul.f32 0.2, %v1168_v36 }
 0x60d   : > { %v1177_v44 = vsel %vm1169_vm8, %v1165_v33, %v1173_v37  ;;  %v1178_v45 = vsel %vm1170_vm9, %v1166_v34, %v1174_v39  ;;  %v1295_v33 = vld [vmem:[#allocation4] sm:$0xf] }
 0x60e   : > { %v1181_v46 = vadd.f32 %v1177_v44, %v2314_v19  ;;  %v1182_v41 = vadd.f32 %v1178_v45, %v2309_v18  ;;  %v1179_v8 = vsel %vm1171_vm10, %v1167_v35, %v1175_v40  ;;  %v1180_v47 = vsel %vm1172_vm11, %v1168_v36, %v1176_v42 }
 0x60f   : > { %v1183_v50 = vadd.f32 %v1179_v8, %v2324_v27  ;;  %v1184_v51 = vadd.f32 %v1180_v47, %v2319_v26 }
 0x610   : > { %v1185_v48 = vsel %vm812_vm7, %v1181_v46, -inf  ;;  %v1188_v49 = vsel %vm812_vm7, %v1182_v41, -inf }
 0x611   : > { %1186 = vmax.xlane.f32.xlu0 %v1185_v48  ;;  %1189 = vmax.xlane.f32.xlu1 %v1188_v49  ;;  %v1191_v52 = vsel %vm812_vm7, %v1183_v50, -inf  ;;  %v1194_v53 = vsel %vm812_vm7, %v1184_v51, -inf }
 0x615   : > { %1192 = vmax.xlane.f32.xlu0 %v1191_v52  ;;  %1195 = vmax.xlane.f32.xlu1 %v1194_v53 }
 0x69a   : > { %v1187_v19 = vpop.xlane.xlu0 %1186  ;;  %v1190_v18 = vpop.xlane.xlu1 %1189 }
 0x69b   : > { %v1197_v54 = vsub.f32 %v1181_v46, %v1187_v19  ;;  %v1198_v55 = vsub.f32 %v1182_v41, %v1190_v18 }
 0x69d   : > { %v1201_v56 = vmul.f32 1.442695, %v1197_v54  ;;  %v1203_v57 = vmul.f32 1.442695, %v1198_v55 }
 0x69e   : > { %v1193_v58 = vpop.xlane.xlu0 %1192  ;;  %v1196_v59 = vpop.xlane.xlu1 %1195 }
 0x69f   : > { %1833 = vpow2.f32 %v1201_v56  ;;  %v1199_v27 = vsub.f32 %v1183_v50, %v1193_v58  ;;  %v1200_v60 = vsub.f32 %v1184_v51, %v1196_v59 }
 0x6a0   : > { %1835 = vpow2.f32 %v1203_v57 }
 0x6a1   : > { %v1205_v26 = vmul.f32 1.442695, %v1199_v27  ;;  %v1207_v61 = vmul.f32 1.442695, %v1200_v60 }
 0x6a3   : > { %1837 = vpow2.f32 %v1205_v26 }
 0x6a4   : > { %1839 = vpow2.f32 %v1207_v61 }
 0x6ac   : > { %v1834_v62 = vpop.eup %1833 }
 0x6ad   : > { %v1836_v63 = vpop.eup %1835  ;;  %v1209_v0 = vsel %vm812_vm7, %v1834_v62, 0.0 }
 0x6ae   : > { %1210 = vadd.xlane.f32.xlu0 %v1209_v0  ;;  %v1212_v1 = vsel %vm812_vm7, %v1836_v63, 0.0 }
 0x6af   : > { %1213 = vadd.xlane.f32.xlu1 %v1212_v1 }
 0x6b0   : > { %v1838_v2 = vpop.eup %1837 }
 0x6b1   : > { %v1840_v3 = vpop.eup %1839  ;;  %v1215_v4 = vsel %vm812_vm7, %v1838_v2, 0.0 }
 0x6b2   : > { %1216 = vadd.xlane.f32.xlu0 %v1215_v4  ;;  %v1218_v5 = vsel %vm812_vm7, %v1840_v3, 0.0 }
 0x6b3   : > { %1219 = vadd.xlane.f32.xlu1 %v1218_v5 }
 0x737   : > { %v1211_v6 = vpop.xlane.xlu0 %1210 }
 0x738   : > { %1841 = vrcp.f32 %v1211_v6  ;;  %v1214_v7 = vpop.xlane.xlu1 %1213 }
 0x739   : > { %1843 = vrcp.f32 %v1214_v7 }
 0x73b   : > { %v1217_v9 = vpop.xlane.xlu0 %1216 }
 0x73c   : > { %1845 = vrcp.f32 %v1217_v9  ;;  %v1220_v10 = vpop.xlane.xlu1 %1219 }
 0x73d   : > { %1847 = vrcp.f32 %v1220_v10 }
 0x745   : > { %v1842_v11 = vpop.eup %1841 }
 0x746   : > { %v1844_v12 = vpop.eup %1843  ;;  %v1222_v13 = vmul.f32 %v1842_v11, %v1834_v62 }
 0x747   : > { %v1224_v14 = vmul.f32 %v1844_v12, %v1836_v63 }
 0x749   : > { %v1846_v15 = vpop.eup %1845  ;;  %v1229_v16 = vpack.c.bf16 %v1224_v14, %v1222_v13 }
 0x74a   : > { %v1848_v17 = vpop.eup %1847  ;;  %v1226_v20 = vmul.f32 %v1846_v15, %v1838_v2 }
 0x74b   : > { %v1228_v21 = vmul.f32 %v1848_v17, %v1840_v3  ;;  %1667 = vmatprep.mubr.msk.bf16.mxu1 %vm812_vm7, %v1229_v16 }
 0x74d   : > { %v1230_v22 = vpack.c.bf16 %v1228_v21, %v1226_v20 }
 0x74f   : > { %1668 = vmatmul.mubr.msk.bf16.vlgmr.msra.gmra.mxu1 %vm812_vm7, %v1230_v22 }
 0x750   : > { %1679 = vmatprep.mubr.msk.f32.mxu1 %vm2066_vm2, %v2065_v38 }
 0x80f   : > { %v1669_v43 = vpop.f32.mrf.mxu1 }
 0x810   : > { %v1289_v30 = vadd.f32 %v1669_v43, %v1531_v24 }
 0x811   : > { %v1280_v23 = vpop.f32.mrf.mxu1 }
 0x812   : > { %v1281_v32 = vadd.f32 %v1531_v24, %v1280_v23 }
 0x813   : > { %v1670_v25 = vpop.f32.mrf.mxu1 }
 0x814   : > { %v1292_v28 = vadd.f32 %v1670_v25, %v1531_v24 }
 0x815   : > { %v1283_v29 = vpop.f32.mrf.mxu1 }
 0x816   : > { %1672 = vmatpush3.msra.mxu1 %v1292_v28  ;;  %v1284_v31 = vadd.f32 %v1531_v24, %v1283_v29 }
 0x817   : > { %1673 = vmatprep.subr.mxu1 %v2065_v38 }
 0x818   : > { %1674 = vmatpush3.msra.mxu1 %v1289_v30 }
 0x819   : > { %1675 = vmatprep.subr.mxu1 %v2065_v38 }
 0x81a   : > { %1676 = vmatpush3.msra.mxu1 %v1284_v31 }
 0x81b   : > { %1677 = vmatprep.subr.mxu1 %v2065_v38 }
 0x81c   : > { %1678 = vmatpush3.msra.mxu1 %v1281_v32 }
 0x81d   : > { %1680 = vmatmul.mubr.msk.f32.vlgmr.msra.gmra.mxu1 %vm812_vm7, %v1295_v33 }
 0x8dd   : > { %v1365_v34 = vpop.f32.mrf.mxu1 }
 0x8de   : > { %1369 = vst [vmem:[%s417_s26] sm:$0xf] %v1365_v34 }
 0x8df   : > { %v1681_v35 = vpop.f32.mrf.mxu1 }
 0x8e0 PF: > { %p22_p9 = scmp.ge.s32.totalorder %s2204_s22, 4   ;;  %s2421_s30 = smov %s2045_s10 }
 0x8e1   : > { %s2422_s10 = smov %s2049_s11  ;;  %s2423_s11 = smov %s2215_s14 }
 0x8e2   : > { %s2424_s12 = smov %s2204_s22  ;;  %24 = sbr.rel (!%p22_p9) target bundleno = 6 (0x6), region = 116 }
 0x8e7   :  { %1389 = vsyncpa [#allocation3], 1 }
 0x8e8   :  { %1391 = vsyncpa [#allocation3 + $0x1], 1 }
 0x8e9   :  { %1392 = vsyncpa [#allocation5], 1 }
 0x8ea   :  { %1393 = vsyncpa [#allocation8], 1 }
 0x8eb   :  { %1394 = vsyncpa [#allocation11], 1 }

// kernel: gat_goal_forward.3
= control target key start
LH: loop header
LB: loop body
LE: loop exit
PB: predicated region body
PF: predicated region fallthrough
CT: control target
= control target key end

     0   :  { %s9126_s0 = inlined_call_operand.vmem [shape: f32[128,128], index: 0, kind: input, shape index: {}]   ;;  %s9127_s1 = inlined_call_operand.vmem [shape: f32[128,64], index: 1, kind: input, shape index: {}]   ;;  %s9128_s2 = inlined_call_operand.vmem [shape: f32[1,64], index: 2, kind: input, shape index: {}]   ;;  %s9129_s3 = inlined_call_operand.vmem [shape: f32[1,64], index: 3, kind: input, shape index: {}]   ;;  %s9130_s4 = inlined_call_operand.vmem [shape: bf16[2,64,192], index: 4, kind: input, shape index: {}]   ;;  %s9131_s5 = inlined_call_operand.vmem [shape: f32[2,1,192], index: 5, kind: input, shape index: {}]   ;;  %s9132_s6 = inlined_call_operand.hbm [shape: bf16[2,64,64], index: 6, kind: input, shape index: {}]   ;;  %s9133_s7 = inlined_call_operand.vmem [shape: f32[2,1,64], index: 7, kind: input, shape index: {}, may-alias: {7,9,13,15}]   ;;  %s9134_s8 = inlined_call_operand.vmem [shape: f32[2,1,64], index: 8, kind: input, shape index: {}, may-alias: {8,14}]   ;;  %s9135_s9 = inlined_call_operand.vmem [shape: f32[2,1,64], index: 9, kind: input, shape index: {}, may-alias: {7,9,13,15}]   ;;  %s9136_s10 = inlined_call_operand.hbm [shape: bf16[2,64,128], index: 10, kind: input, shape index: {}]   ;;  %s9137_s11 = inlined_call_operand.vmem [shape: f32[2,1,128], index: 11, kind: input, shape index: {}]   ;;  %s9138_s12 = inlined_call_operand.hbm [shape: bf16[2,128,64], index: 12, kind: input, shape index: {}]   ;;  %s9139_s13 = inlined_call_operand.vmem [shape: f32[2,1,64], index: 13, kind: input, shape index: {}, may-alias: {7,9,13,15}]   ;;  %s9140_s14 = inlined_call_operand.vmem [shape: f32[2,1,64], index: 14, kind: input, shape index: {}, may-alias: {8,14}]   ;;  %s9141_s15 = inlined_call_operand.vmem [shape: f32[2,1,64], index: 15, kind: input, shape index: {}, may-alias: {7,9,13,15}]   ;;  %s9142_s16 = inlined_call_operand.vmem [shape: f32[128,64], index: 16, kind: output, shape index: {}]  }
   0x1   :  { %9164 = sst [smem:[#allocation22_spill]] %s9126_s0 }
   0x2   :  { %9165 = sst [smem:[#allocation23_spill]] %s9127_s1 }
   0x3   :  { %9166 = sst [smem:[#allocation24_spill]] %s9128_s2 }
   0x4   :  { %9167 = sst [smem:[#allocation25_spill]] %s9129_s3 }
   0x5   :  { %9168 = sst [smem:[#allocation26_spill]] %s9130_s4 }
   0x6   :  { %9169 = sst [smem:[#allocation27_spill]] %s9131_s5 }
   0x7   :  { %9170 = sst [smem:[#allocation28_spill]] %s9132_s6 }
   0x8   :  { %9171 = sst [smem:[#allocation29_spill]] %s9136_s10 }
   0x9   :  { %9172 = sst [smem:[#allocation30_spill]] %s9138_s12 }
   0xa   :  { %9173 = sst [smem:[#allocation31_spill]] %s9140_s14 }
   0xb   :  { %9174 = sst [smem:[#allocation32_spill]] %s9141_s15 }
   0xc   :  { %9175 = sst [smem:[#allocation33_spill]] %s9142_s16 }
   0xd   :  { %21 = vsyncpa [#allocation4], 0 }
   0xe   :  { %23 = vsyncpa [#allocation4 + $0x1], 0 }
   0xf   :  { %24 = vsyncpa [#allocation6], 0 }
  0x10   :  { %26 = vsyncpa [#allocation6 + $0x1], 0  ;;  %s6512_s21 = smov 0   ;;  %s6514_s22 = smov 0  }
  0x11   :  { %s6516_s23 = smov 0   ;;  %s6518_s24 = smov 0  }
  0x12 LB: > { %9176 = sst [smem:[#allocation10_spill]] %s6408_s23  ;;  %s6531_s25 = sadd.s32 4294967295, %s6412_s24   ;;  %s6412_s24 = sphi %s6518_s24, %s9231_s24   ;;  %s6408_s23 = sphi %s6516_s23, %s9233_s23   ;;  %s6404_s22 = sphi %s6514_s22, %s9235_s22   ;;  %s6400_s21 = sphi %s6512_s21, %s9234_s21  }
  0x13   : > { %s6534_s26 = sadd.s32 1, %s6412_s24   ;;  %s175_s28 = sadd.s32 1, %s6408_s23 }
  0x14   : > { %9177 = sst [smem:[#allocation11_spill]] %s6534_s26  ;;  %s172_s27 = ssub.s32 %s6412_s24, %s6534_s26 }
  0x15   : > { %p173_p0 = scmp.eq.s32.totalorder %s172_s27, 0  ;;  %p182_p1 = scmp.ne.s32.totalorder %s6408_s23, %s6404_s22 }
  0x16   : > { %p183_p2 = scmp.eq.s32.totalorder %s6412_s24, 0  ;;  %p188_p3 = scmp.ne.s32.totalorder %s6404_s22, %s6400_s21 }
  0x17   : > { %s6544_s29 = scalar_select %p173_p0, %s6408_s23, %s175_s28  }
  0x18   : > { %p184_p4 = por %p183_p2, %p182_p1  ;;  %p189_p5 = scmp.eq.s32.totalorder %s6531_s25, 0 }
  0x19   : > { %9178 = sst [smem:[#allocation12_spill]] %s6544_s29  ;;  %p5803_p6 = scmp.lt.s32.totalorder %s6412_s24, 2 }
  0x1a   : > { %p6548_p7 = por %p189_p5, %p188_p3  ;;  %s6553_s0 = sand.u32 1, %s6408_s23  }
  0x1b   : > { %s9148_s17 = sshll.u32 %s6553_s0, 5  ;;  %s9149_s18 = sshll.u32 %s6412_s24, 9 }
  0x1c   : > { %s9179_s30 = scalar_select %p6548_p7, 1, 0 }
  0x1d   : > { %p6557_p8 = pnand %p5803_p6, %p184_p4  ;;  %s533_s20 = sand.u32 1, %s6412_s24  }
  0x1e   : > { %s9181_s10 = sld [smem:[#allocation29_spill]]  ;;  %s537_s29 = scalar_lea.vmem [#allocation5], %s9148_s17 }
  0x1f   : > { %s544_s23 = sshll.u32 %s537_s29, 4  ;;  %s6575_s26 = scalar_lea.sflag [#allocation6], %s533_s20  ;;  %s6572_s23 = int_to_ptr.vmem [resolvable:$true] %s544_s23 }
  0x20   : > { %p6581_p12 = pneg %p6557_p8 }
  0x24   : > { %s6567_s28 = scalar_lea.hbm %s9181_s10, %s9149_s18  ;;  %s6295_s29 = scalar_lea.hbm %s9181_s10, 1024 }
  0x25   : > { %s6290_s16 = scalar_lea.hbm %s6567_s28, 512  ;;  %p6296_p1 = scmp.lt.s32.totalorder %s6567_s28, %s9181_s10 }
  0x26   : > { %p6291_p11 = scmp.ne.s32.totalorder %s6567_s28, %s6290_s16  ;;  %p6297_p2 = scmp.lt.s32.totalorder %s6295_s29, %s6290_s16 }
  0x28   : > { %p6293_p13 = pnand %p6581_p12, %p6291_p11  ;;  %p6298_p3 = por %p6297_p2, %p6296_p1 }
  0x2a   : > { %p6294_p0 = pneg %p6293_p13 }
  0x2c   : > { %p6299_p4 = pnand %p6298_p3, %p6294_p0 }
  0x2e   : > { %6302 = shalt.err (!%p6299_p4)
}
  0x2f   : > { %s6303_s20 = scalar_lea.vmem %s6572_s23, 512  ;;  %s6414_s2 = smov [#allocation5]  }
  0x30   : > { %p6304_p5 = scmp.ne.s32.totalorder %s6572_s23, %s6303_s20  ;;  %s6308_s21 = sshll.u32 %s6414_s2, 4  ;;  %s6309_s21 = int_to_ptr.vmem [resolvable:$false] %s6308_s21 }
  0x31   : > { %s6310_s27 = scalar_lea.vmem %s6309_s21, 1024  ;;  %p6311_p13 = scmp.lt.s32.totalorder %s6572_s23, %s6309_s21 }
  0x32   : > { %p6306_p6 = pnand %p6304_p5, %p6581_p12  ;;  %p6312_p9 = scmp.lt.s32.totalorder %s6310_s27, %s6303_s20 }
  0x34   : > { %p6307_p11 = pneg %p6306_p6  ;;  %p6313_p10 = por %p6312_p9, %p6311_p13 }
  0x36   : > { %p6314_p7 = pnand %p6313_p10, %p6307_p11 }
  0x38   : > { %6317 = shalt.err (!%p6314_p7)
}
  0x39   : > { %s9152_s16 = smov 64   ;;  %s9154_s2 = smov 4  }
  0x3a   : > { %5799 = dma.hbm_to_vmem [thread:$0]  (!%p6557_p8), %s6567_s28, 512, %s6572_s23, %s6575_s26, %s9152_s16, %s9152_s16, %s9154_s2  }
  0x3b   : > { %p9183_p9 = scmp.lt.s32.totalorder %s6412_s24, 3  ;;  %p9184_p7 = scmp.ge.s32.totalorder %s6412_s24, 1 }
  0x3c   : > { %s9186_s18 = sshll.u32 %s6412_s24, 9  ;;  %s9187_s6 = sld [smem:[#allocation28_spill]] }
  0x3d   : > { %p6611_p10 = pnand %p9184_p7, %p9183_p9  ;;  %s9188_s27 = sshll.u32 %s6553_s0, 5 }
  0x3e   : > { %s498_s10 = scalar_lea.vmem [#allocation3], %s9188_s27  ;;  %s5033_s15 = sshll.u32 %s6553_s0, 6 }
  0x3f   : > { %s9185_s17 = scalar_select %p6611_p10, 1, 0 }
  0x40   : > { %s505_s1 = sshll.u32 %s498_s10, 4  ;;  %s495_s23 = scalar_lea.sflag [#allocation4], %s6553_s0  ;;  %s6625_s1 = int_to_ptr.vmem [resolvable:$true] %s505_s1 }
  0x42   : > { %s6620_s21 = scalar_lea.hbm %s9187_s6, %s9186_s18  ;;  %s6323_s18 = scalar_lea.hbm %s9187_s6, 1024 }
  0x43   : > { %s6318_s28 = scalar_lea.hbm %s6620_s21, 512  ;;  %p6324_p3 = scmp.lt.s32.totalorder %s6620_s21, %s9187_s6 }
  0x44   : > { %p6319_p0 = scmp.ne.s32.totalorder %s6620_s21, %s6318_s28  ;;  %p6325_p4 = scmp.lt.s32.totalorder %s6323_s18, %s6318_s28 }
  0x46   : > { %p6321_p1 = pnand %p6319_p0, %p6581_p12  ;;  %p6326_p5 = por %p6325_p4, %p6324_p3 }
  0x48   : > { %p6322_p2 = pneg %p6321_p1 }
  0x4a   : > { %p6327_p6 = pnand %p6326_p5, %p6322_p2 }
  0x4c   : > { %6330 = shalt.err (!%p6327_p6)
}
  0x4d   : > { %s6331_s10 = scalar_lea.vmem %s6625_s1, 512  ;;  %s6417_s27 = smov [#allocation3]  }
  0x4e   : > { %p6332_p11 = scmp.ne.s32.totalorder %s6625_s1, %s6331_s10  ;;  %s6336_s16 = sshll.u32 %s6417_s27, 4  ;;  %s6337_s16 = int_to_ptr.vmem [resolvable:$false] %s6336_s16 }
  0x4f   : > { %s6338_s2 = scalar_lea.vmem %s6337_s16, 1024  ;;  %p6339_p7 = scmp.lt.s32.totalorder %s6625_s1, %s6337_s16 }
  0x50   : > { %p6334_p13 = pnand %p6332_p11, %p6581_p12  ;;  %p6340_p0 = scmp.lt.s32.totalorder %s6338_s2, %s6331_s10 }
  0x52   : > { %p6335_p9 = pneg %p6334_p13  ;;  %p6341_p1 = por %p6340_p0, %p6339_p7 }
  0x54   : > { %p6342_p10 = pnand %p6341_p1, %p6335_p9 }
  0x56   : > { %6345 = shalt.err (!%p6342_p10)
}
  0x57   : > { %s9189_s28 = smov 4   ;;  %s9190_s18 = smov 64  }
  0x58   : > { %5796 = dma.hbm_to_vmem [thread:$0]  (!%p6557_p8), %s6620_s21, 512, %s6625_s1, %s495_s23, %s9190_s18, %s9190_s18, %s9189_s28  }
  0x59   : > { %s5161_s29 = sshll.u32 %s6412_s24, 10  ;;  %s564_s20 = scalar_lea.vmem [#allocation7], %s5033_s15 }
  0x5a   : > { %s571_s27 = sshll.u32 %s564_s20, 4  ;;  %s9191_s12 = sld [smem:[#allocation30_spill]]  ;;  %s572_s27 = int_to_ptr.vmem [resolvable:$true] %s571_s27 }
  0x60   : > { %s6657_s2 = scalar_lea.hbm %s9191_s12, %s5161_s29  ;;  %s6351_s24 = scalar_lea.hbm %s9191_s12, 2048 }
  0x61   : > { %s6346_s6 = scalar_lea.hbm %s6657_s2, 1024  ;;  %p6352_p4 = scmp.lt.s32.totalorder %s6657_s2, %s9191_s12 }
  0x62   : > { %p6347_p10 = scmp.ne.s32.totalorder %s6657_s2, %s6346_s6  ;;  %p6353_p5 = scmp.lt.s32.totalorder %s6351_s24, %s6346_s6 }
  0x64   : > { %p6349_p2 = pnand %p6347_p10, %p6581_p12  ;;  %p6354_p6 = por %p6353_p5, %p6352_p4 }
  0x66   : > { %p6350_p3 = pneg %p6349_p2 }
  0x68   : > { %p6355_p11 = pnand %p6354_p6, %p6350_p3 }
  0x6a   : > { %6358 = shalt.err (!%p6355_p11)
}
  0x6b   : > { %s6359_s21 = scalar_lea.vmem %s572_s27, 1024  ;;  %s6418_s23 = smov [#allocation7]  }
  0x6c   : > { %p6360_p13 = scmp.ne.s32.totalorder %s572_s27, %s6359_s21  ;;  %s6364_s29 = sshll.u32 %s6418_s23, 4  ;;  %s6365_s29 = int_to_ptr.vmem [resolvable:$false] %s6364_s29 }
  0x6d   : > { %s6366_s20 = scalar_lea.vmem %s6365_s29, 2048  ;;  %p6367_p0 = scmp.lt.s32.totalorder %s572_s27, %s6365_s29 }
  0x6e   : > { %p6362_p9 = pnand %p6360_p13, %p6581_p12  ;;  %p6368_p1 = scmp.lt.s32.totalorder %s6366_s20, %s6359_s21 }
  0x70   : > { %p6363_p7 = pneg %p6362_p9  ;;  %p6369_p10 = por %p6368_p1, %p6367_p0 }
  0x72   : > { %p6370_p2 = pnand %p6369_p10, %p6363_p7 }
  0x74   : > { %6373 = shalt.err (!%p6370_p2)
}
  0x75   : > { %5802 = dma.hbm_to_vmem [thread:$0]  (!%p6557_p8), %s6657_s2, 1024, %s572_s27, %s6575_s26, %s9190_s18, %s9190_s18, %s9189_s28  }
  0x76   : > { %p9192_p12 = scmp.ne.s32.totalorder %s9185_s17, 0 }
  0x78   : > { %601 = sbr.rel (%p9192_p12) target bundleno = 4163 (0x1043), region = 84 }
  0x7d   : > { %s603_s3 = sand.u32 1, %s6404_s22   ;;  %p9193_p3 = scmp.ne.s32.totalorder %s9179_s30, 0 }
  0x7e   : > { %s5037_s6 = sshll.u32 %s603_s3, 5  ;;  %s604_s14 = scalar_lea.sflag [#allocation4], %s603_s3 }
  0x7f   : > { %s6682_s16 = scalar_lea.vmem [#allocation3], %s5037_s6 }
  0x80   : > { %6391 = dma.done.wait (%p9193_p3), %s604_s14, 512  }
  0x81   : > { %6393 = vsyncadd (%p9193_p3), %s604_s14, 4294966784  ;;  %s612_s19 = sand.u32 1, %s6531_s25   ;;  %s6689_s26 = scalar_lea.vmem [#allocation5], %s5037_s6 }
  0x82   : > { %s613_s10 = scalar_lea.sflag [#allocation6], %s612_s19 }
  0x83   : > { %6395 = dma.done.wait (%p9193_p3), %s613_s10, 1536  }
  0x84   : > { %6397 = vsyncadd (%p9193_p3), %s613_s10, 4294965760  ;;  %s5039_s17 = sshll.u32 %s603_s3, 6  ;;  %p709_p8 = scmp.lt.s32.totalorder %s6531_s25, 1 }
  0x85   : > { %s9194_s4 = sld [smem:[#allocation26_spill]]  ;;  %s6739_s6 = scalar_lea.vmem [#allocation7], %s5039_s17 }
  0x86   : > { %s6697_s28 = scalar_select %p709_p8, %s6531_s25, 1 }
  0x87   : > { %s9195_s5 = sld [smem:[#allocation27_spill]]  ;;  %p5043_p4 = scmp.ne.s32.totalorder %s6531_s25, 0 }
  0x88   : > { %s5162_s18 = sshll.u32 %s6697_s28, 6  ;;  %s5042_s27 = sshll.u32 %s6697_s28, 1 }
  0x89   : > { %s726_s10 = scalar_lea.vmem %s9135_s9, %s6697_s28  ;;  %s729_s30 = scalar_lea.vmem %s9137_s11, %s6697_s28 }
  0x8a   : > { %s9196_s21 = sld [smem:[#allocation31_spill]] }
  0x8b   : > { %s6704_s1 = scalar_lea.vmem %s9194_s4, %s5162_s18  ;;  %s9197_s20 = sld [smem:[#allocation32_spill]] }
  0x8c   : > { %s9198_s2 = sld [smem:[#allocation23_spill]] (!%p5043_p4) }
  0x8d   : > { %s6709_s0 = scalar_lea.vmem %s9195_s5, %s5042_s27  ;;  %s732_s27 = scalar_lea.vmem %s9139_s13, %s6697_s28 }
  0x8e   : > { %743 = sbr.rel (%p5043_p4) target bundleno = 489 (0x1e9), region = 100  ;;  %s9199_s17 = sld [smem:[#allocation24_spill]] (!%p5043_p4) }
  0x90   : > { %s735_s23 = scalar_lea.vmem %s9196_s21, %s6697_s28  ;;  %s9200_s21 = sld [smem:[#allocation25_spill]] (!%p5043_p4) }
  0x91   : > { %s738_s3 = scalar_lea.vmem %s9197_s20, %s6697_s28 }
  0x93   : > { %v744_v0 = vld [vmem:[%s9198_s2] sm:$0xff]  ;;  %vm762_vm0 = vcmask 523264   ;;  %v746_v1 = vld [vmem:[%s9198_s2 + $0x10] sm:$0xff]  ;;  %v745_v2 = vld [vmem:[%s9198_s2 + $0x8] sm:$0xff] }
  0x94   : > { %v763_v3 = vsel %vm762_vm0, %v744_v0, 0.0  ;;  %v769_v4 = vsel %vm762_vm0, %v746_v1, 0.0  ;;  %v747_v5 = vld [vmem:[%s9198_s2 + $0x18] sm:$0xff]  ;;  %v766_v6 = vsel %vm762_vm0, %v745_v2, 0.0  ;;  %v748_v8 = vld [vmem:[%s9198_s2 + $0x20] sm:$0xff]  ;;  %v749_v9 = vld [vmem:[%s9198_s2 + $0x28] sm:$0xff] }
  0x95   : > { %764 = vadd.xlane.f32.xlu0 %v763_v3  ;;  %770 = vadd.xlane.f32.xlu1 %v769_v4  ;;  %v772_v7 = vsel %vm762_vm0, %v747_v5, 0.0  ;;  %v775_v10 = vsel %vm762_vm0, %v748_v8, 0.0  ;;  %v778_v11 = vsel %vm762_vm0, %v749_v9, 0.0  ;;  %v6769_v12 = vld [vmem:[%s9198_s2 + $0x30] sm:$0xff]  ;;  %v6774_v13 = vld [vmem:[%s9198_s2 + $0x38] sm:$0xff]  ;;  %v6783_v16 = vld [vmem:[%s9198_s2 + $0x40] sm:$0xff] }
  0x96   : > { %v781_v14 = vsel %vm762_vm0, %v6769_v12, 0.0  ;;  %v784_v15 = vsel %vm762_vm0, %v6774_v13, 0.0  ;;  %v6788_v17 = vld [vmem:[%s9198_s2 + $0x48] sm:$0xff]  ;;  %v787_v18 = vsel %vm762_vm0, %v6783_v16, 0.0  ;;  %v6797_v20 = vld [vmem:[%s9198_s2 + $0x50] sm:$0xff]  ;;  %v6802_v21 = vld [vmem:[%s9198_s2 + $0x58] sm:$0xff] }
  0x97   : > { %v790_v19 = vsel %vm762_vm0, %v6788_v17, 0.0  ;;  %v793_v22 = vsel %vm762_vm0, %v6797_v20, 0.0  ;;  %v796_v23 = vsel %vm762_vm0, %v6802_v21, 0.0  ;;  %v6811_v24 = vld [vmem:[%s9198_s2 + $0x60] sm:$0xff]  ;;  %v6816_v25 = vld [vmem:[%s9198_s2 + $0x68] sm:$0xff]  ;;  %v6825_v28 = vld [vmem:[%s9198_s2 + $0x70] sm:$0xff] }
  0x98   : > { %v799_v26 = vsel %vm762_vm0, %v6811_v24, 0.0  ;;  %v802_v27 = vsel %vm762_vm0, %v6816_v25, 0.0  ;;  %v6830_v29 = vld [vmem:[%s9198_s2 + $0x78] sm:$0xff]  ;;  %v805_v30 = vsel %vm762_vm0, %v6825_v28, 0.0 }
  0x99   : > { %767 = vadd.xlane.f32.xlu0 %v766_v6  ;;  %773 = vadd.xlane.f32.xlu1 %v772_v7  ;;  %v808_v31 = vsel %vm762_vm0, %v6830_v29, 0.0 }
  0x9d   : > { %776 = vadd.xlane.f32.xlu0 %v775_v10  ;;  %779 = vadd.xlane.f32.xlu1 %v778_v11 }
  0xa1   : > { %782 = vadd.xlane.f32.xlu0 %v781_v14  ;;  %785 = vadd.xlane.f32.xlu1 %v784_v15 }
  0xa5   : > { %788 = vadd.xlane.f32.xlu0 %v787_v18  ;;  %791 = vadd.xlane.f32.xlu1 %v790_v19 }
  0xa9   : > { %794 = vadd.xlane.f32.xlu0 %v793_v22  ;;  %797 = vadd.xlane.f32.xlu1 %v796_v23 }
  0xad   : > { %800 = vadd.xlane.f32.xlu0 %v799_v26  ;;  %803 = vadd.xlane.f32.xlu1 %v802_v27 }
  0xb1   : > { %806 = vadd.xlane.f32.xlu0 %v805_v30  ;;  %809 = vadd.xlane.f32.xlu1 %v808_v31 }
 0x11e   : > { %v765_v32 = vpop.xlane.xlu0 %764  ;;  %v771_v33 = vpop.xlane.xlu1 %770 }
 0x11f   : > { %v812_v34 = vmul.f32 0.015625, %v765_v32  ;;  %v814_v35 = vmul.f32 0.015625, %v771_v33 }
 0x121   : > { %v6836_v36 = vsub.f32 %v744_v0, %v812_v34  ;;  %v6838_v37 = vsub.f32 %v746_v1, %v814_v35 }
 0x122   : > { %v768_v38 = vpop.xlane.xlu0 %767  ;;  %v774_v39 = vpop.xlane.xlu1 %773 }
 0x123   : > { %v813_v40 = vmul.f32 0.015625, %v768_v38  ;;  %v815_v41 = vmul.f32 0.015625, %v774_v39  ;;  %v844_v42 = vmul.f32 %v6836_v36, %v6836_v36  ;;  %v846_v43 = vmul.f32 %v6838_v37, %v6838_v37 }
 0x125   : > { %v6844_v44 = vsub.f32 %v745_v2, %v813_v40  ;;  %v6846_v45 = vsub.f32 %v747_v5, %v815_v41  ;;  %v860_v46 = vsel %vm762_vm0, %v844_v42, 0.0  ;;  %v866_v49 = vsel %vm762_vm0, %v846_v43, 0.0 }
 0x126   : > { %861 = vadd.xlane.f32.xlu0 %v860_v46  ;;  %v777_v47 = vpop.xlane.xlu0 %776  ;;  %v780_v48 = vpop.xlane.xlu1 %779 }
 0x127   : > { %v816_v50 = vmul.f32 0.015625, %v777_v47  ;;  %v817_v51 = vmul.f32 0.015625, %v780_v48  ;;  %v845_v52 = vmul.f32 %v6844_v44, %v6844_v44  ;;  %v847_v53 = vmul.f32 %v6846_v45, %v6846_v45 }
 0x129   : > { %v6854_v54 = vsub.f32 %v748_v8, %v816_v50  ;;  %v6856_v55 = vsub.f32 %v749_v9, %v817_v51  ;;  %v863_v56 = vsel %vm762_vm0, %v845_v52, 0.0  ;;  %v869_v59 = vsel %vm762_vm0, %v847_v53, 0.0 }
 0x12a   : > { %867 = vadd.xlane.f32.xlu0 %v866_v49  ;;  %864 = vadd.xlane.f32.xlu1 %v863_v56  ;;  %v783_v57 = vpop.xlane.xlu0 %782  ;;  %v786_v58 = vpop.xlane.xlu1 %785 }
 0x12b   : > { %v818_v60 = vmul.f32 0.015625, %v783_v57  ;;  %v819_v61 = vmul.f32 0.015625, %v786_v58  ;;  %v848_v62 = vmul.f32 %v6854_v54, %v6854_v54  ;;  %v849_v63 = vmul.f32 %v6856_v55, %v6856_v55 }
 0x12d   : > { %v6865_v0 = vsub.f32 %v6769_v12, %v818_v60  ;;  %v6868_v1 = vsub.f32 %v6774_v13, %v819_v61  ;;  %v872_v2 = vsel %vm762_vm0, %v848_v62, 0.0  ;;  %v875_v5 = vsel %vm762_vm0, %v849_v63, 0.0 }
 0x12e   : > { %870 = vadd.xlane.f32.xlu1 %v869_v59  ;;  %873 = vadd.xlane.f32.xlu0 %v872_v2  ;;  %v789_v3 = vpop.xlane.xlu0 %788  ;;  %v792_v4 = vpop.xlane.xlu1 %791 }
 0x12f   : > { %v820_v6 = vmul.f32 0.015625, %v789_v3  ;;  %v821_v7 = vmul.f32 0.015625, %v792_v4  ;;  %v850_v8 = vmul.f32 %v6865_v0, %v6865_v0  ;;  %v851_v9 = vmul.f32 %v6868_v1, %v6868_v1 }
 0x131   : > { %v6877_v10 = vsub.f32 %v6783_v16, %v820_v6  ;;  %v6880_v11 = vsub.f32 %v6788_v17, %v821_v7  ;;  %v878_v12 = vsel %vm762_vm0, %v850_v8, 0.0  ;;  %v881_v15 = vsel %vm762_vm0, %v851_v9, 0.0 }
 0x132   : > { %876 = vadd.xlane.f32.xlu1 %v875_v5  ;;  %879 = vadd.xlane.f32.xlu0 %v878_v12  ;;  %v795_v13 = vpop.xlane.xlu0 %794  ;;  %v798_v14 = vpop.xlane.xlu1 %797 }
 0x133   : > { %v822_v18 = vmul.f32 0.015625, %v795_v13  ;;  %v823_v19 = vmul.f32 0.015625, %v798_v14  ;;  %v852_v22 = vmul.f32 %v6877_v10, %v6877_v10  ;;  %v853_v16 = vmul.f32 %v6880_v11, %v6880_v11 }
 0x135   : > { %v6889_v23 = vsub.f32 %v6797_v20, %v822_v18  ;;  %v6892_v17 = vsub.f32 %v6802_v21, %v823_v19  ;;  %v884_v26 = vsel %vm762_vm0, %v852_v22, 0.0  ;;  %v887_v31 = vsel %vm762_vm0, %v853_v16, 0.0 }
 0x136   : > { %882 = vadd.xlane.f32.xlu1 %v881_v15  ;;  %885 = vadd.xlane.f32.xlu0 %v884_v26  ;;  %v801_v27 = vpop.xlane.xlu0 %800  ;;  %v804_v30 = vpop.xlane.xlu1 %803  ;;  %v6929_v26 = vld [vmem:[%s9199_s17] ss:$0 sm:$0xff] }
 0x137   : > { %v824_v32 = vmul.f32 0.015625, %v801_v27  ;;  %v825_v33 = vmul.f32 0.015625, %v804_v30  ;;  %v854_v34 = vmul.f32 %v6889_v23, %v6889_v23  ;;  %v855_v20 = vmul.f32 %v6892_v17, %v6892_v17 }
 0x139   : > { %v6901_v35 = vsub.f32 %v6811_v24, %v824_v32  ;;  %v6904_v21 = vsub.f32 %v6816_v25, %v825_v33  ;;  %v890_v38 = vsel %vm762_vm0, %v854_v34, 0.0  ;;  %v893_v41 = vsel %vm762_vm0, %v855_v20, 0.0  ;;  %v6935_v32 = vld [vmem:[%s9200_s21] ss:$0 sm:$0xff] }
 0x13a   : > { %888 = vadd.xlane.f32.xlu1 %v887_v31  ;;  %891 = vadd.xlane.f32.xlu0 %v890_v38  ;;  %v807_v39 = vpop.xlane.xlu0 %806  ;;  %v810_v40 = vpop.xlane.xlu1 %809 }
 0x13b   : > { %v826_v42 = vmul.f32 0.015625, %v807_v39  ;;  %v827_v43 = vmul.f32 0.015625, %v810_v40  ;;  %v856_v46 = vmul.f32 %v6901_v35, %v6901_v35  ;;  %v857_v24 = vmul.f32 %v6904_v21, %v6904_v21 }
 0x13d   : > { %v6913_v47 = vsub.f32 %v6825_v28, %v826_v42  ;;  %v6916_v25 = vsub.f32 %v6830_v29, %v827_v43  ;;  %v896_v48 = vsel %vm762_vm0, %v856_v46, 0.0  ;;  %v899_v49 = vsel %vm762_vm0, %v857_v24, 0.0 }
 0x13e   : > { %894 = vadd.xlane.f32.xlu1 %v893_v41  ;;  %897 = vadd.xlane.f32.xlu0 %v896_v48 }
 0x13f   : > { %v858_v50 = vmul.f32 %v6913_v47, %v6913_v47  ;;  %v859_v51 = vmul.f32 %v6916_v25, %v6916_v25 }
 0x141   : > { %v902_v52 = vsel %vm762_vm0, %v858_v50, 0.0  ;;  %v905_v28 = vsel %vm762_vm0, %v859_v51, 0.0 }
 0x142   : > { %900 = vadd.xlane.f32.xlu1 %v899_v49  ;;  %903 = vadd.xlane.f32.xlu0 %v902_v52 }
 0x146   : > { %906 = vadd.xlane.f32.xlu1 %v905_v28 }
 0x1af   : > { %v862_v29 = vpop.xlane.xlu0 %861 }
 0x1b0   : > { %v908_v53 = vmul.f32 0.015625, %v862_v29 }
 0x1b2   : > { %v924_v56 = vadd.f32 1e-12, %v908_v53 }
 0x1b3   : > { %v865_v57 = vpop.xlane.xlu1 %864  ;;  %v868_v58 = vpop.xlane.xlu0 %867 }
 0x1b4   : > { %5846 = vrsqrt.f32 %v924_v56  ;;  %v909_v59 = vmul.f32 0.015625, %v865_v57  ;;  %v910_v60 = vmul.f32 0.015625, %v868_v58 }
 0x1b6   : > { %v925_v61 = vadd.f32 1e-12, %v909_v59  ;;  %v926_v62 = vadd.f32 1e-12, %v910_v60 }
 0x1b7   : > { %v871_v63 = vpop.xlane.xlu1 %870  ;;  %v874_v2 = vpop.xlane.xlu0 %873 }
 0x1b8   : > { %5848 = vrsqrt.f32 %v925_v61  ;;  %v911_v3 = vmul.f32 0.015625, %v871_v63  ;;  %v912_v4 = vmul.f32 0.015625, %v874_v2 }
 0x1b9   : > { %5850 = vrsqrt.f32 %v926_v62 }
 0x1ba   : > { %v927_v5 = vadd.f32 1e-12, %v911_v3  ;;  %v928_v6 = vadd.f32 1e-12, %v912_v4 }
 0x1bb   : > { %v877_v7 = vpop.xlane.xlu1 %876  ;;  %v880_v8 = vpop.xlane.xlu0 %879 }
 0x1bc   : > { %5852 = vrsqrt.f32 %v927_v5  ;;  %v913_v9 = vmul.f32 0.015625, %v877_v7  ;;  %v914_v12 = vmul.f32 0.015625, %v880_v8 }
 0x1bd   : > { %5854 = vrsqrt.f32 %v928_v6 }
 0x1be   : > { %v929_v13 = vadd.f32 1e-12, %v913_v9  ;;  %v930_v14 = vadd.f32 1e-12, %v914_v12 }
 0x1bf   : > { %v883_v15 = vpop.xlane.xlu1 %882  ;;  %v886_v18 = vpop.xlane.xlu0 %885 }
 0x1c0   : > { %5856 = vrsqrt.f32 %v929_v13  ;;  %v915_v19 = vmul.f32 0.015625, %v883_v15  ;;  %v916_v22 = vmul.f32 0.015625, %v886_v18 }
 0x1c1   : > { %v5847_v16 = vpop.eup %5846  ;;  %5858 = vrsqrt.f32 %v930_v14 }
 0x1c2   : > { %v956_v27 = vmul.f32 %v5847_v16, %v6836_v36  ;;  %v931_v30 = vadd.f32 1e-12, %v915_v19  ;;  %v932_v31 = vadd.f32 1e-12, %v916_v22 }
 0x1c3   : > { %v889_v33 = vpop.xlane.xlu1 %888  ;;  %v892_v34 = vpop.xlane.xlu0 %891 }
 0x1c4   : > { %v978_v20 = vmul.f32 %v6929_v26, %v956_v27  ;;  %5860 = vrsqrt.f32 %v931_v30  ;;  %v917_v38 = vmul.f32 0.015625, %v889_v33  ;;  %v918_v39 = vmul.f32 0.015625, %v892_v34 }
 0x1c5   : > { %v5849_v40 = vpop.eup %5848  ;;  %5862 = vrsqrt.f32 %v932_v31 }
 0x1c6   : > { %v5851_v41 = vpop.eup %5850  ;;  %v1000_v42 = vadd.f32 %v6935_v32, %v978_v20  ;;  %v957_v36 = vmul.f32 %v5849_v40, %v6844_v44  ;;  %v933_v43 = vadd.f32 1e-12, %v917_v38  ;;  %v934_v46 = vadd.f32 1e-12, %v918_v39 }
 0x1c7   : > { %v958_v24 = vmul.f32 %v5851_v41, %v6838_v37  ;;  %v895_v48 = vpop.xlane.xlu1 %894  ;;  %v898_v49 = vpop.xlane.xlu0 %897 }
 0x1c8   : > { %1016 = vst.msk [vmem:[#allocation2] sm:$0xff] %vm762_vm0, %v1000_v42  ;;  %v979_v50 = vmul.f32 %v6929_v26, %v957_v36  ;;  %5864 = vrsqrt.f32 %v933_v43  ;;  %v919_v51 = vmul.f32 0.015625, %v895_v48  ;;  %v920_v52 = vmul.f32 0.015625, %v898_v49 }
 0x1c9   : > { %v5853_v28 = vpop.eup %5852  ;;  %v980_v29 = vmul.f32 %v6929_v26, %v958_v24  ;;  %5866 = vrsqrt.f32 %v934_v46 }
 0x1ca   : > { %v5855_v53 = vpop.eup %5854  ;;  %v1001_v44 = vadd.f32 %v6935_v32, %v979_v50  ;;  %v959_v56 = vmul.f32 %v5853_v28, %v6846_v45  ;;  %v935_v57 = vadd.f32 1e-12, %v919_v51  ;;  %v936_v37 = vadd.f32 1e-12, %v920_v52 }
 0x1cb   : > { %v1002_v58 = vadd.f32 %v6935_v32, %v980_v29  ;;  %v960_v59 = vmul.f32 %v5855_v53, %v6854_v54  ;;  %v901_v60 = vpop.xlane.xlu1 %900  ;;  %v904_v61 = vpop.xlane.xlu0 %903 }
 0x1cc   : > { %1017 = vst.msk [vmem:[#allocation2 + $0x8] sm:$0xff] %vm762_vm0, %v1001_v44  ;;  %v981_v62 = vmul.f32 %v6929_v26, %v959_v56  ;;  %5868 = vrsqrt.f32 %v935_v57  ;;  %v921_v63 = vmul.f32 0.015625, %v901_v60  ;;  %v922_v2 = vmul.f32 0.015625, %v904_v61 }
 0x1cd   : > { %v5857_v3 = vpop.eup %5856  ;;  %1018 = vst.msk [vmem:[#allocation2 + $0x10] sm:$0xff] %vm762_vm0, %v1002_v58  ;;  %v982_v45 = vmul.f32 %v6929_v26, %v960_v59  ;;  %5870 = vrsqrt.f32 %v936_v37 }
 0x1ce   : > { %v5859_v4 = vpop.eup %5858  ;;  %v1003_v5 = vadd.f32 %v6935_v32, %v981_v62  ;;  %v961_v54 = vmul.f32 %v5857_v3, %v6856_v55  ;;  %v937_v6 = vadd.f32 1e-12, %v921_v63  ;;  %v938_v7 = vadd.f32 1e-12, %v922_v2 }
 0x1cf   : > { %v1004_v8 = vadd.f32 %v6935_v32, %v982_v45  ;;  %v962_v9 = vmul.f32 %v5859_v4, %v6865_v0  ;;  %v907_v12 = vpop.xlane.xlu1 %906 }
 0x1d0   : > { %1019 = vst.msk [vmem:[#allocation2 + $0x18] sm:$0xff] %vm762_vm0, %v1003_v5  ;;  %v983_v13 = vmul.f32 %v6929_v26, %v961_v54  ;;  %5872 = vrsqrt.f32 %v937_v6  ;;  %v923_v14 = vmul.f32 0.015625, %v907_v12 }
 0x1d1   : > { %v5861_v15 = vpop.eup %5860  ;;  %1020 = vst.msk [vmem:[#allocation2 + $0x20] sm:$0xff] %vm762_vm0, %v1004_v8  ;;  %v984_v18 = vmul.f32 %v6929_v26, %v962_v9  ;;  %5874 = vrsqrt.f32 %v938_v7 }
 0x1d2   : > { %v5863_v55 = vpop.eup %5862  ;;  %v1005_v19 = vadd.f32 %v6935_v32, %v983_v13  ;;  %v963_v22 = vmul.f32 %v5861_v15, %v6868_v1  ;;  %v939_v16 = vadd.f32 1e-12, %v923_v14 }
 0x1d3   : > { %v1006_v0 = vadd.f32 %v6935_v32, %v984_v18  ;;  %v964_v27 = vmul.f32 %v5863_v55, %v6877_v10 }
 0x1d4   : > { %1021 = vst.msk [vmem:[#allocation2 + $0x28] sm:$0xff] %vm762_vm0, %v1005_v19  ;;  %v985_v30 = vmul.f32 %v6929_v26, %v963_v22  ;;  %5876 = vrsqrt.f32 %v939_v16 }
 0x1d5   : > { %v5865_v31 = vpop.eup %5864  ;;  %1022 = vst.msk [vmem:[#allocation2 + $0x30] sm:$0xff] %vm762_vm0, %v1006_v0  ;;  %v986_v33 = vmul.f32 %v6929_v26, %v964_v27 }
 0x1d6   : > { %v5867_v34 = vpop.eup %5866  ;;  %v1007_v20 = vadd.f32 %v6935_v32, %v985_v30  ;;  %v965_v1 = vmul.f32 %v5865_v31, %v6880_v11 }
 0x1d7   : > { %v1008_v38 = vadd.f32 %v6935_v32, %v986_v33  ;;  %v966_v39 = vmul.f32 %v5867_v34, %v6889_v23 }
 0x1d8   : > { %1023 = vst.msk [vmem:[#allocation2 + $0x38] sm:$0xff] %vm762_vm0, %v1007_v20  ;;  %v987_v10 = vmul.f32 %v6929_v26, %v965_v1 }
 0x1d9   : > { %v5869_v40 = vpop.eup %5868  ;;  %1024 = vst.msk [vmem:[#allocation2 + $0x40] sm:$0xff] %vm762_vm0, %v1008_v38  ;;  %v988_v41 = vmul.f32 %v6929_v26, %v966_v39 }
 0x1da   : > { %v5871_v42 = vpop.eup %5870  ;;  %v1009_v36 = vadd.f32 %v6935_v32, %v987_v10  ;;  %v967_v43 = vmul.f32 %v5869_v40, %v6892_v17 }
 0x1db   : > { %v1010_v11 = vadd.f32 %v6935_v32, %v988_v41  ;;  %v968_v46 = vmul.f32 %v5871_v42, %v6901_v35 }
 0x1dc   : > { %1025 = vst.msk [vmem:[#allocation2 + $0x48] sm:$0xff] %vm762_vm0, %v1009_v36  ;;  %v989_v23 = vmul.f32 %v6929_v26, %v967_v43 }
 0x1dd   : > { %v5873_v24 = vpop.eup %5872  ;;  %1026 = vst.msk [vmem:[#allocation2 + $0x50] sm:$0xff] %vm762_vm0, %v1010_v11  ;;  %v990_v48 = vmul.f32 %v6929_v26, %v968_v46 }
 0x1de   : > { %v5875_v49 = vpop.eup %5874  ;;  %v1011_v50 = vadd.f32 %v6935_v32, %v989_v23  ;;  %v969_v51 = vmul.f32 %v5873_v24, %v6904_v21 }
 0x1df   : > { %v1012_v17 = vadd.f32 %v6935_v32, %v990_v48  ;;  %v970_v52 = vmul.f32 %v5875_v49, %v6913_v47 }
 0x1e0   : > { %1027 = vst.msk [vmem:[#allocation2 + $0x58] sm:$0xff] %vm762_vm0, %v1011_v50  ;;  %v991_v35 = vmul.f32 %v6929_v26, %v969_v51 }
 0x1e1   : > { %v5877_v28 = vpop.eup %5876  ;;  %1028 = vst.msk [vmem:[#allocation2 + $0x60] sm:$0xff] %vm762_vm0, %v1012_v17  ;;  %v992_v29 = vmul.f32 %v6929_v26, %v970_v52 }
 0x1e2   : > { %v1013_v53 = vadd.f32 %v6935_v32, %v991_v35  ;;  %v971_v44 = vmul.f32 %v5877_v28, %v6916_v25 }
 0x1e3   : > { %v1014_v56 = vadd.f32 %v6935_v32, %v992_v29 }
 0x1e4   : > { %1029 = vst.msk [vmem:[#allocation2 + $0x68] sm:$0xff] %vm762_vm0, %v1013_v53  ;;  %v993_v21 = vmul.f32 %v6929_v26, %v971_v44 }
 0x1e5   : > { %1030 = vst.msk [vmem:[#allocation2 + $0x70] sm:$0xff] %vm762_vm0, %v1014_v56 }
 0x1e6   : > { %v1015_v47 = vadd.f32 %v6935_v32, %v993_v21 }
 0x1e8   : > { %1031 = vst.msk [vmem:[#allocation2 + $0x78] sm:$0xff] %vm762_vm0, %v1015_v47 }
 0x1e9 PF: > { %v5878_v25 = vld [vmem:[%s6704_s1 + $0x34] ss:$8 sps:$4 sm:$0xff]   ;;  %v5880_v57 = vld [vmem:[%s6704_s1 + $0x30] ss:$8 sps:$4 sm:$0xff]   ;;  %v6419_v37 = vmov 0   ;;  %v1032_v62 = vld [vmem:[#allocation2] sm:$0xff]  ;;  %v1082_v31 = vlaneseq  ;;  %s9227_s12 = scalar_lea.vmem %s9134_s8, %s6697_s28 }
 0x1ea   : > { %1189 = vmatprep.mubr.bf16.mxu0 %v6419_v37  ;;  %1165 = vmatprep.subr.bf16.mxu0 %v5878_v25  ;;  %v5881_v26 = vld [vmem:[%s6704_s1 + $0x24] ss:$8 sps:$4 sm:$0xff]   ;;  %v5883_v58 = vld [vmem:[%s6704_s1 + $0x20] ss:$8 sps:$4 sm:$0xff]   ;;  %v5884_v32 = vld [vmem:[%s6704_s1 + $0x14] ss:$8 sps:$4 sm:$0xff]  }
 0x1eb   : > { %1166 = vmatpush1.bf16.msra.mxu0 %v5880_v57  ;;  %v5886_v59 = vld [vmem:[%s6704_s1 + $0x10] ss:$8 sps:$4 sm:$0xff]   ;;  %v5887_v60 = vld [vmem:[%s6704_s1 + $0x4] ss:$8 sps:$4 sm:$0xff]   ;;  %v5889_v61 = vld [vmem:[%s6704_s1] ss:$8 sps:$4 sm:$0xff]  }
 0x1ec   : > { %1167 = vmatprep.subr.bf16.mxu0 %v5881_v26  ;;  %v1033_v63 = vld [vmem:[#allocation2 + $0x8] sm:$0xff]  ;;  %vm1132_vm1 = vcmask 523264   ;;  %v1034_v3 = vld [vmem:[#allocation2 + $0x10] sm:$0xff]  ;;  %v1035_v45 = vld [vmem:[#allocation2 + $0x18] sm:$0xff]  ;;  %v1083_v33 = vshrl.u32 %v1082_v31, 7  ;;  %vm1318_vm2 = vcmask 130048  }
 0x1ed   : > { %v1064_v2 = vpack.c.bf16 %v1033_v63, %v1032_v62  ;;  %v1065_v4 = vpack.c.bf16 %v1035_v45, %v1034_v3  ;;  %v1036_v5 = vld [vmem:[#allocation2 + $0x20] sm:$0xff]  ;;  %v1037_v54 = vld [vmem:[#allocation2 + $0x28] sm:$0xff]  ;;  %v1038_v7 = vld [vmem:[#allocation2 + $0x30] sm:$0xff]  ;;  %s6420_s1 = smov 64   ;;  %s6422_s20 = smov 112  }
 0x1ee   : > { %v1066_v6 = vpack.c.bf16 %v1037_v54, %v1036_v5  ;;  %v1039_v8 = vld [vmem:[#allocation2 + $0x38] sm:$0xff]  ;;  %v1040_v12 = vld [vmem:[#allocation2 + $0x40] sm:$0xff]  ;;  %v1041_v13 = vld [vmem:[#allocation2 + $0x48] sm:$0xff]  ;;  %v1084_v34 = vsub.s32 0, %v1083_v33  ;;  %s9205_s4 = sld [smem:[#allocation22_spill]]  ;;  %s6424_s25 = smov 96  }
 0x1ef   : > { %1168 = vmatpush1.bf16.msra.mxu0 %v5883_v58  ;;  %v1067_v9 = vpack.c.bf16 %v1039_v8, %v1038_v7  ;;  %v1068_v14 = vpack.c.bf16 %v1041_v13, %v1040_v12  ;;  %v1042_v15 = vld [vmem:[#allocation2 + $0x50] sm:$0xff]  ;;  %v1043_v18 = vld [vmem:[#allocation2 + $0x58] sm:$0xff]  ;;  %v1044_v19 = vld [vmem:[#allocation2 + $0x60] sm:$0xff]  ;;  %v1088_v7 = vsub.s32 1, %v1083_v33  ;;  %s6425_s17 = smov 16   ;;  %s6426_s29 = smov 80  }
 0x1f0   : > { %1169 = vmatprep.subr.bf16.mxu0 %v5884_v32  ;;  %v1069_v55 = vpack.c.bf16 %v1043_v18, %v1042_v15  ;;  %v1045_v22 = vld [vmem:[#allocation2 + $0x68] sm:$0xff]  ;;  %v1046_v0 = vld [vmem:[#allocation2 + $0x70] sm:$0xff]  ;;  %v1047_v27 = vld [vmem:[#allocation2 + $0x78] sm:$0xff] }
 0x1f1   : > { %v1070_v16 = vpack.c.bf16 %v1045_v22, %v1044_v19  ;;  %v1071_v30 = vpack.c.bf16 %v1047_v27, %v1046_v0  ;;  %v1080_v20 = vld [vmem:[%s6709_s0] sm:$0x3]  ;;  %s6421_s0 = smov 48  }
 0x1f2   : > { %v7017_v38 = vrot.slane %v1080_v20, %v1084_v34 }
 0x1f3   : > { %1170 = vmatpush1.bf16.msra.mxu0 %v5886_v59 }
 0x1f4   : > { %1171 = vmatprep.subr.bf16.mxu0 %v5887_v60 }
 0x1f7   : > { %1172 = vmatpush1.bf16.msra.mxu0 %v5889_v61 }
 0x1fa   : > { %5054 = vmatmul.mubr.msk.bf16.vlgmr.msra.gmra.mxu0 %vm1132_vm1, %v1064_v2 }
 0x1fb   : > { %1199 = vmatprep.mubr.bf16.mxu0 %v6419_v37 }
 0x202   : > { %5055 = vmatmul.mubr.msk.bf16.gmra.mxu0 %vm1132_vm1, %v1065_v4 }
 0x203   : > { %1209 = vmatprep.mubr.bf16.mxu0 %v6419_v37 }
 0x20a   : > { %5056 = vmatmul.mubr.msk.bf16.gmra.mxu0 %vm1132_vm1, %v1066_v6 }
 0x20b   : > { %1219 = vmatprep.mubr.bf16.mxu0 %v6419_v37 }
 0x212   : > { %5057 = vmatmul.mubr.msk.bf16.gmra.mxu0 %vm1132_vm1, %v1067_v9 }
 0x213   : > { %1229 = vmatprep.mubr.bf16.mxu0 %v6419_v37 }
 0x21a   : > { %5058 = vmatmul.mubr.msk.bf16.gmra.mxu0 %vm1132_vm1, %v1068_v14  ;;  %v1089_v14 = vrot.slane %v1080_v20, %v1088_v7 }
 0x21b   : > { %1239 = vmatprep.mubr.bf16.mxu0 %v6419_v37 }
 0x222   : > { %5059 = vmatmul.mubr.msk.bf16.gmra.mxu0 %vm1132_vm1, %v1069_v55 }
 0x223   : > { %1249 = vmatprep.mubr.bf16.mxu0 %v6419_v37 }
 0x22a   : > { %5060 = vmatmul.mubr.msk.bf16.gmra.mxu0 %vm1132_vm1, %v1070_v16 }
 0x22b   : > { %1259 = vmatprep.mubr.bf16.mxu0 %v6419_v37 }
 0x232   : > { %5061 = vmatmul.mubr.msk.bf16.gmra.mxu0 %vm1132_vm1, %v1071_v30 }
 0x2ba   : > { %v1191_v1 = vpop.f32.mrf.mxu0 }
 0x2bb   : > { %v1192_v40 = vadd.f32 %v1191_v1, %v7017_v38 }
 0x2bc   : > { %v7019_v39 = vpop.f32.mrf.mxu0 }
 0x2be   : > { %v1195_v10 = vpop.f32.mrf.mxu0 }
 0x2bf   : > { %v1196_v41 = vadd.f32 %v1195_v10, %v7017_v38 }
 0x2c0   : > { %v7023_v42 = vpop.f32.mrf.mxu0 }
 0x2c1   : > { %v7025_v36 = vpack.c.bf16 %v1196_v41, %v1192_v40 }
 0x2c2   : > { %v1201_v43 = vpop.f32.mrf.mxu0 }
 0x2c3   : > { %v1202_v11 = vadd.f32 %v1201_v43, %v7017_v38  ;;  %5371 = vmatprep.mubr.msk.bf16.mxu1 %vm1318_vm2, %v7025_v36 }
 0x2c4   : > { %v7030_v46 = vpop.f32.mrf.mxu0 }
 0x2c6   : > { %v1205_v23 = vpop.f32.mrf.mxu0 }
 0x2c7   : > { %v1206_v24 = vadd.f32 %v1205_v23, %v7017_v38 }
 0x2c8   : > { %v7033_v48 = vpop.f32.mrf.mxu0 }
 0x2c9   : > { %v7035_v49 = vpack.c.bf16 %v1206_v24, %v1202_v11 }
 0x2ca   : > { %v1211_v50 = vpop.f32.mrf.mxu0 }
 0x2cb   : > { %v1212_v4 = vadd.f32 %v1211_v50, %v7017_v38 }
 0x2cc   : > { %v7037_v51 = vpop.f32.mrf.mxu0 }
 0x2ce   : > { %v1215_v17 = vpop.f32.mrf.mxu0 }
 0x2cf   : > { %v1216_v2 = vadd.f32 %v1215_v17, %v7017_v38 }
 0x2d0   : > { %v7039_v52 = vpop.f32.mrf.mxu0 }
 0x2d1   : > { %v7059_v54 = vpack.c.bf16 %v1216_v2, %v1212_v4  ;;  %v1218_v50 = vadd.f32 %v7039_v52, %v1089_v14  ;;  %v1204_v52 = vadd.f32 %v7030_v46, %v1089_v14 }
 0x2d2   : > { %v1221_v35 = vpop.f32.mrf.mxu0 }
 0x2d3   : > { %v1222_v1 = vadd.f32 %v1221_v35, %v7017_v38  ;;  %v1214_v35 = vadd.f32 %v7037_v51, %v1089_v14  ;;  %v1198_v51 = vadd.f32 %v7023_v42, %v1089_v14 }
 0x2d4   : > { %v7041_v28 = vpop.f32.mrf.mxu0 }
 0x2d5   : > { %v1224_v24 = vadd.f32 %v7041_v28, %v1089_v14  ;;  %v1208_v28 = vadd.f32 %v7033_v48, %v1089_v14  ;;  %v1194_v48 = vadd.f32 %v7019_v39, %v1089_v14 }
 0x2d6   : > { %v1225_v29 = vpop.f32.mrf.mxu0 }
 0x2d7   : > { %v1226_v33 = vadd.f32 %v1225_v29, %v7017_v38  ;;  %v7121_v29 = vpack.c.bf16 %v1218_v50, %v1214_v35  ;;  %v7140_v46 = vpack.c.bf16 %v1198_v51, %v1194_v48  ;;  %v7225_v50 = vld [vmem:[%s9205_s4 + $0x10] sm:$0xff] }
 0x2d8   : > { %v7043_v53 = vpop.f32.mrf.mxu0 }
 0x2d9   : > { %v7090_v40 = vpack.c.bf16 %v1226_v33, %v1222_v1  ;;  %9203 = vst [vmem:[#allocation15_spill] sm:$0xff] %v7121_v29  ;;  %9204 = vst [vmem:[#allocation16_spill] sm:$0xff] %v7140_v46 }
 0x2da   : > { %v1231_v44 = vpop.f32.mrf.mxu0 }
 0x2db   : > { %v1232_v62 = vadd.f32 %v1231_v44, %v7017_v38 }
 0x2dc   : > { %v1233_v56 = vpop.f32.mrf.mxu0 }
 0x2dd   : > { %v1234_v11 = vadd.f32 %v1233_v56, %v1089_v14 }
 0x2de   : > { %v1235_v21 = vpop.f32.mrf.mxu0 }
 0x2df   : > { %v1236_v59 = vadd.f32 %v1235_v21, %v7017_v38 }
 0x2e0   : > { %v1237_v47 = vpop.f32.mrf.mxu0 }
 0x2e1   : > { %v7054_v3 = vpack.c.bf16 %v1236_v59, %v1232_v62  ;;  %v1238_v41 = vadd.f32 %v1237_v47, %v1089_v14 }
 0x2e2   : > { %v1241_v25 = vpop.f32.mrf.mxu0 }
 0x2e3   : > { %v1242_v26 = vadd.f32 %v1241_v25, %v7017_v38  ;;  %v7101_v23 = vpack.c.bf16 %v1238_v41, %v1234_v11 }
 0x2e4   : > { %v1243_v57 = vpop.f32.mrf.mxu0 }
 0x2e5   : > { %v1244_v10 = vadd.f32 %v1243_v57, %v1089_v14 }
 0x2e6   : > { %v1245_v37 = vpop.f32.mrf.mxu0 }
 0x2e7   : > { %v1246_v58 = vadd.f32 %v1245_v37, %v7017_v38 }
 0x2e8   : > { %v1247_v32 = vpop.f32.mrf.mxu0 }
 0x2e9   : > { %v7048_v60 = vpack.c.bf16 %v1246_v58, %v1242_v26  ;;  %v1248_v34 = vadd.f32 %v1247_v32, %v1089_v14 }
 0x2ea   : > { %v1251_v61 = vpop.f32.mrf.mxu0 }
 0x2eb   : > { %1312 = vrot.lane.b32.xlu1 %v7048_v60, %s6420_s1  ;;  %v1252_v12 = vadd.f32 %v1251_v61, %v7017_v38  ;;  %v7092_v43 = vpack.c.bf16 %v1248_v34, %v1244_v10 }
 0x2ec   : > { %v1253_v63 = vpop.f32.mrf.mxu0 }
 0x2ed   : > { %v1254_v30 = vadd.f32 %v1253_v63, %v1089_v14 }
 0x2ee   : > { %v1255_v45 = vpop.f32.mrf.mxu0 }
 0x2ef   : > { %1310 = vrot.lane.b32.xlu1 %v7054_v3, %s6420_s1  ;;  %v1256_v8 = vadd.f32 %v1255_v45, %v7017_v38 }
 0x2f0   : > { %v1257_v5 = vpop.f32.mrf.mxu0 }
 0x2f1   : > { %v7069_v55 = vpack.c.bf16 %v1256_v8, %v1252_v12  ;;  %v1258_v22 = vadd.f32 %v1257_v5, %v1089_v14 }
 0x2f2   : > { %v1261_v6 = vpop.f32.mrf.mxu0 }
 0x2f3   : > { %1306 = vrot.lane.b32.xlu1 %v7059_v54, %s6420_s1  ;;  %v1262_v15 = vadd.f32 %v1261_v6, %v7017_v38  ;;  %v7080_v20 = vpack.c.bf16 %v1258_v22, %v1254_v30 }
 0x2f4   : > { %v1263_v9 = vpop.f32.mrf.mxu0 }
 0x2f5   : > { %v1264_v16 = vadd.f32 %v1263_v9, %v1089_v14  ;;  %9202 = vst [vmem:[#allocation14_spill] sm:$0xff] %v7080_v20 }
 0x2f6   : > { %v1265_v13 = vpop.f32.mrf.mxu0 }
 0x2f7   : > { %v1266_v18 = vadd.f32 %v1265_v13, %v7017_v38  ;;  %1302 = vrot.lane.b32.xlu1 %v7025_v36, %s6420_s1  ;;  %v1228_v38 = vadd.f32 %v7043_v53, %v1089_v14  ;;  %v7131_v53 = vpack.c.bf16 %v1208_v28, %v1204_v52 }
 0x2f8   : > { %v1267_v19 = vpop.f32.mrf.mxu0 }
 0x2f9   : > { %v7071_v0 = vpack.c.bf16 %v1266_v18, %v1262_v15  ;;  %v1268_v27 = vadd.f32 %v1267_v19, %v1089_v14  ;;  %v7111_v17 = vpack.c.bf16 %v1228_v38, %v1224_v24 }
 0x2fb   : > { %v7073_v31 = vpack.c.bf16 %v1268_v27, %v1264_v16  ;;  %1316 = vrot.lane.b32.xlu0 %v7071_v0, %s6420_s1  ;;  %1781 = vrot.lane.b32.xlu1 %v7069_v55, %s6421_s0 }
 0x2fd   : > { %9201 = vst [vmem:[#allocation13_spill] sm:$0xff] %v7073_v31  ;;  %5387 = vmatprep.subr.bf16.mxu0 %v7073_v31 }
 0x2fe   : > { %5388 = vmatpush3.bf16.msra.mxu0 %v7073_v31 }
 0x2ff   : > { %5389 = vmatprep.subr.bf16.mxu0 %v7080_v20  ;;  %1314 = vrot.lane.b32.xlu0 %v7069_v55, %s6420_s1 }
 0x300   : > { %1777 = vrot.lane.b32.xlu1 %v7054_v3, %s6421_s0 }
 0x302   : > { %5390 = vmatpush3.bf16.msra.mxu0 %v7080_v20 }
 0x303   : > { %5391 = vmatprep.subr.bf16.mxu0 %v7092_v43  ;;  %1308 = vrot.lane.b32.xlu0 %v7090_v40, %s6420_s1 }
 0x304   : > { %1773 = vrot.lane.b32.xlu1 %v7059_v54, %s6421_s0 }
 0x306   : > { %5392 = vmatpush3.bf16.msra.mxu0 %v7092_v43 }
 0x307   : > { %5393 = vmatprep.subr.bf16.mxu0 %v7101_v23  ;;  %1304 = vrot.lane.b32.xlu0 %v7035_v49, %s6420_s1 }
 0x308   : > { %1769 = vrot.lane.b32.xlu1 %v7025_v36, %s6421_s0 }
 0x30a   : > { %5394 = vmatpush3.bf16.msra.mxu0 %v7101_v23 }
 0x30b   : > { %5395 = vmatprep.subr.bf16.mxu0 %v7111_v17  ;;  %1783 = vrot.lane.b32.xlu0 %v7071_v0, %s6421_s0 }
 0x30c   : > { %1755 = vrot.lane.b32.xlu1 %v7035_v49, %s6422_s20 }
 0x30e   : > { %5396 = vmatpush3.bf16.msra.mxu0 %v7111_v17 }
 0x30f   : > { %5397 = vmatprep.subr.bf16.mxu0 %v7121_v29  ;;  %1779 = vrot.lane.b32.xlu0 %v7048_v60, %s6421_s0 }
 0x310   : > { %1759 = vrot.lane.b32.xlu1 %v7090_v40, %s6422_s20 }
 0x312   : > { %5398 = vmatpush3.bf16.msra.mxu0 %v7121_v29 }
 0x313   : > { %5399 = vmatprep.subr.bf16.mxu0 %v7131_v53  ;;  %1775 = vrot.lane.b32.xlu0 %v7090_v40, %s6421_s0 }
 0x314   : > { %1763 = vrot.lane.b32.xlu1 %v7048_v60, %s6422_s20 }
 0x316   : > { %5400 = vmatpush3.bf16.msra.mxu0 %v7131_v53 }
 0x317   : > { %1771 = vrot.lane.b32.xlu0 %v7035_v49, %s6421_s0  ;;  %5401 = vmatprep.subr.bf16.mxu0 %v7140_v46 }
 0x318   : > { %1767 = vrot.lane.b32.xlu1 %v7071_v0, %s6422_s20 }
 0x31a   : > { %5402 = vmatpush3.bf16.msra.mxu0 %v7140_v46 }
 0x31b   : > { %1753 = vrot.lane.b32.xlu0 %v7025_v36, %s6422_s20 }
 0x31c   : > { %2136 = vrot.lane.b32.xlu1 %v7073_v31, %s6422_s20 }
 0x31f   : > { %1757 = vrot.lane.b32.xlu0 %v7059_v54, %s6422_s20 }
 0x323   : > { %1761 = vrot.lane.b32.xlu0 %v7054_v3, %s6422_s20 }
 0x327   : > { %1765 = vrot.lane.b32.xlu0 %v7069_v55, %s6422_s20 }
 0x35d   : > { %v1313_v39 = vpop.permute.xlu1 %1312 }
 0x35e   : > { %v1359_v61 = vsel %vm1318_vm2, %v1313_v39, 0 }
 0x361   : > { %v1311_v42 = vpop.permute.xlu1 %1310 }
 0x362   : > { %v1356_v2 = vsel %vm1318_vm2, %v1311_v42, 0 }
 0x365   : > { %v1307_v44 = vpop.permute.xlu1 %1306 }
 0x366   : > { %v1350_v7 = vsel %vm1318_vm2, %v1307_v44, 0 }
 0x369   : > { %v1303_v56 = vpop.permute.xlu1 %1302 }
 0x36a   : > { %v1344_v12 = vsel %vm1318_vm2, %v1303_v56, 0 }
 0x36d   : > { %v1317_v21 = vpop.permute.xlu0 %1316  ;;  %v1782_v47 = vpop.permute.xlu1 %1781 }
 0x36e   : > { %5755 = vmatprep.subr.msk.bf16.mxu1 %vm1318_vm2, %v1317_v21  ;;  %v1365_v25 = vsel %vm1318_vm2, %v1317_v21, 0  ;;  %v1828_v18 = vsel %vm1318_vm2, %v1782_v47, 0 }
 0x36f   : > { %5356 = vmatpush3.bf16.xpose.msra.mxu1 %v1365_v25 }
 0x371   : > { %v1315_v57 = vpop.permute.xlu0 %1314 }
 0x372   : > { %v1778_v37 = vpop.permute.xlu1 %1777  ;;  %5756 = vmatprep.subr.msk.bf16.mxu1 %vm1318_vm2, %v1315_v57  ;;  %v1362_v58 = vsel %vm1318_vm2, %v1315_v57, 0  ;;  %v7247_v57 = vld [vmem:[%s9205_s4 + $0x18] sm:$0xff] }
 0x373   : > { %v1822_v30 = vsel %vm1318_vm2, %v1778_v37, 0 }
 0x375   : > { %v1309_v45 = vpop.permute.xlu0 %1308 }
 0x376   : > { %v1774_v26 = vpop.permute.xlu1 %1773  ;;  %v1353_v6 = vsel %vm1318_vm2, %v1309_v45, 0 }
 0x377   : > { %5358 = vmatpush3.bf16.xpose.msra.mxu1 %v1362_v58  ;;  %v1816_v34 = vsel %vm1318_vm2, %v1774_v26, 0 }
 0x378   : > { %5757 = vmatprep.subr.msk.bf16.mxu1 %vm1318_vm2, %v1313_v39  ;;  %v7233_v39 = vld [vmem:[%s9205_s4] sm:$0xff] }
 0x379   : > { %v1305_v8 = vpop.permute.xlu0 %1304 }
 0x37a   : > { %v1770_v32 = vpop.permute.xlu1 %1769  ;;  %v1347_v9 = vsel %vm1318_vm2, %v1305_v8, 0 }
 0x37b   : > { %v1810_v10 = vsel %vm1318_vm2, %v1770_v32, 0 }
 0x37d   : > { %v1784_v13 = vpop.permute.xlu0 %1783 }
 0x37e   : > { %v7164_v59 = vpop.permute.xlu1 %1755  ;;  %v1831_v14 = vsel %vm1318_vm2, %v1784_v13, 0 }
 0x37f   : > { %5360 = vmatpush3.bf16.xpose.msra.mxu1 %v1359_v61 }
 0x380   : > { %5758 = vmatprep.subr.msk.bf16.mxu1 %vm1318_vm2, %v1311_v42 }
 0x381   : > { %v1780_v15 = vpop.permute.xlu0 %1779 }
 0x382   : > { %v1760_v62 = vpop.permute.xlu1 %1759  ;;  %v1825_v22 = vsel %vm1318_vm2, %v1780_v15, 0 }
 0x385   : > { %v1776_v19 = vpop.permute.xlu0 %1775 }
 0x386   : > { %v7168_v63 = vpop.permute.xlu1 %1763  ;;  %v1819_v33 = vsel %vm1318_vm2, %v1776_v19, 0 }
 0x387   : > { %5362 = vmatpush3.bf16.xpose.msra.mxu1 %v1356_v2 }
 0x388   : > { %5759 = vmatprep.subr.msk.bf16.mxu1 %vm1318_vm2, %v1309_v45 }
 0x389   : > { %v1772_v16 = vpop.permute.xlu0 %1771 }
 0x38a   : > { %v1768_v4 = vpop.permute.xlu1 %1767  ;;  %v1813_v1 = vsel %vm1318_vm2, %v1772_v16, 0 }
 0x38d   : > { %v1754_v27 = vpop.permute.xlu0 %1753 }
 0x38e   : > { %v7172_v5 = vpop.permute.xlu1 %2136 }
 0x38f   : > { %5451 = vmatprep.subr.bf16.mxu0 %v7172_v5  ;;  %5364 = vmatpush3.bf16.xpose.msra.mxu1 %v1353_v6  ;;  %v7274_v6 = vld [vmem:[%s9205_s4 + $0x20] sm:$0xff] }
 0x390   : > { %5760 = vmatprep.subr.msk.bf16.mxu1 %vm1318_vm2, %v1307_v44  ;;  %v7239_v44 = vld [vmem:[%s9205_s4 + $0x8] sm:$0xff] }
 0x391   : > { %v1758_v41 = vpop.permute.xlu0 %1757 }
 0x395   : > { %v1762_v11 = vpop.permute.xlu0 %1761 }
 0x397   : > { %5366 = vmatpush3.bf16.xpose.msra.mxu1 %v1350_v7 }
 0x398   : > { %5761 = vmatprep.subr.msk.bf16.mxu1 %vm1318_vm2, %v1305_v8 }
 0x399   : > { %v1766_v38 = vpop.permute.xlu0 %1765 }
 0x39f   : > { %5368 = vmatpush3.bf16.xpose.msra.mxu1 %v1347_v9 }
 0x3a0   : > { %5762 = vmatprep.subr.msk.bf16.mxu1 %vm1318_vm2, %v1303_v56 }
 0x3a7   : > { %5370 = vmatpush3.bf16.xpose.msra.mxu1 %v1344_v12  ;;  %v7283_v12 = vld [vmem:[%s9205_s4 + $0x28] sm:$0xff] }
 0x3a8   : > { %5763 = vmatprep.subr.msk.bf16.mxu1 %vm1318_vm2, %v1784_v13 }
 0x3ae   : > { %5372 = vmatmul.mubr.msk.bf16.vlgmr.msra.gmra.mxu1 %vm1318_vm2, %v7035_v49 }
 0x3af   : > { %5375 = vmatprep.mubr.msk.bf16.mxu1 %vm1318_vm2, %v7059_v54  ;;  %5420 = vmatpush3.bf16.xpose.msra.mxu1 %v1831_v14 }
 0x3b0   : > { %5764 = vmatprep.subr.msk.bf16.mxu1 %vm1318_vm2, %v1782_v47 }
 0x3b6   : > { %5376 = vmatmul.mubr.msk.bf16.gmra.mxu1 %vm1318_vm2, %v7090_v40 }
 0x3b7   : > { %5379 = vmatprep.mubr.msk.bf16.mxu1 %vm1318_vm2, %v7054_v3  ;;  %5422 = vmatpush3.bf16.xpose.msra.mxu1 %v1828_v18  ;;  %v7292_v18 = vld [vmem:[%s9205_s4 + $0x50] sm:$0xff] }
 0x3b8   : > { %5765 = vmatprep.subr.msk.bf16.mxu1 %vm1318_vm2, %v1780_v15 }
 0x3be   : > { %5380 = vmatmul.mubr.msk.bf16.gmra.mxu1 %vm1318_vm2, %v7048_v60 }
 0x3bf   : > { %5383 = vmatprep.mubr.msk.bf16.mxu1 %vm1318_vm2, %v7069_v55  ;;  %5424 = vmatpush3.bf16.xpose.msra.mxu1 %v1825_v22 }
 0x3c0   : > { %5766 = vmatprep.subr.msk.bf16.mxu1 %vm1318_vm2, %v1778_v37 }
 0x3c6   : > { %5384 = vmatmul.mubr.msk.bf16.gmra.mxu1 %vm1318_vm2, %v7071_v0 }
 0x3c7   : > { %5426 = vmatpush3.bf16.xpose.msra.mxu1 %v1822_v30  ;;  %5435 = vmatprep.mubr.msk.bf16.mxu1 %vm1318_vm2, %v1754_v27 }
 0x3c8   : > { %5767 = vmatprep.subr.msk.bf16.mxu1 %vm1318_vm2, %v1776_v19 }
 0x3cf   : > { %5428 = vmatpush3.bf16.xpose.msra.mxu1 %v1819_v33 }
 0x3d0   : > { %5768 = vmatprep.subr.msk.bf16.mxu1 %vm1318_vm2, %v1774_v26 }
 0x3d7   : > { %5430 = vmatpush3.bf16.xpose.msra.mxu1 %v1816_v34 }
 0x3d8   : > { %5769 = vmatprep.subr.msk.bf16.mxu1 %vm1318_vm2, %v1772_v16  ;;  %v7301_v16 = vld [vmem:[%s9205_s4 + $0x58] sm:$0xff] }
 0x3df   : > { %5432 = vmatpush3.bf16.xpose.msra.mxu1 %v1813_v1  ;;  %v7310_v1 = vld [vmem:[%s9205_s4 + $0x40] sm:$0xff] }
 0x3e0   : > { %5770 = vmatprep.subr.msk.bf16.mxu1 %vm1318_vm2, %v1770_v32  ;;  %v7256_v32 = vld [vmem:[%s9205_s4 + $0x30] sm:$0xff] }
 0x3e7   : > { %5434 = vmatpush3.bf16.xpose.msra.mxu1 %v1810_v10 }
 0x3ee   : > { %5436 = vmatmul.mubr.msk.bf16.vlgmr.msra.gmra.mxu1 %vm1318_vm2, %v7164_v59 }
 0x3ef   : > { %5439 = vmatprep.mubr.msk.bf16.mxu1 %vm1318_vm2, %v1758_v41 }
 0x3f6   : > { %5440 = vmatmul.mubr.msk.bf16.gmra.mxu1 %vm1318_vm2, %v1760_v62  ;;  %v7265_v62 = vld [vmem:[%s9205_s4 + $0x38] sm:$0xff] }
 0x3f7   : > { %5443 = vmatprep.mubr.msk.bf16.mxu1 %vm1318_vm2, %v1762_v11 }
 0x3fe   : > { %5444 = vmatmul.mubr.msk.bf16.gmra.mxu1 %vm1318_vm2, %v7168_v63 }
 0x3ff   : > { %5447 = vmatprep.mubr.msk.bf16.mxu1 %vm1318_vm2, %v1766_v38  ;;  %v1057_v38 = vld [vmem:[%s9205_s4 + $0x48] sm:$0xff] }
 0x406   : > { %5448 = vmatmul.mubr.msk.bf16.gmra.mxu1 %vm1318_vm2, %v1768_v4 }
 0x46e   : > { %v5373_v24 = vpop.f32.mrf.mxu1 }
 0x46f   : > { %v1466_v35 = vmul.f32 0.25, %v5373_v24 }
 0x470   : > { %v1401_v28 = vpop.f32.mrf.mxu1 }
 0x471   : > { %v1464_v52 = vmul.f32 0.25, %v1401_v28  ;;  %v7228_v51 = vadd.f32 %v1466_v35, %v7225_v50 }
 0x472   : > { %v5374_v48 = vpop.f32.mrf.mxu1 }
 0x473   : > { %1500 = vmax.xlane.f32.xlu0 %v7228_v51  ;;  %v1467_v56 = vmul.f32 0.25, %v5374_v48  ;;  %v7242_v47 = vadd.f32 %v1464_v52, %v7233_v39  ;;  %v7326_v52 = vld [vmem:[%s9205_s4 + $0x70] sm:$0xff] }
 0x474   : > { %v1404_v42 = vpop.f32.mrf.mxu1 }
 0x475   : > { %v1465_v21 = vmul.f32 0.25, %v1404_v42  ;;  %v7260_v59 = vadd.f32 %v1467_v56, %v7247_v57  ;;  %v1063_v56 = vld [vmem:[%s9205_s4 + $0x78] sm:$0xff] }
 0x476   : > { %v5377_v25 = vpop.f32.mrf.mxu1 }
 0x477   : > { %v1470_v37 = vmul.f32 0.25, %v5377_v25  ;;  %1496 = vmax.xlane.f32.xlu0 %v7242_v47  ;;  %v7251_v26 = vadd.f32 %v1465_v21, %v7239_v44 }
 0x478   : > { %v1417_v58 = vpop.f32.mrf.mxu1 }
 0x479   : > { %1498 = vmax.xlane.f32.xlu1 %v7251_v26  ;;  %v1468_v63 = vmul.f32 0.25, %v1417_v58  ;;  %v7269_v45 = vadd.f32 %v1470_v37, %v7256_v32 }
 0x47a   : > { %v5378_v61 = vpop.f32.mrf.mxu1 }
 0x47b   : > { %v1471_v2 = vmul.f32 0.25, %v5378_v61  ;;  %1502 = vmax.xlane.f32.xlu0 %v7260_v59  ;;  %v7287_v14 = vadd.f32 %v1468_v63, %v7274_v6  ;;  %v7341_v61 = vld [vmem:[%s9205_s4 + $0x60] sm:$0xff] }
 0x47c   : > { %v1420_v4 = vpop.f32.mrf.mxu1 }
 0x47d   : > { %v1469_v7 = vmul.f32 0.25, %v1420_v4  ;;  %1508 = vmax.xlane.f32.xlu1 %v7269_v45  ;;  %v7278_v8 = vadd.f32 %v1471_v2, %v7265_v62  ;;  %v1061_v4 = vld [vmem:[%s9205_s4 + $0x68] sm:$0xff] }
 0x47e   : > { %v5381_v9 = vpop.f32.mrf.mxu1 }
 0x47f   : > { %v1474_v13 = vmul.f32 0.25, %v5381_v9  ;;  %1510 = vmax.xlane.f32.xlu0 %v7278_v8  ;;  %v7296_v19 = vadd.f32 %v1469_v7, %v7283_v12 }
 0x480   : > { %v1433_v15 = vpop.f32.mrf.mxu1 }
 0x481   : > { %1504 = vmax.xlane.f32.xlu1 %v7287_v14  ;;  %v1472_v27 = vmul.f32 0.25, %v1433_v15  ;;  %v7305_v33 = vadd.f32 %v1474_v13, %v7292_v18 }
 0x482   : > { %v5382_v22 = vpop.f32.mrf.mxu1 }
 0x483   : > { %v1475_v30 = vmul.f32 0.25, %v5382_v22  ;;  %1506 = vmax.xlane.f32.xlu0 %v7296_v19  ;;  %v7321_v35 = vadd.f32 %v1472_v27, %v7310_v1 }
 0x484   : > { %v1436_v34 = vpop.f32.mrf.mxu1 }
 0x485   : > { %v1473_v10 = vmul.f32 0.25, %v1436_v34  ;;  %1516 = vmax.xlane.f32.xlu1 %v7305_v33  ;;  %v7314_v41 = vadd.f32 %v1475_v30, %v7301_v16 }
 0x486   : > { %v5385_v11 = vpop.f32.mrf.mxu1 }
 0x487   : > { %v1478_v24 = vmul.f32 0.25, %v5385_v11  ;;  %1518 = vmax.xlane.f32.xlu0 %v7314_v41  ;;  %v7329_v48 = vadd.f32 %v1473_v10, %v1057_v38 }
 0x488   : > { %v1449_v28 = vpop.f32.mrf.mxu1 }
 0x489   : > { %1512 = vmax.xlane.f32.xlu1 %v7321_v35  ;;  %v1476_v21 = vmul.f32 0.25, %v1449_v28  ;;  %v7336_v37 = vadd.f32 %v1478_v24, %v7326_v52 }
 0x48a   : > { %v5386_v42 = vpop.f32.mrf.mxu1 }
 0x48b   : > { %v1479_v25 = vmul.f32 0.25, %v5386_v42  ;;  %1514 = vmax.xlane.f32.xlu0 %v7329_v48  ;;  %v7351_v7 = vadd.f32 %v1476_v21, %v7341_v61 }
 0x48c   : > { %v1452_v58 = vpop.f32.mrf.mxu1 }
 0x48d   : > { %v1477_v63 = vmul.f32 0.25, %v1452_v58  ;;  %1524 = vmax.xlane.f32.xlu1 %v7336_v37  ;;  %v7344_v2 = vadd.f32 %v1479_v25, %v1063_v56 }
 0x48f   : > { %1526 = vmax.xlane.f32.xlu0 %v7344_v2  ;;  %v7354_v9 = vadd.f32 %v1477_v63, %v1061_v4 }
 0x491   : > { %1520 = vmax.xlane.f32.xlu1 %v7351_v7 }
 0x493   : > { %1522 = vmax.xlane.f32.xlu0 %v7354_v9 }
 0x4ae   : > { %v5437_v13 = vpop.f32.mrf.mxu1 }
 0x4af   : > { %v1932_v15 = vmul.f32 0.25, %v5437_v13 }
 0x4b0   : > { %v1867_v22 = vpop.f32.mrf.mxu1 }
 0x4b1   : > { %v1930_v27 = vmul.f32 0.25, %v1867_v22  ;;  %v7358_v30 = vadd.f32 %v1932_v15, %v7225_v50 }
 0x4b2   : > { %v5438_v34 = vpop.f32.mrf.mxu1 }
 0x4b3   : > { %v1933_v10 = vmul.f32 0.25, %v5438_v34  ;;  %1966 = vmax.xlane.f32.xlu1 %v7358_v30  ;;  %v7362_v28 = vadd.f32 %v1930_v27, %v7233_v39 }
 0x4b4   : > { %v1870_v11 = vpop.f32.mrf.mxu1 }
 0x4b5   : > { %v1931_v24 = vmul.f32 0.25, %v1870_v11  ;;  %v7365_v42 = vadd.f32 %v1933_v10, %v7247_v57 }
 0x4b6   : > { %v5441_v21 = vpop.f32.mrf.mxu1 }
 0x4b7   : > { %1962 = vmax.xlane.f32.xlu1 %v7362_v28  ;;  %1968 = vmax.xlane.f32.xlu0 %v7365_v42  ;;  %v7370_v50 = vadd.f32 %v1931_v24, %v7239_v44 }
 0x4b8   : > { %v1883_v25 = vpop.f32.mrf.mxu1 }
 0x4ba   : > { %v5442_v58 = vpop.f32.mrf.mxu1 }
 0x4bb   : > { %v1937_v63 = vmul.f32 0.25, %v5442_v58  ;;  %1964 = vmax.xlane.f32.xlu0 %v7370_v50 }
 0x4bc   : > { %v1886_v13 = vpop.f32.mrf.mxu1 }
 0x4bd   : > { %v1935_v15 = vmul.f32 0.25, %v1886_v13  ;;  %v7374_v39 = vadd.f32 %v1937_v63, %v7265_v62 }
 0x4be   : > { %v5445_v57 = vpop.f32.mrf.mxu1 }
 0x4bf   : > { %1976 = vmax.xlane.f32.xlu0 %v7374_v39  ;;  %v7378_v27 = vadd.f32 %v1935_v15, %v7283_v12 }
 0x4c0   : > { %v1899_v22 = vpop.f32.mrf.mxu1 }
 0x4c2   : > { %v5446_v34 = vpop.f32.mrf.mxu1 }
 0x4c3   : > { %v1941_v10 = vmul.f32 0.25, %v5446_v34  ;;  %1972 = vmax.xlane.f32.xlu0 %v7378_v27 }
 0x4c4   : > { %v1902_v44 = vpop.f32.mrf.mxu1 }
 0x4c5   : > { %v1939_v11 = vmul.f32 0.25, %v1902_v44  ;;  %v7382_v24 = vadd.f32 %v1941_v10, %v7301_v16  ;;  %v1936_v10 = vmul.f32 0.25, %v5441_v21  ;;  %v1934_v44 = vmul.f32 0.25, %v1883_v25 }
 0x4c6   : > { %v5449_v58 = vpop.f32.mrf.mxu1 }
 0x4c7   : > { %1984 = vmax.xlane.f32.xlu0 %v7382_v24  ;;  %v7387_v63 = vadd.f32 %v1939_v11, %v1057_v38  ;;  %v1940_v38 = vmul.f32 0.25, %v5445_v57  ;;  %v7401_v11 = vadd.f32 %v1934_v44, %v7274_v6 }
 0x4c8   : > { %2134 = vrot.lane.b32.xlu1 %v7080_v20, %s6422_s20  ;;  %v1915_v62 = vpop.f32.mrf.mxu1  ;;  %v7397_v20 = vadd.f32 %v1936_v10, %v7256_v32 }
 0x4c9   : > { %v1942_v32 = vmul.f32 0.25, %v1915_v62 }
 0x4ca   : > { %v5450_v12 = vpop.f32.mrf.mxu1 }
 0x4cb   : > { %v1945_v13 = vmul.f32 0.25, %v5450_v12  ;;  %1980 = vmax.xlane.f32.xlu0 %v7387_v63  ;;  %v7405_v12 = vadd.f32 %v1940_v38, %v7292_v18  ;;  %v7418_v18 = vadd.f32 %v1942_v32, %v7341_v61 }
 0x4cc   : > { %v1918_v15 = vpop.f32.mrf.mxu1 }
 0x4cd   : > { %v1943_v34 = vmul.f32 0.25, %v1918_v15  ;;  %v7390_v31 = vadd.f32 %v1945_v13, %v1063_v56  ;;  %v1938_v56 = vmul.f32 0.25, %v1899_v22 }
 0x4cf   : > { %1992 = vmax.xlane.f32.xlu0 %v7390_v31  ;;  %v7393_v16 = vadd.f32 %v1943_v34, %v1061_v4  ;;  %v1944_v4 = vmul.f32 0.25, %v5449_v58  ;;  %v7409_v21 = vadd.f32 %v1938_v56, %v7310_v1 }
 0x4d1   : > { %v7413_v25 = vadd.f32 %v1944_v4, %v7326_v52 }
 0x4d3   : > { %1988 = vmax.xlane.f32.xlu0 %v7393_v16 }
 0x4ec   : > { %1974 = vmax.xlane.f32.xlu1 %v7397_v20 }
 0x4f0   : > { %1970 = vmax.xlane.f32.xlu1 %v7401_v11 }
 0x4f4   : > { %1982 = vmax.xlane.f32.xlu1 %v7405_v12 }
 0x4f8   : > { %1978 = vmax.xlane.f32.xlu1 %v7409_v21 }
 0x4fc   : > { %v1501_v6 = vpop.xlane.xlu0 %1500  ;;  %1990 = vmax.xlane.f32.xlu1 %v7413_v25 }
 0x4fd   : > { %v1530_v57 = vsub.f32 %v7228_v51, %v1501_v6 }
 0x4ff   : > { %v1548_v22 = vmul.f32 1.442695, %v1530_v57 }
 0x500   : > { %v1497_v13 = vpop.xlane.xlu0 %1496  ;;  %1986 = vmax.xlane.f32.xlu1 %v7418_v18 }
 0x501   : > { %5906 = vpow2.f32 %v1548_v22  ;;  %v1528_v1 = vsub.f32 %v7242_v47, %v1497_v13 }
 0x502   : > { %v1499_v58 = vpop.xlane.xlu1 %1498 }
 0x503   : > { %v1544_v62 = vmul.f32 1.442695, %v1528_v1  ;;  %v1529_v52 = vsub.f32 %v7251_v26, %v1499_v58 }
 0x504   : > { %v1503_v15 = vpop.xlane.xlu0 %1502 }
 0x505   : > { %5908 = vpow2.f32 %v1544_v62  ;;  %v1531_v34 = vsub.f32 %v7260_v59, %v1503_v15  ;;  %v1546_v38 = vmul.f32 1.442695, %v1529_v52 }
 0x506   : > { %v1509_v10 = vpop.xlane.xlu1 %1508 }
 0x507   : > { %v1550_v51 = vmul.f32 1.442695, %v1531_v34  ;;  %v1534_v61 = vsub.f32 %v7269_v45, %v1509_v10 }
 0x508   : > { %v1511_v44 = vpop.xlane.xlu0 %1510 }
 0x509   : > { %5910 = vpow2.f32 %v1550_v51  ;;  %v1556_v56 = vmul.f32 1.442695, %v1534_v61  ;;  %v1535_v4 = vsub.f32 %v7278_v8, %v1511_v44 }
 0x50a   : > { %v1505_v32 = vpop.xlane.xlu1 %1504 }
 0x50b   : > { %5912 = vpow2.f32 %v1556_v56  ;;  %v1532_v47 = vsub.f32 %v7287_v14, %v1505_v32  ;;  %v1558_v57 = vmul.f32 1.442695, %v1535_v4 }
 0x50c   : > { %v1507_v6 = vpop.xlane.xlu0 %1506  ;;  %5914 = vpow2.f32 %v1546_v38 }
 0x50d   : > { %v1552_v26 = vmul.f32 1.442695, %v1532_v47  ;;  %v1533_v59 = vsub.f32 %v7296_v19, %v1507_v6 }
 0x50e   : > { %v7428_v22 = vpop.eup %5906  ;;  %v1517_v13 = vpop.xlane.xlu1 %1516 }
 0x50f   : > { %5916 = vpow2.f32 %v1552_v26  ;;  %v1538_v45 = vsub.f32 %v7305_v33, %v1517_v13  ;;  %1580 = vadd.xlane.f32.xlu1 %v7428_v22  ;;  %v1554_v8 = vmul.f32 1.442695, %v1533_v59 }
 0x510   : > { %v1519_v1 = vpop.xlane.xlu0 %1518  ;;  %5918 = vpow2.f32 %v1558_v57 }
 0x511   : > { %v1564_v58 = vmul.f32 1.442695, %v1538_v45  ;;  %v1539_v14 = vsub.f32 %v7314_v41, %v1519_v1 }
 0x512   : > { %v7433_v62 = vpop.eup %5908  ;;  %v1513_v15 = vpop.xlane.xlu1 %1512 }
 0x513   : > { %5920 = vpow2.f32 %v1564_v58  ;;  %v1536_v19 = vsub.f32 %v7321_v35, %v1513_v15  ;;  %1576 = vadd.xlane.f32.xlu1 %v7433_v62  ;;  %v1566_v34 = vmul.f32 1.442695, %v1539_v14 }
 0x514   : > { %v1515_v52 = vpop.xlane.xlu0 %1514  ;;  %5922 = vpow2.f32 %v1554_v8 }
 0x515   : > { %v1560_v33 = vmul.f32 1.442695, %v1536_v19  ;;  %v1537_v10 = vsub.f32 %v7329_v48, %v1515_v52 }
 0x516   : > { %v7438_v51 = vpop.eup %5910  ;;  %v1525_v61 = vpop.xlane.xlu1 %1524 }
 0x517   : > { %5924 = vpow2.f32 %v1560_v33  ;;  %v1542_v41 = vsub.f32 %v7336_v37, %v1525_v61  ;;  %1582 = vadd.xlane.f32.xlu0 %v7438_v51  ;;  %v1562_v35 = vmul.f32 1.442695, %v1537_v10 }
 0x518   : > { %v7442_v44 = vpop.eup %5912  ;;  %v1527_v38 = vpop.xlane.xlu0 %1526  ;;  %5926 = vpow2.f32 %v1566_v34 }
 0x519   : > { %v1572_v56 = vmul.f32 1.442695, %v1542_v41  ;;  %v1543_v4 = vsub.f32 %v7344_v2, %v1527_v38  ;;  %1588 = vadd.xlane.f32.xlu1 %v7442_v44  ;;  %v7446_v32 = vpop.eup %5914 }
 0x51a   : > { %v1521_v48 = vpop.xlane.xlu1 %1520 }
 0x51b   : > { %5928 = vpow2.f32 %v1572_v56  ;;  %v1540_v47 = vsub.f32 %v7351_v7, %v1521_v48  ;;  %1578 = vadd.xlane.f32.xlu0 %v7446_v32  ;;  %v1574_v57 = vmul.f32 1.442695, %v1543_v4 }
 0x51c   : > { %v7450_v37 = vpop.eup %5916  ;;  %v1523_v6 = vpop.xlane.xlu0 %1522  ;;  %5930 = vpow2.f32 %v1562_v35 }
 0x51d   : > { %v1568_v26 = vmul.f32 1.442695, %v1540_v47  ;;  %v1541_v59 = vsub.f32 %v7354_v9, %v1523_v6  ;;  %1584 = vadd.xlane.f32.xlu1 %v7450_v37  ;;  %v7454_v2 = vpop.eup %5918 }
 0x51f   : > { %5932 = vpow2.f32 %v1568_v26  ;;  %1590 = vadd.xlane.f32.xlu0 %v7454_v2  ;;  %v1570_v7 = vmul.f32 1.442695, %v1541_v59 }
 0x520   : > { %v7457_v13 = vpop.eup %5920  ;;  %5934 = vpow2.f32 %v1574_v57 }
 0x521   : > { %1596 = vadd.xlane.f32.xlu1 %v7457_v13  ;;  %v7460_v45 = vpop.eup %5922  ;;  %5936 = vpow2.f32 %v1570_v7 }
 0x523   : > { %1586 = vadd.xlane.f32.xlu0 %v7460_v45 }
 0x524   : > { %v7463_v1 = vpop.eup %5924 }
 0x525   : > { %1592 = vadd.xlane.f32.xlu1 %v7463_v1  ;;  %v7466_v9 = vpop.eup %5926 }
 0x527   : > { %1598 = vadd.xlane.f32.xlu0 %v7466_v9 }
 0x528   : > { %v7469_v8 = vpop.eup %5928 }
 0x529   : > { %1604 = vadd.xlane.f32.xlu1 %v7469_v8  ;;  %v7472_v58 = vpop.eup %5930 }
 0x52b   : > { %1594 = vadd.xlane.f32.xlu0 %v7472_v58 }
 0x52c   : > { %v7475_v14 = vpop.eup %5932 }
 0x52d   : > { %1600 = vadd.xlane.f32.xlu1 %v7475_v14  ;;  %v7478_v15 = vpop.eup %5934 }
 0x52e   : > { %v7481_v19 = vpop.eup %5936 }
 0x52f   : > { %1606 = vadd.xlane.f32.xlu0 %v7478_v15 }
 0x533   : > { %1602 = vadd.xlane.f32.xlu0 %v7481_v19 }
 0x53c   : > { %v1967_v52 = vpop.xlane.xlu1 %1966 }
 0x53d   : > { %v1996_v34 = vsub.f32 %v7358_v30, %v1967_v52 }
 0x53e   : > { %2130 = vrot.lane.b32.xlu1 %v7101_v23, %s6422_s20 }
 0x53f   : > { %v2014_v33 = vmul.f32 1.442695, %v1996_v34 }
 0x540   : > { %v1963_v10 = vpop.xlane.xlu1 %1962  ;;  %v1969_v61 = vpop.xlane.xlu0 %1968 }
 0x541   : > { %5938 = vpow2.f32 %v2014_v33  ;;  %v1994_v41 = vsub.f32 %v7362_v28, %v1963_v10  ;;  %v1997_v38 = vsub.f32 %v7365_v42, %v1969_v61 }
 0x542   : > { %2128 = vrot.lane.b32.xlu1 %v7111_v17, %s6422_s20 }
 0x543   : > { %v2010_v35 = vmul.f32 1.442695, %v1994_v41  ;;  %v2016_v4 = vmul.f32 1.442695, %v1997_v38 }
 0x544   : > { %v1965_v56 = vpop.xlane.xlu0 %1964  ;;  %v7513_v52 = vpop.permute.xlu1 %2134 }
 0x545   : > { %5940 = vpow2.f32 %v2010_v35  ;;  %v1995_v30 = vsub.f32 %v7370_v50, %v1965_v56 }
 0x546   : > { %2126 = vrot.lane.b32.xlu1 %v7121_v29, %s6422_s20  ;;  %5942 = vpow2.f32 %v2016_v4 }
 0x547   : > { %v2012_v48 = vmul.f32 1.442695, %v1995_v30 }
 0x548   : > { %v1977_v47 = vpop.xlane.xlu0 %1976 }
 0x549   : > { %5944 = vpow2.f32 %v2012_v48  ;;  %v2001_v56 = vsub.f32 %v7374_v39, %v1977_v47 }
 0x54a   : > { %2124 = vrot.lane.b32.xlu1 %v7131_v53, %s6422_s20 }
 0x54c   : > { %v1973_v6 = vpop.xlane.xlu0 %1972 }
 0x54d   : > { %v1999_v26 = vsub.f32 %v7378_v27, %v1973_v6 }
 0x54e   : > { %v7496_v28 = vpop.eup %5938  ;;  %2122 = vrot.lane.b32.xlu1 %v7140_v46, %s6422_s20 }
 0x54f   : > { %2046 = vadd.xlane.f32.xlu0 %v7496_v28  ;;  %v2020_v59 = vmul.f32 1.442695, %v1999_v26 }
 0x550   : > { %v1985_v33 = vpop.xlane.xlu0 %1984 }
 0x551   : > { %5946 = vpow2.f32 %v2020_v59  ;;  %v2024_v59 = vmul.f32 1.442695, %v2001_v56 }
 0x552   : > { %v7501_v42 = vpop.eup %5940 }
 0x553   : > { %2042 = vadd.xlane.f32.xlu0 %v7501_v42  ;;  %v7504_v50 = vpop.eup %5942 }
 0x554   : > { %v1981_v35 = vpop.xlane.xlu0 %1980 }
 0x555   : > { %v2003_v46 = vsub.f32 %v7387_v63, %v1981_v35 }
 0x556   : > { %v7507_v57 = vpop.eup %5944 }
 0x557   : > { %2048 = vadd.xlane.f32.xlu0 %v7504_v50  ;;  %v2028_v39 = vmul.f32 1.442695, %v2003_v46 }
 0x558   : > { %v1993_v29 = vpop.xlane.xlu0 %1992 }
 0x55b   : > { %2044 = vadd.xlane.f32.xlu0 %v7507_v57 }
 0x55e   : > { %v7511_v7 = vpop.eup %5946 }
 0x571   : > { %2132 = vrot.lane.b32.xlu0 %v7092_v43, %s6422_s20  ;;  %s6423_s20 = smov 32  }
 0x572   : > { %2052 = vadd.xlane.f32.xlu1 %v7511_v7 }
 0x575   : > { %v1975_v34 = vpop.xlane.xlu1 %1974 }
 0x576   : > { %v2000_v41 = vsub.f32 %v7397_v20, %v1975_v34  ;;  %v2005_v34 = vsub.f32 %v7382_v24, %v1985_v33  ;;  %v2009_v24 = vsub.f32 %v7390_v31, %v1993_v29 }
 0x578   : > { %v2022_v4 = vmul.f32 1.442695, %v2000_v41  ;;  %v2032_v41 = vmul.f32 1.442695, %v2005_v34  ;;  %v2040_v33 = vmul.f32 1.442695, %v2009_v24 }
 0x579   : > { %v1971_v10 = vpop.xlane.xlu1 %1970 }
 0x57a   : > { %v1998_v61 = vsub.f32 %v7401_v11, %v1971_v10 }
 0x57c   : > { %v2018_v27 = vmul.f32 1.442695, %v1998_v61 }
 0x57d   : > { %v1983_v38 = vpop.xlane.xlu1 %1982 }
 0x57e   : > { %5948 = vpow2.f32 %v2018_v27  ;;  %v2004_v48 = vsub.f32 %v7405_v12, %v1983_v38 }
 0x57f   : > { %5950 = vpow2.f32 %v2022_v4 }
 0x580   : > { %v2030_v20 = vmul.f32 1.442695, %v2004_v48 }
 0x581   : > { %v1979_v30 = vpop.xlane.xlu1 %1978 }
 0x582   : > { %v2002_v6 = vsub.f32 %v7409_v21, %v1979_v30  ;;  %v1989_v21 = vpop.xlane.xlu0 %1988 }
 0x583   : > { %v2007_v63 = vsub.f32 %v7393_v16, %v1989_v21 }
 0x584   : > { %v2026_v26 = vmul.f32 1.442695, %v2002_v6 }
 0x585   : > { %v1991_v11 = vpop.xlane.xlu1 %1990 }
 0x586   : > { %5952 = vpow2.f32 %v2026_v26  ;;  %v2008_v10 = vsub.f32 %v7413_v25, %v1991_v11  ;;  %v2036_v25 = vmul.f32 1.442695, %v2007_v63 }
 0x587   : > { %5954 = vpow2.f32 %v2024_v59 }
 0x588   : > { %5956 = vpow2.f32 %v2030_v20  ;;  %v2038_v38 = vmul.f32 1.442695, %v2008_v10 }
 0x589   : > { %v1987_v47 = vpop.xlane.xlu1 %1986  ;;  %5958 = vpow2.f32 %v2028_v39 }
 0x58a   : > { %v2006_v12 = vsub.f32 %v7418_v18, %v1987_v47 }
 0x58b   : > { %v7528_v27 = vpop.eup %5948 }
 0x58c   : > { %v2034_v61 = vmul.f32 1.442695, %v2006_v12  ;;  %v7531_v46 = vpop.eup %5950 }
 0x58e   : > { %5960 = vpow2.f32 %v2034_v61 }
 0x58f   : > { %5962 = vpow2.f32 %v2032_v41 }
 0x590   : > { %2050 = vadd.xlane.f32.xlu0 %v7528_v27  ;;  %5964 = vpow2.f32 %v2038_v38 }
 0x591   : > { %5966 = vpow2.f32 %v2036_v25 }
 0x592   : > { %5968 = vpow2.f32 %v2040_v33 }
 0x593   : > { %v7534_v18 = vpop.eup %5952 }
 0x594   : > { %2054 = vadd.xlane.f32.xlu0 %v7531_v46  ;;  %2058 = vadd.xlane.f32.xlu1 %v7534_v18  ;;  %v7538_v16 = vpop.eup %5954 }
 0x595   : > { %v7540_v35 = vpop.eup %5956 }
 0x596   : > { %v7544_v31 = vpop.eup %5958 }
 0x598   : > { %v1581_v56 = vpop.xlane.xlu1 %1580  ;;  %2056 = vadd.xlane.f32.xlu0 %v7538_v16  ;;  %2062 = vadd.xlane.f32.xlu1 %v7540_v35 }
 0x59b   : > { %v7546_v29 = vpop.eup %5960 }
 0x59c   : > { %2066 = vadd.xlane.f32.xlu1 %v7546_v29  ;;  %2060 = vadd.xlane.f32.xlu0 %v7544_v31  ;;  %v7550_v4 = vpop.eup %5962  ;;  %v1577_v30 = vpop.xlane.xlu1 %1576 }
 0x59d   : > { %v7552_v48 = vpop.eup %5964 }
 0x59e   : > { %v7556_v59 = vpop.eup %5966 }
 0x59f   : > { %v7559_v34 = vpop.eup %5968 }
 0x5a0   : > { %2070 = vadd.xlane.f32.xlu1 %v7552_v48  ;;  %2064 = vadd.xlane.f32.xlu0 %v7550_v4  ;;  %v1583_v6 = vpop.xlane.xlu0 %1582 }
 0x5a1   : > { %5970 = vrcp.f32 %v1583_v6 }
 0x5a2   : > { %v1589_v26 = vpop.xlane.xlu1 %1588  ;;  %5972 = vrcp.f32 %v1577_v30 }
 0x5a3   : > { %5974 = vrcp.f32 %v1581_v56 }
 0x5a4   : > { %2068 = vadd.xlane.f32.xlu0 %v7556_v59  ;;  %v1579_v11 = vpop.xlane.xlu0 %1578 }
 0x5a5   : > { %5976 = vrcp.f32 %v1579_v11 }
 0x5a6   : > { %v1585_v20 = vpop.xlane.xlu1 %1584 }
 0x5a8   : > { %2072 = vadd.xlane.f32.xlu0 %v7559_v34  ;;  %v1591_v39 = vpop.xlane.xlu0 %1590 }
 0x5a9   : > { %5978 = vrcp.f32 %v1591_v39 }
 0x5aa   : > { %v1597_v47 = vpop.xlane.xlu1 %1596  ;;  %5980 = vrcp.f32 %v1585_v20 }
 0x5ab   : > { %5982 = vrcp.f32 %v1589_v26 }
 0x5ac   : > { %v1587_v10 = vpop.xlane.xlu0 %1586 }
 0x5ad   : > { %5984 = vrcp.f32 %v1587_v10 }
 0x5ae   : > { %v1593_v12 = vpop.xlane.xlu1 %1592  ;;  %v5971_v21 = vpop.eup %5970 }
 0x5af   : > { %v5973_v61 = vpop.eup %5972  ;;  %v1615_v25 = vmul.f32 %v5971_v21, %v7438_v51 }
 0x5b0   : > { %v1599_v41 = vpop.xlane.xlu0 %1598  ;;  %v5975_v63 = vpop.eup %5974  ;;  %v1609_v33 = vmul.f32 %v5973_v61, %v7433_v62 }
 0x5b1   : > { %2535 = vrot.lane.b32.xlu1 %v7071_v0, %s6423_s20  ;;  %5986 = vrcp.f32 %v1599_v41  ;;  %v1613_v6 = vmul.f32 %v5975_v63, %v7428_v22 }
 0x5b2   : > { %v5977_v38 = vpop.eup %5976  ;;  %v1605_v24 = vpop.xlane.xlu1 %1604  ;;  %5988 = vrcp.f32 %v1593_v12 }
 0x5b3   : > { %v1611_v56 = vmul.f32 %v5977_v38, %v7446_v32  ;;  %5990 = vrcp.f32 %v1597_v47  ;;  %v1641_v11 = vpack.c.bf16 %v1615_v25, %v1613_v6 }
 0x5b4   : > { %v1595_v30 = vpop.xlane.xlu0 %1594 }
 0x5b5   : > { %5992 = vrcp.f32 %v1595_v30  ;;  %2531 = vrot.lane.b32.xlu1 %v7048_v60, %s6423_s20  ;;  %v1640_v26 = vpack.c.bf16 %v1611_v56, %v1609_v33 }
 0x5b6   : > { %v5979_v20 = vpop.eup %5978  ;;  %v1601_v10 = vpop.xlane.xlu1 %1600 }
 0x5b7   : > { %5403 = vmatprep.mubr.bf16.mxu0 %v1640_v26  ;;  %v5981_v39 = vpop.eup %5980  ;;  %v1623_v22 = vmul.f32 %v5979_v20, %v7454_v2 }
 0x5b8   : > { %5404 = vmatmul.mubr.bf16.vlgmr.msra.gmra.mxu0 %v1641_v11  ;;  %v1607_v51 = vpop.xlane.xlu0 %1606  ;;  %v5983_v12 = vpop.eup %5982  ;;  %v1617_v32 = vmul.f32 %v5981_v39, %v7450_v37 }
 0x5b9   : > { %5452 = vmatpush3.bf16.msra.mxu0 %v7172_v5  ;;  %2529 = vrot.lane.b32.xlu1 %v7054_v3, %s6423_s20  ;;  %5994 = vrcp.f32 %v1607_v51  ;;  %v1621_v61 = vmul.f32 %v5983_v12, %v7442_v44  ;;  %v5891_v12 = vld [vmem:[%s6682_s16] sm:$0xff]  }
 0x5ba   : > { %v5985_v62 = vpop.eup %5984  ;;  %5453 = vmatprep.subr.bf16.mxu0 %v7513_v52  ;;  %5996 = vrcp.f32 %v1601_v10  ;;  %5501 = vmatprep.subr.bf16.mxu1 %v5891_v12 }
 0x5bb   : > { %v1619_v47 = vmul.f32 %v5985_v62, %v7460_v45  ;;  %5998 = vrcp.f32 %v1605_v24  ;;  %v1643_v2 = vpack.c.bf16 %v1623_v22, %v1621_v61  ;;  %5502 = vmatpush3.bf16.msra.mxu1 %v5891_v12  ;;  %v9206_v22 = vld [vmem:[#allocation13_spill] sm:$0xff] }
 0x5bc   : > { %v1603_v21 = vpop.xlane.xlu0 %1602 }
 0x5bd   : > { %5454 = vmatpush3.bf16.msra.mxu0 %v7513_v52  ;;  %6000 = vrcp.f32 %v1603_v21  ;;  %2525 = vrot.lane.b32.xlu1 %v7059_v54, %s6423_s20  ;;  %v1642_v5 = vpack.c.bf16 %v1619_v47, %v1617_v32  ;;  %v5890_v21 = vld [vmem:[%s6682_s16 + $0x8] sm:$0xff]  }
 0x5be   : > { %2533 = vrot.lane.b32.xlu0 %v7069_v55, %s6423_s20  ;;  %v5987_v41 = vpop.eup %5986 }
 0x5bf   : > { %5407 = vmatprep.mubr.bf16.mxu0 %v1642_v5  ;;  %v5989_v37 = vpop.eup %5988  ;;  %v1631_v52 = vmul.f32 %v5987_v41, %v7466_v9 }
 0x5c0   : > { %5408 = vmatmul.mubr.bf16.gmra.mxu0 %v1643_v2  ;;  %v5991_v45 = vpop.eup %5990  ;;  %v1625_v63 = vmul.f32 %v5989_v37, %v7463_v1 }
 0x5c1   : > { %2521 = vrot.lane.b32.xlu1 %v7025_v36, %s6423_s20  ;;  %v1629_v24 = vmul.f32 %v5991_v45, %v7457_v13 }
 0x5c2   : > { %v5993_v44 = vpop.eup %5992  ;;  %2527 = vrot.lane.b32.xlu0 %v7090_v40, %s6423_s20 }
 0x5c3   : > { %v1627_v38 = vmul.f32 %v5993_v44, %v7472_v58  ;;  %v1645_v33 = vpack.c.bf16 %v1631_v52, %v1629_v24 }
 0x5c5   : > { %2507 = vrot.lane.b32.xlu1 %v7035_v49, %s6424_s25  ;;  %v1644_v25 = vpack.c.bf16 %v1627_v38, %v1625_v63 }
 0x5c6   : > { %2523 = vrot.lane.b32.xlu0 %v7035_v49, %s6423_s20  ;;  %v5995_v56 = vpop.eup %5994 }
 0x5c7   : > { %5411 = vmatprep.mubr.bf16.mxu0 %v1644_v25  ;;  %v5997_v30 = vpop.eup %5996  ;;  %v1639_v13 = vmul.f32 %v5995_v56, %v7478_v15 }
 0x5c8   : > { %5412 = vmatmul.mubr.bf16.gmra.mxu0 %v1645_v33  ;;  %v5999_v9 = vpop.eup %5998  ;;  %v1633_v58 = vmul.f32 %v5997_v30, %v7475_v14 }
 0x5c9   : > { %2511 = vrot.lane.b32.xlu1 %v7090_v40, %s6424_s25  ;;  %v1637_v26 = vmul.f32 %v5999_v9, %v7469_v8 }
 0x5ca   : > { %v6001_v1 = vpop.eup %6000  ;;  %2505 = vrot.lane.b32.xlu0 %v7025_v36, %s6424_s25 }
 0x5cb   : > { %v1635_v6 = vmul.f32 %v6001_v1, %v7481_v19  ;;  %v1647_v20 = vpack.c.bf16 %v1639_v13, %v1637_v26  ;;  %v2131_v19 = vpop.permute.xlu1 %2130 }
 0x5cd   : > { %2515 = vrot.lane.b32.xlu1 %v7048_v60, %s6424_s25  ;;  %v1646_v11 = vpack.c.bf16 %v1635_v6, %v1633_v58 }
 0x5ce   : > { %2509 = vrot.lane.b32.xlu0 %v7059_v54, %s6424_s25 }
 0x5cf   : > { %5415 = vmatprep.mubr.bf16.mxu0 %v1646_v11  ;;  %v2129_v10 = vpop.permute.xlu1 %2128 }
 0x5d0   : > { %5416 = vmatmul.mubr.bf16.gmra.mxu0 %v1647_v20 }
 0x5d1   : > { %2519 = vrot.lane.b32.xlu1 %v7071_v0, %s6424_s25 }
 0x5d2   : > { %2513 = vrot.lane.b32.xlu0 %v7054_v3, %s6424_s25 }
 0x5d3   : > { %v2127_v62 = vpop.permute.xlu1 %2126 }
 0x5d5   : > { %3166 = vrot.lane.b32.xlu1 %v7069_v55, %s6425_s17 }
 0x5d6   : > { %2517 = vrot.lane.b32.xlu0 %v7069_v55, %s6424_s25 }
 0x5d8   : > { %v2047_v8 = vpop.xlane.xlu0 %2046 }
 0x5d9   : > { %3162 = vrot.lane.b32.xlu1 %v7054_v3, %s6425_s17 }
 0x5da   : > { %3168 = vrot.lane.b32.xlu0 %v7071_v0, %s6425_s17 }
 0x5dc   : > { %v2043_v14 = vpop.xlane.xlu0 %2042 }
 0x5dd   : > { %3158 = vrot.lane.b32.xlu1 %v7059_v54, %s6425_s17  ;;  %6002 = vrcp.f32 %v2043_v14 }
 0x5de   : > { %3164 = vrot.lane.b32.xlu0 %v7048_v60, %s6425_s17 }
 0x5e0   : > { %v2049_v15 = vpop.xlane.xlu0 %2048 }
 0x5e1   : > { %3154 = vrot.lane.b32.xlu1 %v7025_v36, %s6425_s17 }
 0x5e2   : > { %3160 = vrot.lane.b32.xlu0 %v7090_v40, %s6425_s17 }
 0x5e4   : > { %v2045_v39 = vpop.xlane.xlu0 %2044 }
 0x5e5   : > { %6004 = vrcp.f32 %v2045_v39  ;;  %3140 = vrot.lane.b32.xlu1 %v7035_v49, %s6426_s29 }
 0x5e6   : > { %3156 = vrot.lane.b32.xlu0 %v7035_v49, %s6425_s17  ;;  %6006 = vrcp.f32 %v2049_v15 }
 0x5e7   : > { %6008 = vrcp.f32 %v2047_v8 }
 0x5e8   : > { %v2133_v51 = vpop.permute.xlu0 %2132 }
 0x5e9   : > { %3144 = vrot.lane.b32.xlu1 %v7090_v40, %s6426_s29  ;;  %5455 = vmatprep.subr.bf16.mxu0 %v2133_v51 }
 0x5ea   : > { %3138 = vrot.lane.b32.xlu0 %v7025_v36, %s6426_s29  ;;  %5456 = vmatpush3.bf16.msra.mxu0 %v2133_v51  ;;  %v6003_v49 = vpop.eup %6002 }
 0x5eb   : > { %5457 = vmatprep.subr.bf16.mxu0 %v2131_v19 }
 0x5ed   : > { %3148 = vrot.lane.b32.xlu1 %v7048_v60, %s6426_s29  ;;  %v2075_v60 = vmul.f32 %v6003_v49, %v7501_v42 }
 0x5ee   : > { %3142 = vrot.lane.b32.xlu0 %v7059_v54, %s6426_s29  ;;  %5458 = vmatpush3.bf16.msra.mxu0 %v2131_v19  ;;  %v2125_v54 = vpop.permute.xlu1 %2124 }
 0x5ef   : > { %5459 = vmatprep.subr.bf16.mxu0 %v2129_v10 }
 0x5f1   : > { %3152 = vrot.lane.b32.xlu1 %v7071_v0, %s6426_s29 }
 0x5f2   : > { %v6005_v36 = vpop.eup %6004  ;;  %3146 = vrot.lane.b32.xlu0 %v7054_v3, %s6426_s29  ;;  %5460 = vmatpush3.bf16.msra.mxu0 %v2129_v10  ;;  %v2123_v47 = vpop.permute.xlu1 %2122 }
 0x5f3   : > { %5461 = vmatprep.subr.bf16.mxu0 %v2127_v62  ;;  %v2077_v40 = vmul.f32 %v6005_v36, %v7507_v57  ;;  %v6007_v0 = vpop.eup %6006 }
 0x5f4   : > { %v6009_v3 = vpop.eup %6008  ;;  %v2081_v42 = vmul.f32 %v6007_v0, %v7504_v50 }
 0x5f5   : > { %2880 = vrot.lane.b32.xlu1 %v9206_v22, %s6424_s25  ;;  %v2106_v32 = vpack.c.bf16 %v2077_v40, %v2075_v60  ;;  %v2079_v57 = vmul.f32 %v6009_v3, %v7496_v28 }
 0x5f6   : > { %3150 = vrot.lane.b32.xlu0 %v7069_v55, %s6426_s29  ;;  %5462 = vmatpush3.bf16.msra.mxu0 %v2127_v62 }
 0x5f7   : > { %5463 = vmatprep.subr.bf16.mxu0 %v2125_v54  ;;  %5467 = vmatprep.mubr.bf16.mxu0 %v2106_v32  ;;  %v2107_v61 = vpack.c.bf16 %v2081_v42, %v2079_v57 }
 0x5fa   : > { %5464 = vmatpush3.bf16.msra.mxu0 %v2125_v54 }
 0x5fb   : > { %5465 = vmatprep.subr.bf16.mxu0 %v2123_v47  ;;  %v2053_v5 = vpop.xlane.xlu1 %2052 }
 0x5fc   : > { %6010 = vrcp.f32 %v2053_v5 }
 0x5fe   : > { %5466 = vmatpush3.bf16.msra.mxu0 %v2123_v47 }
 0x5ff   : > { %5483 = vmatprep.subr.bf16.mxu0 %v5890_v21 }
 0x601   : > { %5468 = vmatmul.mubr.bf16.vlgmr.msra.gmra.mxu0 %v2107_v61 }
 0x602   : > { %5484 = vmatpush3.bf16.msra.mxu0 %v5890_v21 }
 0x609   : > { %v6011_v44 = vpop.eup %6010 }
 0x60a   : > { %v2085_v38 = vmul.f32 %v6011_v44, %v7511_v7 }
 0x619   : > { %v2051_v55 = vpop.xlane.xlu0 %2050 }
 0x61a   : > { %6012 = vrcp.f32 %v2051_v55 }
 0x61d   : > { %v2059_v2 = vpop.xlane.xlu1 %2058  ;;  %v2055_v41 = vpop.xlane.xlu0 %2054 }
 0x61e   : > { %6014 = vrcp.f32 %v2055_v41 }
 0x621   : > { %v2063_v37 = vpop.xlane.xlu1 %2062  ;;  %v2057_v45 = vpop.xlane.xlu0 %2056 }
 0x622   : > { %6016 = vrcp.f32 %v2057_v45 }
 0x623   : > { %6018 = vrcp.f32 %v2059_v2 }
 0x625   : > { %v2067_v50 = vpop.xlane.xlu1 %2066  ;;  %v2061_v52 = vpop.xlane.xlu0 %2060 }
 0x626   : > { %6020 = vrcp.f32 %v2061_v52 }
 0x627   : > { %v6013_v28 = vpop.eup %6012  ;;  %6022 = vrcp.f32 %v2063_v37 }
 0x628   : > { %v2083_v63 = vmul.f32 %v6013_v28, %v7528_v27 }
 0x629   : > { %v2071_v24 = vpop.xlane.xlu1 %2070  ;;  %v2065_v25 = vpop.xlane.xlu0 %2064 }
 0x62a   : > { %v2108_v33 = vpack.c.bf16 %v2085_v38, %v2083_v63  ;;  %6024 = vrcp.f32 %v2065_v25 }
 0x62b   : > { %6026 = vrcp.f32 %v2067_v50  ;;  %v6015_v9 = vpop.eup %6014 }
 0x62c   : > { %5471 = vmatprep.mubr.bf16.mxu0 %v2108_v33  ;;  %v2087_v13 = vmul.f32 %v6015_v9, %v7531_v46 }
 0x62d   : > { %v7647_v56 = vpop.permute.xlu1 %2535  ;;  %v2069_v30 = vpop.xlane.xlu0 %2068 }
 0x62e   : > { %6028 = vrcp.f32 %v2069_v30  ;;  %5771 = vmatprep.subr.msk.bf16.mxu0 %vm1318_vm2, %v7647_v56 }
 0x62f   : > { %v6017_v1 = vpop.eup %6016  ;;  %6030 = vrcp.f32 %v2071_v24 }
 0x630   : > { %v2089_v58 = vmul.f32 %v6017_v1, %v7538_v16  ;;  %v6019_v6 = vpop.eup %6018 }
 0x631   : > { %v7651_v27 = vpop.permute.xlu1 %2531  ;;  %v2073_v7 = vpop.xlane.xlu0 %2072  ;;  %v2091_v8 = vmul.f32 %v6019_v6, %v7534_v18 }
 0x632   : > { %6032 = vrcp.f32 %v2073_v7  ;;  %v2109_v26 = vpack.c.bf16 %v2089_v58, %v2087_v13 }
 0x633   : > { %v6021_v11 = vpop.eup %6020 }
 0x634   : > { %5472 = vmatmul.mubr.bf16.gmra.mxu0 %v2109_v26  ;;  %v2093_v14 = vmul.f32 %v6021_v11, %v7544_v31  ;;  %v6023_v15 = vpop.eup %6022 }
 0x635   : > { %v7655_v20 = vpop.permute.xlu1 %2529  ;;  %v2095_v46 = vmul.f32 %v6023_v15, %v7540_v35 }
 0x636   : > { %v2110_v19 = vpack.c.bf16 %v2093_v14, %v2091_v8 }
 0x637   : > { %v6025_v39 = vpop.eup %6024 }
 0x638   : > { %v6027_v10 = vpop.eup %6026  ;;  %5475 = vmatprep.mubr.bf16.mxu0 %v2110_v19  ;;  %v2097_v16 = vmul.f32 %v6025_v39, %v7550_v4 }
 0x639   : > { %v7659_v51 = vpop.permute.xlu1 %2525  ;;  %v2099_v49 = vmul.f32 %v6027_v10, %v7546_v29 }
 0x63a   : > { %v2111_v62 = vpack.c.bf16 %v2097_v16, %v2095_v46  ;;  %v2583_v16 = vsel %vm1318_vm2, %v7647_v56, 0  ;;  %v2574_v56 = vsel %vm1318_vm2, %v7655_v20, 0 }
 0x63b   : > { %v6029_v12 = vpop.eup %6028 }
 0x63c   : > { %v2101_v36 = vmul.f32 %v6029_v12, %v7556_v59  ;;  %v6031_v18 = vpop.eup %6030  ;;  %5476 = vmatmul.mubr.bf16.gmra.mxu0 %v2111_v62  ;;  %v2534_v12 = vpop.permute.xlu0 %2533 }
 0x63d   : > { %v7665_v31 = vpop.permute.xlu1 %2521  ;;  %v2103_v54 = vmul.f32 %v6031_v18, %v7552_v48  ;;  %v2580_v62 = vsel %vm1318_vm2, %v2534_v12, 0 }
 0x63e   : > { %v2112_v60 = vpack.c.bf16 %v2101_v36, %v2099_v49  ;;  %v2577_v49 = vsel %vm1318_vm2, %v7651_v27, 0 }
 0x63f   : > { %v6033_v40 = vpop.eup %6032 }
 0x640   : > { %5479 = vmatprep.mubr.bf16.mxu0 %v2112_v60  ;;  %v2105_v32 = vmul.f32 %v6033_v40, %v7559_v34  ;;  %v2528_v36 = vpop.permute.xlu0 %2527 }
 0x641   : > { %v7669_v35 = vpop.permute.xlu1 %2507  ;;  %v2571_v60 = vsel %vm1318_vm2, %v2528_v36, 0 }
 0x642   : > { %v2113_v4 = vpack.c.bf16 %v2105_v32, %v2103_v54  ;;  %v2568_v54 = vsel %vm1318_vm2, %v7659_v51, 0 }
 0x644   : > { %5480 = vmatmul.mubr.bf16.gmra.mxu0 %v2113_v4  ;;  %v2524_v18 = vpop.permute.xlu0 %2523 }
 0x645   : > { %v7671_v0 = vpop.permute.xlu1 %2511 }
 0x648   : > { %v2506_v40 = vpop.permute.xlu0 %2505 }
 0x649   : > { %v7673_v29 = vpop.permute.xlu1 %2515 }
 0x64d   : > { %v7675_v59 = vpop.permute.xlu1 %2519 }
 0x651   : > { %v7677_v3 = vpop.permute.xlu1 %3166 }
 0x655   : > { %v7679_v47 = vpop.permute.xlu1 %3162 }
 0x659   : > { %v7681_v42 = vpop.permute.xlu1 %3158 }
 0x65d   : > { %v7683_v21 = vpop.permute.xlu1 %3154 }
 0x661   : > { %v7685_v48 = vpop.permute.xlu1 %3140 }
 0x665   : > { %v7687_v34 = vpop.permute.xlu1 %3144 }
 0x669   : > { %v7689_v57 = vpop.permute.xlu1 %3148 }
 0x66d   : > { %v7691_v61 = vpop.permute.xlu1 %3152 }
 0x671   : > { %v2881_v5 = vpop.permute.xlu1 %2880 }
 0x672   : > { %5551 = vmatprep.subr.bf16.mxu1 %v2881_v5 }
 0x678   : > { %v5405_v55 = vpop.f32.mrf.mxu0 }
 0x67a   : > { %v1682_v2 = vpop.f32.mrf.mxu0 }
 0x67c   : > { %v5406_v41 = vpop.f32.mrf.mxu0 }
 0x67d   : > { %v1746_v44 = vpack.c.bf16 %v5406_v41, %v5405_v55 }
 0x67e   : > { %v1685_v37 = vpop.f32.mrf.mxu0 }
 0x67f   : > { %v1745_v45 = vpack.c.bf16 %v1685_v37, %v1682_v2  ;;  %v2565_v2 = vsel %vm1318_vm2, %v2524_v18, 0 }
 0x680   : > { %v5409_v50 = vpop.f32.mrf.mxu0 }
 0x681   : > { %5503 = vmatprep.mubr.msk.bf16.mxu1 %vm1318_vm2, %v1745_v45 }
 0x682   : > { %v1698_v52 = vpop.f32.mrf.mxu0  ;;  %5504 = vmatmul.mubr.msk.bf16.vlgmr.msra.gmra.mxu1 %vm1318_vm2, %v1746_v44 }
 0x683   : > { %5552 = vmatpush3.bf16.msra.mxu1 %v2881_v5 }
 0x684   : > { %v5410_v28 = vpop.f32.mrf.mxu0 }
 0x685   : > { %v1748_v24 = vpack.c.bf16 %v5410_v28, %v5409_v50  ;;  %v2562_v28 = vsel %vm1318_vm2, %v7665_v31, 0 }
 0x686   : > { %v1701_v63 = vpop.f32.mrf.mxu0 }
 0x687   : > { %v1747_v38 = vpack.c.bf16 %v1701_v63, %v1698_v52 }
 0x688   : > { %v5413_v25 = vpop.f32.mrf.mxu0 }
 0x689   : > { %5507 = vmatprep.mubr.msk.bf16.mxu1 %vm1318_vm2, %v1747_v38 }
 0x68a   : > { %v1714_v33 = vpop.f32.mrf.mxu0  ;;  %5508 = vmatmul.mubr.msk.bf16.gmra.mxu1 %vm1318_vm2, %v1748_v24 }
 0x68c   : > { %v5414_v30 = vpop.f32.mrf.mxu0 }
 0x68d   : > { %v1750_v7 = vpack.c.bf16 %v5414_v30, %v5413_v25 }
 0x68e   : > { %v1717_v9 = vpop.f32.mrf.mxu0 }
 0x68f   : > { %v1749_v1 = vpack.c.bf16 %v1717_v9, %v1714_v33 }
 0x690   : > { %v5417_v13 = vpop.f32.mrf.mxu0 }
 0x691   : > { %5511 = vmatprep.mubr.msk.bf16.mxu1 %vm1318_vm2, %v1749_v1 }
 0x692   : > { %v1730_v58 = vpop.f32.mrf.mxu0  ;;  %5512 = vmatmul.mubr.msk.bf16.gmra.mxu1 %vm1318_vm2, %v1750_v7 }
 0x694   : > { %v5418_v6 = vpop.f32.mrf.mxu0 }
 0x695   : > { %v1752_v8 = vpack.c.bf16 %v5418_v6, %v5417_v13 }
 0x696   : > { %v1733_v26 = vpop.f32.mrf.mxu0 }
 0x697   : > { %v1751_v11 = vpack.c.bf16 %v1733_v26, %v1730_v58  ;;  %v3213_v58 = vsel %vm1318_vm2, %v7677_v3, 0 }
 0x699   : > { %5515 = vmatprep.mubr.msk.bf16.mxu1 %vm1318_vm2, %v1751_v11  ;;  %v3201_v11 = vsel %vm1318_vm2, %v7681_v42, 0 }
 0x69a   : > { %5516 = vmatmul.mubr.msk.bf16.gmra.mxu1 %vm1318_vm2, %v1752_v8 }
 0x6c1   : > { %v5469_v14 = vpop.f32.mrf.mxu0 }
 0x6c3   : > { %v2180_v15 = vpop.f32.mrf.mxu0 }
 0x6c5   : > { %v5470_v19 = vpop.f32.mrf.mxu0 }
 0x6c6   : > { %v2244_v46 = vpack.c.bf16 %v5470_v19, %v5469_v14 }
 0x6c7   : > { %v2183_v39 = vpop.f32.mrf.mxu0 }
 0x6c8   : > { %v2243_v10 = vpack.c.bf16 %v2183_v39, %v2180_v15 }
 0x6ca   : > { %5485 = vmatprep.mubr.msk.bf16.mxu0 %vm1318_vm2, %v2243_v10 }
 0x6cb   : > { %5486 = vmatmul.mubr.msk.bf16.vlgmr.msra.gmra.mxu0 %vm1318_vm2, %v2244_v46 }
 0x6cc   : > { %5520 = vmatpush3.bf16.xpose.msra.mxu0 %v2583_v16 }
 0x6cd   : > { %5772 = vmatprep.subr.msk.bf16.mxu0 %vm1318_vm2, %v2534_v12 }
 0x6d4   : > { %5522 = vmatpush3.bf16.xpose.msra.mxu0 %v2580_v62 }
 0x6d5   : > { %5773 = vmatprep.subr.msk.bf16.mxu0 %vm1318_vm2, %v7651_v27  ;;  %v2510_v27 = vpop.permute.xlu0 %2509 }
 0x6d9   : > { %v2514_v4 = vpop.permute.xlu0 %2513 }
 0x6dc   : > { %5524 = vmatpush3.bf16.xpose.msra.mxu0 %v2577_v49 }
 0x6dd   : > { %5774 = vmatprep.subr.msk.bf16.mxu0 %vm1318_vm2, %v7655_v20  ;;  %v2518_v44 = vpop.permute.xlu0 %2517 }
 0x6e1   : > { %v3169_v63 = vpop.permute.xlu0 %3168 }
 0x6e4   : > { %5526 = vmatpush3.bf16.xpose.msra.mxu0 %v2574_v56 }
 0x6e5   : > { %5775 = vmatprep.subr.msk.bf16.mxu0 %vm1318_vm2, %v2528_v36  ;;  %v3165_v13 = vpop.permute.xlu0 %3164 }
 0x6e6   : > { %v3210_v6 = vsel %vm1318_vm2, %v3165_v13, 0 }
 0x6ec   : > { %5528 = vmatpush3.bf16.xpose.msra.mxu0 %v2571_v60 }
 0x6ed   : > { %5776 = vmatprep.subr.msk.bf16.mxu0 %vm1318_vm2, %v7659_v51 }
 0x6f4   : > { %5530 = vmatpush3.bf16.xpose.msra.mxu0 %v2568_v54  ;;  %v5473_v32 = vpop.f32.mrf.mxu0 }
 0x6f5   : > { %5777 = vmatprep.subr.msk.bf16.mxu0 %vm1318_vm2, %v2524_v18 }
 0x6f6   : > { %v2196_v20 = vpop.f32.mrf.mxu0 }
 0x6f8   : > { %v5474_v5 = vpop.f32.mrf.mxu0 }
 0x6f9   : > { %v2246_v37 = vpack.c.bf16 %v5474_v5, %v5473_v32  ;;  %v7825_v5 = vld [vmem:[%s9205_s4] sm:$0xff] }
 0x6fa   : > { %v2199_v55 = vpop.f32.mrf.mxu0 }
 0x6fb   : > { %v2245_v41 = vpack.c.bf16 %v2199_v55, %v2196_v20 }
 0x6fc   : > { %5532 = vmatpush3.bf16.xpose.msra.mxu0 %v2565_v2  ;;  %v5477_v45 = vpop.f32.mrf.mxu0 }
 0x6fd   : > { %5778 = vmatprep.subr.msk.bf16.mxu0 %vm1318_vm2, %v7665_v31  ;;  %5489 = vmatprep.mubr.msk.bf16.mxu0 %vm1318_vm2, %v2245_v41  ;;  %v3216_v31 = vsel %vm1318_vm2, %v3169_v63, 0 }
 0x6fe   : > { %v2212_v51 = vpop.f32.mrf.mxu0  ;;  %5490 = vmatmul.mubr.msk.bf16.gmra.mxu0 %vm1318_vm2, %v2246_v37 }
 0x700   : > { %v5478_v50 = vpop.f32.mrf.mxu0 }
 0x701   : > { %v2248_v24 = vpack.c.bf16 %v5478_v50, %v5477_v45  ;;  %v7833_v45 = vld [vmem:[%s9205_s4 + $0x8] sm:$0xff] }
 0x702   : > { %v2215_v52 = vpop.f32.mrf.mxu0 }
 0x703   : > { %v2247_v38 = vpack.c.bf16 %v2215_v52, %v2212_v51  ;;  %v7842_v52 = vld [vmem:[%s9205_s4 + $0x18] sm:$0xff] }
 0x704   : > { %5534 = vmatpush3.bf16.xpose.msra.mxu0 %v2562_v28  ;;  %v5481_v25 = vpop.f32.mrf.mxu0 }
 0x705   : > { %5779 = vmatprep.subr.msk.bf16.mxu0 %vm1318_vm2, %v3169_v63  ;;  %5493 = vmatprep.mubr.msk.bf16.mxu0 %vm1318_vm2, %v2247_v38  ;;  %v7851_v38 = vld [vmem:[%s9205_s4 + $0x30] sm:$0xff] }
 0x706   : > { %v2228_v33 = vpop.f32.mrf.mxu0  ;;  %5494 = vmatmul.mubr.msk.bf16.gmra.mxu0 %vm1318_vm2, %v2248_v24 }
 0x708   : > { %v5482_v30 = vpop.f32.mrf.mxu0 }
 0x709   : > { %v2250_v7 = vpack.c.bf16 %v5482_v30, %v5481_v25 }
 0x70a   : > { %v2231_v9 = vpop.f32.mrf.mxu0 }
 0x70b   : > { %v2249_v1 = vpack.c.bf16 %v2231_v9, %v2228_v33  ;;  %v7860_v9 = vld [vmem:[%s9205_s4 + $0x38] sm:$0xff] }
 0x70d   : > { %5497 = vmatprep.mubr.msk.bf16.mxu0 %vm1318_vm2, %v2249_v1 }
 0x70e   : > { %5498 = vmatmul.mubr.msk.bf16.gmra.mxu0 %vm1318_vm2, %v2250_v7 }
 0x70f   : > { %5535 = vmatprep.mubr.msk.bf16.mxu0 %vm1318_vm2, %v2506_v40 }
 0x716   : > { %5536 = vmatmul.mubr.msk.bf16.vlgmr.msra.gmra.mxu0 %vm1318_vm2, %v7669_v35  ;;  %v3161_v35 = vpop.permute.xlu0 %3160 }
 0x717   : > { %5602 = vmatpush3.bf16.xpose.msra.mxu0 %v3216_v31  ;;  %5539 = vmatprep.mubr.msk.bf16.mxu0 %vm1318_vm2, %v2510_v27  ;;  %v7816_v27 = vld [vmem:[%s9205_s4 + $0x10] sm:$0xff] }
 0x718   : > { %5780 = vmatprep.subr.msk.bf16.mxu0 %vm1318_vm2, %v7677_v3  ;;  %v3207_v3 = vsel %vm1318_vm2, %v7679_v47, 0 }
 0x71a   : > { %v3157_v26 = vpop.permute.xlu0 %3156 }
 0x71e   : > { %5540 = vmatmul.mubr.msk.bf16.gmra.mxu0 %vm1318_vm2, %v7671_v0  ;;  %v3139_v0 = vpop.permute.xlu0 %3138 }
 0x71f   : > { %5604 = vmatpush3.bf16.xpose.msra.mxu0 %v3213_v58  ;;  %5543 = vmatprep.mubr.msk.bf16.mxu0 %vm1318_vm2, %v2514_v4 }
 0x720   : > { %5781 = vmatprep.subr.msk.bf16.mxu0 %vm1318_vm2, %v3165_v13  ;;  %v7869_v13 = vld [vmem:[%s9205_s4 + $0x20] sm:$0xff] }
 0x722   : > { %v3143_v8 = vpop.permute.xlu0 %3142 }
 0x726   : > { %5544 = vmatmul.mubr.msk.bf16.gmra.mxu0 %vm1318_vm2, %v7673_v29  ;;  %v3204_v29 = vsel %vm1318_vm2, %v3161_v35, 0 }
 0x727   : > { %5606 = vmatpush3.bf16.xpose.msra.mxu0 %v3210_v6  ;;  %5547 = vmatprep.mubr.msk.bf16.mxu0 %vm1318_vm2, %v2518_v44 }
 0x728   : > { %5782 = vmatprep.subr.msk.bf16.mxu0 %vm1318_vm2, %v7679_v47  ;;  %v3195_v47 = vsel %vm1318_vm2, %v7683_v21, 0 }
 0x72e   : > { %5548 = vmatmul.mubr.msk.bf16.gmra.mxu0 %vm1318_vm2, %v7675_v59  ;;  %v3198_v59 = vsel %vm1318_vm2, %v3157_v26, 0 }
 0x72f   : > { %5608 = vmatpush3.bf16.xpose.msra.mxu0 %v3207_v3  ;;  %5617 = vmatprep.mubr.msk.bf16.mxu0 %vm1318_vm2, %v3139_v0 }
 0x730   : > { %5783 = vmatprep.subr.msk.bf16.mxu0 %vm1318_vm2, %v3161_v35 }
 0x737   : > { %5610 = vmatpush3.bf16.xpose.msra.mxu0 %v3204_v29  ;;  %v7887_v29 = vld [vmem:[%s9205_s4 + $0x50] sm:$0xff] }
 0x738   : > { %5784 = vmatprep.subr.msk.bf16.mxu0 %vm1318_vm2, %v7681_v42  ;;  %v3147_v42 = vpop.permute.xlu0 %3146 }
 0x73c   : > { %v3151_v14 = vpop.permute.xlu0 %3150 }
 0x73f   : > { %5612 = vmatpush3.bf16.xpose.msra.mxu0 %v3201_v11 }
 0x740   : > { %5785 = vmatprep.subr.msk.bf16.mxu0 %vm1318_vm2, %v3157_v26  ;;  %v7878_v26 = vld [vmem:[%s9205_s4 + $0x28] sm:$0xff] }
 0x747   : > { %5614 = vmatpush3.bf16.xpose.msra.mxu0 %v3198_v59 }
 0x748   : > { %5786 = vmatprep.subr.msk.bf16.mxu0 %vm1318_vm2, %v7683_v21 }
 0x74f   : > { %5616 = vmatpush3.bf16.xpose.msra.mxu0 %v3195_v47 }
 0x756   : > { %5618 = vmatmul.mubr.msk.bf16.vlgmr.msra.gmra.mxu0 %vm1318_vm2, %v7685_v48 }
 0x757   : > { %5621 = vmatprep.mubr.msk.bf16.mxu0 %vm1318_vm2, %v3143_v8 }
 0x75e   : > { %5622 = vmatmul.mubr.msk.bf16.gmra.mxu0 %vm1318_vm2, %v7687_v34 }
 0x75f   : > { %5625 = vmatprep.mubr.msk.bf16.mxu0 %vm1318_vm2, %v3147_v42  ;;  %v7896_v42 = vld [vmem:[%s9205_s4 + $0x58] sm:$0xff] }
 0x766   : > { %5626 = vmatmul.mubr.msk.bf16.gmra.mxu0 %vm1318_vm2, %v7689_v57 }
 0x767   : > { %5629 = vmatprep.mubr.msk.bf16.mxu0 %vm1318_vm2, %v3151_v14 }
 0x76e   : > { %5630 = vmatmul.mubr.msk.bf16.gmra.mxu0 %vm1318_vm2, %v7691_v61 }
 0x78b   : > { %v7781_v21 = vpop.f32.mrf.mxu0 }
 0x78d   : > { %v7783_v48 = vpop.f32.mrf.mxu0 }
 0x78f   : > { %v7785_v15 = vpop.f32.mrf.mxu0 }
 0x791   : > { %v7787_v19 = vpop.f32.mrf.mxu0 }
 0x7be   : > { %v7789_v34 = vpop.f32.mrf.mxu0 }
 0x7c0   : > { %v7791_v39 = vpop.f32.mrf.mxu0 }
 0x7c2   : > { %v7793_v10 = vpop.f32.mrf.mxu0 }
 0x7c4   : > { %v7795_v57 = vpop.f32.mrf.mxu0 }
 0x7c6   : > { %v7797_v46 = vpop.f32.mrf.mxu0 }
 0x7c8   : > { %v7799_v16 = vpop.f32.mrf.mxu0 }
 0x7ca   : > { %v7801_v61 = vpop.f32.mrf.mxu0 }
 0x7cb   : > { %9207 = vst [vmem:[#allocation13_spill] sm:$0xff] %v7801_v61 }
 0x7cc   : > { %v7803_v12 = vpop.f32.mrf.mxu0 }
 0x7cd   : > { %9208 = vst [vmem:[#allocation17_spill] sm:$0xff] %v7803_v12 }
 0x7ce   : > { %v7805_v62 = vpop.f32.mrf.mxu0 }
 0x7cf   : > { %9209 = vst [vmem:[#allocation18_spill] sm:$0xff] %v7805_v62 }
 0x7d0   : > { %v7807_v49 = vpop.f32.mrf.mxu0 }
 0x7d1   : > { %9210 = vst [vmem:[#allocation19_spill] sm:$0xff] %v7807_v49 }
 0x7d2   : > { %v7809_v36 = vpop.f32.mrf.mxu0 }
 0x7d3   : > { %9211 = vst [vmem:[#allocation20_spill] sm:$0xff] %v7809_v36 }
 0x7d4   : > { %v7811_v56 = vpop.f32.mrf.mxu0 }
 0x7d5   : > { %9212 = vst [vmem:[#allocation21_spill] sm:$0xff] %v7811_v56 }
 0x7d6   : > { %v5537_v18 = vpop.f32.mrf.mxu0 }
 0x7d7   : > { %v2684_v60 = vmul.f32 0.25, %v5537_v18 }
 0x7d8   : > { %v2619_v40 = vpop.f32.mrf.mxu0 }
 0x7d9   : > { %v7819_v54 = vadd.f32 %v7816_v27, %v2684_v60  ;;  %v2682_v32 = vmul.f32 0.25, %v2619_v40  ;;  %v7905_v40 = vld [vmem:[%s9205_s4 + $0x40] sm:$0xff] }
 0x7da   : > { %v5538_v20 = vpop.f32.mrf.mxu0 }
 0x7db   : > { %2718 = vmax.xlane.f32.xlu0 %v7819_v54  ;;  %v7828_v55 = vadd.f32 %v7825_v5, %v2682_v32  ;;  %v2685_v2 = vmul.f32 0.25, %v5538_v20 }
 0x7dc   : > { %v2622_v4 = vpop.f32.mrf.mxu0 }
 0x7dd   : > { %v2683_v41 = vmul.f32 0.25, %v2622_v4  ;;  %v7845_v28 = vadd.f32 %v7842_v52, %v2685_v2  ;;  %v7914_v2 = vld [vmem:[%s9205_s4 + $0x48] sm:$0xff] }
 0x7de   : > { %v5541_v37 = vpop.f32.mrf.mxu0 }
 0x7df   : > { %v7836_v44 = vadd.f32 %v7833_v45, %v2683_v41  ;;  %v2688_v51 = vmul.f32 0.25, %v5541_v37  ;;  %2714 = vmax.xlane.f32.xlu0 %v7828_v55  ;;  %v7923_v37 = vld [vmem:[%s9205_s4 + $0x70] sm:$0xff] }
 0x7e0   : > { %v2635_v50 = vpop.f32.mrf.mxu0 }
 0x7e1   : > { %2716 = vmax.xlane.f32.xlu1 %v7836_v44  ;;  %v7854_v24 = vadd.f32 %v7851_v38, %v2688_v51  ;;  %v2686_v25 = vmul.f32 0.25, %v2635_v50 }
 0x7e2   : > { %v5542_v63 = vpop.f32.mrf.mxu0 }
 0x7e3   : > { %v2689_v33 = vmul.f32 0.25, %v5542_v63  ;;  %2720 = vmax.xlane.f32.xlu0 %v7845_v28  ;;  %v7872_v58 = vadd.f32 %v7869_v13, %v2686_v25  ;;  %v7933_v63 = vld [vmem:[%s9205_s4 + $0x60] sm:$0xff] }
 0x7e4   : > { %v2638_v30 = vpop.f32.mrf.mxu0 }
 0x7e5   : > { %v7863_v1 = vadd.f32 %v7860_v9, %v2689_v33  ;;  %v2687_v7 = vmul.f32 0.25, %v2638_v30  ;;  %2726 = vmax.xlane.f32.xlu1 %v7854_v24  ;;  %v9213_v33 = vld [vmem:[#allocation14_spill] sm:$0xff] }
 0x7e6   : > { %v5545_v31 = vpop.f32.mrf.mxu0 }
 0x7e7   : > { %v2692_v35 = vmul.f32 0.25, %v5545_v31  ;;  %2728 = vmax.xlane.f32.xlu0 %v7863_v1  ;;  %v7881_v0 = vadd.f32 %v7878_v26, %v2687_v7 }
 0x7e8   : > { %v2651_v6 = vpop.f32.mrf.mxu0 }
 0x7e9   : > { %2722 = vmax.xlane.f32.xlu1 %v7872_v58  ;;  %v7890_v11 = vadd.f32 %v7887_v29, %v2692_v35  ;;  %v2690_v59 = vmul.f32 0.25, %v2651_v6  ;;  %v7952_v35 = vld [vmem:[%s9205_s4 + $0x78] sm:$0xff] }
 0x7ea   : > { %v5546_v3 = vpop.f32.mrf.mxu0 }
 0x7eb   : > { %v2693_v47 = vmul.f32 0.25, %v5546_v3  ;;  %2724 = vmax.xlane.f32.xlu0 %v7881_v0  ;;  %v7908_v32 = vadd.f32 %v7905_v40, %v2690_v59  ;;  %v7961_v59 = vld [vmem:[%s9205_s4 + $0x68] sm:$0xff] }
 0x7ec   : > { %v2654_v8 = vpop.f32.mrf.mxu0 }
 0x7ed   : > { %v7899_v14 = vadd.f32 %v7896_v42, %v2693_v47  ;;  %v2691_v18 = vmul.f32 0.25, %v2654_v8  ;;  %2734 = vmax.xlane.f32.xlu1 %v7890_v11  ;;  %v9214_v8 = vld [vmem:[#allocation15_spill] sm:$0xff] }
 0x7ee   : > { %v5549_v60 = vpop.f32.mrf.mxu0 }
 0x7ef   : > { %v2696_v20 = vmul.f32 0.25, %v5549_v60  ;;  %2736 = vmax.xlane.f32.xlu0 %v7899_v14  ;;  %v7917_v41 = vadd.f32 %v7914_v2, %v2691_v18 }
 0x7f0   : > { %v2667_v4 = vpop.f32.mrf.mxu0 }
 0x7f1   : > { %2730 = vmax.xlane.f32.xlu1 %v7908_v32  ;;  %v7926_v51 = vadd.f32 %v7923_v37, %v2696_v20  ;;  %v2694_v50 = vmul.f32 0.25, %v2667_v4 }
 0x7f2   : > { %v5550_v30 = vpop.f32.mrf.mxu0 }
 0x7f3   : > { %2732 = vmax.xlane.f32.xlu0 %v7917_v41  ;;  %v7936_v25 = vadd.f32 %v7933_v63, %v2694_v50  ;;  %v2697_v7 = vmul.f32 0.25, %v5550_v30 }
 0x7f4   : > { %v2670_v31 = vpop.f32.mrf.mxu0 }
 0x7f5   : > { %2742 = vmax.xlane.f32.xlu1 %v7926_v51  ;;  %v7955_v6 = vadd.f32 %v7952_v35, %v2697_v7  ;;  %v2695_v3 = vmul.f32 0.25, %v2670_v31 }
 0x7f7   : > { %v7964_v47 = vadd.f32 %v7961_v59, %v2695_v3 }
 0x7f9   : > { %2738 = vmax.xlane.f32.xlu1 %v7936_v25 }
 0x809   : > { %2876 = vrot.lane.b32.xlu0 %v7092_v43, %s6424_s25 }
 0x80a   : > { %2878 = vrot.lane.b32.xlu1 %v9213_v33, %s6424_s25 }
 0x80d   : > { %2872 = vrot.lane.b32.xlu0 %v7111_v17, %s6424_s25 }
 0x80e   : > { %2874 = vrot.lane.b32.xlu1 %v7101_v23, %s6424_s25 }
 0x812   : > { %2868 = vrot.lane.b32.xlu1 %v7131_v53, %s6424_s25 }
 0x82c   : > { %2744 = vmax.xlane.f32.xlu0 %v7955_v6 }
 0x830   : > { %2740 = vmax.xlane.f32.xlu0 %v7964_v47 }
 0x846   : > { %2870 = vrot.lane.b32.xlu0 %v9214_v8, %s6424_s25 }
 0x864   : > { %v2719_v18 = vpop.xlane.xlu0 %2718 }
 0x865   : > { %v2748_v60 = vsub.f32 %v7819_v54, %v2719_v18 }
 0x867   : > { %v2766_v20 = vmul.f32 1.442695, %v2748_v60 }
 0x868   : > { %v2715_v4 = vpop.xlane.xlu0 %2714 }
 0x869   : > { %6034 = vpow2.f32 %v2766_v20  ;;  %v2746_v50 = vsub.f32 %v7828_v55, %v2715_v4 }
 0x86a   : > { %v2717_v30 = vpop.xlane.xlu1 %2716 }
 0x86b   : > { %v2762_v7 = vmul.f32 1.442695, %v2746_v50  ;;  %v2747_v3 = vsub.f32 %v7836_v44, %v2717_v30 }
 0x86c   : > { %v2721_v31 = vpop.xlane.xlu0 %2720 }
 0x86d   : > { %6036 = vpow2.f32 %v2762_v7  ;;  %v2749_v56 = vsub.f32 %v7845_v28, %v2721_v31  ;;  %v2764_v61 = vmul.f32 1.442695, %v2747_v3 }
 0x86e   : > { %v2727_v36 = vpop.xlane.xlu1 %2726 }
 0x86f   : > { %v2768_v49 = vmul.f32 1.442695, %v2749_v56  ;;  %v2752_v62 = vsub.f32 %v7854_v24, %v2727_v36 }
 0x870   : > { %v2729_v12 = vpop.xlane.xlu0 %2728 }
 0x871   : > { %6038 = vpow2.f32 %v2768_v49  ;;  %v2774_v54 = vmul.f32 1.442695, %v2752_v62  ;;  %v2753_v55 = vsub.f32 %v7863_v1, %v2729_v12 }
 0x872   : > { %v2723_v18 = vpop.xlane.xlu1 %2722 }
 0x873   : > { %6040 = vpow2.f32 %v2774_v54  ;;  %v2750_v60 = vsub.f32 %v7872_v58, %v2723_v18  ;;  %v2776_v50 = vmul.f32 1.442695, %v2753_v55 }
 0x874   : > { %v2725_v20 = vpop.xlane.xlu0 %2724  ;;  %6042 = vpow2.f32 %v2764_v61 }
 0x875   : > { %v2770_v4 = vmul.f32 1.442695, %v2750_v60  ;;  %v2751_v44 = vsub.f32 %v7881_v0, %v2725_v20 }
 0x876   : > { %v7977_v28 = vpop.eup %6034  ;;  %v2735_v56 = vpop.xlane.xlu1 %2734 }
 0x877   : > { %6044 = vpow2.f32 %v2770_v4  ;;  %v2772_v36 = vmul.f32 1.442695, %v2751_v44  ;;  %v2756_v49 = vsub.f32 %v7890_v11, %v2735_v56  ;;  %2798 = vadd.xlane.f32.xlu0 %v7977_v28 }
 0x878   : > { %v2737_v62 = vpop.xlane.xlu0 %2736 }
 0x879   : > { %6046 = vpow2.f32 %v2772_v36  ;;  %v2782_v61 = vmul.f32 1.442695, %v2756_v49  ;;  %v2757_v11 = vsub.f32 %v7899_v14, %v2737_v62 }
 0x87a   : > { %v7981_v12 = vpop.eup %6036  ;;  %v2731_v24 = vpop.xlane.xlu1 %2730  ;;  %6048 = vpow2.f32 %v2776_v50 }
 0x87b   : > { %v2754_v1 = vsub.f32 %v7908_v32, %v2731_v24  ;;  %2794 = vadd.xlane.f32.xlu0 %v7981_v12  ;;  %6050 = vpow2.f32 %v2782_v61  ;;  %v2784_v60 = vmul.f32 1.442695, %v2757_v11 }
 0x87c   : > { %v2733_v58 = vpop.xlane.xlu0 %2732 }
 0x87d   : > { %v2755_v0 = vsub.f32 %v7917_v41, %v2733_v58  ;;  %v2778_v31 = vmul.f32 1.442695, %v2754_v1 }
 0x87e   : > { %v7986_v30 = vpop.eup %6038  ;;  %v2743_v7 = vpop.xlane.xlu1 %2742 }
 0x87f   : > { %v2780_v3 = vmul.f32 1.442695, %v2755_v0  ;;  %v2760_v54 = vsub.f32 %v7926_v51, %v2743_v7  ;;  %2800 = vadd.xlane.f32.xlu0 %v7986_v30  ;;  %v5619_v7 = vpop.f32.mrf.mxu0 }
 0x880   : > { %v7991_v18 = vpop.eup %6040  ;;  %v2877_v50 = vpop.permute.xlu0 %2876 }
 0x881   : > { %6052 = vpow2.f32 %v2780_v3  ;;  %v2790_v32 = vmul.f32 1.442695, %v2760_v54  ;;  %2806 = vadd.xlane.f32.xlu1 %v7991_v18  ;;  %v7994_v55 = vpop.eup %6042 }
 0x882   : > { %v2739_v41 = vpop.xlane.xlu1 %2738  ;;  %6054 = vpow2.f32 %v2778_v31 }
 0x883   : > { %v2758_v14 = vsub.f32 %v7936_v25, %v2739_v41  ;;  %2796 = vadd.xlane.f32.xlu0 %v7994_v55  ;;  %6056 = vpow2.f32 %v2790_v32  ;;  %v3252_v32 = vpop.f32.mrf.mxu0 }
 0x884   : > { %v7998_v20 = vpop.eup %6044  ;;  %6058 = vpow2.f32 %v2784_v60  ;;  %v2873_v24 = vpop.permute.xlu0 %2872 }
 0x885   : > { %2802 = vadd.xlane.f32.xlu1 %v7998_v20  ;;  %v2786_v44 = vmul.f32 1.442695, %v2758_v14  ;;  %v5620_v14 = vpop.f32.mrf.mxu0 }
 0x886   : > { %v8001_v51 = vpop.eup %6046  ;;  %v2879_v4 = vpop.permute.xlu1 %2878 }
 0x887   : > { %5553 = vmatprep.subr.bf16.mxu1 %v2879_v4  ;;  %2804 = vadd.xlane.f32.xlu0 %v8001_v51  ;;  %v8004_v56 = vpop.eup %6048  ;;  %6060 = vpow2.f32 %v2786_v44  ;;  %v3255_v44 = vpop.f32.mrf.mxu0 }
 0x888   : > { %5554 = vmatpush3.bf16.msra.mxu1 %v2879_v4  ;;  %v8007_v25 = vpop.eup %6050 }
 0x889   : > { %2808 = vadd.xlane.f32.xlu1 %v8004_v56  ;;  %5555 = vmatprep.subr.bf16.mxu1 %v2877_v50 }
 0x88a   : > { %v2875_v36 = vpop.permute.xlu1 %2874 }
 0x88c   : > { %5556 = vmatpush3.bf16.msra.mxu1 %v2877_v50  ;;  %v3315_v50 = vmul.f32 0.25, %v3252_v32 }
 0x88d   : > { %2814 = vadd.xlane.f32.xlu1 %v8007_v25  ;;  %5557 = vmatprep.subr.bf16.mxu1 %v2875_v36 }
 0x88e   : > { %v8010_v49 = vpop.eup %6052  ;;  %v2869_v4 = vpop.permute.xlu1 %2868 }
 0x88f   : > { %2812 = vadd.xlane.f32.xlu0 %v8010_v49  ;;  %v8013_v62 = vpop.eup %6054 }
 0x890   : > { %5558 = vmatpush3.bf16.msra.mxu1 %v2875_v36  ;;  %v8016_v61 = vpop.eup %6056 }
 0x891   : > { %2810 = vadd.xlane.f32.xlu1 %v8013_v62  ;;  %5559 = vmatprep.subr.bf16.mxu1 %v2873_v24  ;;  %v8019_v1 = vpop.eup %6058 }
 0x893   : > { %2822 = vadd.xlane.f32.xlu0 %v8016_v61 }
 0x894   : > { %5560 = vmatpush3.bf16.msra.mxu1 %v2873_v24  ;;  %v8022_v58 = vpop.eup %6060  ;;  %v8031_v24 = vadd.f32 %v7825_v5, %v3315_v50  ;;  %v3318_v5 = vmul.f32 0.25, %v5620_v14 }
 0x895   : > { %2816 = vadd.xlane.f32.xlu1 %v8019_v1 }
 0x899   : > { %2818 = vadd.xlane.f32.xlu1 %v8022_v58 }
 0x8b5   : > { %v2745_v0 = vpop.xlane.xlu0 %2744 }
 0x8b6   : > { %v2761_v11 = vsub.f32 %v7955_v6, %v2745_v0  ;;  %v5623_v6 = vpop.f32.mrf.mxu0 }
 0x8b8   : > { %v2792_v31 = vmul.f32 1.442695, %v2761_v11  ;;  %v3268_v11 = vpop.f32.mrf.mxu0 }
 0x8b9   : > { %v2741_v3 = vpop.xlane.xlu0 %2740 }
 0x8ba   : > { %6062 = vpow2.f32 %v2792_v31  ;;  %v2759_v54 = vsub.f32 %v7964_v47, %v2741_v3  ;;  %v3316_v47 = vmul.f32 0.25, %v3255_v44  ;;  %v3317_v31 = vmul.f32 0.25, %v5619_v7 }
 0x8bc   : > { %v2788_v41 = vmul.f32 1.442695, %v2759_v54  ;;  %v8038_v3 = vadd.f32 %v7833_v45, %v3316_v47  ;;  %v5624_v54 = vpop.f32.mrf.mxu0  ;;  %v8042_v32 = vadd.f32 %v7816_v27, %v3317_v31  ;;  %v9215_v31 = vld [vmem:[#allocation16_spill] sm:$0xff] }
 0x8bd   : > { %v2871_v60 = vpop.permute.xlu0 %2870  ;;  %v3322_v27 = vmul.f32 0.25, %v5624_v54 }
 0x8be   : > { %6064 = vpow2.f32 %v2788_v41  ;;  %5561 = vmatprep.subr.bf16.mxu1 %v2871_v60  ;;  %v3271_v41 = vpop.f32.mrf.mxu0 }
 0x8bf   : > { %5562 = vmatpush3.bf16.msra.mxu1 %v2871_v60  ;;  %v8046_v60 = vadd.f32 %v7842_v52, %v3318_v5  ;;  %v3320_v7 = vmul.f32 0.25, %v3271_v41  ;;  %v8058_v52 = vadd.f32 %v7860_v9, %v3322_v27 }
 0x8c0   : > { %5563 = vmatprep.subr.bf16.mxu1 %v2869_v4  ;;  %v5627_v44 = vpop.f32.mrf.mxu0 }
 0x8c1   : > { %v8054_v14 = vadd.f32 %v7878_v26, %v3320_v7  ;;  %v3325_v26 = vmul.f32 0.25, %v5627_v44 }
 0x8c2   : > { %v3284_v50 = vpop.f32.mrf.mxu0 }
 0x8c3   : > { %5564 = vmatpush3.bf16.msra.mxu1 %v2869_v4  ;;  %v3319_v4 = vmul.f32 0.25, %v3268_v11  ;;  %v3323_v11 = vmul.f32 0.25, %v3284_v50  ;;  %v8072_v7 = vadd.f32 %v7887_v29, %v3325_v26 }
 0x8c4   : > { %v5628_v47 = vpop.f32.mrf.mxu0 }
 0x8c5   : > { %v8050_v45 = vadd.f32 %v7869_v13, %v3319_v4  ;;  %v8064_v5 = vadd.f32 %v7905_v40, %v3323_v11  ;;  %v3326_v50 = vmul.f32 0.25, %v5628_v47  ;;  %v3321_v47 = vmul.f32 0.25, %v5623_v6 }
 0x8c6   : > { %v3287_v13 = vpop.f32.mrf.mxu0 }
 0x8c7   : > { %v8027_v36 = vpop.eup %6062  ;;  %v3324_v54 = vmul.f32 0.25, %v3287_v13  ;;  %v8076_v40 = vadd.f32 %v7896_v42, %v3326_v50  ;;  %v8091_v26 = vadd.f32 %v7851_v38, %v3321_v47 }
 0x8c8   : > { %2824 = vadd.xlane.f32.xlu1 %v8027_v36  ;;  %v5631_v41 = vpop.f32.mrf.mxu0 }
 0x8c9   : > { %v8068_v4 = vadd.f32 %v7914_v2, %v3324_v54 }
 0x8ca   : > { %v3300_v9 = vpop.f32.mrf.mxu0 }
 0x8cb   : > { %v8033_v0 = vpop.eup %6064  ;;  %v3327_v11 = vmul.f32 0.25, %v3300_v9  ;;  %v3329_v9 = vmul.f32 0.25, %v5631_v41 }
 0x8cc   : > { %3347 = vmax.xlane.f32.xlu1 %v8031_v24  ;;  %2820 = vadd.xlane.f32.xlu0 %v8033_v0  ;;  %v5632_v27 = vpop.f32.mrf.mxu0 }
 0x8cd   : > { %v8080_v2 = vadd.f32 %v7933_v63, %v3327_v11  ;;  %v3330_v54 = vmul.f32 0.25, %v5632_v27  ;;  %v8096_v50 = vadd.f32 %v7923_v37, %v3329_v9 }
 0x8ce   : > { %v3303_v13 = vpop.f32.mrf.mxu0 }
 0x8cf   : > { %v3328_v44 = vmul.f32 0.25, %v3303_v13  ;;  %v8088_v42 = vadd.f32 %v7952_v35, %v3330_v54 }
 0x8d0   : > { %3349 = vmax.xlane.f32.xlu1 %v8038_v3 }
 0x8d1   : > { %v8084_v29 = vadd.f32 %v7961_v59, %v3328_v44 }
 0x8d4   : > { %3351 = vmax.xlane.f32.xlu1 %v8042_v32 }
 0x8d8   : > { %3353 = vmax.xlane.f32.xlu1 %v8046_v60 }
 0x8dc   : > { %3355 = vmax.xlane.f32.xlu1 %v8050_v45 }
 0x8e0   : > { %3357 = vmax.xlane.f32.xlu1 %v8054_v14 }
 0x8e2   : > { %2866 = vrot.lane.b32.xlu0 %v9215_v31, %s6424_s25 }
 0x8e4   : > { %3361 = vmax.xlane.f32.xlu1 %v8058_v52 }
 0x8e8   : > { %3363 = vmax.xlane.f32.xlu1 %v8064_v5 }
 0x8ec   : > { %3365 = vmax.xlane.f32.xlu1 %v8068_v4 }
 0x8f0   : > { %3367 = vmax.xlane.f32.xlu1 %v8072_v7 }
 0x8f4   : > { %3369 = vmax.xlane.f32.xlu1 %v8076_v40 }
 0x8f8   : > { %3371 = vmax.xlane.f32.xlu1 %v8080_v2 }
 0x8fc   : > { %3373 = vmax.xlane.f32.xlu1 %v8084_v29 }
 0x900   : > { %3377 = vmax.xlane.f32.xlu1 %v8088_v42  ;;  %v2799_v63 = vpop.xlane.xlu0 %2798 }
 0x901   : > { %3359 = vmax.xlane.f32.xlu0 %v8091_v26 }
 0x904   : > { %v2795_v59 = vpop.xlane.xlu0 %2794 }
 0x905   : > { %3375 = vmax.xlane.f32.xlu0 %v8096_v50  ;;  %6066 = vrcp.f32 %v2795_v59 }
 0x908   : > { %v2801_v6 = vpop.xlane.xlu0 %2800 }
 0x90c   : > { %v2797_v27 = vpop.xlane.xlu0 %2796 }
 0x90d   : > { %6068 = vrcp.f32 %v2797_v27 }
 0x90e   : > { %6070 = vrcp.f32 %v2801_v6 }
 0x910   : > { %v2805_v54 = vpop.xlane.xlu0 %2804 }
 0x911   : > { %3511 = vrot.lane.b32.xlu1 %v9213_v33, %s6426_s29  ;;  %6072 = vrcp.f32 %v2805_v54 }
 0x912   : > { %v6067_v38 = vpop.eup %6066  ;;  %6074 = vrcp.f32 %v2799_v63  ;;  %v5892_v63 = vld [vmem:[%s6682_s16 + $0x10] sm:$0xff]  }
 0x913   : > { %v2827_v37 = vmul.f32 %v6067_v38, %v7981_v12 }
 0x915   : > { %3505 = vrot.lane.b32.xlu1 %v7111_v17, %s6426_s29  ;;  %v2807_v17 = vpop.xlane.xlu1 %2806 }
 0x919   : > { %3503 = vrot.lane.b32.xlu1 %v9214_v8, %s6426_s29  ;;  %v2803_v33 = vpop.xlane.xlu1 %2802 }
 0x91a   : > { %v6069_v35 = vpop.eup %6068  ;;  %6076 = vrcp.f32 %v2803_v33 }
 0x91b   : > { %3513 = vrot.lane.b32.xlu0 %v9206_v22, %s6426_s29  ;;  %v2829_v41 = vmul.f32 %v6069_v35, %v7994_v55  ;;  %v2813_v22 = vpop.xlane.xlu0 %2812 }
 0x91d   : > { %v2858_v11 = vpack.c.bf16 %v2829_v41, %v2827_v37  ;;  %v2809_v13 = vpop.xlane.xlu1 %2808 }
 0x91e   : > { %6078 = vrcp.f32 %v2809_v13 }
 0x91f   : > { %3509 = vrot.lane.b32.xlu0 %v7092_v43, %s6426_s29  ;;  %5567 = vmatprep.mubr.bf16.mxu1 %v2858_v11  ;;  %v2823_v43 = vpop.xlane.xlu0 %2822 }
 0x921   : > { %v2815_v8 = vpop.xlane.xlu1 %2814 }
 0x923   : > { %3507 = vrot.lane.b32.xlu0 %v7101_v23, %s6426_s29  ;;  %v6071_v23 = vpop.eup %6070 }
 0x924   : > { %v6073_v27 = vpop.eup %6072  ;;  %v2833_v6 = vmul.f32 %v6071_v23, %v7986_v30 }
 0x925   : > { %v2811_v44 = vpop.xlane.xlu1 %2810  ;;  %v6075_v38 = vpop.eup %6074  ;;  %v2837_v11 = vmul.f32 %v6073_v27, %v8001_v51 }
 0x926   : > { %6080 = vrcp.f32 %v2811_v44 }
 0x927   : > { %6082 = vrcp.f32 %v2807_v17  ;;  %v6077_v35 = vpop.eup %6076  ;;  %v2831_v17 = vmul.f32 %v6075_v38, %v7977_v28 }
 0x928   : > { %6084 = vrcp.f32 %v2813_v22  ;;  %v2835_v33 = vmul.f32 %v6077_v35, %v7998_v20 }
 0x929   : > { %v2817_v47 = vpop.xlane.xlu1 %2816  ;;  %v2859_v13 = vpack.c.bf16 %v2833_v6, %v2831_v17 }
 0x92a   : > { %6086 = vrcp.f32 %v2817_v47  ;;  %v2860_v47 = vpack.c.bf16 %v2837_v11, %v2835_v33 }
 0x92b   : > { %v6079_v44 = vpop.eup %6078 }
 0x92d   : > { %v2819_v12 = vpop.xlane.xlu1 %2818 }
 0x933   : > { %v6081_v30 = vpop.eup %6080 }
 0x934   : > { %v6083_v51 = vpop.eup %6082 }
 0x951   : > { %v2825_v55 = vpop.xlane.xlu1 %2824 }
 0x955   : > { %v3348_v9 = vpop.xlane.xlu1 %3347  ;;  %v2821_v59 = vpop.xlane.xlu0 %2820 }
 0x956   : > { %6088 = vrcp.f32 %v2821_v59  ;;  %v3379_v22 = vsub.f32 %v8031_v24, %v3348_v9  ;;  %v2843_v59 = vmul.f32 %v6081_v30, %v8013_v62  ;;  %v2839_v24 = vmul.f32 %v6083_v51, %v7991_v18 }
 0x957   : > { %6090 = vrcp.f32 %v2815_v8  ;;  %v6085_v8 = vpop.eup %6084 }
 0x958   : > { %6092 = vrcp.f32 %v2819_v12  ;;  %v2841_v12 = vmul.f32 %v6079_v44, %v8004_v56  ;;  %v3395_v27 = vmul.f32 1.442695, %v3379_v22  ;;  %v6087_v35 = vpop.eup %6086 }
 0x959   : > { %v3350_v37 = vpop.xlane.xlu1 %3349  ;;  %v2867_v41 = vpop.permute.xlu0 %2866  ;;  %6094 = vrcp.f32 %v2825_v55  ;;  %v2849_v11 = vmul.f32 %v6087_v35, %v8019_v1 }
 0x95a   : > { %5565 = vmatprep.subr.bf16.mxu1 %v2867_v41  ;;  %6096 = vrcp.f32 %v2823_v43  ;;  %v2861_v9 = vpack.c.bf16 %v2841_v12, %v2839_v24  ;;  %v3380_v56 = vsub.f32 %v8038_v3, %v3350_v37 }
 0x95b   : > { %5566 = vmatpush3.bf16.msra.mxu1 %v2867_v41 }
 0x95c   : > { %5583 = vmatprep.subr.bf16.mxu1 %v5892_v63  ;;  %v3397_v17 = vmul.f32 1.442695, %v3380_v56 }
 0x95d   : > { %v3352_v54 = vpop.xlane.xlu1 %3351 }
 0x95e   : > { %v3381_v23 = vsub.f32 %v8042_v32, %v3352_v54  ;;  %5568 = vmatmul.mubr.bf16.vlgmr.msra.gmra.mxu1 %v2859_v13  ;;  %v2845_v32 = vmul.f32 %v6085_v8, %v8010_v49 }
 0x95f   : > { %5571 = vmatprep.mubr.bf16.mxu1 %v2860_v47  ;;  %5584 = vmatpush3.bf16.msra.mxu1 %v5892_v63 }
 0x960   : > { %v3399_v28 = vmul.f32 1.442695, %v3381_v23  ;;  %v2862_v63 = vpack.c.bf16 %v2845_v32, %v2843_v59 }
 0x961   : > { %v3354_v20 = vpop.xlane.xlu1 %3353 }
 0x962   : > { %6098 = vpow2.f32 %v3399_v28  ;;  %v3382_v38 = vsub.f32 %v8046_v60, %v3354_v20 }
 0x963   : > { %v6089_v55 = vpop.eup %6088  ;;  %6100 = vpow2.f32 %v3395_v27 }
 0x964   : > { %v3401_v43 = vmul.f32 1.442695, %v3382_v38  ;;  %v6091_v41 = vpop.eup %6090  ;;  %v2853_v18 = vmul.f32 %v6089_v55, %v8033_v0 }
 0x965   : > { %v3356_v6 = vpop.xlane.xlu1 %3355  ;;  %v6093_v62 = vpop.eup %6092  ;;  %v2847_v33 = vmul.f32 %v6091_v41, %v8007_v25 }
 0x966   : > { %5572 = vmatmul.mubr.bf16.gmra.mxu1 %v2861_v9  ;;  %6102 = vpow2.f32 %v3401_v43  ;;  %v2851_v13 = vmul.f32 %v6093_v62, %v8022_v58  ;;  %v6095_v3 = vpop.eup %6094  ;;  %v3383_v59 = vsub.f32 %v8050_v45, %v3356_v6 }
 0x967   : > { %5575 = vmatprep.mubr.bf16.mxu1 %v2862_v63  ;;  %v2863_v44 = vpack.c.bf16 %v2849_v11, %v2847_v33  ;;  %v6097_v47 = vpop.eup %6096  ;;  %6104 = vpow2.f32 %v3397_v17  ;;  %v2857_v0 = vmul.f32 %v6095_v3, %v8027_v36 }
 0x968   : > { %v2864_v54 = vpack.c.bf16 %v2853_v18, %v2851_v13  ;;  %v2855_v58 = vmul.f32 %v6097_v47, %v8016_v61  ;;  %v3403_v9 = vmul.f32 1.442695, %v3383_v59 }
 0x969   : > { %v3358_v60 = vpop.xlane.xlu1 %3357 }
 0x96a   : > { %v3384_v49 = vsub.f32 %v8054_v14, %v3358_v60  ;;  %v2865_v51 = vpack.c.bf16 %v2857_v0, %v2855_v58 }
 0x96c   : > { %v3405_v30 = vmul.f32 1.442695, %v3384_v49 }
 0x96d   : > { %v3362_v37 = vpop.xlane.xlu1 %3361 }
 0x96e   : > { %5576 = vmatmul.mubr.bf16.gmra.mxu1 %v2863_v44  ;;  %6106 = vpow2.f32 %v3405_v30  ;;  %v3386_v35 = vsub.f32 %v8058_v52, %v3362_v37  ;;  %v8193_v30 = vpop.f32.mrf.mxu1 }
 0x96f   : > { %v8131_v1 = vpop.eup %6098  ;;  %5579 = vmatprep.mubr.bf16.mxu1 %v2864_v54 }
 0x970   : > { %3431 = vadd.xlane.f32.xlu1 %v8131_v1  ;;  %v8137_v22 = vpop.eup %6100  ;;  %v3409_v41 = vmul.f32 1.442695, %v3386_v35  ;;  %v8195_v0 = vpop.f32.mrf.mxu1 }
 0x971   : > { %v3364_v14 = vpop.xlane.xlu1 %3363 }
 0x972   : > { %v3387_v25 = vsub.f32 %v8064_v5, %v3364_v14 }
 0x973   : > { %v8140_v8 = vpop.eup %6102 }
 0x974   : > { %v3411_v23 = vmul.f32 1.442695, %v3387_v25  ;;  %3427 = vadd.xlane.f32.xlu1 %v8137_v22  ;;  %v8143_v36 = vpop.eup %6104 }
 0x975   : > { %v3366_v28 = vpop.xlane.xlu1 %3365 }
 0x976   : > { %6108 = vpow2.f32 %v3411_v23  ;;  %5580 = vmatmul.mubr.bf16.gmra.mxu1 %v2865_v51 }
 0x978   : > { %3433 = vadd.xlane.f32.xlu1 %v8140_v8 }
 0x979   : > { %v3368_v61 = vpop.xlane.xlu1 %3367 }
 0x97a   : > { %v3389_v45 = vsub.f32 %v8072_v7, %v3368_v61 }
 0x97b   : > { %v8146_v5 = vpop.eup %6106 }
 0x97c   : > { %3429 = vadd.xlane.f32.xlu1 %v8143_v36 }
 0x97d   : > { %v3370_v20 = vpop.xlane.xlu1 %3369 }
 0x97e   : > { %v3390_v52 = vsub.f32 %v8076_v40, %v3370_v20 }
 0x980   : > { %3437 = vadd.xlane.f32.xlu1 %v8146_v5 }
 0x981   : > { %v3372_v24 = vpop.xlane.xlu1 %3371 }
 0x982   : > { %v3391_v55 = vsub.f32 %v8080_v2, %v3372_v24  ;;  %v3388_v2 = vsub.f32 %v8068_v4, %v3366_v28 }
 0x983   : > { %v8149_v12 = vpop.eup %6108 }
 0x984   : > { %3443 = vadd.xlane.f32.xlu1 %v8149_v12  ;;  %v3419_v6 = vmul.f32 1.442695, %v3391_v55  ;;  %v3413_v7 = vmul.f32 1.442695, %v3388_v2 }
 0x985   : > { %v3374_v13 = vpop.xlane.xlu1 %3373 }
 0x986   : > { %v3392_v44 = vsub.f32 %v8084_v29, %v3374_v13 }
 0x988   : > { %v3421_v37 = vmul.f32 1.442695, %v3392_v44 }
 0x989   : > { %v3378_v3 = vpop.xlane.xlu1 %3377 }
 0x98a   : > { %v3360_v27 = vpop.xlane.xlu0 %3359  ;;  %v3394_v54 = vsub.f32 %v8088_v42, %v3378_v3 }
 0x98b   : > { %v3385_v38 = vsub.f32 %v8091_v26, %v3360_v27  ;;  %v3415_v26 = vmul.f32 1.442695, %v3389_v45 }
 0x98c   : > { %v3425_v47 = vmul.f32 1.442695, %v3394_v54 }
 0x98d   : > { %v3407_v32 = vmul.f32 1.442695, %v3385_v38  ;;  %v3512_v28 = vpop.permute.xlu1 %3511 }
 0x98e   : > { %v3376_v63 = vpop.xlane.xlu0 %3375 }
 0x98f   : > { %6110 = vpow2.f32 %v3407_v32  ;;  %v3393_v56 = vsub.f32 %v8096_v50, %v3376_v63  ;;  %v3417_v50 = vmul.f32 1.442695, %v3390_v52 }
 0x990   : > { %6112 = vpow2.f32 %v3403_v9 }
 0x991   : > { %v3423_v43 = vmul.f32 1.442695, %v3393_v56  ;;  %v3506_v59 = vpop.permute.xlu1 %3505 }
 0x992   : > { %v8157_v62 = vpop.permute.xlu0 %3513 }
 0x993   : > { %6114 = vpow2.f32 %v3423_v43  ;;  %5633 = vmatprep.subr.bf16.mxu1 %v8157_v62 }
 0x994   : > { %6116 = vpow2.f32 %v3409_v41 }
 0x995   : > { %6118 = vpow2.f32 %v3419_v6  ;;  %v8223_v38 = vpop.permute.xlu1 %3503 }
 0x996   : > { %6120 = vpow2.f32 %v3415_v26  ;;  %v3510_v56 = vpop.permute.xlu0 %3509 }
 0x997   : > { %6122 = vpow2.f32 %v3417_v50 }
 0x998   : > { %6124 = vpow2.f32 %v3413_v7 }
 0x999   : > { %6126 = vpow2.f32 %v3421_v37 }
 0x99a   : > { %6128 = vpow2.f32 %v3425_v47  ;;  %v3508_v6 = vpop.permute.xlu0 %3507 }
 0x99c   : > { %v8163_v11 = vpop.eup %6110 }
 0x99d   : > { %3439 = vadd.xlane.f32.xlu0 %v8163_v11  ;;  %v8166_v60 = vpop.eup %6112 }
 0x9a0   : > { %v8168_v18 = vpop.eup %6114 }
 0x9a1   : > { %3435 = vadd.xlane.f32.xlu0 %v8166_v60  ;;  %3455 = vadd.xlane.f32.xlu1 %v8168_v18  ;;  %v8172_v40 = vpop.eup %6116 }
 0x9a2   : > { %v8174_v4 = vpop.eup %6118 }
 0x9a3   : > { %v8178_v17 = vpop.eup %6120 }
 0x9a4   : > { %v8181_v49 = vpop.eup %6122 }
 0x9a5   : > { %3441 = vadd.xlane.f32.xlu0 %v8172_v40  ;;  %3451 = vadd.xlane.f32.xlu1 %v8174_v4  ;;  %v8184_v33 = vpop.eup %6124 }
 0x9a6   : > { %v8197_v14 = vpop.eup %6126 }
 0x9a9   : > { %3447 = vadd.xlane.f32.xlu0 %v8178_v17 }
 0x9ad   : > { %3449 = vadd.xlane.f32.xlu0 %v8181_v49 }
 0x9b1   : > { %3445 = vadd.xlane.f32.xlu0 %v8184_v33 }
 0x9b6   : > { %3499 = vrot.lane.b32.xlu1 %v9215_v31, %s6426_s29  ;;  %v8200_v31 = vpop.f32.mrf.mxu1 }
 0x9b8   : > { %v8205_v29 = vpop.f32.mrf.mxu1 }
 0x9ba   : > { %v8207_v42 = vpop.f32.mrf.mxu1 }
 0x9bc   : > { %v8209_v25 = vpop.f32.mrf.mxu1 }
 0x9be   : > { %v8211_v58 = vpop.f32.mrf.mxu1 }
 0x9c0   : > { %v8213_v23 = vpop.f32.mrf.mxu1 }
 0x9c2   : > { %v8215_v51 = vpop.f32.mrf.mxu1 }
 0x9c4   : > { %v8217_v61 = vpop.f32.mrf.mxu1 }
 0x9c6   : > { %v8219_v20 = vpop.f32.mrf.mxu1 }
 0x9c7   : > { %3501 = vrot.lane.b32.xlu0 %v7131_v53, %s6426_s29  ;;  %v8202_v53 = vpop.eup %6128  ;;  %s9226_s29 = scalar_lea.vmem %s9133_s7, %s6697_s28 }
 0x9c8   : > { %v8221_v27 = vpop.f32.mrf.mxu1 }
 0x9ca   : > { %v8225_v24 = vpop.f32.mrf.mxu1 }
 0x9cc   : > { %v8227_v9 = vpop.f32.mrf.mxu1 }
 0x9ce   : > { %v8229_v35 = vpop.f32.mrf.mxu1 }
 0x9cf   : > { %9216 = vst [vmem:[#allocation14_spill] sm:$0xff] %v8229_v35 }
 0x9d0   : > { %v8231_v55 = vpop.f32.mrf.mxu1 }
 0x9d1   : > { %9217 = vst [vmem:[#allocation15_spill] sm:$0xff] %v8231_v55 }
 0x9e6   : > { %3453 = vadd.xlane.f32.xlu0 %v8197_v14 }
 0x9ea   : > { %3457 = vadd.xlane.f32.xlu0 %v8202_v53 }
 0x9f9   : > { %v3432_v32 = vpop.xlane.xlu1 %3431 }
 0x9fd   : > { %v3428_v63 = vpop.xlane.xlu1 %3427 }
 0xa01   : > { %v3434_v41 = vpop.xlane.xlu1 %3433 }
 0xa05   : > { %v3430_v2 = vpop.xlane.xlu1 %3429 }
 0xa06   : > { %6130 = vrcp.f32 %v3430_v2 }
 0xa07   : > { %6132 = vrcp.f32 %v3428_v63 }
 0xa08   : > { %6134 = vrcp.f32 %v3434_v41 }
 0xa09   : > { %v3438_v54 = vpop.xlane.xlu1 %3437 }
 0xa1e   : > { %v5569_v43 = vpop.f32.mrf.mxu1 }
 0xa20   : > { %v2924_v45 = vpop.f32.mrf.mxu1 }
 0xa22   : > { %v5570_v26 = vpop.f32.mrf.mxu1 }
 0xa23   : > { %v2988_v7 = vpack.c.bf16 %v5570_v26, %v5569_v43 }
 0xa24   : > { %v2927_v52 = vpop.f32.mrf.mxu1 }
 0xa25   : > { %v2987_v50 = vpack.c.bf16 %v2927_v52, %v2924_v45 }
 0xa26   : > { %v5573_v13 = vpop.f32.mrf.mxu1  ;;  %v3440_v44 = vpop.xlane.xlu0 %3439 }
 0xa27   : > { %5585 = vmatprep.mubr.msk.bf16.mxu1 %vm1318_vm2, %v2987_v50  ;;  %v3444_v50 = vpop.xlane.xlu1 %3443 }
 0xa28   : > { %v2940_v3 = vpop.f32.mrf.mxu1  ;;  %5586 = vmatmul.mubr.msk.bf16.vlgmr.msra.gmra.mxu1 %vm1318_vm2, %v2988_v7 }
 0xa29   : > { %5634 = vmatpush3.bf16.msra.mxu1 %v8157_v62 }
 0xa2a   : > { %5635 = vmatprep.subr.bf16.mxu1 %v3512_v28  ;;  %v5574_v37 = vpop.f32.mrf.mxu1  ;;  %v3436_v47 = vpop.xlane.xlu0 %3435 }
 0xa2b   : > { %v2990_v45 = vpack.c.bf16 %v5574_v37, %v5573_v13  ;;  %6136 = vrcp.f32 %v3436_v47 }
 0xa2c   : > { %v2943_v55 = vpop.f32.mrf.mxu1  ;;  %6138 = vrcp.f32 %v3432_v32 }
 0xa2d   : > { %v2989_v35 = vpack.c.bf16 %v2943_v55, %v2940_v3  ;;  %5636 = vmatpush3.bf16.msra.mxu1 %v3512_v28  ;;  %6140 = vrcp.f32 %v3438_v54  ;;  %v8238_v28 = vpop.xlane.xlu1 %3455  ;;  %v6131_v3 = vpop.eup %6130 }
 0xa2e   : > { %5637 = vmatprep.subr.bf16.mxu1 %v3510_v56  ;;  %v5577_v43 = vpop.f32.mrf.mxu1  ;;  %v3442_v26 = vpop.xlane.xlu0 %3441 }
 0xa2f   : > { %5589 = vmatprep.mubr.msk.bf16.mxu1 %vm1318_vm2, %v2989_v35  ;;  %v6133_v41 = vpop.eup %6132  ;;  %6142 = vrcp.f32 %v3442_v26 }
 0xa30   : > { %v2956_v52 = vpop.f32.mrf.mxu1  ;;  %5590 = vmatmul.mubr.msk.bf16.gmra.mxu1 %vm1318_vm2, %v2990_v45  ;;  %6144 = vrcp.f32 %v3440_v44 }
 0xa31   : > { %5638 = vmatpush3.bf16.msra.mxu1 %v3510_v56  ;;  %v3452_v37 = vpop.xlane.xlu1 %3451 }
 0xa32   : > { %5639 = vmatprep.subr.bf16.mxu1 %v3508_v6  ;;  %v5578_v62 = vpop.f32.mrf.mxu1  ;;  %v3448_v2 = vpop.xlane.xlu0 %3447 }
 0xa33   : > { %v2992_v7 = vpack.c.bf16 %v5578_v62, %v5577_v43  ;;  %v3460_v43 = vmul.f32 %v6133_v41, %v8137_v22 }
 0xa34   : > { %v2959_v63 = vpop.f32.mrf.mxu1 }
 0xa35   : > { %v2991_v55 = vpack.c.bf16 %v2959_v63, %v2956_v52  ;;  %5640 = vmatpush3.bf16.msra.mxu1 %v3508_v6  ;;  %v3462_v6 = vmul.f32 %v6131_v3, %v8143_v36  ;;  %v3500_v36 = vpop.permute.xlu1 %3499 }
 0xa36   : > { %5641 = vmatprep.subr.bf16.mxu1 %v3506_v59  ;;  %v5581_v35 = vpop.f32.mrf.mxu1  ;;  %v3450_v13 = vpop.xlane.xlu0 %3449 }
 0xa37   : > { %5593 = vmatprep.mubr.msk.bf16.mxu1 %vm1318_vm2, %v2991_v55  ;;  %v3491_v26 = vpack.c.bf16 %v3462_v6, %v3460_v43 }
 0xa38   : > { %v2972_v56 = vpop.f32.mrf.mxu1  ;;  %5594 = vmatmul.mubr.msk.bf16.gmra.mxu1 %vm1318_vm2, %v2992_v7 }
 0xa39   : > { %5642 = vmatpush3.bf16.msra.mxu1 %v3506_v59  ;;  %v6135_v59 = vpop.eup %6134 }
 0xa3a   : > { %5643 = vmatprep.subr.bf16.mxu1 %v8223_v38  ;;  %v5582_v32 = vpop.f32.mrf.mxu1  ;;  %v3446_v54 = vpop.xlane.xlu0 %3445 }
 0xa3b   : > { %6146 = vrcp.f32 %v3446_v54  ;;  %v2994_v52 = vpack.c.bf16 %v5582_v32, %v5581_v35  ;;  %v6137_v63 = vpop.eup %6136 }
 0xa3c   : > { %v2975_v47 = vpop.f32.mrf.mxu1  ;;  %6148 = vrcp.f32 %v3444_v50  ;;  %v6139_v44 = vpop.eup %6138  ;;  %v3468_v22 = vmul.f32 %v6137_v63, %v8166_v60 }
 0xa3d   : > { %v2993_v45 = vpack.c.bf16 %v2975_v47, %v2972_v56  ;;  %5644 = vmatpush3.bf16.msra.mxu1 %v8223_v38  ;;  %v6141_v50 = vpop.eup %6140  ;;  %6150 = vrcp.f32 %v3450_v13  ;;  %v3466_v38 = vmul.f32 %v6135_v59, %v8140_v8  ;;  %v3464_v55 = vmul.f32 %v6139_v44, %v8131_v1 }
 0xa3e   : > { %v3502_v62 = vpop.permute.xlu0 %3501  ;;  %6152 = vrcp.f32 %v3448_v2  ;;  %v3470_v7 = vmul.f32 %v6141_v50, %v8146_v5  ;;  %v6143_v3 = vpop.eup %6142 }
 0xa3f   : > { %5597 = vmatprep.mubr.msk.bf16.mxu1 %vm1318_vm2, %v2993_v45  ;;  %5645 = vmatprep.subr.bf16.mxu1 %v3502_v62  ;;  %v3492_v35 = vpack.c.bf16 %v3466_v38, %v3464_v55  ;;  %v6145_v41 = vpop.eup %6144  ;;  %v3474_v13 = vmul.f32 %v6143_v3, %v8172_v40  ;;  %6154 = vrcp.f32 %v3452_v37  ;;  %v2446_v55 = vadd.f32 %v8205_v29, %v7787_v19 }
 0xa40   : > { %5598 = vmatmul.mubr.msk.bf16.gmra.mxu1 %vm1318_vm2, %v2994_v52  ;;  %v3493_v56 = vpack.c.bf16 %v3470_v7, %v3468_v22  ;;  %v3472_v60 = vmul.f32 %v6145_v41, %v8163_v11  ;;  %v2462_v29 = vadd.f32 %v8213_v23, %v7795_v57  ;;  %v9219_v23 = vld [vmem:[#allocation17_spill] sm:$0xff] }
 0xa41   : > { %5646 = vmatpush3.bf16.msra.mxu1 %v3502_v62  ;;  %5649 = vmatprep.mubr.bf16.mxu1 %v3491_v26 }
 0xa42   : > { %5647 = vmatprep.subr.bf16.mxu1 %v3500_v36  ;;  %v3494_v1 = vpack.c.bf16 %v3474_v13, %v3472_v60  ;;  %v2478_v60 = vadd.f32 %v8221_v27, %v9219_v23 }
 0xa45   : > { %5648 = vmatpush3.bf16.msra.mxu1 %v3500_v36  ;;  %v5893_v36 = vld [vmem:[%s6682_s16 + $0x18] sm:$0xff]  }
 0xa46   : > { %5665 = vmatprep.subr.bf16.mxu1 %v5893_v36 }
 0xa48   : > { %5650 = vmatmul.mubr.bf16.vlgmr.msra.gmra.mxu1 %v3492_v35  ;;  %v6147_v32 = vpop.eup %6146 }
 0xa49   : > { %5653 = vmatprep.mubr.bf16.mxu1 %v3493_v56  ;;  %v6149_v54 = vpop.eup %6148  ;;  %v3478_v8 = vmul.f32 %v6147_v32, %v8184_v33  ;;  %5666 = vmatpush3.bf16.msra.mxu1 %v5893_v36 }
 0xa4a   : > { %v3476_v2 = vmul.f32 %v6149_v54, %v8149_v12  ;;  %v6151_v6 = vpop.eup %6150 }
 0xa4b   : > { %v6153_v5 = vpop.eup %6152  ;;  %v3482_v45 = vmul.f32 %v6151_v6, %v8181_v49 }
 0xa4c   : > { %v3495_v47 = vpack.c.bf16 %v3478_v8, %v3476_v2  ;;  %v3480_v43 = vmul.f32 %v6153_v5, %v8178_v17  ;;  %v6155_v12 = vpop.eup %6154 }
 0xa4d   : > { %v3484_v59 = vmul.f32 %v6155_v12, %v8174_v4  ;;  %v2443_v4 = vadd.f32 %v8195_v0, %v7783_v48  ;;  %v2459_v0 = vadd.f32 %v8209_v25, %v7791_v39  ;;  %v2475_v25 = vadd.f32 %v8217_v61, %v7799_v16  ;;  %v9221_v61 = vld [vmem:[#allocation19_spill] sm:$0xff] }
 0xa4e   : > { %v3496_v52 = vpack.c.bf16 %v3482_v45, %v3480_v43  ;;  %v9222_v45 = vld [vmem:[#allocation20_spill] sm:$0xff]  ;;  %v9223_v43 = vld [vmem:[#allocation14_spill] sm:$0xff]  ;;  %v9225_v12 = vld [vmem:[#allocation15_spill] sm:$0xff] }
 0xa50   : > { %5654 = vmatmul.mubr.bf16.gmra.mxu1 %v3494_v1 }
 0xa51   : > { %5657 = vmatprep.mubr.bf16.mxu1 %v3495_v47  ;;  %v2491_v47 = vadd.f32 %v8227_v9, %v9221_v61 }
 0xa58   : > { %5658 = vmatmul.mubr.bf16.gmra.mxu1 %v3496_v52  ;;  %v2502_v52 = vadd.f32 %v9223_v43, %v9222_v45 }
 0xa6f   : > { %v3454_v40 = vpop.xlane.xlu0 %3453 }
 0xa70   : > { %6156 = vrcp.f32 %v3454_v40 }
 0xa71   : > { %6158 = vrcp.f32 %v8238_v28  ;;  %v2451_v28 = vadd.f32 %v8193_v30, %v7781_v21  ;;  %v2467_v21 = vadd.f32 %v8207_v42, %v7789_v34  ;;  %v2483_v42 = vadd.f32 %v8215_v51, %v7797_v46  ;;  %v9220_v51 = vld [vmem:[#allocation18_spill] sm:$0xff] }
 0xa72   : > { %v2499_v1 = vadd.f32 %v8225_v24, %v9220_v51 }
 0xa73   : > { %v3458_v11 = vpop.xlane.xlu0 %3457 }
 0xa74   : > { %6160 = vrcp.f32 %v3458_v11  ;;  %v9224_v11 = vld [vmem:[#allocation21_spill] sm:$0xff] }
 0xa7d   : > { %v6157_v33 = vpop.eup %6156 }
 0xa7e   : > { %v3486_v62 = vmul.f32 %v6157_v33, %v8197_v14  ;;  %v6159_v26 = vpop.eup %6158  ;;  %v2494_v33 = vadd.f32 %v9225_v12, %v9224_v11  ;;  %v6276_v11 = vld [vmem:[#allocation2 + $0x18] sm:$0xff] }
 0xa7f   : > { %v3488_v17 = vmul.f32 %v6159_v26, %v8168_v18  ;;  %v2454_v18 = vadd.f32 %v8200_v31, %v7785_v15  ;;  %v2470_v31 = vadd.f32 %v8211_v58, %v7793_v10  ;;  %v9218_v58 = vld [vmem:[#allocation13_spill] sm:$0xff] }
 0xa80   : > { %v3497_v49 = vpack.c.bf16 %v3486_v62, %v3484_v59  ;;  %v2486_v13 = vadd.f32 %v8219_v20, %v9218_v58 }
 0xa81   : > { %v6161_v63 = vpop.eup %6160 }
 0xa82   : > { %5661 = vmatprep.mubr.bf16.mxu1 %v3497_v49  ;;  %v3490_v37 = vmul.f32 %v6161_v63, %v8202_v53 }
 0xa84   : > { %v3498_v44 = vpack.c.bf16 %v3490_v37, %v3488_v17 }
 0xa86   : > { %5662 = vmatmul.mubr.bf16.gmra.mxu1 %v3498_v44 }
 0xae8   : > { %v5587_v50 = vpop.f32.mrf.mxu1 }
 0xae9   : > { %v8268_v14 = vadd.f32 %v5587_v50, %v2451_v28 }
 0xaea   : > { %v3059_v38 = vpop.f32.mrf.mxu1 }
 0xaeb   : > { %v8272_v22 = vadd.f32 %v3059_v38, %v2443_v4 }
 0xaec   : > { %v5588_v53 = vpop.f32.mrf.mxu1 }
 0xaed   : > { %v8276_v7 = vadd.f32 %v5588_v53, %v2454_v18 }
 0xaee   : > { %v3062_v35 = vpop.f32.mrf.mxu1 }
 0xaef   : > { %v8280_v30 = vadd.f32 %v3062_v35, %v2446_v55 }
 0xaf0   : > { %v5591_v48 = vpop.f32.mrf.mxu1 }
 0xaf1   : > { %v8284_v3 = vadd.f32 %v5591_v48, %v2467_v21 }
 0xaf2   : > { %v3075_v15 = vpop.f32.mrf.mxu1 }
 0xaf3   : > { %v8288_v56 = vadd.f32 %v3075_v15, %v2459_v0 }
 0xaf4   : > { %v5592_v19 = vpop.f32.mrf.mxu1 }
 0xaf5   : > { %v8292_v41 = vadd.f32 %v5592_v19, %v2470_v31 }
 0xaf6   : > { %v3078_v34 = vpop.f32.mrf.mxu1 }
 0xaf7   : > { %v8296_v32 = vadd.f32 %v3078_v34, %v2462_v29 }
 0xaf8   : > { %v5595_v39 = vpop.f32.mrf.mxu1 }
 0xaf9   : > { %v8300_v54 = vadd.f32 %v5595_v39, %v2483_v42  ;;  %v8341_v39 = vld [vmem:[%s9226_s29] ss:$0 sm:$0xff] }
 0xafa   : > { %v3091_v10 = vpop.f32.mrf.mxu1 }
 0xafb   : > { %v8304_v8 = vadd.f32 %v3091_v10, %v2475_v25 }
 0xafc   : > { %v5596_v57 = vpop.f32.mrf.mxu1 }
 0xafd   : > { %v8308_v2 = vadd.f32 %v5596_v57, %v2486_v13 }
 0xafe   : > { %v3094_v46 = vpop.f32.mrf.mxu1 }
 0xaff   : > { %v8312_v6 = vadd.f32 %v3094_v46, %v2478_v60  ;;  %v6274_v46 = vld [vmem:[#allocation2 + $0x10] sm:$0xff] }
 0xb00   : > { %v5599_v16 = vpop.f32.mrf.mxu1 }
 0xb01   : > { %v8316_v5 = vadd.f32 %v5599_v16, %v2499_v1 }
 0xb02   : > { %v3107_v20 = vpop.f32.mrf.mxu1 }
 0xb03   : > { %v8320_v40 = vadd.f32 %v3107_v20, %v2491_v47  ;;  %v6275_v47 = vld [vmem:[#allocation2] sm:$0xff] }
 0xb04   : > { %v5600_v27 = vpop.f32.mrf.mxu1 }
 0xb05   : > { %v8324_v59 = vadd.f32 %v5600_v27, %v2502_v52 }
 0xb06   : > { %v3110_v24 = vpop.f32.mrf.mxu1 }
 0xb07   : > { %v8326_v62 = vadd.f32 %v3110_v24, %v2494_v33 }
 0xb08   : > { %v5651_v26 = vpop.f32.mrf.mxu1 }
 0xb0a   : > { %v3557_v49 = vpop.f32.mrf.mxu1 }
 0xb0c   : > { %v5652_v9 = vpop.f32.mrf.mxu1 }
 0xb0d   : > { %v3621_v37 = vpack.c.bf16 %v5652_v9, %v5651_v26 }
 0xb0e   : > { %v3560_v63 = vpop.f32.mrf.mxu1 }
 0xb0f   : > { %v3620_v17 = vpack.c.bf16 %v3560_v63, %v3557_v49  ;;  %v6277_v49 = vld [vmem:[#allocation2 + $0x20] sm:$0xff] }
 0xb10   : > { %v5655_v44 = vpop.f32.mrf.mxu1 }
 0xb11   : > { %5667 = vmatprep.mubr.msk.bf16.mxu1 %vm1318_vm2, %v3620_v17 }
 0xb12   : > { %v3573_v36 = vpop.f32.mrf.mxu1  ;;  %5668 = vmatmul.mubr.msk.bf16.vlgmr.msra.gmra.mxu1 %vm1318_vm2, %v3621_v37 }
 0xb14   : > { %v5656_v28 = vpop.f32.mrf.mxu1 }
 0xb15   : > { %v3623_v38 = vpack.c.bf16 %v5656_v28, %v5655_v44  ;;  %v6279_v28 = vld [vmem:[#allocation2 + $0x30] sm:$0xff] }
 0xb16   : > { %v3576_v50 = vpop.f32.mrf.mxu1 }
 0xb17   : > { %v3622_v4 = vpack.c.bf16 %v3576_v50, %v3573_v36 }
 0xb18   : > { %v5659_v18 = vpop.f32.mrf.mxu1 }
 0xb19   : > { %5671 = vmatprep.mubr.msk.bf16.mxu1 %vm1318_vm2, %v3622_v4 }
 0xb1a   : > { %v3589_v53 = vpop.f32.mrf.mxu1  ;;  %5672 = vmatmul.mubr.msk.bf16.gmra.mxu1 %vm1318_vm2, %v3623_v38 }
 0xb1c   : > { %v5660_v55 = vpop.f32.mrf.mxu1 }
 0xb1d   : > { %v3625_v48 = vpack.c.bf16 %v5660_v55, %v5659_v18  ;;  %v6280_v55 = vld [vmem:[#allocation2 + $0x38] sm:$0xff] }
 0xb1e   : > { %v3592_v35 = vpop.f32.mrf.mxu1 }
 0xb1f   : > { %v3624_v21 = vpack.c.bf16 %v3592_v35, %v3589_v53 }
 0xb21   : > { %5675 = vmatprep.mubr.msk.bf16.mxu1 %vm1318_vm2, %v3624_v21 }
 0xb22   : > { %5676 = vmatmul.mubr.msk.bf16.gmra.mxu1 %vm1318_vm2, %v3625_v48 }
 0xb46   : > { %v5663_v0 = vpop.f32.mrf.mxu1 }
 0xb48   : > { %v3605_v15 = vpop.f32.mrf.mxu1 }
 0xb4a   : > { %v5664_v31 = vpop.f32.mrf.mxu1 }
 0xb4b   : > { %v3627_v34 = vpack.c.bf16 %v5664_v31, %v5663_v0 }
 0xb4c   : > { %v3608_v19 = vpop.f32.mrf.mxu1 }
 0xb4d   : > { %v3626_v29 = vpack.c.bf16 %v3608_v19, %v3605_v15  ;;  %v6281_v15 = vld [vmem:[#allocation2 + $0x28] sm:$0xff] }
 0xb4f   : > { %5679 = vmatprep.mubr.msk.bf16.mxu1 %vm1318_vm2, %v3626_v29 }
 0xb50   : > { %5680 = vmatmul.mubr.msk.bf16.gmra.mxu1 %vm1318_vm2, %v3627_v34 }
 0xbd2   : > { %v5669_v42 = vpop.f32.mrf.mxu1 }
 0xbd3   : > { %v3757_v25 = vadd.f32 %v5669_v42, %v8268_v14  ;;  %v6282_v42 = vld [vmem:[#allocation2 + $0x50] sm:$0xff] }
 0xbd4   : > { %v3692_v10 = vpop.f32.mrf.mxu1 }
 0xbd5   : > { %v3780_v58 = vadd.f32 %v8341_v39, %v3757_v25  ;;  %v3755_v13 = vadd.f32 %v3692_v10, %v8272_v22 }
 0xbd6   : > { %v5670_v57 = vpop.f32.mrf.mxu1 }
 0xbd7   : > { %v3778_v23 = vadd.f32 %v8341_v39, %v3755_v13  ;;  %v3758_v60 = vadd.f32 %v5670_v57, %v8276_v7  ;;  %v8348_v51 = vadd.f32 %v6274_v46, %v3780_v58  ;;  %v6283_v57 = vld [vmem:[#allocation2 + $0x40] sm:$0xff]  ;;  %v6284_v46 = vld [vmem:[#allocation2 + $0x58] sm:$0xff] }
 0xbd8   : > { %v3695_v1 = vpop.f32.mrf.mxu1 }
 0xbd9   : > { %v3781_v16 = vadd.f32 %v8341_v39, %v3758_v60  ;;  %v3756_v61 = vadd.f32 %v3695_v1, %v8280_v30  ;;  %v3818_v14 = vsel %vm1132_vm1, %v8348_v51, 0.0  ;;  %v8354_v20 = vadd.f32 %v6275_v47, %v3778_v23 }
 0xbda   : > { %3819 = vadd.xlane.f32.xlu0 %v3818_v14  ;;  %v5673_v22 = vpop.f32.mrf.mxu1 }
 0xbdb   : > { %v3761_v45 = vadd.f32 %v5673_v22, %v8284_v3  ;;  %v3779_v7 = vadd.f32 %v8341_v39, %v3756_v61  ;;  %v3812_v27 = vsel %vm1132_vm1, %v8354_v20, 0.0  ;;  %v8361_v30 = vadd.f32 %v6276_v11, %v3781_v16 }
 0xbdc   : > { %v3708_v43 = vpop.f32.mrf.mxu1 }
 0xbdd   : > { %v3759_v52 = vadd.f32 %v3708_v43, %v8288_v56  ;;  %v3784_v24 = vadd.f32 %v8341_v39, %v3761_v45  ;;  %v3821_v3 = vsel %vm1132_vm1, %v8361_v30, 0.0  ;;  %v6278_v56 = vld [vmem:[#allocation2 + $0x8] sm:$0xff] }
 0xbde   : > { %3813 = vadd.xlane.f32.xlu0 %v3812_v27  ;;  %v5674_v12 = vpop.f32.mrf.mxu1  ;;  %v8370_v63 = vadd.f32 %v6278_v56, %v3779_v7 }
 0xbdf   : > { %v3782_v33 = vadd.f32 %v8341_v39, %v3759_v52  ;;  %v3762_v26 = vadd.f32 %v5674_v12, %v8292_v41  ;;  %v8378_v50 = vadd.f32 %v6279_v28, %v3784_v24  ;;  %v6286_v12 = vld [vmem:[#allocation2 + $0x70] sm:$0xff] }
 0xbe0   : > { %v3711_v17 = vpop.f32.mrf.mxu1  ;;  %v3815_v41 = vsel %vm1132_vm1, %v8370_v63, 0.0 }
 0xbe1   : > { %v8368_v9 = vadd.f32 %v6277_v49, %v3782_v33  ;;  %v3785_v44 = vadd.f32 %v8341_v39, %v3762_v26  ;;  %v3760_v36 = vadd.f32 %v3711_v17, %v8296_v32  ;;  %v3830_v53 = vsel %vm1132_vm1, %v8378_v50, 0.0  ;;  %v6288_v17 = vld [vmem:[#allocation2 + $0x68] sm:$0xff] }
 0xbe2   : > { %3822 = vadd.xlane.f32.xlu0 %v3821_v3  ;;  %v5677_v4 = vpop.f32.mrf.mxu1 }
 0xbe3   : > { %v3824_v37 = vsel %vm1132_vm1, %v8368_v9, 0.0  ;;  %v3783_v38 = vadd.f32 %v8341_v39, %v3760_v36  ;;  %v3765_v18 = vadd.f32 %v5677_v4, %v8300_v54  ;;  %v8384_v35 = vadd.f32 %v6280_v55, %v3785_v44  ;;  %v6289_v44 = vld [vmem:[#allocation2 + $0x78] sm:$0xff] }
 0xbe4   : > { %3825 = vadd.xlane.f32.xlu1 %v3824_v37  ;;  %v3724_v21 = vpop.f32.mrf.mxu1 }
 0xbe5   : > { %v3788_v32 = vadd.f32 %v8341_v39, %v3765_v18  ;;  %v3763_v48 = vadd.f32 %v3724_v21, %v8304_v8  ;;  %v3833_v0 = vsel %vm1132_vm1, %v8384_v35, 0.0  ;;  %v8390_v31 = vadd.f32 %v6281_v15, %v3783_v38 }
 0xbe6   : > { %3816 = vadd.xlane.f32.xlu0 %v3815_v41  ;;  %v5678_v19 = vpop.f32.mrf.mxu1 }
 0xbe7   : > { %v3786_v54 = vadd.f32 %v8341_v39, %v3763_v48  ;;  %v3766_v29 = vadd.f32 %v5678_v19, %v8308_v2  ;;  %v3827_v34 = vsel %vm1132_vm1, %v8390_v31, 0.0  ;;  %v8396_v25 = vadd.f32 %v6282_v42, %v3788_v32 }
 0xbe8   : > { %v3727_v10 = vpop.f32.mrf.mxu1 }
 0xbe9   : > { %v3789_v8 = vadd.f32 %v8341_v39, %v3766_v29  ;;  %v3764_v58 = vadd.f32 %v3727_v10, %v8312_v6  ;;  %v3842_v13 = vsel %vm1132_vm1, %v8396_v25, 0.0  ;;  %v8402_v23 = vadd.f32 %v6283_v57, %v3786_v54  ;;  %v6285_v6 = vld [vmem:[#allocation2 + $0x48] sm:$0xff] }
 0xbea   : > { %3831 = vadd.xlane.f32.xlu0 %v3830_v53 }
 0xbeb   : > { %v3787_v2 = vadd.f32 %v8341_v39, %v3764_v58  ;;  %v3836_v60 = vsel %vm1132_vm1, %v8402_v23, 0.0  ;;  %v8407_v1 = vadd.f32 %v6284_v46, %v3789_v8 }
 0xbed   : > { %v3845_v16 = vsel %vm1132_vm1, %v8407_v1, 0.0  ;;  %v8411_v61 = vadd.f32 %v6285_v6, %v3787_v2 }
 0xbee   : > { %3834 = vadd.xlane.f32.xlu0 %v3833_v0 }
 0xbef   : > { %v3839_v14 = vsel %vm1132_vm1, %v8411_v61, 0.0 }
 0xbf2   : > { %3828 = vadd.xlane.f32.xlu0 %v3827_v34 }
 0xbf6   : > { %3843 = vadd.xlane.f32.xlu0 %v3842_v13 }
 0xbfa   : > { %3837 = vadd.xlane.f32.xlu0 %v3836_v60 }
 0xbfe   : > { %3846 = vadd.xlane.f32.xlu0 %v3845_v16 }
 0xc02   : > { %3840 = vadd.xlane.f32.xlu0 %v3839_v14 }
 0xc10   : > { %v5681_v47 = vpop.f32.mrf.mxu1 }
 0xc11   : > { %v3769_v22 = vadd.f32 %v5681_v47, %v8316_v5  ;;  %v6287_v5 = vld [vmem:[#allocation2 + $0x60] sm:$0xff] }
 0xc12   : > { %v3740_v45 = vpop.f32.mrf.mxu1 }
 0xc13   : > { %v3792_v43 = vadd.f32 %v8341_v39, %v3769_v22  ;;  %v3767_v7 = vadd.f32 %v3740_v45, %v8320_v40 }
 0xc14   : > { %v5682_v52 = vpop.f32.mrf.mxu1 }
 0xc15   : > { %v3790_v27 = vadd.f32 %v8341_v39, %v3767_v7  ;;  %v3770_v11 = vadd.f32 %v5682_v52, %v8324_v59  ;;  %v8420_v33 = vadd.f32 %v6286_v12, %v3792_v43 }
 0xc16   : > { %v3743_v24 = vpop.f32.mrf.mxu1 }
 0xc17   : > { %v3768_v26 = vadd.f32 %v3743_v24, %v8326_v62  ;;  %v3854_v3 = vsel %vm1132_vm1, %v8420_v33, 0.0  ;;  %v8425_v49 = vadd.f32 %v6287_v5, %v3790_v27  ;;  %v3793_v40 = vadd.f32 %v8341_v39, %v3770_v11 }
 0xc18   : > { %3855 = vadd.xlane.f32.xlu1 %v3854_v3 }
 0xc19   : > { %v3791_v56 = vadd.f32 %v8341_v39, %v3768_v26  ;;  %v3848_v59 = vsel %vm1132_vm1, %v8425_v49, 0.0  ;;  %v8435_v36 = vadd.f32 %v6289_v44, %v3793_v40  ;;  %v5894_v44 = vld [vmem:[%s6689_s26 + $0x18] sm:$0xff]  }
 0xc1a   : > { %3849 = vadd.xlane.f32.xlu0 %v3848_v59  ;;  %5683 = vmatprep.subr.bf16.mxu0 %v5894_v44 }
 0xc1b   : > { %v8431_v37 = vadd.f32 %v6288_v17, %v3791_v56  ;;  %v3857_v41 = vsel %vm1132_vm1, %v8435_v36, 0.0  ;;  %5684 = vmatpush3.bf16.msra.mxu0 %v5894_v44 }
 0xc1d   : > { %v3851_v62 = vsel %vm1132_vm1, %v8431_v37, 0.0 }
 0xc1e   : > { %3852 = vadd.xlane.f32.xlu0 %v3851_v62 }
 0xc22   : > { %3858 = vadd.xlane.f32.xlu0 %v3857_v41 }
 0xc63   : > { %v3820_v28 = vpop.xlane.xlu0 %3819 }
 0xc64   : > { %v3863_v39 = vmul.f32 0.015625, %v3820_v28 }
 0xc66   : > { %v8440_v18 = vsub.f32 %v8348_v51, %v3863_v39 }
 0xc67   : > { %v3814_v4 = vpop.xlane.xlu0 %3813 }
 0xc68   : > { %v3861_v38 = vmul.f32 0.015625, %v3814_v4  ;;  %v3895_v19 = vmul.f32 %v8440_v18, %v8440_v18  ;;  %v5896_v4 = vld [vmem:[%s6689_s26 + $0x8] sm:$0xff]  }
 0xc6a   : > { %v8443_v53 = vsub.f32 %v8354_v20, %v3861_v38  ;;  %v3915_v42 = vsel %vm1132_vm1, %v3895_v19, 0.0  ;;  %v5897_v38 = vld [vmem:[%s6689_s26] sm:$0xff]  }
 0xc6b   : > { %v3823_v55 = vpop.xlane.xlu0 %3822 }
 0xc6c   : > { %v3893_v21 = vmul.f32 %v8443_v53, %v8443_v53  ;;  %v3864_v48 = vmul.f32 0.015625, %v3823_v55 }
 0xc6d   : > { %v3826_v32 = vpop.xlane.xlu1 %3825 }
 0xc6e   : > { %v3865_v0 = vmul.f32 0.015625, %v3826_v32  ;;  %v3909_v15 = vsel %vm1132_vm1, %v3893_v21, 0.0  ;;  %v8454_v20 = vsub.f32 %v8361_v30, %v3864_v48 }
 0xc6f   : > { %v3817_v54 = vpop.xlane.xlu0 %3816  ;;  %3910 = vadd.xlane.f32.xlu1 %v3909_v15 }
 0xc70   : > { %v8451_v51 = vsub.f32 %v8368_v9, %v3865_v0  ;;  %v3862_v29 = vmul.f32 0.015625, %v3817_v54 }
 0xc72   : > { %v8457_v34 = vsub.f32 %v8370_v63, %v3862_v29  ;;  %v3897_v10 = vmul.f32 %v8451_v51, %v8451_v51  ;;  %v3896_v63 = vmul.f32 %v8454_v20, %v8454_v20 }
 0xc73   : > { %v3832_v8 = vpop.xlane.xlu0 %3831  ;;  %3916 = vadd.xlane.f32.xlu1 %v3915_v42 }
 0xc74   : > { %v3867_v58 = vmul.f32 0.015625, %v3832_v8  ;;  %v3894_v13 = vmul.f32 %v8457_v34, %v8457_v34  ;;  %v3921_v30 = vsel %vm1132_vm1, %v3897_v10, 0.0  ;;  %v3918_v6 = vsel %vm1132_vm1, %v3896_v63, 0.0 }
 0xc76   : > { %v8465_v9 = vsub.f32 %v8378_v50, %v3867_v58  ;;  %v3912_v57 = vsel %vm1132_vm1, %v3894_v13, 0.0 }
 0xc77   : > { %v3835_v2 = vpop.xlane.xlu0 %3834  ;;  %3922 = vadd.xlane.f32.xlu1 %v3921_v30  ;;  %3913 = vadd.xlane.f32.xlu0 %v3912_v57 }
 0xc78   : > { %v3899_v60 = vmul.f32 %v8465_v9, %v8465_v9  ;;  %v3868_v46 = vmul.f32 0.015625, %v3835_v2 }
 0xc7a   : > { %v3927_v16 = vsel %vm1132_vm1, %v3899_v60, 0.0  ;;  %v8476_v47 = vsub.f32 %v8384_v35, %v3868_v46 }
 0xc7b   : > { %v3829_v50 = vpop.xlane.xlu0 %3828  ;;  %3928 = vadd.xlane.f32.xlu1 %v3927_v16  ;;  %3919 = vadd.xlane.f32.xlu0 %v3918_v6 }
 0xc7c   : > { %v3866_v14 = vmul.f32 0.015625, %v3829_v50  ;;  %v3900_v27 = vmul.f32 %v8476_v47, %v8476_v47 }
 0xc7e   : > { %v8479_v22 = vsub.f32 %v8390_v31, %v3866_v14  ;;  %v3930_v24 = vsel %vm1132_vm1, %v3900_v27, 0.0 }
 0xc7f   : > { %v3844_v45 = vpop.xlane.xlu0 %3843 }
 0xc80   : > { %v3898_v43 = vmul.f32 %v8479_v22, %v8479_v22  ;;  %v3871_v7 = vmul.f32 0.015625, %v3844_v45 }
 0xc82   : > { %v3924_v52 = vsel %vm1132_vm1, %v3898_v43, 0.0  ;;  %v8487_v35 = vsub.f32 %v8396_v25, %v3871_v7 }
 0xc83   : > { %v3838_v11 = vpop.xlane.xlu0 %3837  ;;  %3925 = vadd.xlane.f32.xlu0 %v3924_v52 }
 0xc84   : > { %v3869_v12 = vmul.f32 0.015625, %v3838_v11  ;;  %v3903_v56 = vmul.f32 %v8487_v35, %v8487_v35 }
 0xc86   : > { %v8490_v31 = vsub.f32 %v8402_v23, %v3869_v12  ;;  %v3939_v62 = vsel %vm1132_vm1, %v3903_v56, 0.0 }
 0xc87   : > { %v3847_v26 = vpop.xlane.xlu0 %3846  ;;  %3931 = vadd.xlane.f32.xlu0 %v3930_v24 }
 0xc88   : > { %v3901_v3 = vmul.f32 %v8490_v31, %v8490_v31  ;;  %v3872_v5 = vmul.f32 0.015625, %v3847_v26 }
 0xc8a   : > { %v3933_v40 = vsel %vm1132_vm1, %v3901_v3, 0.0  ;;  %v8499_v23 = vsub.f32 %v8407_v1, %v3872_v5  ;;  %v5895_v1 = vld [vmem:[%s6689_s26 + $0x10] sm:$0xff]  }
 0xc8b   : > { %v3841_v59 = vpop.xlane.xlu0 %3840  ;;  %3934 = vadd.xlane.f32.xlu1 %v3933_v40  ;;  %5685 = vmatprep.subr.bf16.mxu0 %v5895_v1 }
 0xc8c   : > { %v3870_v25 = vmul.f32 0.015625, %v3841_v59  ;;  %v3904_v39 = vmul.f32 %v8499_v23, %v8499_v23  ;;  %5686 = vmatpush3.bf16.msra.mxu0 %v5895_v1 }
 0xc8d   : > { %5687 = vmatprep.subr.bf16.mxu0 %v5896_v4 }
 0xc8e   : > { %v8502_v17 = vsub.f32 %v8411_v61, %v3870_v25  ;;  %v3942_v61 = vsel %vm1132_vm1, %v3904_v39, 0.0 }
 0xc8f   : > { %3940 = vadd.xlane.f32.xlu1 %v3939_v62 }
 0xc90   : > { %v3902_v41 = vmul.f32 %v8502_v17, %v8502_v17  ;;  %5688 = vmatpush3.bf16.msra.mxu0 %v5896_v4 }
 0xc91   : > { %5689 = vmatprep.subr.bf16.mxu0 %v5897_v38 }
 0xc92   : > { %v3936_v28 = vsel %vm1132_vm1, %v3902_v41, 0.0  ;;  %v8545_v41 = vld [vmem:[%s9227_s12] ss:$0 sm:$0xff] }
 0xc93   : > { %3937 = vadd.xlane.f32.xlu0 %v3936_v28 }
 0xc94   : > { %5690 = vmatpush3.bf16.msra.mxu0 %v5897_v38 }
 0xc97   : > { %3943 = vadd.xlane.f32.xlu0 %v3942_v61 }
 0xca1   : > { %v3856_v55 = vpop.xlane.xlu1 %3855 }
 0xca2   : > { %v3875_v21 = vmul.f32 0.015625, %v3856_v55 }
 0xca3   : > { %v3850_v32 = vpop.xlane.xlu0 %3849 }
 0xca4   : > { %v3873_v48 = vmul.f32 0.015625, %v3850_v32  ;;  %v8516_v0 = vsub.f32 %v8420_v33, %v3875_v21 }
 0xca6   : > { %v8519_v15 = vsub.f32 %v8425_v49, %v3873_v48  ;;  %v3907_v8 = vmul.f32 %v8516_v0, %v8516_v0 }
 0xca7   : > { %v3853_v19 = vpop.xlane.xlu0 %3852 }
 0xca8   : > { %v3874_v54 = vmul.f32 0.015625, %v3853_v19  ;;  %v3905_v29 = vmul.f32 %v8519_v15, %v8519_v15  ;;  %v3951_v30 = vsel %vm1132_vm1, %v3907_v8, 0.0 }
 0xcaa   : > { %v8524_v42 = vsub.f32 %v8431_v37, %v3874_v54  ;;  %v3945_v10 = vsel %vm1132_vm1, %v3905_v29, 0.0 }
 0xcab   : > { %3946 = vadd.xlane.f32.xlu1 %v3945_v10  ;;  %v3859_v58 = vpop.xlane.xlu0 %3858 }
 0xcac   : > { %v3876_v33 = vmul.f32 0.015625, %v3859_v58  ;;  %v3906_v49 = vmul.f32 %v8524_v42, %v8524_v42 }
 0xcae   : > { %v8532_v13 = vsub.f32 %v8435_v36, %v3876_v33  ;;  %v3948_v57 = vsel %vm1132_vm1, %v3906_v49, 0.0 }
 0xcaf   : > { %3952 = vadd.xlane.f32.xlu1 %v3951_v30  ;;  %3949 = vadd.xlane.f32.xlu0 %v3948_v57 }
 0xcb0   : > { %v3908_v37 = vmul.f32 %v8532_v13, %v8532_v13 }
 0xcb2   : > { %v3954_v63 = vsel %vm1132_vm1, %v3908_v37, 0.0 }
 0xcb3   : > { %3955 = vadd.xlane.f32.xlu0 %v3954_v63 }
 0xcf8   : > { %v3911_v2 = vpop.xlane.xlu1 %3910 }
 0xcf9   : > { %v3957_v60 = vmul.f32 0.015625, %v3911_v2 }
 0xcfb   : > { %v3973_v46 = vadd.f32 1e-12, %v3957_v60 }
 0xcfc   : > { %v3917_v16 = vpop.xlane.xlu1 %3916 }
 0xcfd   : > { %v3959_v6 = vmul.f32 0.015625, %v3917_v16  ;;  %6162 = vrsqrt.f32 %v3973_v46 }
 0xcff   : > { %v3975_v36 = vadd.f32 1e-12, %v3959_v6 }
 0xd00   : > { %v3923_v50 = vpop.xlane.xlu1 %3922  ;;  %v3914_v14 = vpop.xlane.xlu0 %3913 }
 0xd01   : > { %v3961_v45 = vmul.f32 0.015625, %v3923_v50  ;;  %v3958_v43 = vmul.f32 0.015625, %v3914_v14  ;;  %6164 = vrsqrt.f32 %v3975_v36 }
 0xd03   : > { %v3974_v7 = vadd.f32 1e-12, %v3958_v43  ;;  %v3977_v11 = vadd.f32 1e-12, %v3961_v45 }
 0xd04   : > { %v3929_v52 = vpop.xlane.xlu1 %3928  ;;  %v3920_v27 = vpop.xlane.xlu0 %3919 }
 0xd05   : > { %v3960_v12 = vmul.f32 0.015625, %v3920_v27  ;;  %6166 = vrsqrt.f32 %v3974_v7  ;;  %v3963_v24 = vmul.f32 0.015625, %v3929_v52 }
 0xd06   : > { %6168 = vrsqrt.f32 %v3977_v11 }
 0xd07   : > { %v3976_v26 = vadd.f32 1e-12, %v3960_v12  ;;  %v3979_v3 = vadd.f32 1e-12, %v3963_v24 }
 0xd09   : > { %6170 = vrsqrt.f32 %v3976_v26 }
 0xd0a   : > { %v6163_v40 = vpop.eup %6162  ;;  %6172 = vrsqrt.f32 %v3979_v3 }
 0xd0b   : > { %v4005_v62 = vmul.f32 %v6163_v40, %v8443_v53  ;;  %v8555_v53 = vld [vmem:[%s726_s10] ss:$0 sm:$0xff] }
 0xd0c   : > { %v3926_v5 = vpop.xlane.xlu0 %3925 }
 0xd0d   : > { %v3962_v56 = vmul.f32 0.015625, %v3926_v5  ;;  %v4027_v55 = vmul.f32 %v8545_v41, %v4005_v62 }
 0xd0e   : > { %v6165_v44 = vpop.eup %6164 }
 0xd0f   : > { %v3978_v59 = vadd.f32 1e-12, %v3962_v56  ;;  %v4007_v61 = vmul.f32 %v6165_v44, %v8440_v18  ;;  %v8561_v10 = vadd.f32 %v8555_v53, %v4027_v55 }
 0xd10   : > { %v3932_v25 = vpop.xlane.xlu0 %3931 }
 0xd11   : > { %6174 = vrsqrt.f32 %v3978_v59  ;;  %v3964_v28 = vmul.f32 0.015625, %v3932_v25  ;;  %v4029_v18 = vmul.f32 %v8545_v41, %v4007_v61 }
 0xd12   : > { %v6167_v39 = vpop.eup %6166 }
 0xd13   : > { %v3980_v1 = vadd.f32 1e-12, %v3964_v28  ;;  %v4006_v38 = vmul.f32 %v6167_v39, %v8457_v34  ;;  %v6169_v32 = vpop.eup %6168 }
 0xd14   : > { %v3935_v4 = vpop.xlane.xlu1 %3934  ;;  %v4009_v30 = vmul.f32 %v6169_v32, %v8451_v51 }
 0xd15   : > { %6176 = vrsqrt.f32 %v3980_v1  ;;  %v3965_v21 = vmul.f32 0.015625, %v3935_v4  ;;  %v4028_v48 = vmul.f32 %v8545_v41, %v4006_v38 }
 0xd16   : > { %v6171_v19 = vpop.eup %6170  ;;  %v4031_v6 = vmul.f32 %v8545_v41, %v4009_v30 }
 0xd17   : > { %v3981_v54 = vadd.f32 1e-12, %v3965_v21  ;;  %v4008_v29 = vmul.f32 %v6171_v19, %v8454_v20  ;;  %v8564_v8 = vadd.f32 %v8555_v53, %v4028_v48  ;;  %v6173_v37 = vpop.eup %6172  ;;  %v8571_v20 = vadd.f32 %v8555_v53, %v4029_v18 }
 0xd18   : > { %v3941_v34 = vpop.xlane.xlu1 %3940  ;;  %v4011_v51 = vmul.f32 %v6173_v37, %v8465_v9  ;;  %v8585_v52 = vadd.f32 %v8555_v53, %v4031_v6 }
 0xd19   : > { %v3967_v58 = vmul.f32 0.015625, %v3941_v34  ;;  %v4030_v33 = vmul.f32 %v8545_v41, %v4008_v29  ;;  %v4065_v49 = vpack.c.bf16 %v8564_v8, %v8561_v10  ;;  %6178 = vrsqrt.f32 %v3981_v54 }
 0xd1a   : > { %v4033_v12 = vmul.f32 %v8545_v41, %v4011_v51 }
 0xd1b   : > { %v3983_v57 = vadd.f32 1e-12, %v3967_v58  ;;  %v8574_v63 = vadd.f32 %v8555_v53, %v4030_v33  ;;  %5691 = vmatprep.mubr.msk.bf16.mxu0 %vm1132_vm1, %v4065_v49 }
 0xd1c   : > { %v3938_v2 = vpop.xlane.xlu0 %3937  ;;  %v8597_v26 = vadd.f32 %v8555_v53, %v4033_v12  ;;  %v5902_v12 = vld [vmem:[%s6739_s6 + $0x18] sm:$0xff]  }
 0xd1d   : > { %v3966_v60 = vmul.f32 0.015625, %v3938_v2  ;;  %v4066_v16 = vpack.c.bf16 %v8574_v63, %v8571_v20  ;;  %6180 = vrsqrt.f32 %v3983_v57 }
 0xd1e   : > { %v6175_v46 = vpop.eup %6174 }
 0xd1f   : > { %v3982_v36 = vadd.f32 1e-12, %v3966_v60  ;;  %v4010_v50 = vmul.f32 %v6175_v46, %v8479_v22  ;;  %5692 = vmatmul.mubr.msk.bf16.vlgmr.msra.gmra.mxu0 %vm1132_vm1, %v4066_v16 }
 0xd20   : > { %v3944_v14 = vpop.xlane.xlu0 %3943 }
 0xd21   : > { %6182 = vrsqrt.f32 %v3982_v36  ;;  %v3968_v45 = vmul.f32 0.015625, %v3944_v14  ;;  %v4032_v43 = vmul.f32 %v8545_v41, %v4010_v50 }
 0xd22   : > { %v6177_v7 = vpop.eup %6176 }
 0xd23   : > { %v4012_v27 = vmul.f32 %v6177_v7, %v8476_v47  ;;  %v3984_v11 = vadd.f32 1e-12, %v3968_v45  ;;  %v8589_v9 = vadd.f32 %v8555_v53, %v4032_v43 }
 0xd25   : > { %6184 = vrsqrt.f32 %v3984_v11  ;;  %v4067_v22 = vpack.c.bf16 %v8589_v9, %v8585_v52  ;;  %v4034_v24 = vmul.f32 %v8545_v41, %v4012_v27  ;;  %v5898_v27 = vld [vmem:[%s6739_s6 + $0x38] sm:$0xff]   ;;  %v5901_v11 = vld [vmem:[%s6739_s6 + $0x20] sm:$0xff]  }
 0xd26   : > { %v6179_v47 = vpop.eup %6178  ;;  %5707 = vmatprep.subr.bf16.mxu0 %v5898_v27  ;;  %5739 = vmatprep.subr.bf16.mxu1 %v5898_v27 }
 0xd27   : > { %5695 = vmatprep.mubr.msk.bf16.mxu0 %vm1132_vm1, %v4067_v22  ;;  %v8600_v3 = vadd.f32 %v8555_v53, %v4034_v24  ;;  %v4013_v40 = vmul.f32 %v6179_v47, %v8490_v31  ;;  %5708 = vmatpush3.bf16.msra.mxu0 %v5898_v27  ;;  %v5903_v22 = vld [vmem:[%s6739_s6 + $0x10] sm:$0xff]   ;;  %v5904_v24 = vld [vmem:[%s6739_s6 + $0x8] sm:$0xff]   ;;  %v5905_v47 = vld [vmem:[%s6739_s6] sm:$0xff]  }
 0xd28   : > { %5747 = vmatpush3.bf16.msra.mxu1 %v5898_v27 }
 0xd29   : > { %v4068_v5 = vpack.c.bf16 %v8600_v3, %v8597_v26  ;;  %v4035_v44 = vmul.f32 %v8545_v41, %v4013_v40 }
 0xd2a   : > { %v6181_v56 = vpop.eup %6180 }
 0xd2b   : > { %5696 = vmatmul.mubr.msk.bf16.gmra.mxu0 %vm1132_vm1, %v4068_v5  ;;  %v4015_v25 = vmul.f32 %v6181_v56, %v8487_v35  ;;  %v8612_v61 = vadd.f32 %v8555_v53, %v4035_v44  ;;  %v8670_v5 = vld [vmem:[%s729_s30] ss:$0 sm:$0xff] }
 0xd2d   : > { %v4037_v31 = vmul.f32 %v8545_v41, %v4015_v25 }
 0xd2e   : > { %v6183_v59 = vpop.eup %6182 }
 0xd2f   : > { %v4014_v62 = vmul.f32 %v6183_v59, %v8502_v17 }
 0xd31   : > { %v4036_v28 = vmul.f32 %v8545_v41, %v4014_v62 }
 0xd32   : > { %v6185_v39 = vpop.eup %6184 }
 0xd33   : > { %v4016_v1 = vmul.f32 %v6185_v39, %v8499_v23  ;;  %v8615_v4 = vadd.f32 %v8555_v53, %v4036_v28  ;;  %v8623_v23 = vadd.f32 %v8555_v53, %v4037_v31 }
 0xd34   : > { %v3947_v38 = vpop.xlane.xlu1 %3946 }
 0xd35   : > { %v3969_v55 = vmul.f32 0.015625, %v3947_v38  ;;  %v4069_v35 = vpack.c.bf16 %v8615_v4, %v8612_v61  ;;  %v4038_v17 = vmul.f32 %v8545_v41, %v4016_v1 }
 0xd37   : > { %v3985_v21 = vadd.f32 1e-12, %v3969_v55  ;;  %5699 = vmatprep.mubr.msk.bf16.mxu0 %vm1132_vm1, %v4069_v35  ;;  %v8626_v32 = vadd.f32 %v8555_v53, %v4038_v17 }
 0xd38   : > { %v3953_v48 = vpop.xlane.xlu1 %3952  ;;  %v3950_v19 = vpop.xlane.xlu0 %3949 }
 0xd39   : > { %6186 = vrsqrt.f32 %v3985_v21  ;;  %v3971_v54 = vmul.f32 0.015625, %v3953_v48  ;;  %v3970_v18 = vmul.f32 0.015625, %v3950_v19  ;;  %v4070_v29 = vpack.c.bf16 %v8626_v32, %v8623_v23 }
 0xd3b   : > { %v3987_v34 = vadd.f32 1e-12, %v3971_v54  ;;  %v3986_v58 = vadd.f32 1e-12, %v3970_v18  ;;  %5700 = vmatmul.mubr.msk.bf16.gmra.mxu0 %vm1132_vm1, %v4070_v29 }
 0xd3c   : > { %v3956_v33 = vpop.xlane.xlu0 %3955 }
 0xd3d   : > { %6188 = vrsqrt.f32 %v3987_v34  ;;  %v3972_v49 = vmul.f32 0.015625, %v3956_v33 }
 0xd3e   : > { %6190 = vrsqrt.f32 %v3986_v58 }
 0xd3f   : > { %v3988_v30 = vadd.f32 1e-12, %v3972_v49 }
 0xd41   : > { %6192 = vrsqrt.f32 %v3988_v30 }
 0xd46   : > { %v6187_v57 = vpop.eup %6186 }
 0xd47   : > { %v4017_v37 = vmul.f32 %v6187_v57, %v8519_v15 }
 0xd49   : > { %v4039_v6 = vmul.f32 %v8545_v41, %v4017_v37 }
 0xd4a   : > { %v6189_v2 = vpop.eup %6188 }
 0xd4b   : > { %v6191_v60 = vpop.eup %6190  ;;  %v4019_v46 = vmul.f32 %v6189_v2, %v8516_v0  ;;  %v8639_v45 = vadd.f32 %v8555_v53, %v4039_v6 }
 0xd4c   : > { %v4018_v16 = vmul.f32 %v6191_v60, %v8524_v42 }
 0xd4d   : > { %v4041_v14 = vmul.f32 %v8545_v41, %v4019_v46 }
 0xd4e   : > { %v6193_v51 = vpop.eup %6192  ;;  %v4040_v36 = vmul.f32 %v8545_v41, %v4018_v16 }
 0xd4f   : > { %v4020_v50 = vmul.f32 %v6193_v51, %v8532_v13  ;;  %v8648_v43 = vadd.f32 %v8555_v53, %v4041_v14 }
 0xd50   : > { %v8642_v15 = vadd.f32 %v8555_v53, %v4040_v36 }
 0xd51   : > { %v4042_v0 = vmul.f32 %v8545_v41, %v4020_v50  ;;  %v5899_v41 = vld [vmem:[%s6739_s6 + $0x30] sm:$0xff]  }
 0xd52   : > { %v4071_v42 = vpack.c.bf16 %v8642_v15, %v8639_v45  ;;  %5709 = vmatprep.subr.bf16.mxu0 %v5899_v41  ;;  %5740 = vmatprep.subr.bf16.mxu1 %v5899_v41 }
 0xd53   : > { %v8651_v13 = vadd.f32 %v8555_v53, %v4042_v0  ;;  %5710 = vmatpush3.bf16.msra.mxu0 %v5899_v41  ;;  %5748 = vmatpush3.bf16.msra.mxu1 %v5899_v41  ;;  %v5900_v53 = vld [vmem:[%s6739_s6 + $0x28] sm:$0xff]  }
 0xd54   : > { %5703 = vmatprep.mubr.msk.bf16.mxu0 %vm1132_vm1, %v4071_v42  ;;  %5711 = vmatprep.subr.bf16.mxu0 %v5900_v53 }
 0xd55   : > { %v4072_v7 = vpack.c.bf16 %v8651_v13, %v8648_v43  ;;  %5741 = vmatprep.subr.bf16.mxu1 %v5900_v53 }
 0xd57   : > { %5704 = vmatmul.mubr.msk.bf16.gmra.mxu0 %vm1132_vm1, %v4072_v7  ;;  %5749 = vmatpush3.bf16.msra.mxu1 %v5900_v53 }
 0xd58   : > { %5712 = vmatpush3.bf16.msra.mxu0 %v5900_v53  ;;  %5742 = vmatprep.subr.bf16.mxu1 %v5901_v11 }
 0xd59   : > { %5713 = vmatprep.subr.bf16.mxu0 %v5901_v11 }
 0xd5b   : > { %5750 = vmatpush3.bf16.msra.mxu1 %v5901_v11 }
 0xd5c   : > { %5714 = vmatpush3.bf16.msra.mxu0 %v5901_v11  ;;  %5743 = vmatprep.subr.bf16.mxu1 %v5902_v12 }
 0xd5d   : > { %5715 = vmatprep.subr.bf16.mxu0 %v5902_v12 }
 0xd5f   : > { %5751 = vmatpush3.bf16.msra.mxu1 %v5902_v12 }
 0xd60   : > { %5716 = vmatpush3.bf16.msra.mxu0 %v5902_v12  ;;  %5744 = vmatprep.subr.bf16.mxu1 %v5903_v22 }
 0xd61   : > { %5717 = vmatprep.subr.bf16.mxu0 %v5903_v22 }
 0xd63   : > { %5752 = vmatpush3.bf16.msra.mxu1 %v5903_v22 }
 0xd64   : > { %5718 = vmatpush3.bf16.msra.mxu0 %v5903_v22  ;;  %5745 = vmatprep.subr.bf16.mxu1 %v5904_v24 }
 0xd65   : > { %5719 = vmatprep.subr.bf16.mxu0 %v5904_v24 }
 0xd67   : > { %5753 = vmatpush3.bf16.msra.mxu1 %v5904_v24 }
 0xd68   : > { %5720 = vmatpush3.bf16.msra.mxu0 %v5904_v24  ;;  %5746 = vmatprep.subr.bf16.mxu1 %v5905_v47 }
 0xd69   : > { %5721 = vmatprep.subr.bf16.mxu0 %v5905_v47 }
 0xd6b   : > { %5754 = vmatpush3.bf16.msra.mxu1 %v5905_v47 }
 0xd6c   : > { %5722 = vmatpush3.bf16.msra.mxu0 %v5905_v47 }
 0xddf   : > { %v5693_v40 = vpop.f32.mrf.mxu0 }
 0xde0   : > { %v8673_v56 = vadd.f32 %v5693_v40, %v8670_v5 }
 0xde1   : > { %v4170_v59 = vpop.f32.mrf.mxu0 }
 0xde2   : > { %v4251_v25 = vmul.f32 0.044715, %v8673_v56  ;;  %v8677_v62 = vadd.f32 %v8670_v5, %v4170_v59 }
 0xde3   : > { %v5694_v44 = vpop.f32.mrf.mxu0 }
 0xde4   : > { %v4267_v28 = vmul.f32 %v4251_v25, %v8673_v56  ;;  %v4249_v39 = vmul.f32 0.044715, %v8677_v62  ;;  %v8682_v1 = vadd.f32 %v5694_v44, %v8670_v5 }
 0xde5   : > { %v4173_v31 = vpop.f32.mrf.mxu0 }
 0xde6   : > { %v4283_v38 = vmul.f32 %v4267_v28, %v8673_v56  ;;  %v4265_v55 = vmul.f32 %v4249_v39, %v8677_v62  ;;  %v4252_v35 = vmul.f32 0.044715, %v8682_v1  ;;  %v8688_v17 = vadd.f32 %v8670_v5, %v4173_v31 }
 0xde8   : > { %v4299_v21 = vadd.f32 %v4283_v38, %v8673_v56  ;;  %v4281_v48 = vmul.f32 %v4265_v55, %v8677_v62  ;;  %v4268_v19 = vmul.f32 %v4252_v35, %v8682_v1  ;;  %v4250_v54 = vmul.f32 0.044715, %v8688_v17 }
 0xdea   : > { %v4315_v18 = vmul.f32 0.7978846, %v4299_v21  ;;  %v4284_v29 = vmul.f32 %v4268_v19, %v8682_v1  ;;  %v4297_v58 = vadd.f32 %v4281_v48, %v8677_v62  ;;  %v4266_v33 = vmul.f32 %v4250_v54, %v8688_v17 }
 0xdeb   : > { %v5697_v34 = vpop.f32.mrf.mxu0 }
 0xdec   : > { %v8698_v49 = vadd.f32 %v5697_v34, %v8670_v5  ;;  %v4300_v30 = vadd.f32 %v4284_v29, %v8682_v1  ;;  %v4313_v37 = vmul.f32 0.7978846, %v4297_v58  ;;  %6194 = vtanh.f32 %v4315_v18 }
 0xded   : > { %v4186_v57 = vpop.f32.mrf.mxu0  ;;  %v4282_v2 = vmul.f32 %v4266_v33, %v8688_v17 }
 0xdee   : > { %v4255_v60 = vmul.f32 0.044715, %v8698_v49  ;;  %v8704_v46 = vadd.f32 %v8670_v5, %v4186_v57  ;;  %v4316_v16 = vmul.f32 0.7978846, %v4300_v30  ;;  %6196 = vtanh.f32 %v4313_v37 }
 0xdef   : > { %v5698_v6 = vpop.f32.mrf.mxu0  ;;  %v4298_v14 = vadd.f32 %v4282_v2, %v8688_v17  ;;  %v4235_v2 = vmul.f32 0.5, %v8673_v56  ;;  %v4234_v56 = vmul.f32 0.5, %v8688_v17 }
 0xdf0   : > { %v4271_v51 = vmul.f32 %v4255_v60, %v8698_v49  ;;  %v4253_v36 = vmul.f32 0.044715, %v8704_v46  ;;  %v8709_v50 = vadd.f32 %v5698_v6, %v8670_v5  ;;  %6198 = vtanh.f32 %v4316_v16 }
 0xdf1   : > { %v4189_v0 = vpop.f32.mrf.mxu0  ;;  %v4314_v53 = vmul.f32 0.7978846, %v4298_v14  ;;  %v4236_v16 = vmul.f32 0.5, %v8682_v1 }
 0xdf2   : > { %v4287_v42 = vmul.f32 %v4271_v51, %v8698_v49  ;;  %v4269_v7 = vmul.f32 %v4253_v36, %v8704_v46  ;;  %v4256_v27 = vmul.f32 0.044715, %v8709_v50  ;;  %v8716_v41 = vadd.f32 %v8670_v5, %v4189_v0 }
 0xdf3   : > { %6200 = vtanh.f32 %v4314_v53  ;;  %v4233_v53 = vmul.f32 0.5, %v8677_v62 }
 0xdf4   : > { %v4303_v11 = vadd.f32 %v4287_v42, %v8698_v49  ;;  %v4285_v12 = vmul.f32 %v4269_v7, %v8704_v46  ;;  %v4272_v22 = vmul.f32 %v4256_v27, %v8709_v50  ;;  %v4254_v24 = vmul.f32 0.044715, %v8716_v41 }
 0xdf6   : > { %v4319_v47 = vmul.f32 0.7978846, %v4303_v11  ;;  %v4288_v40 = vmul.f32 %v4272_v22, %v8709_v50  ;;  %v4301_v59 = vadd.f32 %v4285_v12, %v8704_v46  ;;  %v4270_v25 = vmul.f32 %v4254_v24, %v8716_v41 }
 0xdf8   : > { %v4304_v44 = vadd.f32 %v4288_v40, %v8709_v50  ;;  %v4317_v28 = vmul.f32 0.7978846, %v4301_v59  ;;  %v4286_v39 = vmul.f32 %v4270_v25, %v8716_v41  ;;  %6202 = vtanh.f32 %v4319_v47 }
 0xdf9   : > { %v6195_v38 = vpop.eup %6194 }
 0xdfa   : > { %v4320_v31 = vmul.f32 0.7978846, %v4304_v44  ;;  %v4302_v35 = vadd.f32 %v4286_v39, %v8716_v41  ;;  %6204 = vtanh.f32 %v4317_v28  ;;  %v4347_v60 = vadd.f32 1.0, %v6195_v38 }
 0xdfb   : > { %v5701_v55 = vpop.f32.mrf.mxu0  ;;  %v6197_v21 = vpop.eup %6196 }
 0xdfc   : > { %6206 = vtanh.f32 %v4320_v31  ;;  %v8729_v48 = vadd.f32 %v5701_v55, %v8670_v5  ;;  %v4318_v54 = vmul.f32 0.7978846, %v4302_v35  ;;  %v4345_v51 = vadd.f32 1.0, %v6197_v21 }
 0xdfd   : > { %v4202_v19 = vpop.f32.mrf.mxu0  ;;  %v6199_v18 = vpop.eup %6198  ;;  %v4363_v59 = vmul.f32 %v4347_v60, %v4235_v2  ;;  %v4237_v60 = vmul.f32 0.5, %v8704_v46 }
 0xdfe   : > { %v4259_v29 = vmul.f32 0.044715, %v8729_v48  ;;  %v8733_v34 = vadd.f32 %v8670_v5, %v4202_v19  ;;  %v4348_v58 = vadd.f32 1.0, %v6199_v18  ;;  %6208 = vtanh.f32 %v4318_v54 }
 0xdff   : > { %v5702_v33 = vpop.f32.mrf.mxu0  ;;  %v4361_v47 = vmul.f32 %v4345_v51, %v4233_v53  ;;  %v4239_v51 = vmul.f32 0.5, %v8698_v49 }
 0xe00   : > { %v4275_v30 = vmul.f32 %v4259_v29, %v8729_v48  ;;  %v4257_v57 = vmul.f32 0.044715, %v8733_v34  ;;  %v8738_v37 = vadd.f32 %v5702_v33, %v8670_v5  ;;  %v6201_v36 = vpop.eup %6200  ;;  %v4364_v27 = vmul.f32 %v4348_v58, %v4236_v16 }
 0xe01   : > { %v4205_v6 = vpop.f32.mrf.mxu0  ;;  %v4346_v11 = vadd.f32 1.0, %v6201_v36  ;;  %v4238_v16 = vmul.f32 0.5, %v8716_v41 }
 0xe02   : > { %v4291_v14 = vmul.f32 %v4275_v30, %v8729_v48  ;;  %v4273_v0 = vmul.f32 %v4257_v57, %v8733_v34  ;;  %v4260_v42 = vmul.f32 0.044715, %v8738_v37  ;;  %v8746_v7 = vadd.f32 %v8670_v5, %v4205_v6 }
 0xe03   : > { %v4362_v40 = vmul.f32 %v4346_v11, %v4234_v56  ;;  %v4378_v38 = vpack.c.bf16 %v4364_v27, %v4363_v59  ;;  %v4240_v57 = vmul.f32 0.5, %v8709_v50  ;;  %v4244_v59 = vmul.f32 0.5, %v8738_v37 }
 0xe04   : > { %v4307_v1 = vadd.f32 %v4291_v14, %v8729_v48  ;;  %v4289_v12 = vmul.f32 %v4273_v0, %v8733_v34  ;;  %v4276_v22 = vmul.f32 %v4260_v42, %v8738_v37  ;;  %v4258_v24 = vmul.f32 0.044715, %v8746_v7 }
 0xe05   : > { %v6203_v62 = vpop.eup %6202  ;;  %v4377_v39 = vpack.c.bf16 %v4362_v40, %v4361_v47 }
 0xe06   : > { %v4323_v25 = vmul.f32 0.7978846, %v4307_v1  ;;  %v4292_v44 = vmul.f32 %v4276_v22, %v8738_v37  ;;  %v4274_v28 = vmul.f32 %v4258_v24, %v8746_v7  ;;  %v4305_v17 = vadd.f32 %v4289_v12, %v8733_v34 }
 0xe07   : > { %v6205_v31 = vpop.eup %6204  ;;  %5723 = vmatprep.mubr.bf16.mxu0 %v4377_v39  ;;  %v4351_v30 = vadd.f32 1.0, %v6203_v62 }
 0xe08   : > { %v4308_v55 = vadd.f32 %v4292_v44, %v8738_v37  ;;  %v4290_v35 = vmul.f32 %v4274_v28, %v8746_v7  ;;  %v4321_v19 = vmul.f32 0.7978846, %v4305_v17  ;;  %6210 = vtanh.f32 %v4323_v25  ;;  %5724 = vmatmul.mubr.bf16.vlgmr.msra.gmra.mxu0 %v4378_v38 }
 0xe09   : > { %v6207_v21 = vpop.eup %6206  ;;  %v4349_v58 = vadd.f32 1.0, %v6205_v31  ;;  %v4367_v42 = vmul.f32 %v4351_v30, %v4239_v51  ;;  %v4241_v31 = vmul.f32 0.5, %v8733_v34  ;;  %v4242_v38 = vmul.f32 0.5, %v8746_v7 }
 0xe0a   : > { %v4352_v54 = vadd.f32 1.0, %v6207_v21  ;;  %v4324_v18 = vmul.f32 0.7978846, %v4308_v55  ;;  %v4306_v29 = vadd.f32 %v4290_v35, %v8746_v7  ;;  %6212 = vtanh.f32 %v4321_v19 }
 0xe0b   : > { %v6209_v33 = vpop.eup %6208  ;;  %v4365_v14 = vmul.f32 %v4349_v58, %v4237_v60  ;;  %v4243_v55 = vmul.f32 0.5, %v8729_v48 }
 0xe0c   : > { %6214 = vtanh.f32 %v4324_v18  ;;  %v4322_v2 = vmul.f32 0.7978846, %v4306_v29  ;;  %v4350_v6 = vadd.f32 1.0, %v6209_v33  ;;  %v4368_v36 = vmul.f32 %v4352_v54, %v4240_v57 }
 0xe0e   : > { %6216 = vtanh.f32 %v4322_v2  ;;  %v4366_v0 = vmul.f32 %v4350_v6, %v4238_v16  ;;  %v4380_v53 = vpack.c.bf16 %v4368_v36, %v4367_v42 }
 0xe10   : > { %v4379_v27 = vpack.c.bf16 %v4366_v0, %v4365_v14 }
 0xe12   : > { %5727 = vmatprep.mubr.bf16.mxu1 %v4379_v27 }
 0xe13   : > { %5728 = vmatmul.mubr.bf16.vlgmr.msra.gmra.mxu1 %v4380_v53 }
 0xe15   : > { %v6211_v56 = vpop.eup %6210 }
 0xe16   : > { %v4355_v25 = vadd.f32 1.0, %v6211_v56 }
 0xe17   : > { %v5705_v50 = vpop.f32.mrf.mxu0  ;;  %v6213_v11 = vpop.eup %6212 }
 0xe18   : > { %v4227_v1 = vadd.f32 %v5705_v50, %v8670_v5  ;;  %v4353_v40 = vadd.f32 1.0, %v6213_v11  ;;  %v4371_v58 = vmul.f32 %v4355_v25, %v4243_v55 }
 0xe19   : > { %v6215_v46 = vpop.eup %6214  ;;  %v4218_v12 = vpop.f32.mrf.mxu0 }
 0xe1a   : > { %v4263_v41 = vmul.f32 0.044715, %v4227_v1  ;;  %v4219_v22 = vadd.f32 %v8670_v5, %v4218_v12  ;;  %v4356_v49 = vadd.f32 1.0, %v6215_v46  ;;  %v4369_v37 = vmul.f32 %v4353_v40, %v4241_v31  ;;  %v8777_v31 = vld [vmem:[%s732_s27] ss:$0 sm:$0xff] }
 0xe1b   : > { %v6217_v24 = vpop.eup %6216  ;;  %v5706_v47 = vpop.f32.mrf.mxu0  ;;  %v4247_v40 = vmul.f32 0.5, %v4227_v1 }
 0xe1c   : > { %v4279_v44 = vmul.f32 %v4263_v41, %v4227_v1  ;;  %v4261_v28 = vmul.f32 0.044715, %v4219_v22  ;;  %v4230_v62 = vadd.f32 %v5706_v47, %v8670_v5  ;;  %v4354_v39 = vadd.f32 1.0, %v6217_v24 }
 0xe1d   : > { %v4221_v17 = vpop.f32.mrf.mxu0  ;;  %v4372_v35 = vmul.f32 %v4356_v49, %v4244_v59  ;;  %v4245_v49 = vmul.f32 0.5, %v4219_v22 }
 0xe1e   : > { %v4295_v21 = vmul.f32 %v4279_v44, %v4227_v1  ;;  %v4277_v19 = vmul.f32 %v4261_v28, %v4219_v22  ;;  %v4264_v54 = vmul.f32 0.044715, %v4230_v62  ;;  %v4222_v18 = vadd.f32 %v8670_v5, %v4221_v17 }
 0xe1f   : > { %v4370_v29 = vmul.f32 %v4354_v39, %v4242_v38  ;;  %v4382_v6 = vpack.c.bf16 %v4372_v35, %v4371_v58  ;;  %v4248_v12 = vmul.f32 0.5, %v4230_v62 }
 0xe20   : > { %v4311_v33 = vadd.f32 %v4295_v21, %v4227_v1  ;;  %v4293_v30 = vmul.f32 %v4277_v19, %v4219_v22  ;;  %v4280_v57 = vmul.f32 %v4264_v54, %v4230_v62  ;;  %v4262_v2 = vmul.f32 0.044715, %v4222_v18 }
 0xe21   : > { %v4381_v60 = vpack.c.bf16 %v4370_v29, %v4369_v37  ;;  %v4246_v24 = vmul.f32 0.5, %v4222_v18 }
 0xe22   : > { %v4296_v16 = vmul.f32 %v4280_v57, %v4230_v62  ;;  %v4278_v34 = vmul.f32 %v4262_v2, %v4222_v18  ;;  %v4309_v7 = vadd.f32 %v4293_v30, %v4219_v22  ;;  %v4327_v51 = vmul.f32 0.7978846, %v4311_v33 }
 0xe23   : > { %5731 = vmatprep.mubr.bf16.mxu1 %v4381_v60 }
 0xe24   : > { %v4312_v48 = vadd.f32 %v4296_v16, %v4230_v62  ;;  %v4294_v36 = vmul.f32 %v4278_v34, %v4222_v18  ;;  %5732 = vmatmul.mubr.bf16.gmra.mxu1 %v4382_v6  ;;  %v4325_v14 = vmul.f32 0.7978846, %v4309_v7 }
 0xe26   : > { %v4328_v0 = vmul.f32 0.7978846, %v4312_v48  ;;  %v4310_v5 = vadd.f32 %v4294_v36, %v4222_v18  ;;  %6218 = vtanh.f32 %v4325_v14 }
 0xe27   : > { %6220 = vtanh.f32 %v4327_v51 }
 0xe28   : > { %6222 = vtanh.f32 %v4328_v0  ;;  %v4326_v42 = vmul.f32 0.7978846, %v4310_v5 }
 0xe2a   : > { %6224 = vtanh.f32 %v4326_v42 }
 0xe33   : > { %v6219_v27 = vpop.eup %6218 }
 0xe34   : > { %v6221_v53 = vpop.eup %6220  ;;  %v4357_v50 = vadd.f32 1.0, %v6219_v27 }
 0xe35   : > { %v6223_v56 = vpop.eup %6222  ;;  %v4359_v41 = vadd.f32 1.0, %v6221_v53 }
 0xe36   : > { %v4360_v11 = vadd.f32 1.0, %v6223_v56  ;;  %v4373_v25 = vmul.f32 %v4357_v50, %v4245_v49 }
 0xe37   : > { %v6225_v46 = vpop.eup %6224  ;;  %v4375_v28 = vmul.f32 %v4359_v41, %v4247_v40 }
 0xe38   : > { %v4358_v47 = vadd.f32 1.0, %v6225_v46  ;;  %v4376_v59 = vmul.f32 %v4360_v11, %v4248_v12 }
 0xe3a   : > { %v4374_v44 = vmul.f32 %v4358_v47, %v4246_v24  ;;  %v4384_v17 = vpack.c.bf16 %v4376_v59, %v4375_v28 }
 0xe3c   : > { %v4383_v39 = vpack.c.bf16 %v4374_v44, %v4373_v25 }
 0xe3e   : > { %5735 = vmatprep.mubr.bf16.mxu1 %v4383_v39 }
 0xe3f   : > { %5736 = vmatmul.mubr.bf16.gmra.mxu1 %v4384_v17 }
 0xec8   : > { %v5725_v62 = vpop.f32.mrf.mxu0 }
 0xec9   : > { %v4499_v22 = vadd.f32 %v5725_v62, %v8777_v31 }
 0xeca   : > { %v4490_v38 = vpop.f32.mrf.mxu0 }
 0xecb   : > { %v8781_v1 = vadd.f32 %v4499_v22, %v8571_v20  ;;  %v4491_v55 = vadd.f32 %v8777_v31, %v4490_v38 }
 0xecc   : > { %v5726_v35 = vpop.f32.mrf.mxu0 }
 0xecd   : > { %v8785_v21 = vadd.f32 %v4491_v55, %v8561_v10  ;;  %v4502_v19 = vadd.f32 %v5726_v35, %v8777_v31  ;;  %v4577_v54 = vsel %vm1132_vm1, %v8781_v1, 0.0 }
 0xece   : > { %4578 = vadd.xlane.f32.xlu1 %v4577_v54  ;;  %v4493_v18 = vpop.f32.mrf.mxu0 }
 0xecf   : > { %v8791_v37 = vadd.f32 %v4502_v19, %v8574_v63  ;;  %v4494_v29 = vadd.f32 %v8777_v31, %v4493_v18  ;;  %v4571_v10 = vsel %vm1132_vm1, %v8785_v21, 0.0 }
 0xed1   : > { %v8795_v20 = vadd.f32 %v4494_v29, %v8564_v8  ;;  %v4580_v58 = vsel %vm1132_vm1, %v8791_v37, 0.0 }
 0xed2   : > { %4581 = vadd.xlane.f32.xlu0 %v4580_v58  ;;  %4572 = vadd.xlane.f32.xlu1 %v4571_v10 }
 0xed3   : > { %v5729_v33 = vpop.f32.mrf.mxu1  ;;  %v4574_v8 = vsel %vm1132_vm1, %v8795_v20, 0.0 }
 0xed4   : > { %v4515_v30 = vadd.f32 %v5729_v33, %v8777_v31 }
 0xed5   : > { %v4506_v57 = vpop.f32.mrf.mxu1 }
 0xed6   : > { %v8803_v63 = vadd.f32 %v4515_v30, %v8597_v26  ;;  %v4507_v2 = vadd.f32 %v8777_v31, %v4506_v57  ;;  %4575 = vadd.xlane.f32.xlu0 %v4574_v8 }
 0xed7   : > { %v5730_v60 = vpop.f32.mrf.mxu1 }
 0xed8   : > { %v8809_v16 = vadd.f32 %v4507_v2, %v8585_v52  ;;  %v4518_v34 = vadd.f32 %v5730_v60, %v8777_v31  ;;  %v4589_v6 = vsel %vm1132_vm1, %v8803_v63, 0.0 }
 0xed9   : > { %v4509_v7 = vpop.f32.mrf.mxu1  ;;  %4590 = vadd.xlane.f32.xlu1 %v4589_v6 }
 0xeda   : > { %v8815_v26 = vadd.f32 %v4518_v34, %v8600_v3  ;;  %v4510_v51 = vadd.f32 %v8777_v31, %v4509_v7  ;;  %v4583_v52 = vsel %vm1132_vm1, %v8809_v16, 0.0 }
 0xedc   : > { %v8819_v48 = vadd.f32 %v4510_v51, %v8589_v9  ;;  %v4592_v36 = vsel %vm1132_vm1, %v8815_v26, 0.0 }
 0xedd   : > { %4593 = vadd.xlane.f32.xlu0 %v4592_v36  ;;  %4584 = vadd.xlane.f32.xlu1 %v4583_v52 }
 0xede   : > { %v4586_v14 = vsel %vm1132_vm1, %v8819_v48, 0.0 }
 0xee1   : > { %4587 = vadd.xlane.f32.xlu0 %v4586_v14 }
 0xee4   : > { %v5733_v0 = vpop.f32.mrf.mxu1 }
 0xee5   : > { %v4531_v3 = vadd.f32 %v5733_v0, %v8777_v31 }
 0xee6   : > { %v4522_v5 = vpop.f32.mrf.mxu1 }
 0xee7   : > { %v8829_v42 = vadd.f32 %v4531_v3, %v8623_v23  ;;  %v4523_v9 = vadd.f32 %v8777_v31, %v4522_v5 }
 0xee8   : > { %v5734_v27 = vpop.f32.mrf.mxu1 }
 0xee9   : > { %v8833_v53 = vadd.f32 %v4523_v9, %v8612_v61  ;;  %v4534_v56 = vadd.f32 %v5734_v27, %v8777_v31  ;;  %v4601_v50 = vsel %vm1132_vm1, %v8829_v42, 0.0 }
 0xeea   : > { %v4525_v11 = vpop.f32.mrf.mxu1  ;;  %4602 = vadd.xlane.f32.xlu1 %v4601_v50 }
 0xeeb   : > { %v8839_v46 = vadd.f32 %v4534_v56, %v8626_v32  ;;  %v4526_v12 = vadd.f32 %v8777_v31, %v4525_v11  ;;  %v4595_v61 = vsel %vm1132_vm1, %v8833_v53, 0.0 }
 0xeed   : > { %v8843_v23 = vadd.f32 %v4526_v12, %v8615_v4  ;;  %v4604_v41 = vsel %vm1132_vm1, %v8839_v46, 0.0 }
 0xeee   : > { %4605 = vadd.xlane.f32.xlu0 %v4604_v41  ;;  %4596 = vadd.xlane.f32.xlu1 %v4595_v61 }
 0xeef   : > { %v4598_v49 = vsel %vm1132_vm1, %v8843_v23, 0.0 }
 0xef2   : > { %4599 = vadd.xlane.f32.xlu0 %v4598_v49 }
 0xeff   : > { %v5737_v24 = vpop.f32.mrf.mxu1 }
 0xf00   : > { %v4547_v47 = vadd.f32 %v5737_v24, %v8777_v31 }
 0xf01   : > { %v4538_v32 = vpop.f32.mrf.mxu1 }
 0xf02   : > { %v4539_v40 = vadd.f32 %v8777_v31, %v4538_v32  ;;  %v8857_v44 = vadd.f32 %v4547_v47, %v8648_v43 }
 0xf03   : > { %v5738_v4 = vpop.f32.mrf.mxu1 }
 0xf04   : > { %v8854_v59 = vadd.f32 %v4539_v40, %v8639_v45  ;;  %v4550_v28 = vadd.f32 %v5738_v4, %v8777_v31  ;;  %v4613_v43 = vsel %vm1132_vm1, %v8857_v44, 0.0 }
 0xf05   : > { %v4541_v25 = vpop.f32.mrf.mxu1 }
 0xf06   : > { %v4542_v39 = vadd.f32 %v8777_v31, %v4541_v25  ;;  %v4607_v17 = vsel %vm1132_vm1, %v8854_v59, 0.0  ;;  %v8867_v22 = vadd.f32 %v4550_v28, %v8651_v13 }
 0xf07   : > { %4608 = vadd.xlane.f32.xlu1 %v4607_v17 }
 0xf08   : > { %v8864_v62 = vadd.f32 %v4542_v39, %v8642_v15  ;;  %v4616_v31 = vsel %vm1132_vm1, %v8867_v22, 0.0 }
 0xf0a   : > { %v4610_v45 = vsel %vm1132_vm1, %v8864_v62, 0.0 }
 0xf0b   : > { %4611 = vadd.xlane.f32.xlu0 %v4610_v45  ;;  %4614 = vadd.xlane.f32.xlu1 %v4613_v43 }
 0xf0f   : > { %4617 = vadd.xlane.f32.xlu0 %v4616_v31 }
 0xf57   : > { %v4579_v38 = vpop.xlane.xlu1 %4578 }
 0xf58   : > { %v4621_v55 = vmul.f32 0.015625, %v4579_v38 }
 0xf5a   : > { %v8876_v15 = vsub.f32 %v8781_v1, %v4621_v55 }
 0xf5b   : > { %v4582_v35 = vpop.xlane.xlu0 %4581  ;;  %v4573_v13 = vpop.xlane.xlu1 %4572 }
 0xf5c   : > { %v4622_v19 = vmul.f32 0.015625, %v4582_v35  ;;  %v4619_v54 = vmul.f32 0.015625, %v4573_v13  ;;  %v4653_v18 = vmul.f32 %v8876_v15, %v8876_v15 }
 0xf5e   : > { %v8881_v29 = vsub.f32 %v8791_v37, %v4622_v19  ;;  %v8884_v58 = vsub.f32 %v8785_v21, %v4619_v54  ;;  %v4673_v10 = vsel %vm1132_vm1, %v4653_v18, 0.0 }
 0xf5f   : > { %v4576_v33 = vpop.xlane.xlu0 %4575  ;;  %4674 = vadd.xlane.f32.xlu1 %v4673_v10 }
 0xf60   : > { %v4620_v30 = vmul.f32 0.015625, %v4576_v33  ;;  %v4654_v1 = vmul.f32 %v8881_v29, %v8881_v29  ;;  %v4651_v57 = vmul.f32 %v8884_v58, %v8884_v58 }
 0xf62   : > { %v4591_v2 = vpop.xlane.xlu1 %4590  ;;  %v8892_v8 = vsub.f32 %v8795_v20, %v4620_v30  ;;  %v4676_v60 = vsel %vm1132_vm1, %v4654_v1, 0.0  ;;  %v4667_v21 = vsel %vm1132_vm1, %v4651_v57, 0.0 }
 0xf63   : > { %v4625_v37 = vmul.f32 0.015625, %v4591_v2  ;;  %4677 = vadd.xlane.f32.xlu0 %v4676_v60  ;;  %4668 = vadd.xlane.f32.xlu1 %v4667_v21 }
 0xf64   : > { %v4652_v6 = vmul.f32 %v8892_v8, %v8892_v8 }
 0xf65   : > { %v8897_v34 = vsub.f32 %v8803_v63, %v4625_v37 }
 0xf66   : > { %v4594_v7 = vpop.xlane.xlu0 %4593  ;;  %v4585_v51 = vpop.xlane.xlu1 %4584  ;;  %v4670_v20 = vsel %vm1132_vm1, %v4652_v6, 0.0 }
 0xf67   : > { %v4626_v36 = vmul.f32 0.015625, %v4594_v7  ;;  %v4623_v52 = vmul.f32 0.015625, %v4585_v51  ;;  %v4657_v14 = vmul.f32 %v8897_v34, %v8897_v34  ;;  %4671 = vadd.xlane.f32.xlu0 %v4670_v20 }
 0xf69   : > { %v8905_v0 = vsub.f32 %v8815_v26, %v4626_v36  ;;  %v8908_v3 = vsub.f32 %v8809_v16, %v4623_v52  ;;  %v4685_v63 = vsel %vm1132_vm1, %v4657_v14, 0.0 }
 0xf6a   : > { %v4588_v5 = vpop.xlane.xlu0 %4587  ;;  %4686 = vadd.xlane.f32.xlu1 %v4685_v63 }
 0xf6b   : > { %v4624_v9 = vmul.f32 0.015625, %v4588_v5  ;;  %v4658_v27 = vmul.f32 %v8905_v0, %v8905_v0  ;;  %v4655_v56 = vmul.f32 %v8908_v3, %v8908_v3 }
 0xf6d   : > { %v8916_v50 = vsub.f32 %v8819_v48, %v4624_v9  ;;  %v4688_v26 = vsel %vm1132_vm1, %v4658_v27, 0.0  ;;  %v4679_v11 = vsel %vm1132_vm1, %v4655_v56, 0.0 }
 0xf6e   : > { %4689 = vadd.xlane.f32.xlu0 %v4688_v26  ;;  %4680 = vadd.xlane.f32.xlu1 %v4679_v11 }
 0xf6f   : > { %v4656_v16 = vmul.f32 %v8916_v50, %v8916_v50 }
 0xf71   : > { %v4682_v12 = vsel %vm1132_vm1, %v4656_v16, 0.0 }
 0xf72   : > { %4683 = vadd.xlane.f32.xlu0 %v4682_v12 }
 0xf73   : > { %v4603_v41 = vpop.xlane.xlu1 %4602 }
 0xf74   : > { %v4629_v61 = vmul.f32 0.015625, %v4603_v41 }
 0xf76   : > { %v8924_v49 = vsub.f32 %v8829_v42, %v4629_v61 }
 0xf77   : > { %v4606_v24 = vpop.xlane.xlu0 %4605  ;;  %v4597_v48 = vpop.xlane.xlu1 %4596 }
 0xf78   : > { %v4630_v32 = vmul.f32 0.015625, %v4606_v24  ;;  %v4627_v47 = vmul.f32 0.015625, %v4597_v48  ;;  %v4661_v40 = vmul.f32 %v8924_v49, %v8924_v49 }
 0xf7a   : > { %v8929_v4 = vsub.f32 %v8839_v46, %v4630_v32  ;;  %v8932_v25 = vsub.f32 %v8833_v53, %v4627_v47  ;;  %v4697_v28 = vsel %vm1132_vm1, %v4661_v40, 0.0  ;;  %v8976_v40 = vld [vmem:[%s735_s23] ss:$0 sm:$0xff] }
 0xf7b   : > { %v4600_v39 = vpop.xlane.xlu0 %4599  ;;  %4698 = vadd.xlane.f32.xlu1 %v4697_v28 }
 0xf7c   : > { %v4628_v17 = vmul.f32 0.015625, %v4600_v39  ;;  %v4662_v42 = vmul.f32 %v8929_v4, %v8929_v4  ;;  %v4659_v45 = vmul.f32 %v8932_v25, %v8932_v25 }
 0xf7e   : > { %v8940_v43 = vsub.f32 %v8843_v23, %v4628_v17  ;;  %v4700_v46 = vsel %vm1132_vm1, %v4662_v42, 0.0  ;;  %v4691_v31 = vsel %vm1132_vm1, %v4659_v45, 0.0  ;;  %v8984_v42 = vld [vmem:[%s738_s3] ss:$0 sm:$0xff]  ;;  %s9230_s3 = sld [smem:[#allocation33_spill]] }
 0xf7f   : > { %4701 = vadd.xlane.f32.xlu0 %v4700_v46  ;;  %4692 = vadd.xlane.f32.xlu1 %v4691_v31 }
 0xf80   : > { %v4660_v53 = vmul.f32 %v8940_v43, %v8940_v43 }
 0xf82   : > { %v4694_v38 = vsel %vm1132_vm1, %v4660_v53, 0.0 }
 0xf83   : > { %4695 = vadd.xlane.f32.xlu0 %v4694_v38 }
 0xf90   : > { %v4609_v55 = vpop.xlane.xlu1 %4608 }
 0xf91   : > { %v4631_v35 = vmul.f32 0.015625, %v4609_v55 }
 0xf93   : > { %v8948_v13 = vsub.f32 %v8854_v59, %v4631_v35 }
 0xf94   : > { %v4612_v19 = vpop.xlane.xlu0 %4611  ;;  %v4615_v23 = vpop.xlane.xlu1 %4614 }
 0xf95   : > { %v4632_v54 = vmul.f32 0.015625, %v4612_v19  ;;  %v4633_v18 = vmul.f32 0.015625, %v4615_v23  ;;  %v4663_v10 = vmul.f32 %v8948_v13, %v8948_v13 }
 0xf97   : > { %v8953_v33 = vsub.f32 %v8864_v62, %v4632_v54  ;;  %v8956_v30 = vsub.f32 %v8857_v44, %v4633_v18  ;;  %v4703_v1 = vsel %vm1132_vm1, %v4663_v10, 0.0 }
 0xf98   : > { %v4618_v57 = vpop.xlane.xlu0 %4617  ;;  %4704 = vadd.xlane.f32.xlu1 %v4703_v1 }
 0xf99   : > { %v4634_v2 = vmul.f32 0.015625, %v4618_v57  ;;  %v4664_v59 = vmul.f32 %v8953_v33, %v8953_v33  ;;  %v4665_v37 = vmul.f32 %v8956_v30, %v8956_v30 }
 0xf9b   : > { %v8964_v60 = vsub.f32 %v8867_v22, %v4634_v2  ;;  %v4706_v62 = vsel %vm1132_vm1, %v4664_v59, 0.0  ;;  %v4709_v21 = vsel %vm1132_vm1, %v4665_v37, 0.0 }
 0xf9c   : > { %4707 = vadd.xlane.f32.xlu0 %v4706_v62  ;;  %4710 = vadd.xlane.f32.xlu1 %v4709_v21 }
 0xf9d   : > { %v4666_v44 = vmul.f32 %v8964_v60, %v8964_v60 }
 0xf9f   : > { %v4712_v6 = vsel %vm1132_vm1, %v4666_v44, 0.0 }
 0xfa0   : > { %4713 = vadd.xlane.f32.xlu0 %v4712_v6 }
 0xfe8   : > { %v4675_v7 = vpop.xlane.xlu1 %4674 }
 0xfe9   : > { %v4717_v51 = vmul.f32 0.015625, %v4675_v7 }
 0xfeb   : > { %v4733_v36 = vadd.f32 1e-12, %v4717_v51 }
 0xfec   : > { %v4678_v52 = vpop.xlane.xlu0 %4677  ;;  %v4669_v20 = vpop.xlane.xlu1 %4668 }
 0xfed   : > { %6226 = vrsqrt.f32 %v4733_v36  ;;  %v4718_v22 = vmul.f32 0.015625, %v4678_v52  ;;  %v4715_v14 = vmul.f32 0.015625, %v4669_v20 }
 0xfef   : > { %v4734_v63 = vadd.f32 1e-12, %v4718_v22  ;;  %v4731_v5 = vadd.f32 1e-12, %v4715_v14 }
 0xff0   : > { %v4672_v9 = vpop.xlane.xlu0 %4671 }
 0xff1   : > { %6228 = vrsqrt.f32 %v4734_v63  ;;  %v4716_v27 = vmul.f32 0.015625, %v4672_v9 }
 0xff2   : > { %6230 = vrsqrt.f32 %v4731_v5 }
 0xff3   : > { %v4687_v56 = vpop.xlane.xlu1 %4686  ;;  %v4732_v26 = vadd.f32 1e-12, %v4716_v27 }
 0xff4   : > { %v4721_v11 = vmul.f32 0.015625, %v4687_v56 }
 0xff5   : > { %6232 = vrsqrt.f32 %v4732_v26 }
 0xff6   : > { %v4737_v16 = vadd.f32 1e-12, %v4721_v11 }
 0xff7   : > { %v4690_v12 = vpop.xlane.xlu0 %4689  ;;  %v4681_v41 = vpop.xlane.xlu1 %4680 }
 0xff8   : > { %6234 = vrsqrt.f32 %v4737_v16  ;;  %v4722_v61 = vmul.f32 0.015625, %v4690_v12  ;;  %v4719_v24 = vmul.f32 0.015625, %v4681_v41 }
 0xffa   : > { %v4738_v48 = vadd.f32 1e-12, %v4722_v61  ;;  %v4735_v32 = vadd.f32 1e-12, %v4719_v24  ;;  %v6227_v47 = vpop.eup %6226 }
 0xffb   : > { %v4684_v28 = vpop.xlane.xlu0 %4683  ;;  %v4765_v39 = vmul.f32 %v6227_v47, %v8876_v15 }
 0xffc   : > { %6236 = vrsqrt.f32 %v4738_v48  ;;  %v4720_v17 = vmul.f32 0.015625, %v4684_v28 }
 0xffd   : > { %6238 = vrsqrt.f32 %v4735_v32  ;;  %v4787_v45 = vmul.f32 %v8976_v40, %v4765_v39 }
 0xffe   : > { %v4736_v46 = vadd.f32 1e-12, %v4720_v17  ;;  %v6229_v31 = vpop.eup %6228 }
 0xfff   : > { %v6231_v53 = vpop.eup %6230  ;;  %v4809_v38 = vadd.f32 %v8984_v42, %v4787_v45  ;;  %v4766_v55 = vmul.f32 %v6229_v31, %v8881_v29 }
0x1000   : > { %6240 = vrsqrt.f32 %v4736_v46  ;;  %v4763_v15 = vmul.f32 %v6231_v53, %v8884_v58 }
0x1001   : > { %4825 = vst.msk [vmem:[#allocation2 + $0x10] sm:$0xff] %vm1132_vm1, %v4809_v38  ;;  %4841 = vst.msk [vmem:[%s9230_s3 + $0x10] sm:$0xff] %vm1132_vm1, %v4809_v38  ;;  %v4788_v35 = vmul.f32 %v8976_v40, %v4766_v55 }
0x1002   : > { %v6233_v19 = vpop.eup %6232  ;;  %v4785_v23 = vmul.f32 %v8976_v40, %v4763_v15 }
0x1003   : > { %v4810_v18 = vadd.f32 %v8984_v42, %v4788_v35  ;;  %v4764_v29 = vmul.f32 %v6233_v19, %v8892_v8 }
0x1004   : > { %v4699_v54 = vpop.xlane.xlu1 %4698  ;;  %v4807_v58 = vadd.f32 %v8984_v42, %v4785_v23 }
0x1005   : > { %v4725_v10 = vmul.f32 0.015625, %v4699_v54  ;;  %v6235_v1 = vpop.eup %6234  ;;  %4826 = vst.msk [vmem:[#allocation2 + $0x18] sm:$0xff] %vm1132_vm1, %v4810_v18  ;;  %4842 = vst.msk [vmem:[%s9230_s3 + $0x18] sm:$0xff] %vm1132_vm1, %v4810_v18  ;;  %v4786_v57 = vmul.f32 %v8976_v40, %v4764_v29 }
0x1006   : > { %v4769_v2 = vmul.f32 %v6235_v1, %v8897_v34  ;;  %4823 = vst.msk [vmem:[#allocation2] sm:$0xff] %vm1132_vm1, %v4807_v58  ;;  %4839 = vst.msk [vmem:[%s9230_s3] sm:$0xff] %vm1132_vm1, %v4807_v58 }
0x1007   : > { %v4741_v59 = vadd.f32 1e-12, %v4725_v10  ;;  %v4808_v62 = vadd.f32 %v8984_v42, %v4786_v57 }
0x1008   : > { %v4702_v8 = vpop.xlane.xlu0 %4701  ;;  %v4693_v37 = vpop.xlane.xlu1 %4692  ;;  %v4791_v21 = vmul.f32 %v8976_v40, %v4769_v2 }
0x1009   : > { %6242 = vrsqrt.f32 %v4741_v59  ;;  %v4726_v44 = vmul.f32 0.015625, %v4702_v8  ;;  %v6237_v6 = vpop.eup %6236  ;;  %v4723_v7 = vmul.f32 0.015625, %v4693_v37  ;;  %4824 = vst.msk [vmem:[#allocation2 + $0x8] sm:$0xff] %vm1132_vm1, %v4808_v62  ;;  %4840 = vst.msk [vmem:[%s9230_s3 + $0x8] sm:$0xff] %vm1132_vm1, %v4808_v62 }
0x100a   : > { %v6239_v51 = vpop.eup %6238  ;;  %v4813_v34 = vadd.f32 %v8984_v42, %v4791_v21  ;;  %v4770_v36 = vmul.f32 %v6237_v6, %v8905_v0 }
0x100b   : > { %v4742_v52 = vadd.f32 1e-12, %v4726_v44  ;;  %v4767_v20 = vmul.f32 %v6239_v51, %v8908_v3  ;;  %v4739_v22 = vadd.f32 1e-12, %v4723_v7 }
0x100c   : > { %v4696_v14 = vpop.xlane.xlu0 %4695  ;;  %4829 = vst.msk [vmem:[#allocation2 + $0x30] sm:$0xff] %vm1132_vm1, %v4813_v34  ;;  %4845 = vst.msk [vmem:[%s9230_s3 + $0x30] sm:$0xff] %vm1132_vm1, %v4813_v34  ;;  %v4792_v63 = vmul.f32 %v8976_v40, %v4770_v36 }
0x100d   : > { %6244 = vrsqrt.f32 %v4742_v52  ;;  %v4724_v5 = vmul.f32 0.015625, %v4696_v14  ;;  %v6241_v9 = vpop.eup %6240  ;;  %v4789_v27 = vmul.f32 %v8976_v40, %v4767_v20 }
0x100e   : > { %6246 = vrsqrt.f32 %v4739_v22  ;;  %v4814_v0 = vadd.f32 %v8984_v42, %v4792_v63  ;;  %v4768_v3 = vmul.f32 %v6241_v9, %v8916_v50 }
0x100f   : > { %v4740_v56 = vadd.f32 1e-12, %v4724_v5  ;;  %v4811_v26 = vadd.f32 %v8984_v42, %v4789_v27 }
0x1010   : > { %4830 = vst.msk [vmem:[#allocation2 + $0x38] sm:$0xff] %vm1132_vm1, %v4814_v0  ;;  %4846 = vst.msk [vmem:[%s9230_s3 + $0x38] sm:$0xff] %vm1132_vm1, %v4814_v0  ;;  %v4790_v11 = vmul.f32 %v8976_v40, %v4768_v3 }
0x1011   : > { %6248 = vrsqrt.f32 %v4740_v56  ;;  %4827 = vst.msk [vmem:[#allocation2 + $0x20] sm:$0xff] %vm1132_vm1, %v4811_v26  ;;  %4843 = vst.msk [vmem:[%s9230_s3 + $0x20] sm:$0xff] %vm1132_vm1, %v4811_v26 }
0x1012   : > { %v4812_v50 = vadd.f32 %v8984_v42, %v4790_v11 }
0x1014   : > { %4828 = vst.msk [vmem:[#allocation2 + $0x28] sm:$0xff] %vm1132_vm1, %v4812_v50  ;;  %4844 = vst.msk [vmem:[%s9230_s3 + $0x28] sm:$0xff] %vm1132_vm1, %v4812_v50 }
0x1016   : > { %v6243_v16 = vpop.eup %6242 }
0x1017   : > { %v4773_v12 = vmul.f32 %v6243_v16, %v8924_v49 }
0x1019   : > { %v4795_v41 = vmul.f32 %v8976_v40, %v4773_v12 }
0x101a   : > { %v6245_v61 = vpop.eup %6244 }
0x101b   : > { %v6247_v24 = vpop.eup %6246  ;;  %v4817_v48 = vadd.f32 %v8984_v42, %v4795_v41  ;;  %v4774_v32 = vmul.f32 %v6245_v61, %v8929_v4 }
0x101c   : > { %v4771_v47 = vmul.f32 %v6247_v24, %v8932_v25 }
0x101d   : > { %4833 = vst.msk [vmem:[#allocation2 + $0x50] sm:$0xff] %vm1132_vm1, %v4817_v48  ;;  %4849 = vst.msk [vmem:[%s9230_s3 + $0x50] sm:$0xff] %vm1132_vm1, %v4817_v48  ;;  %v4796_v28 = vmul.f32 %v8976_v40, %v4774_v32 }
0x101e   : > { %v6249_v49 = vpop.eup %6248  ;;  %v4793_v39 = vmul.f32 %v8976_v40, %v4771_v47 }
0x101f   : > { %v4818_v17 = vadd.f32 %v8984_v42, %v4796_v28  ;;  %v4772_v45 = vmul.f32 %v6249_v49, %v8940_v43 }
0x1020   : > { %v4815_v4 = vadd.f32 %v8984_v42, %v4793_v39 }
0x1021   : > { %4834 = vst.msk [vmem:[#allocation2 + $0x58] sm:$0xff] %vm1132_vm1, %v4818_v17  ;;  %4850 = vst.msk [vmem:[%s9230_s3 + $0x58] sm:$0xff] %vm1132_vm1, %v4818_v17  ;;  %v4794_v25 = vmul.f32 %v8976_v40, %v4772_v45  ;;  %v4705_v46 = vpop.xlane.xlu1 %4704 }
0x1022   : > { %4831 = vst.msk [vmem:[#allocation2 + $0x40] sm:$0xff] %vm1132_vm1, %v4815_v4  ;;  %4847 = vst.msk [vmem:[%s9230_s3 + $0x40] sm:$0xff] %vm1132_vm1, %v4815_v4  ;;  %v4727_v43 = vmul.f32 0.015625, %v4705_v46 }
0x1023   : > { %v4816_v31 = vadd.f32 %v8984_v42, %v4794_v25 }
0x1024   : > { %v4743_v53 = vadd.f32 1e-12, %v4727_v43 }
0x1025   : > { %4832 = vst.msk [vmem:[#allocation2 + $0x48] sm:$0xff] %vm1132_vm1, %v4816_v31  ;;  %4848 = vst.msk [vmem:[%s9230_s3 + $0x48] sm:$0xff] %vm1132_vm1, %v4816_v31  ;;  %v4708_v38 = vpop.xlane.xlu0 %4707  ;;  %v4711_v55 = vpop.xlane.xlu1 %4710 }
0x1026   : > { %6250 = vrsqrt.f32 %v4743_v53  ;;  %v4728_v15 = vmul.f32 0.015625, %v4708_v38  ;;  %v4729_v35 = vmul.f32 0.015625, %v4711_v55 }
0x1028   : > { %v4744_v19 = vadd.f32 1e-12, %v4728_v15  ;;  %v4745_v23 = vadd.f32 1e-12, %v4729_v35 }
0x1029   : > { %v4714_v54 = vpop.xlane.xlu0 %4713 }
0x102a   : > { %6252 = vrsqrt.f32 %v4744_v19  ;;  %v4730_v18 = vmul.f32 0.015625, %v4714_v54 }
0x102b   : > { %6254 = vrsqrt.f32 %v4745_v23 }
0x102c   : > { %v4746_v29 = vadd.f32 1e-12, %v4730_v18 }
0x102e   : > { %6256 = vrsqrt.f32 %v4746_v29 }
0x1033   : > { %v6251_v10 = vpop.eup %6250 }
0x1034   : > { %v4775_v1 = vmul.f32 %v6251_v10, %v8948_v13 }
0x1036   : > { %v4797_v58 = vmul.f32 %v8976_v40, %v4775_v1 }
0x1037   : > { %v6253_v57 = vpop.eup %6252 }
0x1038   : > { %v6255_v2 = vpop.eup %6254  ;;  %v4819_v59 = vadd.f32 %v8984_v42, %v4797_v58  ;;  %v4776_v8 = vmul.f32 %v6253_v57, %v8953_v33 }
0x1039   : > { %v4777_v37 = vmul.f32 %v6255_v2, %v8956_v30 }
0x103a   : > { %4835 = vst.msk [vmem:[#allocation2 + $0x60] sm:$0xff] %vm1132_vm1, %v4819_v59  ;;  %4851 = vst.msk [vmem:[%s9230_s3 + $0x60] sm:$0xff] %vm1132_vm1, %v4819_v59  ;;  %v4798_v62 = vmul.f32 %v8976_v40, %v4776_v8 }
0x103b   : > { %v6257_v13 = vpop.eup %6256  ;;  %v4799_v21 = vmul.f32 %v8976_v40, %v4777_v37 }
0x103c   : > { %v4820_v44 = vadd.f32 %v8984_v42, %v4798_v62  ;;  %v4778_v6 = vmul.f32 %v6257_v13, %v8964_v60 }
0x103d   : > { %v4821_v33 = vadd.f32 %v8984_v42, %v4799_v21 }
0x103e   : > { %4836 = vst.msk [vmem:[#allocation2 + $0x68] sm:$0xff] %vm1132_vm1, %v4820_v44  ;;  %4852 = vst.msk [vmem:[%s9230_s3 + $0x68] sm:$0xff] %vm1132_vm1, %v4820_v44  ;;  %v4800_v30 = vmul.f32 %v8976_v40, %v4778_v6 }
0x103f   : > { %4837 = vst.msk [vmem:[#allocation2 + $0x70] sm:$0xff] %vm1132_vm1, %v4821_v33  ;;  %4853 = vst.msk [vmem:[%s9230_s3 + $0x70] sm:$0xff] %vm1132_vm1, %v4821_v33 }
0x1040   : > { %v4822_v60 = vadd.f32 %v8984_v42, %v4800_v30 }
0x1042   : > { %4838 = vst.msk [vmem:[#allocation2 + $0x78] sm:$0xff] %vm1132_vm1, %v4822_v60  ;;  %4854 = vst.msk [vmem:[%s9230_s3 + $0x78] sm:$0xff] %vm1132_vm1, %v4822_v60 }
0x1043 PF: > { %s9231_s24 = sld [smem:[#allocation11_spill]]  ;;  %s9234_s21 = smov %s6404_s22 }
0x1044   : > { %s9232_s20 = sld [smem:[#allocation10_spill]] }
0x1045   : > { %s9233_s23 = sld [smem:[#allocation12_spill]] }
0x1049   : > { %p29_p5 = scmp.ge.s32.totalorder %s9231_s24, 4  }
0x104a   : > { %s9235_s22 = smov %s9232_s20 }
0x104b   :  { %31 = sbr.rel (!%p29_p5) target bundleno = 18 (0x12), region = 175 }
0x1050   :  { %4866 = vsyncpa [#allocation4], 1 }
0x1051   :  { %4868 = vsyncpa [#allocation4 + $0x1], 1 }
0x1052   :  { %4869 = vsyncpa [#allocation6], 1 }
0x1053   :  { %4871 = vsyncpa [#allocation6 + $0x1], 1 }

// kernel: gat_goal_forward.5
= control target key start
LH: loop header
LB: loop body
LE: loop exit
PB: predicated region body
PF: predicated region fallthrough
CT: control target
= control target key end

     0   :  { %vm344_vm0 = vcmask 523264   ;;  %vm7351_vm1 = vmmov 0   ;;  %vm3499_vm2 = vcmask 1043456   ;;  %vm3483_vm3 = vcmask 64512   ;;  %s9469_s2 = inlined_call_operand.vmem [shape: bf16[192,512], index: 2, kind: input, shape index: {}]   ;;  %s9470_s0 = inlined_call_operand.vmem [shape: f32[8,192], index: 0, kind: input, shape index: {}]   ;;  %s9471_s4 = inlined_call_operand.vmem [shape: bf16[512,1536], index: 4, kind: input, shape index: {}]   ;;  %s9472_s3 = inlined_call_operand.vmem [shape: f32[1,512], index: 3, kind: input, shape index: {}, may-alias: {3,7}]   ;;  %s9473_s5 = inlined_call_operand.vmem [shape: f32[1,1536], index: 5, kind: input, shape index: {}]   ;;  %s9474_s1 = inlined_call_operand.vmem [shape: f32[8,8], index: 1, kind: input, shape index: {}]   ;;  %s9475_s6 = inlined_call_operand.vmem [shape: bf16[512,512], index: 6, kind: input, shape index: {}]   ;;  %s9476_s7 = inlined_call_operand.vmem [shape: f32[1,512], index: 7, kind: input, shape index: {}, may-alias: {3,7}]   ;;  %s9477_s8 = inlined_call_operand.vmem [shape: f32[8,512], index: 8, kind: output, shape index: {}]  }
   0x1   :  { %v6469_v0 = vld [vmem:[%s9469_s2 + $0xe4] ss:$16 sps:$4 sm:$0xff]   ;;  %v6471_v1 = vld [vmem:[%s9469_s2 + $0xec] ss:$16 sps:$4 sm:$0xff]   ;;  %v6473_v2 = vld [vmem:[%s9469_s2 + $0xe0] ss:$16 sps:$4 sm:$0xff]  }
   0x2   :  { %348 = vmatprep.subr.bf16.mxu0 %v6469_v0  ;;  %v6474_v3 = vld [vmem:[%s9469_s2 + $0xe8] ss:$16 sps:$4 sm:$0xff]   ;;  %389 = vmatprep.subr.bf16.mxu1 %v6471_v1  ;;  %v6475_v4 = vld [vmem:[%s9469_s2 + $0xc4] ss:$16 sps:$4 sm:$0xff]   ;;  %v6477_v5 = vld [vmem:[%s9469_s2 + $0xcc] ss:$16 sps:$4 sm:$0xff]  }
   0x3   :  { %349 = vmatpush1.bf16.msra.mxu0 %v6473_v2  ;;  %390 = vmatpush1.bf16.msra.mxu1 %v6474_v3  ;;  %v6479_v6 = vld [vmem:[%s9469_s2 + $0xc0] ss:$16 sps:$4 sm:$0xff]   ;;  %v6480_v7 = vld [vmem:[%s9469_s2 + $0xc8] ss:$16 sps:$4 sm:$0xff]   ;;  %v6481_v8 = vld [vmem:[%s9469_s2 + $0xa4] ss:$16 sps:$4 sm:$0xff]  }
   0x4   :  { %350 = vmatprep.subr.bf16.mxu0 %v6475_v4  ;;  %391 = vmatprep.subr.bf16.mxu1 %v6477_v5  ;;  %v6483_v9 = vld [vmem:[%s9469_s2 + $0xac] ss:$16 sps:$4 sm:$0xff]   ;;  %v6485_v10 = vld [vmem:[%s9469_s2 + $0xa0] ss:$16 sps:$4 sm:$0xff]   ;;  %v6486_v11 = vld [vmem:[%s9469_s2 + $0xa8] ss:$16 sps:$4 sm:$0xff]  }
   0x5   :  { %v6487_v12 = vld [vmem:[%s9469_s2 + $0x84] ss:$16 sps:$4 sm:$0xff]   ;;  %v6489_v13 = vld [vmem:[%s9469_s2 + $0x8c] ss:$16 sps:$4 sm:$0xff]   ;;  %v6491_v14 = vld [vmem:[%s9469_s2 + $0x80] ss:$16 sps:$4 sm:$0xff]  }
   0x6   :  { %v6492_v15 = vld [vmem:[%s9469_s2 + $0x88] ss:$16 sps:$4 sm:$0xff]   ;;  %v6493_v16 = vld [vmem:[%s9469_s2 + $0x64] ss:$16 sps:$4 sm:$0xff]   ;;  %v6495_v17 = vld [vmem:[%s9469_s2 + $0x6c] ss:$16 sps:$4 sm:$0xff]  }
   0x7   :  { %351 = vmatpush1.bf16.msra.mxu0 %v6479_v6  ;;  %392 = vmatpush1.bf16.msra.mxu1 %v6480_v7  ;;  %v6497_v18 = vld [vmem:[%s9469_s2 + $0x60] ss:$16 sps:$4 sm:$0xff]   ;;  %v6498_v19 = vld [vmem:[%s9469_s2 + $0x68] ss:$16 sps:$4 sm:$0xff]   ;;  %v6499_v20 = vld [vmem:[%s9469_s2 + $0x44] ss:$16 sps:$4 sm:$0xff]  }
   0x8   :  { %352 = vmatprep.subr.bf16.mxu0 %v6481_v8  ;;  %393 = vmatprep.subr.bf16.mxu1 %v6483_v9  ;;  %v6501_v21 = vld [vmem:[%s9469_s2 + $0x4c] ss:$16 sps:$4 sm:$0xff]   ;;  %v6503_v22 = vld [vmem:[%s9469_s2 + $0x40] ss:$16 sps:$4 sm:$0xff]   ;;  %v6504_v23 = vld [vmem:[%s9469_s2 + $0x48] ss:$16 sps:$4 sm:$0xff]  }
   0x9   :  { %v6505_v24 = vld [vmem:[%s9469_s2 + $0x24] ss:$16 sps:$4 sm:$0xff]   ;;  %v6507_v25 = vld [vmem:[%s9469_s2 + $0x2c] ss:$16 sps:$4 sm:$0xff]   ;;  %v6509_v26 = vld [vmem:[%s9469_s2 + $0x20] ss:$16 sps:$4 sm:$0xff]  }
   0xa   :  { %v6510_v27 = vld [vmem:[%s9469_s2 + $0x28] ss:$16 sps:$4 sm:$0xff]   ;;  %v6511_v28 = vld [vmem:[%s9469_s2 + $0x4] ss:$16 sps:$4 sm:$0xff]   ;;  %v6513_v29 = vld [vmem:[%s9469_s2 + $0xc] ss:$16 sps:$4 sm:$0xff]  }
   0xb   :  { %353 = vmatpush1.bf16.msra.mxu0 %v6485_v10  ;;  %394 = vmatpush1.bf16.msra.mxu1 %v6486_v11  ;;  %v6515_v30 = vld [vmem:[%s9469_s2] ss:$16 sps:$4 sm:$0xff]   ;;  %v6516_v31 = vld [vmem:[%s9469_s2 + $0x8] ss:$16 sps:$4 sm:$0xff]   ;;  %v6517_v32 = vld [vmem:[%s9469_s2 + $0x164] ss:$16 sps:$4 sm:$0xff]  }
   0xc   :  { %354 = vmatprep.subr.bf16.mxu0 %v6487_v12  ;;  %395 = vmatprep.subr.bf16.mxu1 %v6489_v13  ;;  %v6519_v33 = vld [vmem:[%s9469_s2 + $0x16c] ss:$16 sps:$4 sm:$0xff]   ;;  %v6521_v34 = vld [vmem:[%s9469_s2 + $0x160] ss:$16 sps:$4 sm:$0xff]   ;;  %v6522_v35 = vld [vmem:[%s9469_s2 + $0x168] ss:$16 sps:$4 sm:$0xff]  }
   0xd   :  { %v31_v36 = vld [vmem:[%s9470_s0 + $0x8] sm:$0xff]  ;;  %v6523_v37 = vld [vmem:[%s9469_s2 + $0x144] ss:$16 sps:$4 sm:$0xff]   ;;  %v6527_v40 = vld [vmem:[%s9469_s2 + $0x140] ss:$16 sps:$4 sm:$0xff]  }
   0xe   :  { %v6525_v38 = vld [vmem:[%s9469_s2 + $0x14c] ss:$16 sps:$4 sm:$0xff]   ;;  %v33_v39 = vpack.c.bf16 %v31_v36, %v31_v36  ;;  %v6528_v41 = vld [vmem:[%s9469_s2 + $0x148] ss:$16 sps:$4 sm:$0xff]   ;;  %v6529_v42 = vld [vmem:[%s9469_s2 + $0x124] ss:$16 sps:$4 sm:$0xff]  }
   0xf   :  { %355 = vmatpush1.bf16.msra.mxu0 %v6491_v14  ;;  %396 = vmatpush1.bf16.msra.mxu1 %v6492_v15  ;;  %v6531_v43 = vld [vmem:[%s9469_s2 + $0x12c] ss:$16 sps:$4 sm:$0xff]   ;;  %v6533_v44 = vld [vmem:[%s9469_s2 + $0x120] ss:$16 sps:$4 sm:$0xff]   ;;  %v6534_v45 = vld [vmem:[%s9469_s2 + $0x128] ss:$16 sps:$4 sm:$0xff]  }
  0x10   :  { %356 = vmatprep.subr.bf16.mxu0 %v6493_v16  ;;  %397 = vmatprep.subr.bf16.mxu1 %v6495_v17  ;;  %v6535_v46 = vld [vmem:[%s9469_s2 + $0x104] ss:$16 sps:$4 sm:$0xff]   ;;  %v6537_v47 = vld [vmem:[%s9469_s2 + $0x10c] ss:$16 sps:$4 sm:$0xff]   ;;  %v6539_v48 = vld [vmem:[%s9469_s2 + $0x100] ss:$16 sps:$4 sm:$0xff]  }
  0x11   :  { %5791 = vmatprep.mubr.msk.bf16.mxu0 %vm344_vm0, %v33_v39  ;;  %5792 = vmatprep.mubr.msk.bf16.mxu1 %vm344_vm0, %v33_v39  ;;  %v6540_v49 = vld [vmem:[%s9469_s2 + $0x108] ss:$16 sps:$4 sm:$0xff]   ;;  %v30_v50 = vld [vmem:[%s9470_s0] sm:$0xff] }
  0x12   :  { %v6543_v51 = vld [vmem:[%s9471_s4 + $0x2a4] ss:$48 sps:$4 sm:$0xff]   ;;  %v32_v53 = vpack.c.bf16 %v30_v50, %v30_v50  ;;  %v6541_v54 = vld [vmem:[%s9471_s4 + $0x2a0] ss:$48 sps:$4 sm:$0xff]  }
  0x13   :  { %357 = vmatpush1.bf16.msra.mxu0 %v6497_v18  ;;  %398 = vmatpush1.bf16.msra.mxu1 %v6498_v19  ;;  %v6546_v52 = vld [vmem:[%s9471_s4 + $0x8a4] ss:$48 sps:$4 sm:$0xff]   ;;  %v6544_v55 = vld [vmem:[%s9471_s4 + $0x8a0] ss:$48 sps:$4 sm:$0xff]  }
  0x14   :  { %358 = vmatprep.subr.bf16.mxu0 %v6499_v20  ;;  %399 = vmatprep.subr.bf16.mxu1 %v6501_v21  ;;  %v6549_v56 = vld [vmem:[%s9471_s4 + $0x244] ss:$48 sps:$4 sm:$0xff]   ;;  %v6547_v58 = vld [vmem:[%s9471_s4 + $0x240] ss:$48 sps:$4 sm:$0xff]  }
  0x15   :  { %v6552_v57 = vld [vmem:[%s9471_s4 + $0x844] ss:$48 sps:$4 sm:$0xff]   ;;  %v6550_v59 = vld [vmem:[%s9471_s4 + $0x840] ss:$48 sps:$4 sm:$0xff]  }
  0x16   :  { %v6555_v60 = vld [vmem:[%s9471_s4 + $0x1e4] ss:$48 sps:$4 sm:$0xff]   ;;  %v6553_v62 = vld [vmem:[%s9471_s4 + $0x1e0] ss:$48 sps:$4 sm:$0xff]  }
  0x17   :  { %359 = vmatpush1.bf16.msra.mxu0 %v6503_v22  ;;  %400 = vmatpush1.bf16.msra.mxu1 %v6504_v23  ;;  %v6558_v61 = vld [vmem:[%s9471_s4 + $0x7e4] ss:$48 sps:$4 sm:$0xff]   ;;  %v6556_v63 = vld [vmem:[%s9471_s4 + $0x7e0] ss:$48 sps:$4 sm:$0xff]  }
  0x18   :  { %360 = vmatprep.subr.bf16.mxu0 %v6505_v24  ;;  %401 = vmatprep.subr.bf16.mxu1 %v6507_v25  ;;  %v6561_v0 = vld [vmem:[%s9471_s4 + $0x184] ss:$48 sps:$4 sm:$0xff]   ;;  %v6559_v2 = vld [vmem:[%s9471_s4 + $0x180] ss:$48 sps:$4 sm:$0xff]  }
  0x19   :  { %v6564_v1 = vld [vmem:[%s9471_s4 + $0x784] ss:$48 sps:$4 sm:$0xff]   ;;  %v6562_v3 = vld [vmem:[%s9471_s4 + $0x780] ss:$48 sps:$4 sm:$0xff]  }
  0x1a   :  { %v6567_v4 = vld [vmem:[%s9471_s4 + $0x124] ss:$48 sps:$4 sm:$0xff]   ;;  %v6565_v6 = vld [vmem:[%s9471_s4 + $0x120] ss:$48 sps:$4 sm:$0xff]  }
  0x1b   :  { %361 = vmatpush1.bf16.msra.mxu0 %v6509_v26  ;;  %402 = vmatpush1.bf16.msra.mxu1 %v6510_v27  ;;  %v6570_v5 = vld [vmem:[%s9471_s4 + $0x724] ss:$48 sps:$4 sm:$0xff]   ;;  %v6568_v7 = vld [vmem:[%s9471_s4 + $0x720] ss:$48 sps:$4 sm:$0xff]  }
  0x1c   :  { %362 = vmatprep.subr.bf16.mxu0 %v6511_v28  ;;  %403 = vmatprep.subr.bf16.mxu1 %v6513_v29  ;;  %v6573_v8 = vld [vmem:[%s9471_s4 + $0xc4] ss:$48 sps:$4 sm:$0xff]   ;;  %v6571_v10 = vld [vmem:[%s9471_s4 + $0xc0] ss:$48 sps:$4 sm:$0xff]  }
  0x1d   :  { %v6576_v9 = vld [vmem:[%s9471_s4 + $0x6c4] ss:$48 sps:$4 sm:$0xff]   ;;  %v6574_v11 = vld [vmem:[%s9471_s4 + $0x6c0] ss:$48 sps:$4 sm:$0xff]  }
  0x1e   :  { %v6579_v12 = vld [vmem:[%s9471_s4 + $0x64] ss:$48 sps:$4 sm:$0xff]   ;;  %v6577_v14 = vld [vmem:[%s9471_s4 + $0x60] ss:$48 sps:$4 sm:$0xff]  }
  0x1f   :  { %363 = vmatpush1.bf16.msra.mxu0 %v6515_v30  ;;  %404 = vmatpush1.bf16.msra.mxu1 %v6516_v31  ;;  %v6582_v13 = vld [vmem:[%s9471_s4 + $0x664] ss:$48 sps:$4 sm:$0xff]   ;;  %v6580_v15 = vld [vmem:[%s9471_s4 + $0x660] ss:$48 sps:$4 sm:$0xff]  }
  0x20   :  { %372 = vmatprep.subr.bf16.mxu0 %v6517_v32  ;;  %413 = vmatprep.subr.bf16.mxu1 %v6519_v33  ;;  %v6585_v16 = vld [vmem:[%s9471_s4 + $0x4] ss:$48 sps:$4 sm:$0xff]   ;;  %v6583_v18 = vld [vmem:[%s9471_s4] ss:$48 sps:$4 sm:$0xff]  }
  0x21   :  { %v6588_v17 = vld [vmem:[%s9471_s4 + $0x604] ss:$48 sps:$4 sm:$0xff]   ;;  %v6586_v19 = vld [vmem:[%s9471_s4 + $0x600] ss:$48 sps:$4 sm:$0xff]  }
  0x22   :  { %v6591_v20 = vld [vmem:[%s9471_s4 + $0x5a4] ss:$48 sps:$4 sm:$0xff]   ;;  %v6589_v22 = vld [vmem:[%s9471_s4 + $0x5a0] ss:$48 sps:$4 sm:$0xff]  }
  0x23   :  { %373 = vmatpush2.bf16.msra.mxu0 %v6521_v34  ;;  %414 = vmatpush2.bf16.msra.mxu1 %v6522_v35  ;;  %v6594_v21 = vld [vmem:[%s9471_s4 + $0xba4] ss:$48 sps:$4 sm:$0xff]   ;;  %v6592_v23 = vld [vmem:[%s9471_s4 + $0xba0] ss:$48 sps:$4 sm:$0xff]  }
  0x24   :  { %374 = vmatprep.subr.bf16.mxu0 %v6523_v37  ;;  %415 = vmatprep.subr.bf16.mxu1 %v6525_v38  ;;  %v6597_v24 = vld [vmem:[%s9471_s4 + $0x544] ss:$48 sps:$4 sm:$0xff]   ;;  %v6595_v26 = vld [vmem:[%s9471_s4 + $0x540] ss:$48 sps:$4 sm:$0xff]  }
  0x25   :  { %v6600_v25 = vld [vmem:[%s9471_s4 + $0xb44] ss:$48 sps:$4 sm:$0xff]   ;;  %v6598_v27 = vld [vmem:[%s9471_s4 + $0xb40] ss:$48 sps:$4 sm:$0xff]  }
  0x26   :  { %v6603_v28 = vld [vmem:[%s9471_s4 + $0x4e4] ss:$48 sps:$4 sm:$0xff]   ;;  %v6601_v30 = vld [vmem:[%s9471_s4 + $0x4e0] ss:$48 sps:$4 sm:$0xff]  }
  0x27   :  { %375 = vmatpush2.bf16.msra.mxu0 %v6527_v40  ;;  %416 = vmatpush2.bf16.msra.mxu1 %v6528_v41  ;;  %v6606_v29 = vld [vmem:[%s9471_s4 + $0xae4] ss:$48 sps:$4 sm:$0xff]   ;;  %v6604_v31 = vld [vmem:[%s9471_s4 + $0xae0] ss:$48 sps:$4 sm:$0xff]  }
  0x28   :  { %376 = vmatprep.subr.bf16.mxu0 %v6529_v42  ;;  %417 = vmatprep.subr.bf16.mxu1 %v6531_v43  ;;  %v6609_v32 = vld [vmem:[%s9471_s4 + $0x484] ss:$48 sps:$4 sm:$0xff]   ;;  %v6607_v34 = vld [vmem:[%s9471_s4 + $0x480] ss:$48 sps:$4 sm:$0xff]  }
  0x29   :  { %v6612_v33 = vld [vmem:[%s9471_s4 + $0xa84] ss:$48 sps:$4 sm:$0xff]   ;;  %v6610_v35 = vld [vmem:[%s9471_s4 + $0xa80] ss:$48 sps:$4 sm:$0xff]  }
  0x2a   :  { %v6615_v36 = vld [vmem:[%s9471_s4 + $0x424] ss:$48 sps:$4 sm:$0xff]   ;;  %v6613_v38 = vld [vmem:[%s9471_s4 + $0x420] ss:$48 sps:$4 sm:$0xff]  }
  0x2b   :  { %377 = vmatpush2.bf16.msra.mxu0 %v6533_v44  ;;  %418 = vmatpush2.bf16.msra.mxu1 %v6534_v45  ;;  %v6618_v37 = vld [vmem:[%s9471_s4 + $0xa24] ss:$48 sps:$4 sm:$0xff]   ;;  %v6616_v39 = vld [vmem:[%s9471_s4 + $0xa20] ss:$48 sps:$4 sm:$0xff]  }
  0x2c   :  { %378 = vmatprep.subr.bf16.mxu0 %v6535_v46  ;;  %419 = vmatprep.subr.bf16.mxu1 %v6537_v47  ;;  %v6621_v40 = vld [vmem:[%s9471_s4 + $0x3c4] ss:$48 sps:$4 sm:$0xff]   ;;  %v6619_v42 = vld [vmem:[%s9471_s4 + $0x3c0] ss:$48 sps:$4 sm:$0xff]  }
  0x2d   :  { %v6624_v41 = vld [vmem:[%s9471_s4 + $0x9c4] ss:$48 sps:$4 sm:$0xff]   ;;  %v6622_v43 = vld [vmem:[%s9471_s4 + $0x9c0] ss:$48 sps:$4 sm:$0xff]  }
  0x2e   :  { %v6627_v44 = vld [vmem:[%s9471_s4 + $0x364] ss:$48 sps:$4 sm:$0xff]   ;;  %v6625_v46 = vld [vmem:[%s9471_s4 + $0x360] ss:$48 sps:$4 sm:$0xff]  }
  0x2f   :  { %379 = vmatpush2.bf16.msra.mxu0 %v6539_v48  ;;  %420 = vmatpush2.bf16.msra.mxu1 %v6540_v49  ;;  %v6630_v45 = vld [vmem:[%s9471_s4 + $0x964] ss:$48 sps:$4 sm:$0xff]   ;;  %v6628_v47 = vld [vmem:[%s9471_s4 + $0x960] ss:$48 sps:$4 sm:$0xff]  }
  0x30   :  { %2802 = vmatprep.subr.bf16.mxu0 %v6543_v51  ;;  %2843 = vmatprep.subr.bf16.mxu1 %v6546_v52  ;;  %v6633_v48 = vld [vmem:[%s9471_s4 + $0x304] ss:$48 sps:$4 sm:$0xff]   ;;  %v6631_v50 = vld [vmem:[%s9471_s4 + $0x300] ss:$48 sps:$4 sm:$0xff]   ;;  %v6639_v52 = vld [vmem:[%s9471_s4 + $0x2ac] ss:$48 sps:$4 sm:$0xff]  }
  0x31   :  { %v6636_v49 = vld [vmem:[%s9471_s4 + $0x904] ss:$48 sps:$4 sm:$0xff]   ;;  %v6634_v51 = vld [vmem:[%s9471_s4 + $0x900] ss:$48 sps:$4 sm:$0xff]  }
  0x32   :  { %381 = vmatmul.mubr.bf16.vlgmr.msra.gmra.mxu0 %v32_v53  ;;  %422 = vmatmul.mubr.bf16.vlgmr.msra.gmra.mxu1 %v32_v53  ;;  %v6642_v53 = vld [vmem:[%s9471_s4 + $0x8ac] ss:$48 sps:$4 sm:$0xff]  }
  0x33   :  { %2803 = vmatpush1.bf16.msra.mxu0 %v6541_v54  ;;  %2844 = vmatpush1.bf16.msra.mxu1 %v6544_v55  ;;  %v84_v54 = vlaneseq }
  0x34   :  { %2804 = vmatprep.subr.bf16.mxu0 %v6549_v56  ;;  %2845 = vmatprep.subr.bf16.mxu1 %v6552_v57 }
  0x35   :  { %v7749_v55 = vshrl.u32 %v84_v54, 7  ;;  %v6694_v54 = vld [vmem:[%s9471_s4 + $0xb48] ss:$48 sps:$4 sm:$0xff]  }
  0x37   :  { %2805 = vmatpush1.bf16.msra.mxu0 %v6547_v58  ;;  %2846 = vmatpush1.bf16.msra.mxu1 %v6550_v59  ;;  %v7752_v56 = vsub.s32 2, %v7749_v55  ;;  %v7755_v57 = vsub.s32 0, %v7749_v55  ;;  %v82_v58 = vld [vmem:[%s9472_s3] sm:$0xf]  ;;  %v7761_v59 = vsub.s32 1, %v7749_v55 }
  0x38   :  { %2806 = vmatprep.subr.bf16.mxu0 %v6555_v60  ;;  %2847 = vmatprep.subr.bf16.mxu1 %v6558_v61  ;;  %v7764_v60 = vsub.s32 3, %v7749_v55 }
  0x39   :  { %v95_v61 = vrot.slane %v82_v58, %v7752_v56 }
  0x3b   :  { %2807 = vmatpush1.bf16.msra.mxu0 %v6553_v62  ;;  %2848 = vmatpush1.bf16.msra.mxu1 %v6556_v63  ;;  %v87_v62 = vrot.slane %v82_v58, %v7755_v57  ;;  %v91_v63 = vrot.slane %v82_v58, %v7761_v59 }
  0x3c   :  { %2808 = vmatprep.subr.bf16.mxu0 %v6561_v0  ;;  %2849 = vmatprep.subr.bf16.mxu1 %v6564_v1  ;;  %v99_v0 = vrot.slane %v82_v58, %v7764_v60  ;;  %v6699_v58 = vld [vmem:[%s9471_s4 + $0x4ec] ss:$48 sps:$4 sm:$0xff]  }
  0x3f   :  { %2809 = vmatpush1.bf16.msra.mxu0 %v6559_v2  ;;  %2850 = vmatpush1.bf16.msra.mxu1 %v6562_v3 }
  0x40   :  { %2810 = vmatprep.subr.bf16.mxu0 %v6567_v4  ;;  %2851 = vmatprep.subr.bf16.mxu1 %v6570_v5 }
  0x43   :  { %2811 = vmatpush1.bf16.msra.mxu0 %v6565_v6  ;;  %2852 = vmatpush1.bf16.msra.mxu1 %v6568_v7 }
  0x44   :  { %2812 = vmatprep.subr.bf16.mxu0 %v6573_v8  ;;  %2853 = vmatprep.subr.bf16.mxu1 %v6576_v9 }
  0x47   :  { %2813 = vmatpush1.bf16.msra.mxu0 %v6571_v10  ;;  %2854 = vmatpush1.bf16.msra.mxu1 %v6574_v11 }
  0x48   :  { %2814 = vmatprep.subr.bf16.mxu0 %v6579_v12  ;;  %2855 = vmatprep.subr.bf16.mxu1 %v6582_v13 }
  0x4b   :  { %2815 = vmatpush1.bf16.msra.mxu0 %v6577_v14  ;;  %2856 = vmatpush1.bf16.msra.mxu1 %v6580_v15  ;;  %v6637_v14 = vld [vmem:[%s9471_s4 + $0x2a8] ss:$48 sps:$4 sm:$0xff]  }
  0x4c   :  { %2816 = vmatprep.subr.bf16.mxu0 %v6585_v16  ;;  %2857 = vmatprep.subr.bf16.mxu1 %v6588_v17  ;;  %v6640_v15 = vld [vmem:[%s9471_s4 + $0x8a8] ss:$48 sps:$4 sm:$0xff]  }
  0x4f   :  { %2817 = vmatpush1.bf16.msra.mxu0 %v6583_v18  ;;  %2858 = vmatpush1.bf16.msra.mxu1 %v6586_v19  ;;  %v6645_v19 = vld [vmem:[%s9471_s4 + $0x24c] ss:$48 sps:$4 sm:$0xff]  }
  0x50   :  { %2818 = vmatprep.subr.bf16.mxu0 %v6591_v20  ;;  %2859 = vmatprep.subr.bf16.mxu1 %v6594_v21  ;;  %v6648_v20 = vld [vmem:[%s9471_s4 + $0x84c] ss:$48 sps:$4 sm:$0xff]   ;;  %v6643_v21 = vld [vmem:[%s9471_s4 + $0x248] ss:$48 sps:$4 sm:$0xff]  }
  0x53   :  { %2819 = vmatpush2.bf16.msra.mxu0 %v6589_v22  ;;  %2860 = vmatpush2.bf16.msra.mxu1 %v6592_v23  ;;  %v6646_v22 = vld [vmem:[%s9471_s4 + $0x848] ss:$48 sps:$4 sm:$0xff]   ;;  %v6651_v23 = vld [vmem:[%s9471_s4 + $0x1ec] ss:$48 sps:$4 sm:$0xff]  }
  0x54   :  { %2820 = vmatprep.subr.bf16.mxu0 %v6597_v24  ;;  %2861 = vmatprep.subr.bf16.mxu1 %v6600_v25  ;;  %v6654_v24 = vld [vmem:[%s9471_s4 + $0x7ec] ss:$48 sps:$4 sm:$0xff]   ;;  %v6649_v25 = vld [vmem:[%s9471_s4 + $0x1e8] ss:$48 sps:$4 sm:$0xff]  }
  0x57   :  { %2821 = vmatpush2.bf16.msra.mxu0 %v6595_v26  ;;  %2862 = vmatpush2.bf16.msra.mxu1 %v6598_v27  ;;  %v6652_v26 = vld [vmem:[%s9471_s4 + $0x7e8] ss:$48 sps:$4 sm:$0xff]   ;;  %v6657_v27 = vld [vmem:[%s9471_s4 + $0x18c] ss:$48 sps:$4 sm:$0xff]  }
  0x58   :  { %2822 = vmatprep.subr.bf16.mxu0 %v6603_v28  ;;  %2863 = vmatprep.subr.bf16.mxu1 %v6606_v29  ;;  %v6660_v28 = vld [vmem:[%s9471_s4 + $0x78c] ss:$48 sps:$4 sm:$0xff]   ;;  %v6655_v29 = vld [vmem:[%s9471_s4 + $0x188] ss:$48 sps:$4 sm:$0xff]  }
  0x5b   :  { %2823 = vmatpush2.bf16.msra.mxu0 %v6601_v30  ;;  %2864 = vmatpush2.bf16.msra.mxu1 %v6604_v31  ;;  %v6658_v30 = vld [vmem:[%s9471_s4 + $0x788] ss:$48 sps:$4 sm:$0xff]   ;;  %v6663_v31 = vld [vmem:[%s9471_s4 + $0x12c] ss:$48 sps:$4 sm:$0xff]  }
  0x5c   :  { %2824 = vmatprep.subr.bf16.mxu0 %v6609_v32  ;;  %2865 = vmatprep.subr.bf16.mxu1 %v6612_v33  ;;  %v6666_v32 = vld [vmem:[%s9471_s4 + $0x72c] ss:$48 sps:$4 sm:$0xff]   ;;  %v6661_v33 = vld [vmem:[%s9471_s4 + $0x128] ss:$48 sps:$4 sm:$0xff]  }
  0x5f   :  { %2825 = vmatpush2.bf16.msra.mxu0 %v6607_v34  ;;  %2866 = vmatpush2.bf16.msra.mxu1 %v6610_v35  ;;  %v6664_v34 = vld [vmem:[%s9471_s4 + $0x728] ss:$48 sps:$4 sm:$0xff]   ;;  %v6669_v35 = vld [vmem:[%s9471_s4 + $0xcc] ss:$48 sps:$4 sm:$0xff]  }
  0x60   :  { %2826 = vmatprep.subr.bf16.mxu0 %v6615_v36  ;;  %2867 = vmatprep.subr.bf16.mxu1 %v6618_v37  ;;  %v6672_v36 = vld [vmem:[%s9471_s4 + $0x6cc] ss:$48 sps:$4 sm:$0xff]   ;;  %v6667_v37 = vld [vmem:[%s9471_s4 + $0xc8] ss:$48 sps:$4 sm:$0xff]  }
  0x63   :  { %2827 = vmatpush2.bf16.msra.mxu0 %v6613_v38  ;;  %2868 = vmatpush2.bf16.msra.mxu1 %v6616_v39  ;;  %v6670_v38 = vld [vmem:[%s9471_s4 + $0x6c8] ss:$48 sps:$4 sm:$0xff]   ;;  %v6675_v39 = vld [vmem:[%s9471_s4 + $0x6c] ss:$48 sps:$4 sm:$0xff]  }
  0x64   :  { %2828 = vmatprep.subr.bf16.mxu0 %v6621_v40  ;;  %2869 = vmatprep.subr.bf16.mxu1 %v6624_v41  ;;  %v6678_v40 = vld [vmem:[%s9471_s4 + $0x66c] ss:$48 sps:$4 sm:$0xff]   ;;  %v6673_v41 = vld [vmem:[%s9471_s4 + $0x68] ss:$48 sps:$4 sm:$0xff]  }
  0x67   :  { %2829 = vmatpush2.bf16.msra.mxu0 %v6619_v42  ;;  %2870 = vmatpush2.bf16.msra.mxu1 %v6622_v43  ;;  %v6676_v42 = vld [vmem:[%s9471_s4 + $0x668] ss:$48 sps:$4 sm:$0xff]   ;;  %v6681_v43 = vld [vmem:[%s9471_s4 + $0xc] ss:$48 sps:$4 sm:$0xff]  }
  0x68   :  { %2830 = vmatprep.subr.bf16.mxu0 %v6627_v44  ;;  %2871 = vmatprep.subr.bf16.mxu1 %v6630_v45  ;;  %v6684_v44 = vld [vmem:[%s9471_s4 + $0x60c] ss:$48 sps:$4 sm:$0xff]   ;;  %v6679_v45 = vld [vmem:[%s9471_s4 + $0x8] ss:$48 sps:$4 sm:$0xff]  }
  0x6b   :  { %2831 = vmatpush2.bf16.msra.mxu0 %v6625_v46  ;;  %2872 = vmatpush2.bf16.msra.mxu1 %v6628_v47  ;;  %v6682_v46 = vld [vmem:[%s9471_s4 + $0x608] ss:$48 sps:$4 sm:$0xff]   ;;  %v6687_v47 = vld [vmem:[%s9471_s4 + $0x5ac] ss:$48 sps:$4 sm:$0xff]  }
  0x6c   :  { %2832 = vmatprep.subr.bf16.mxu0 %v6633_v48  ;;  %2873 = vmatprep.subr.bf16.mxu1 %v6636_v49  ;;  %v6690_v48 = vld [vmem:[%s9471_s4 + $0xbac] ss:$48 sps:$4 sm:$0xff]   ;;  %v6685_v49 = vld [vmem:[%s9471_s4 + $0x5a8] ss:$48 sps:$4 sm:$0xff]  }
  0x6f   :  { %2833 = vmatpush2.bf16.msra.mxu0 %v6631_v50  ;;  %2874 = vmatpush2.bf16.msra.mxu1 %v6634_v51  ;;  %v6688_v50 = vld [vmem:[%s9471_s4 + $0xba8] ss:$48 sps:$4 sm:$0xff]   ;;  %v6693_v51 = vld [vmem:[%s9471_s4 + $0x54c] ss:$48 sps:$4 sm:$0xff]  }
  0x70   :  { %2884 = vmatprep.subr.bf16.mxu0 %v6639_v52  ;;  %2925 = vmatprep.subr.bf16.mxu1 %v6642_v53  ;;  %v6696_v52 = vld [vmem:[%s9471_s4 + $0xb4c] ss:$48 sps:$4 sm:$0xff]   ;;  %v6691_v53 = vld [vmem:[%s9471_s4 + $0x548] ss:$48 sps:$4 sm:$0xff]  }
  0xf2   :  { %v382_v1 = vpop.f32.mrf.mxu0  ;;  %v423_v2 = vpop.f32.mrf.mxu1 }
  0xf3   :  { %v424_v3 = vadd.f32 %v423_v2, %v95_v61  ;;  %v383_v4 = vadd.f32 %v382_v1, %v87_v62  ;;  %v6702_v61 = vld [vmem:[%s9471_s4 + $0xaec] ss:$48 sps:$4 sm:$0xff]   ;;  %v6697_v62 = vld [vmem:[%s9471_s4 + $0x4e8] ss:$48 sps:$4 sm:$0xff]  }
  0xf4   :  { %v384_v5 = vpop.f32.mrf.mxu0  ;;  %v425_v6 = vpop.f32.mrf.mxu1  ;;  %v6708_v1 = vld [vmem:[%s9471_s4 + $0xa8c] ss:$48 sps:$4 sm:$0xff]   ;;  %v6703_v2 = vld [vmem:[%s9471_s4 + $0x488] ss:$48 sps:$4 sm:$0xff]  }
  0xf5   :  { %v385_v7 = vadd.f32 %v384_v5, %v91_v63  ;;  %v426_v8 = vadd.f32 %v425_v6, %v99_v0  ;;  %v7770_v9 = vpack.c.bf16 %v424_v3, %v424_v3  ;;  %v7782_v16 = vpack.c.bf16 %v383_v4, %v383_v4  ;;  %v6700_v63 = vld [vmem:[%s9471_s4 + $0xae8] ss:$48 sps:$4 sm:$0xff]   ;;  %v6705_v0 = vld [vmem:[%s9471_s4 + $0x48c] ss:$48 sps:$4 sm:$0xff]  }
  0xf6   :  { %v386_v10 = vpop.f32.mrf.mxu0  ;;  %v427_v11 = vpop.f32.mrf.mxu1  ;;  %v6706_v3 = vld [vmem:[%s9471_s4 + $0xa88] ss:$48 sps:$4 sm:$0xff]   ;;  %v6711_v4 = vld [vmem:[%s9471_s4 + $0x42c] ss:$48 sps:$4 sm:$0xff]  }
  0xf7   :  { %v7772_v12 = vpack.c.bf16 %v385_v7, %v385_v7  ;;  %v7774_v13 = vpack.c.bf16 %v426_v8, %v426_v8  ;;  %v6714_v5 = vld [vmem:[%s9471_s4 + $0xa2c] ss:$48 sps:$4 sm:$0xff]   ;;  %v6709_v6 = vld [vmem:[%s9471_s4 + $0x428] ss:$48 sps:$4 sm:$0xff]  }
  0xf8   :  { %v387_v17 = vpop.f32.mrf.mxu0  ;;  %v428_v18 = vpop.f32.mrf.mxu1  ;;  %v6712_v7 = vld [vmem:[%s9471_s4 + $0xa28] ss:$48 sps:$4 sm:$0xff]   ;;  %v6717_v8 = vld [vmem:[%s9471_s4 + $0x3cc] ss:$48 sps:$4 sm:$0xff]  }
  0xf9   :  { %2834 = vmatprep.mubr.bf16.mxu0 %v7772_v12  ;;  %2875 = vmatprep.mubr.bf16.mxu1 %v7774_v13  ;;  %v6720_v10 = vld [vmem:[%s9471_s4 + $0x9cc] ss:$48 sps:$4 sm:$0xff]   ;;  %v6715_v11 = vld [vmem:[%s9471_s4 + $0x3c8] ss:$48 sps:$4 sm:$0xff]  }
  0xfa   :  { %2835 = vmatmul.mubr.bf16.vlgmr.msra.gmra.mxu0 %v7782_v16  ;;  %2876 = vmatmul.mubr.bf16.vlgmr.msra.gmra.mxu1 %v7770_v9  ;;  %v6726_v17 = vld [vmem:[%s9471_s4 + $0x96c] ss:$48 sps:$4 sm:$0xff]   ;;  %v6721_v18 = vld [vmem:[%s9471_s4 + $0x368] ss:$48 sps:$4 sm:$0xff]  }
  0xfb   :  { %2885 = vmatpush1.bf16.msra.mxu0 %v6637_v14  ;;  %2926 = vmatpush1.bf16.msra.mxu1 %v6640_v15  ;;  %v6718_v14 = vld [vmem:[%s9471_s4 + $0x9c8] ss:$48 sps:$4 sm:$0xff]   ;;  %v6723_v15 = vld [vmem:[%s9471_s4 + $0x36c] ss:$48 sps:$4 sm:$0xff]  }
  0xfc   :  { %2916 = vmatprep.mubr.bf16.mxu0 %v7772_v12  ;;  %2957 = vmatprep.mubr.bf16.mxu1 %v7774_v13 }
  0xfd   :  { %2886 = vmatprep.subr.bf16.mxu0 %v6645_v19  ;;  %2927 = vmatprep.subr.bf16.mxu1 %v6648_v20  ;;  %v6724_v19 = vld [vmem:[%s9471_s4 + $0x968] ss:$48 sps:$4 sm:$0xff]   ;;  %v6729_v20 = vld [vmem:[%s9471_s4 + $0x30c] ss:$48 sps:$4 sm:$0xff]  }
  0xff   :  { %2887 = vmatpush1.bf16.msra.mxu0 %v6643_v21  ;;  %2928 = vmatpush1.bf16.msra.mxu1 %v6646_v22  ;;  %v6732_v21 = vld [vmem:[%s9471_s4 + $0x90c] ss:$48 sps:$4 sm:$0xff]   ;;  %v6727_v22 = vld [vmem:[%s9471_s4 + $0x308] ss:$48 sps:$4 sm:$0xff]  }
 0x100   :  { %2888 = vmatprep.subr.bf16.mxu0 %v6651_v23  ;;  %2929 = vmatprep.subr.bf16.mxu1 %v6654_v24  ;;  %v6730_v23 = vld [vmem:[%s9471_s4 + $0x908] ss:$48 sps:$4 sm:$0xff]   ;;  %v6735_v24 = vld [vmem:[%s9471_s4 + $0x2b4] ss:$48 sps:$4 sm:$0xff]  }
 0x103   :  { %2889 = vmatpush1.bf16.msra.mxu0 %v6649_v25  ;;  %2930 = vmatpush1.bf16.msra.mxu1 %v6652_v26  ;;  %v6738_v25 = vld [vmem:[%s9471_s4 + $0x8b4] ss:$48 sps:$4 sm:$0xff]   ;;  %v6733_v26 = vld [vmem:[%s9471_s4 + $0x2b0] ss:$48 sps:$4 sm:$0xff]  }
 0x104   :  { %2890 = vmatprep.subr.bf16.mxu0 %v6657_v27  ;;  %2931 = vmatprep.subr.bf16.mxu1 %v6660_v28  ;;  %v6736_v27 = vld [vmem:[%s9471_s4 + $0x8b0] ss:$48 sps:$4 sm:$0xff]   ;;  %v6741_v28 = vld [vmem:[%s9471_s4 + $0x254] ss:$48 sps:$4 sm:$0xff]  }
 0x107   :  { %2891 = vmatpush1.bf16.msra.mxu0 %v6655_v29  ;;  %2932 = vmatpush1.bf16.msra.mxu1 %v6658_v30  ;;  %v6744_v29 = vld [vmem:[%s9471_s4 + $0x854] ss:$48 sps:$4 sm:$0xff]   ;;  %v6739_v30 = vld [vmem:[%s9471_s4 + $0x250] ss:$48 sps:$4 sm:$0xff]  }
 0x108   :  { %2892 = vmatprep.subr.bf16.mxu0 %v6663_v31  ;;  %2933 = vmatprep.subr.bf16.mxu1 %v6666_v32  ;;  %v6742_v31 = vld [vmem:[%s9471_s4 + $0x850] ss:$48 sps:$4 sm:$0xff]   ;;  %v6747_v32 = vld [vmem:[%s9471_s4 + $0x1f4] ss:$48 sps:$4 sm:$0xff]  }
 0x10b   :  { %2893 = vmatpush1.bf16.msra.mxu0 %v6661_v33  ;;  %2934 = vmatpush1.bf16.msra.mxu1 %v6664_v34  ;;  %v6750_v33 = vld [vmem:[%s9471_s4 + $0x7f4] ss:$48 sps:$4 sm:$0xff]   ;;  %v6745_v34 = vld [vmem:[%s9471_s4 + $0x1f0] ss:$48 sps:$4 sm:$0xff]  }
 0x10c   :  { %2894 = vmatprep.subr.bf16.mxu0 %v6669_v35  ;;  %2935 = vmatprep.subr.bf16.mxu1 %v6672_v36  ;;  %v6748_v35 = vld [vmem:[%s9471_s4 + $0x7f0] ss:$48 sps:$4 sm:$0xff]   ;;  %v6753_v36 = vld [vmem:[%s9471_s4 + $0x194] ss:$48 sps:$4 sm:$0xff]  }
 0x10f   :  { %2895 = vmatpush1.bf16.msra.mxu0 %v6667_v37  ;;  %2936 = vmatpush1.bf16.msra.mxu1 %v6670_v38  ;;  %v6756_v37 = vld [vmem:[%s9471_s4 + $0x794] ss:$48 sps:$4 sm:$0xff]   ;;  %v6751_v38 = vld [vmem:[%s9471_s4 + $0x190] ss:$48 sps:$4 sm:$0xff]  }
 0x110   :  { %2896 = vmatprep.subr.bf16.mxu0 %v6675_v39  ;;  %2937 = vmatprep.subr.bf16.mxu1 %v6678_v40  ;;  %v6754_v39 = vld [vmem:[%s9471_s4 + $0x790] ss:$48 sps:$4 sm:$0xff]   ;;  %v6759_v40 = vld [vmem:[%s9471_s4 + $0x134] ss:$48 sps:$4 sm:$0xff]  }
 0x113   :  { %2897 = vmatpush1.bf16.msra.mxu0 %v6673_v41  ;;  %2938 = vmatpush1.bf16.msra.mxu1 %v6676_v42  ;;  %v6762_v41 = vld [vmem:[%s9471_s4 + $0x734] ss:$48 sps:$4 sm:$0xff]   ;;  %v6757_v42 = vld [vmem:[%s9471_s4 + $0x130] ss:$48 sps:$4 sm:$0xff]  }
 0x114   :  { %2898 = vmatprep.subr.bf16.mxu0 %v6681_v43  ;;  %2939 = vmatprep.subr.bf16.mxu1 %v6684_v44  ;;  %v6760_v43 = vld [vmem:[%s9471_s4 + $0x730] ss:$48 sps:$4 sm:$0xff]   ;;  %v6765_v44 = vld [vmem:[%s9471_s4 + $0xd4] ss:$48 sps:$4 sm:$0xff]  }
 0x117   :  { %2899 = vmatpush1.bf16.msra.mxu0 %v6679_v45  ;;  %2940 = vmatpush1.bf16.msra.mxu1 %v6682_v46  ;;  %v6768_v45 = vld [vmem:[%s9471_s4 + $0x6d4] ss:$48 sps:$4 sm:$0xff]   ;;  %v6763_v46 = vld [vmem:[%s9471_s4 + $0xd0] ss:$48 sps:$4 sm:$0xff]  }
 0x118   :  { %2900 = vmatprep.subr.bf16.mxu0 %v6687_v47  ;;  %2941 = vmatprep.subr.bf16.mxu1 %v6690_v48  ;;  %v6766_v47 = vld [vmem:[%s9471_s4 + $0x6d0] ss:$48 sps:$4 sm:$0xff]   ;;  %v6771_v48 = vld [vmem:[%s9471_s4 + $0x74] ss:$48 sps:$4 sm:$0xff]  }
 0x11b   :  { %2901 = vmatpush2.bf16.msra.mxu0 %v6685_v49  ;;  %2942 = vmatpush2.bf16.msra.mxu1 %v6688_v50  ;;  %v6774_v49 = vld [vmem:[%s9471_s4 + $0x674] ss:$48 sps:$4 sm:$0xff]   ;;  %v6769_v50 = vld [vmem:[%s9471_s4 + $0x70] ss:$48 sps:$4 sm:$0xff]  }
 0x11c   :  { %2902 = vmatprep.subr.bf16.mxu0 %v6693_v51  ;;  %2943 = vmatprep.subr.bf16.mxu1 %v6696_v52  ;;  %v6772_v51 = vld [vmem:[%s9471_s4 + $0x670] ss:$48 sps:$4 sm:$0xff]   ;;  %v6777_v52 = vld [vmem:[%s9471_s4 + $0x14] ss:$48 sps:$4 sm:$0xff]  }
 0x11f   :  { %2903 = vmatpush2.bf16.msra.mxu0 %v6691_v53  ;;  %2944 = vmatpush2.bf16.msra.mxu1 %v6694_v54  ;;  %v6780_v53 = vld [vmem:[%s9471_s4 + $0x614] ss:$48 sps:$4 sm:$0xff]   ;;  %v6775_v54 = vld [vmem:[%s9471_s4 + $0x10] ss:$48 sps:$4 sm:$0xff]  }
 0x120   :  { %2904 = vmatprep.subr.bf16.mxu0 %v6699_v58  ;;  %2945 = vmatprep.subr.bf16.mxu1 %v6702_v61  ;;  %v6778_v58 = vld [vmem:[%s9471_s4 + $0x610] ss:$48 sps:$4 sm:$0xff]   ;;  %v6783_v61 = vld [vmem:[%s9471_s4 + $0x5b4] ss:$48 sps:$4 sm:$0xff]  }
 0x123   :  { %2905 = vmatpush2.bf16.msra.mxu0 %v6697_v62  ;;  %2946 = vmatpush2.bf16.msra.mxu1 %v6700_v63  ;;  %v6786_v62 = vld [vmem:[%s9471_s4 + $0xbb4] ss:$48 sps:$4 sm:$0xff]   ;;  %v6781_v63 = vld [vmem:[%s9471_s4 + $0x5b0] ss:$48 sps:$4 sm:$0xff]  }
 0x124   :  { %2906 = vmatprep.subr.bf16.mxu0 %v6705_v0  ;;  %2947 = vmatprep.subr.bf16.mxu1 %v6708_v1  ;;  %v6784_v0 = vld [vmem:[%s9471_s4 + $0xbb0] ss:$48 sps:$4 sm:$0xff]   ;;  %v6789_v1 = vld [vmem:[%s9471_s4 + $0x554] ss:$48 sps:$4 sm:$0xff]  }
 0x127   :  { %2907 = vmatpush2.bf16.msra.mxu0 %v6703_v2  ;;  %2948 = vmatpush2.bf16.msra.mxu1 %v6706_v3  ;;  %v6792_v2 = vld [vmem:[%s9471_s4 + $0xb54] ss:$48 sps:$4 sm:$0xff]   ;;  %v6787_v3 = vld [vmem:[%s9471_s4 + $0x550] ss:$48 sps:$4 sm:$0xff]  }
 0x128   :  { %2908 = vmatprep.subr.bf16.mxu0 %v6711_v4  ;;  %2949 = vmatprep.subr.bf16.mxu1 %v6714_v5  ;;  %v6790_v4 = vld [vmem:[%s9471_s4 + $0xb50] ss:$48 sps:$4 sm:$0xff]   ;;  %v6795_v5 = vld [vmem:[%s9471_s4 + $0x4f4] ss:$48 sps:$4 sm:$0xff]  }
 0x12b   :  { %2909 = vmatpush2.bf16.msra.mxu0 %v6709_v6  ;;  %2950 = vmatpush2.bf16.msra.mxu1 %v6712_v7  ;;  %v6798_v6 = vld [vmem:[%s9471_s4 + $0xaf4] ss:$48 sps:$4 sm:$0xff]   ;;  %v6793_v7 = vld [vmem:[%s9471_s4 + $0x4f0] ss:$48 sps:$4 sm:$0xff]  }
 0x12c   :  { %2910 = vmatprep.subr.bf16.mxu0 %v6717_v8  ;;  %2951 = vmatprep.subr.bf16.mxu1 %v6720_v10  ;;  %v6796_v8 = vld [vmem:[%s9471_s4 + $0xaf0] ss:$48 sps:$4 sm:$0xff]   ;;  %v6801_v10 = vld [vmem:[%s9471_s4 + $0x494] ss:$48 sps:$4 sm:$0xff]  }
 0x12f   :  { %2911 = vmatpush2.bf16.msra.mxu0 %v6715_v11  ;;  %2952 = vmatpush2.bf16.msra.mxu1 %v6718_v14  ;;  %v6804_v11 = vld [vmem:[%s9471_s4 + $0xa94] ss:$48 sps:$4 sm:$0xff]   ;;  %v6799_v14 = vld [vmem:[%s9471_s4 + $0x490] ss:$48 sps:$4 sm:$0xff]  }
 0x130   :  { %2912 = vmatprep.subr.bf16.mxu0 %v6723_v15  ;;  %2953 = vmatprep.subr.bf16.mxu1 %v6726_v17  ;;  %v6802_v15 = vld [vmem:[%s9471_s4 + $0xa90] ss:$48 sps:$4 sm:$0xff]   ;;  %v6807_v17 = vld [vmem:[%s9471_s4 + $0x434] ss:$48 sps:$4 sm:$0xff]  }
 0x133   :  { %2913 = vmatpush2.bf16.msra.mxu0 %v6721_v18  ;;  %2954 = vmatpush2.bf16.msra.mxu1 %v6724_v19  ;;  %v6810_v18 = vld [vmem:[%s9471_s4 + $0xa34] ss:$48 sps:$4 sm:$0xff]   ;;  %v6805_v19 = vld [vmem:[%s9471_s4 + $0x430] ss:$48 sps:$4 sm:$0xff]  }
 0x134   :  { %2914 = vmatprep.subr.bf16.mxu0 %v6729_v20  ;;  %2955 = vmatprep.subr.bf16.mxu1 %v6732_v21  ;;  %v6808_v20 = vld [vmem:[%s9471_s4 + $0xa30] ss:$48 sps:$4 sm:$0xff]   ;;  %v6813_v21 = vld [vmem:[%s9471_s4 + $0x3d4] ss:$48 sps:$4 sm:$0xff]  }
 0x137   :  { %2915 = vmatpush2.bf16.msra.mxu0 %v6727_v22  ;;  %2956 = vmatpush2.bf16.msra.mxu1 %v6730_v23  ;;  %v6816_v22 = vld [vmem:[%s9471_s4 + $0x9d4] ss:$48 sps:$4 sm:$0xff]   ;;  %v6811_v23 = vld [vmem:[%s9471_s4 + $0x3d0] ss:$48 sps:$4 sm:$0xff]  }
 0x138   :  { %2966 = vmatprep.subr.bf16.mxu0 %v6735_v24  ;;  %3007 = vmatprep.subr.bf16.mxu1 %v6738_v25  ;;  %v6814_v24 = vld [vmem:[%s9471_s4 + $0x9d0] ss:$48 sps:$4 sm:$0xff]   ;;  %v6819_v25 = vld [vmem:[%s9471_s4 + $0x374] ss:$48 sps:$4 sm:$0xff]  }
 0x13a   :  { %2917 = vmatmul.mubr.bf16.vlgmr.msra.gmra.mxu0 %v7782_v16  ;;  %2958 = vmatmul.mubr.bf16.vlgmr.msra.gmra.mxu1 %v7770_v9 }
 0x13b   :  { %2967 = vmatpush1.bf16.msra.mxu0 %v6733_v26  ;;  %2998 = vmatprep.mubr.bf16.mxu0 %v7772_v12  ;;  %v6822_v26 = vld [vmem:[%s9471_s4 + $0x974] ss:$48 sps:$4 sm:$0xff]  }
 0x13c   :  { %3008 = vmatpush1.bf16.msra.mxu1 %v6736_v27  ;;  %3039 = vmatprep.mubr.bf16.mxu1 %v7774_v13  ;;  %v6817_v27 = vld [vmem:[%s9471_s4 + $0x370] ss:$48 sps:$4 sm:$0xff]  }
 0x13d   :  { %2968 = vmatprep.subr.bf16.mxu0 %v6741_v28  ;;  %3009 = vmatprep.subr.bf16.mxu1 %v6744_v29  ;;  %v6820_v28 = vld [vmem:[%s9471_s4 + $0x970] ss:$48 sps:$4 sm:$0xff]   ;;  %v6825_v29 = vld [vmem:[%s9471_s4 + $0x314] ss:$48 sps:$4 sm:$0xff]  }
 0x13f   :  { %2969 = vmatpush1.bf16.msra.mxu0 %v6739_v30  ;;  %v6828_v30 = vld [vmem:[%s9471_s4 + $0x914] ss:$48 sps:$4 sm:$0xff]  }
 0x140   :  { %3010 = vmatpush1.bf16.msra.mxu1 %v6742_v31  ;;  %2970 = vmatprep.subr.bf16.mxu0 %v6747_v32  ;;  %v6823_v31 = vld [vmem:[%s9471_s4 + $0x310] ss:$48 sps:$4 sm:$0xff]  }
 0x141   :  { %3011 = vmatprep.subr.bf16.mxu1 %v6750_v33  ;;  %v6826_v32 = vld [vmem:[%s9471_s4 + $0x910] ss:$48 sps:$4 sm:$0xff]   ;;  %v6831_v33 = vld [vmem:[%s9471_s4 + $0x2bc] ss:$48 sps:$4 sm:$0xff]  }
 0x143   :  { %2971 = vmatpush1.bf16.msra.mxu0 %v6745_v34  ;;  %v6834_v34 = vld [vmem:[%s9471_s4 + $0x8bc] ss:$48 sps:$4 sm:$0xff]  }
 0x144   :  { %3012 = vmatpush1.bf16.msra.mxu1 %v6748_v35  ;;  %2972 = vmatprep.subr.bf16.mxu0 %v6753_v36  ;;  %v6829_v35 = vld [vmem:[%s9471_s4 + $0x2b8] ss:$48 sps:$4 sm:$0xff]  }
 0x145   :  { %3013 = vmatprep.subr.bf16.mxu1 %v6756_v37  ;;  %v6832_v36 = vld [vmem:[%s9471_s4 + $0x8b8] ss:$48 sps:$4 sm:$0xff]   ;;  %v6837_v37 = vld [vmem:[%s9471_s4 + $0x25c] ss:$48 sps:$4 sm:$0xff]  }
 0x147   :  { %2973 = vmatpush1.bf16.msra.mxu0 %v6751_v38  ;;  %v6840_v38 = vld [vmem:[%s9471_s4 + $0x85c] ss:$48 sps:$4 sm:$0xff]  }
 0x148   :  { %3014 = vmatpush1.bf16.msra.mxu1 %v6754_v39  ;;  %2974 = vmatprep.subr.bf16.mxu0 %v6759_v40  ;;  %v6835_v39 = vld [vmem:[%s9471_s4 + $0x258] ss:$48 sps:$4 sm:$0xff]  }
 0x149   :  { %3015 = vmatprep.subr.bf16.mxu1 %v6762_v41  ;;  %v6838_v40 = vld [vmem:[%s9471_s4 + $0x858] ss:$48 sps:$4 sm:$0xff]   ;;  %v6843_v41 = vld [vmem:[%s9471_s4 + $0x1fc] ss:$48 sps:$4 sm:$0xff]  }
 0x14b   :  { %2975 = vmatpush1.bf16.msra.mxu0 %v6757_v42  ;;  %v6846_v42 = vld [vmem:[%s9471_s4 + $0x7fc] ss:$48 sps:$4 sm:$0xff]  }
 0x14c   :  { %3016 = vmatpush1.bf16.msra.mxu1 %v6760_v43  ;;  %2976 = vmatprep.subr.bf16.mxu0 %v6765_v44  ;;  %v6841_v43 = vld [vmem:[%s9471_s4 + $0x1f8] ss:$48 sps:$4 sm:$0xff]  }
 0x14d   :  { %3017 = vmatprep.subr.bf16.mxu1 %v6768_v45  ;;  %v6844_v44 = vld [vmem:[%s9471_s4 + $0x7f8] ss:$48 sps:$4 sm:$0xff]   ;;  %v6849_v45 = vld [vmem:[%s9471_s4 + $0x19c] ss:$48 sps:$4 sm:$0xff]  }
 0x14f   :  { %2977 = vmatpush1.bf16.msra.mxu0 %v6763_v46  ;;  %v6852_v46 = vld [vmem:[%s9471_s4 + $0x79c] ss:$48 sps:$4 sm:$0xff]  }
 0x150   :  { %3018 = vmatpush1.bf16.msra.mxu1 %v6766_v47  ;;  %2978 = vmatprep.subr.bf16.mxu0 %v6771_v48  ;;  %v6847_v47 = vld [vmem:[%s9471_s4 + $0x198] ss:$48 sps:$4 sm:$0xff]  }
 0x151   :  { %3019 = vmatprep.subr.bf16.mxu1 %v6774_v49  ;;  %v6850_v48 = vld [vmem:[%s9471_s4 + $0x798] ss:$48 sps:$4 sm:$0xff]   ;;  %v6855_v49 = vld [vmem:[%s9471_s4 + $0x13c] ss:$48 sps:$4 sm:$0xff]  }
 0x153   :  { %2979 = vmatpush1.bf16.msra.mxu0 %v6769_v50  ;;  %v6858_v50 = vld [vmem:[%s9471_s4 + $0x73c] ss:$48 sps:$4 sm:$0xff]  }
 0x154   :  { %3020 = vmatpush1.bf16.msra.mxu1 %v6772_v51  ;;  %2980 = vmatprep.subr.bf16.mxu0 %v6777_v52  ;;  %v6853_v51 = vld [vmem:[%s9471_s4 + $0x138] ss:$48 sps:$4 sm:$0xff]  }
 0x155   :  { %3021 = vmatprep.subr.bf16.mxu1 %v6780_v53  ;;  %v6856_v52 = vld [vmem:[%s9471_s4 + $0x738] ss:$48 sps:$4 sm:$0xff]   ;;  %v6861_v53 = vld [vmem:[%s9471_s4 + $0xdc] ss:$48 sps:$4 sm:$0xff]  }
 0x157   :  { %2981 = vmatpush1.bf16.msra.mxu0 %v6775_v54  ;;  %v6864_v54 = vld [vmem:[%s9471_s4 + $0x6dc] ss:$48 sps:$4 sm:$0xff]  }
 0x158   :  { %3022 = vmatpush1.bf16.msra.mxu1 %v6778_v58  ;;  %2982 = vmatprep.subr.bf16.mxu0 %v6783_v61  ;;  %v6859_v58 = vld [vmem:[%s9471_s4 + $0xd8] ss:$48 sps:$4 sm:$0xff]  }
 0x159   :  { %3023 = vmatprep.subr.bf16.mxu1 %v6786_v62  ;;  %v6862_v61 = vld [vmem:[%s9471_s4 + $0x6d8] ss:$48 sps:$4 sm:$0xff]   ;;  %v6867_v62 = vld [vmem:[%s9471_s4 + $0x7c] ss:$48 sps:$4 sm:$0xff]  }
 0x15b   :  { %2983 = vmatpush2.bf16.msra.mxu0 %v6781_v63  ;;  %v6870_v63 = vld [vmem:[%s9471_s4 + $0x67c] ss:$48 sps:$4 sm:$0xff]  }
 0x15c   :  { %3024 = vmatpush2.bf16.msra.mxu1 %v6784_v0  ;;  %2984 = vmatprep.subr.bf16.mxu0 %v6789_v1  ;;  %v6865_v0 = vld [vmem:[%s9471_s4 + $0x78] ss:$48 sps:$4 sm:$0xff]  }
 0x15d   :  { %3025 = vmatprep.subr.bf16.mxu1 %v6792_v2  ;;  %v6868_v1 = vld [vmem:[%s9471_s4 + $0x678] ss:$48 sps:$4 sm:$0xff]   ;;  %v6873_v2 = vld [vmem:[%s9471_s4 + $0x1c] ss:$48 sps:$4 sm:$0xff]  }
 0x15f   :  { %2985 = vmatpush2.bf16.msra.mxu0 %v6787_v3  ;;  %v6876_v3 = vld [vmem:[%s9471_s4 + $0x61c] ss:$48 sps:$4 sm:$0xff]  }
 0x160   :  { %3026 = vmatpush2.bf16.msra.mxu1 %v6790_v4  ;;  %2986 = vmatprep.subr.bf16.mxu0 %v6795_v5  ;;  %v6871_v4 = vld [vmem:[%s9471_s4 + $0x18] ss:$48 sps:$4 sm:$0xff]  }
 0x161   :  { %3027 = vmatprep.subr.bf16.mxu1 %v6798_v6  ;;  %v6874_v5 = vld [vmem:[%s9471_s4 + $0x618] ss:$48 sps:$4 sm:$0xff]   ;;  %v6879_v6 = vld [vmem:[%s9471_s4 + $0x5bc] ss:$48 sps:$4 sm:$0xff]  }
 0x163   :  { %2987 = vmatpush2.bf16.msra.mxu0 %v6793_v7  ;;  %v6882_v7 = vld [vmem:[%s9471_s4 + $0xbbc] ss:$48 sps:$4 sm:$0xff]  }
 0x164   :  { %3028 = vmatpush2.bf16.msra.mxu1 %v6796_v8  ;;  %2988 = vmatprep.subr.bf16.mxu0 %v6801_v10  ;;  %v6877_v8 = vld [vmem:[%s9471_s4 + $0x5b8] ss:$48 sps:$4 sm:$0xff]  }
 0x165   :  { %3029 = vmatprep.subr.bf16.mxu1 %v6804_v11  ;;  %v6880_v10 = vld [vmem:[%s9471_s4 + $0xbb8] ss:$48 sps:$4 sm:$0xff]   ;;  %v6885_v11 = vld [vmem:[%s9471_s4 + $0x55c] ss:$48 sps:$4 sm:$0xff]  }
 0x167   :  { %2989 = vmatpush2.bf16.msra.mxu0 %v6799_v14  ;;  %v6888_v14 = vld [vmem:[%s9471_s4 + $0xb5c] ss:$48 sps:$4 sm:$0xff]  }
 0x168   :  { %3030 = vmatpush2.bf16.msra.mxu1 %v6802_v15  ;;  %2990 = vmatprep.subr.bf16.mxu0 %v6807_v17  ;;  %v6883_v15 = vld [vmem:[%s9471_s4 + $0x558] ss:$48 sps:$4 sm:$0xff]  }
 0x169   :  { %3031 = vmatprep.subr.bf16.mxu1 %v6810_v18  ;;  %v6886_v17 = vld [vmem:[%s9471_s4 + $0xb58] ss:$48 sps:$4 sm:$0xff]   ;;  %v6891_v18 = vld [vmem:[%s9471_s4 + $0x4fc] ss:$48 sps:$4 sm:$0xff]  }
 0x16b   :  { %2991 = vmatpush2.bf16.msra.mxu0 %v6805_v19  ;;  %v6894_v19 = vld [vmem:[%s9471_s4 + $0xafc] ss:$48 sps:$4 sm:$0xff]  }
 0x16c   :  { %3032 = vmatpush2.bf16.msra.mxu1 %v6808_v20  ;;  %2992 = vmatprep.subr.bf16.mxu0 %v6813_v21  ;;  %v6889_v20 = vld [vmem:[%s9471_s4 + $0x4f8] ss:$48 sps:$4 sm:$0xff]  }
 0x16d   :  { %3033 = vmatprep.subr.bf16.mxu1 %v6816_v22  ;;  %v6892_v21 = vld [vmem:[%s9471_s4 + $0xaf8] ss:$48 sps:$4 sm:$0xff]   ;;  %v6897_v22 = vld [vmem:[%s9471_s4 + $0x49c] ss:$48 sps:$4 sm:$0xff]  }
 0x16f   :  { %2993 = vmatpush2.bf16.msra.mxu0 %v6811_v23  ;;  %v6900_v23 = vld [vmem:[%s9471_s4 + $0xa9c] ss:$48 sps:$4 sm:$0xff]  }
 0x170   :  { %3034 = vmatpush2.bf16.msra.mxu1 %v6814_v24  ;;  %2994 = vmatprep.subr.bf16.mxu0 %v6819_v25  ;;  %v6895_v24 = vld [vmem:[%s9471_s4 + $0x498] ss:$48 sps:$4 sm:$0xff]  }
 0x171   :  { %3035 = vmatprep.subr.bf16.mxu1 %v6822_v26  ;;  %v6898_v25 = vld [vmem:[%s9471_s4 + $0xa98] ss:$48 sps:$4 sm:$0xff]   ;;  %v6903_v26 = vld [vmem:[%s9471_s4 + $0x43c] ss:$48 sps:$4 sm:$0xff]  }
 0x173   :  { %2995 = vmatpush2.bf16.msra.mxu0 %v6817_v27  ;;  %v6906_v27 = vld [vmem:[%s9471_s4 + $0xa3c] ss:$48 sps:$4 sm:$0xff]  }
 0x174   :  { %3036 = vmatpush2.bf16.msra.mxu1 %v6820_v28  ;;  %2996 = vmatprep.subr.bf16.mxu0 %v6825_v29  ;;  %v6901_v28 = vld [vmem:[%s9471_s4 + $0x438] ss:$48 sps:$4 sm:$0xff]  }
 0x175   :  { %3037 = vmatprep.subr.bf16.mxu1 %v6828_v30  ;;  %v6904_v29 = vld [vmem:[%s9471_s4 + $0xa38] ss:$48 sps:$4 sm:$0xff]   ;;  %v6909_v30 = vld [vmem:[%s9471_s4 + $0x3dc] ss:$48 sps:$4 sm:$0xff]  }
 0x177   :  { %2997 = vmatpush2.bf16.msra.mxu0 %v6823_v31  ;;  %v6912_v31 = vld [vmem:[%s9471_s4 + $0x9dc] ss:$48 sps:$4 sm:$0xff]  }
 0x178   :  { %3038 = vmatpush2.bf16.msra.mxu1 %v6826_v32  ;;  %3048 = vmatprep.subr.bf16.mxu0 %v6831_v33  ;;  %v6907_v32 = vld [vmem:[%s9471_s4 + $0x3d8] ss:$48 sps:$4 sm:$0xff]  }
 0x179   :  { %3089 = vmatprep.subr.bf16.mxu1 %v6834_v34  ;;  %v6910_v33 = vld [vmem:[%s9471_s4 + $0x9d8] ss:$48 sps:$4 sm:$0xff]   ;;  %v6915_v34 = vld [vmem:[%s9471_s4 + $0x37c] ss:$48 sps:$4 sm:$0xff]  }
 0x17a   :  { %2999 = vmatmul.mubr.bf16.vlgmr.msra.gmra.mxu0 %v7782_v16 }
 0x17b   :  { %3040 = vmatmul.mubr.bf16.vlgmr.msra.gmra.mxu1 %v7770_v9  ;;  %3049 = vmatpush1.bf16.msra.mxu0 %v6829_v35  ;;  %v6918_v35 = vld [vmem:[%s9471_s4 + $0x97c] ss:$48 sps:$4 sm:$0xff]  }
 0x17c   :  { %3080 = vmatprep.mubr.bf16.mxu0 %v7772_v12  ;;  %3090 = vmatpush1.bf16.msra.mxu1 %v6832_v36  ;;  %v6913_v36 = vld [vmem:[%s9471_s4 + $0x378] ss:$48 sps:$4 sm:$0xff]  }
 0x17d   :  { %3121 = vmatprep.mubr.bf16.mxu1 %v7774_v13  ;;  %3050 = vmatprep.subr.bf16.mxu0 %v6837_v37  ;;  %v6916_v37 = vld [vmem:[%s9471_s4 + $0x978] ss:$48 sps:$4 sm:$0xff]  }
 0x17e   :  { %3091 = vmatprep.subr.bf16.mxu1 %v6840_v38  ;;  %v6921_v38 = vld [vmem:[%s9471_s4 + $0x31c] ss:$48 sps:$4 sm:$0xff]  }
 0x17f   :  { %3051 = vmatpush1.bf16.msra.mxu0 %v6835_v39  ;;  %v6924_v39 = vld [vmem:[%s9471_s4 + $0x91c] ss:$48 sps:$4 sm:$0xff]  }
 0x180   :  { %3092 = vmatpush1.bf16.msra.mxu1 %v6838_v40  ;;  %3052 = vmatprep.subr.bf16.mxu0 %v6843_v41  ;;  %v6919_v40 = vld [vmem:[%s9471_s4 + $0x318] ss:$48 sps:$4 sm:$0xff]  }
 0x181   :  { %3093 = vmatprep.subr.bf16.mxu1 %v6846_v42  ;;  %v6922_v41 = vld [vmem:[%s9471_s4 + $0x918] ss:$48 sps:$4 sm:$0xff]   ;;  %v6927_v42 = vld [vmem:[%s9471_s4 + $0x2c4] ss:$48 sps:$4 sm:$0xff]  }
 0x183   :  { %3053 = vmatpush1.bf16.msra.mxu0 %v6841_v43  ;;  %v8368_v43 = vld [vmem:[%s9473_s5] sm:$0xff] }
 0x184   :  { %3094 = vmatpush1.bf16.msra.mxu1 %v6844_v44  ;;  %3054 = vmatprep.subr.bf16.mxu0 %v6849_v45  ;;  %v6930_v44 = vld [vmem:[%s9471_s4 + $0x8c4] ss:$48 sps:$4 sm:$0xff]   ;;  %v6925_v45 = vld [vmem:[%s9471_s4 + $0x2c0] ss:$48 sps:$4 sm:$0xff]  }
 0x185   :  { %3095 = vmatprep.subr.bf16.mxu1 %v6852_v46  ;;  %v825_v46 = vrot.slane %v8368_v43, %v7755_v57 }
 0x187   :  { %3055 = vmatpush1.bf16.msra.mxu0 %v6847_v47  ;;  %v6928_v47 = vld [vmem:[%s9471_s4 + $0x8c0] ss:$48 sps:$4 sm:$0xff]  }
 0x188   :  { %3096 = vmatpush1.bf16.msra.mxu1 %v6850_v48  ;;  %3056 = vmatprep.subr.bf16.mxu0 %v6855_v49  ;;  %v829_v48 = vrot.slane %v8368_v43, %v7761_v59  ;;  %v6933_v49 = vld [vmem:[%s9471_s4 + $0x264] ss:$48 sps:$4 sm:$0xff]  }
 0x189   :  { %3097 = vmatprep.subr.bf16.mxu1 %v6858_v50 }
 0x18b   :  { %3057 = vmatpush1.bf16.msra.mxu0 %v6853_v51 }
 0x18c   :  { %3098 = vmatpush1.bf16.msra.mxu1 %v6856_v52  ;;  %3058 = vmatprep.subr.bf16.mxu0 %v6861_v53  ;;  %v6936_v52 = vld [vmem:[%s9471_s4 + $0x864] ss:$48 sps:$4 sm:$0xff]  }
 0x18d   :  { %3099 = vmatprep.subr.bf16.mxu1 %v6864_v54  ;;  %v6931_v54 = vld [vmem:[%s9471_s4 + $0x260] ss:$48 sps:$4 sm:$0xff]  }
 0x18f   :  { %3059 = vmatpush1.bf16.msra.mxu0 %v6859_v58 }
 0x190   :  { %3100 = vmatpush1.bf16.msra.mxu1 %v6862_v61  ;;  %3060 = vmatprep.subr.bf16.mxu0 %v6867_v62  ;;  %v6934_v62 = vld [vmem:[%s9471_s4 + $0x860] ss:$48 sps:$4 sm:$0xff]  }
 0x191   :  { %3101 = vmatprep.subr.bf16.mxu1 %v6870_v63  ;;  %v6939_v63 = vld [vmem:[%s9471_s4 + $0x204] ss:$48 sps:$4 sm:$0xff]  }
 0x193   :  { %3061 = vmatpush1.bf16.msra.mxu0 %v6865_v0 }
 0x194   :  { %3102 = vmatpush1.bf16.msra.mxu1 %v6868_v1  ;;  %3062 = vmatprep.subr.bf16.mxu0 %v6873_v2  ;;  %v6942_v2 = vld [vmem:[%s9471_s4 + $0x804] ss:$48 sps:$4 sm:$0xff]  }
 0x195   :  { %3103 = vmatprep.subr.bf16.mxu1 %v6876_v3 }
 0x197   :  { %3063 = vmatpush1.bf16.msra.mxu0 %v6871_v4 }
 0x198   :  { %3104 = vmatpush1.bf16.msra.mxu1 %v6874_v5  ;;  %3064 = vmatprep.subr.bf16.mxu0 %v6879_v6  ;;  %v6937_v6 = vld [vmem:[%s9471_s4 + $0x200] ss:$48 sps:$4 sm:$0xff]  }
 0x199   :  { %3105 = vmatprep.subr.bf16.mxu1 %v6882_v7 }
 0x19b   :  { %3065 = vmatpush2.bf16.msra.mxu0 %v6877_v8 }
 0x19c   :  { %3106 = vmatpush2.bf16.msra.mxu1 %v6880_v10  ;;  %3066 = vmatprep.subr.bf16.mxu0 %v6885_v11  ;;  %v6940_v10 = vld [vmem:[%s9471_s4 + $0x800] ss:$48 sps:$4 sm:$0xff]   ;;  %v6945_v11 = vld [vmem:[%s9471_s4 + $0x1a4] ss:$48 sps:$4 sm:$0xff]  }
 0x19d   :  { %3107 = vmatprep.subr.bf16.mxu1 %v6888_v14  ;;  %v6948_v14 = vld [vmem:[%s9471_s4 + $0x7a4] ss:$48 sps:$4 sm:$0xff]  }
 0x19f   :  { %3067 = vmatpush2.bf16.msra.mxu0 %v6883_v15  ;;  %v6943_v15 = vld [vmem:[%s9471_s4 + $0x1a0] ss:$48 sps:$4 sm:$0xff]  }
 0x1a0   :  { %3108 = vmatpush2.bf16.msra.mxu1 %v6886_v17  ;;  %3068 = vmatprep.subr.bf16.mxu0 %v6891_v18  ;;  %v6946_v17 = vld [vmem:[%s9471_s4 + $0x7a0] ss:$48 sps:$4 sm:$0xff]   ;;  %v6951_v18 = vld [vmem:[%s9471_s4 + $0x144] ss:$48 sps:$4 sm:$0xff]  }
 0x1a1   :  { %3109 = vmatprep.subr.bf16.mxu1 %v6894_v19  ;;  %v6954_v19 = vld [vmem:[%s9471_s4 + $0x744] ss:$48 sps:$4 sm:$0xff]  }
 0x1a3   :  { %3069 = vmatpush2.bf16.msra.mxu0 %v6889_v20  ;;  %v6949_v20 = vld [vmem:[%s9471_s4 + $0x140] ss:$48 sps:$4 sm:$0xff]  }
 0x1a4   :  { %3110 = vmatpush2.bf16.msra.mxu1 %v6892_v21  ;;  %3070 = vmatprep.subr.bf16.mxu0 %v6897_v22  ;;  %v6952_v21 = vld [vmem:[%s9471_s4 + $0x740] ss:$48 sps:$4 sm:$0xff]   ;;  %v6957_v22 = vld [vmem:[%s9471_s4 + $0xe4] ss:$48 sps:$4 sm:$0xff]  }
 0x1a5   :  { %3111 = vmatprep.subr.bf16.mxu1 %v6900_v23  ;;  %v6960_v23 = vld [vmem:[%s9471_s4 + $0x6e4] ss:$48 sps:$4 sm:$0xff]  }
 0x1a7   :  { %3071 = vmatpush2.bf16.msra.mxu0 %v6895_v24  ;;  %v6955_v24 = vld [vmem:[%s9471_s4 + $0xe0] ss:$48 sps:$4 sm:$0xff]  }
 0x1a8   :  { %3112 = vmatpush2.bf16.msra.mxu1 %v6898_v25  ;;  %3072 = vmatprep.subr.bf16.mxu0 %v6903_v26  ;;  %v6958_v25 = vld [vmem:[%s9471_s4 + $0x6e0] ss:$48 sps:$4 sm:$0xff]   ;;  %v6963_v26 = vld [vmem:[%s9471_s4 + $0x84] ss:$48 sps:$4 sm:$0xff]  }
 0x1a9   :  { %3113 = vmatprep.subr.bf16.mxu1 %v6906_v27  ;;  %v6966_v27 = vld [vmem:[%s9471_s4 + $0x684] ss:$48 sps:$4 sm:$0xff]  }
 0x1ab   :  { %3073 = vmatpush2.bf16.msra.mxu0 %v6901_v28  ;;  %v6961_v28 = vld [vmem:[%s9471_s4 + $0x80] ss:$48 sps:$4 sm:$0xff]  }
 0x1ac   :  { %3114 = vmatpush2.bf16.msra.mxu1 %v6904_v29  ;;  %3074 = vmatprep.subr.bf16.mxu0 %v6909_v30  ;;  %v6964_v29 = vld [vmem:[%s9471_s4 + $0x680] ss:$48 sps:$4 sm:$0xff]   ;;  %v6969_v30 = vld [vmem:[%s9471_s4 + $0x24] ss:$48 sps:$4 sm:$0xff]  }
 0x1ad   :  { %3115 = vmatprep.subr.bf16.mxu1 %v6912_v31  ;;  %v6972_v31 = vld [vmem:[%s9471_s4 + $0x624] ss:$48 sps:$4 sm:$0xff]  }
 0x1af   :  { %3075 = vmatpush2.bf16.msra.mxu0 %v6907_v32  ;;  %v6967_v32 = vld [vmem:[%s9471_s4 + $0x20] ss:$48 sps:$4 sm:$0xff]  }
 0x1b0   :  { %3116 = vmatpush2.bf16.msra.mxu1 %v6910_v33  ;;  %3076 = vmatprep.subr.bf16.mxu0 %v6915_v34  ;;  %v6970_v33 = vld [vmem:[%s9471_s4 + $0x620] ss:$48 sps:$4 sm:$0xff]   ;;  %v6975_v34 = vld [vmem:[%s9471_s4 + $0x5c4] ss:$48 sps:$4 sm:$0xff]  }
 0x1b1   :  { %3117 = vmatprep.subr.bf16.mxu1 %v6918_v35  ;;  %v6978_v35 = vld [vmem:[%s9471_s4 + $0xbc4] ss:$48 sps:$4 sm:$0xff]  }
 0x1b3   :  { %3077 = vmatpush2.bf16.msra.mxu0 %v6913_v36  ;;  %v6973_v36 = vld [vmem:[%s9471_s4 + $0x5c0] ss:$48 sps:$4 sm:$0xff]  }
 0x1b4   :  { %3118 = vmatpush2.bf16.msra.mxu1 %v6916_v37  ;;  %3078 = vmatprep.subr.bf16.mxu0 %v6921_v38  ;;  %v6976_v37 = vld [vmem:[%s9471_s4 + $0xbc0] ss:$48 sps:$4 sm:$0xff]   ;;  %v6981_v38 = vld [vmem:[%s9471_s4 + $0x564] ss:$48 sps:$4 sm:$0xff]  }
 0x1b5   :  { %3119 = vmatprep.subr.bf16.mxu1 %v6924_v39  ;;  %v6984_v39 = vld [vmem:[%s9471_s4 + $0xb64] ss:$48 sps:$4 sm:$0xff]  }
 0x1b7   :  { %3079 = vmatpush2.bf16.msra.mxu0 %v6919_v40  ;;  %v6979_v40 = vld [vmem:[%s9471_s4 + $0x560] ss:$48 sps:$4 sm:$0xff]  }
 0x1b8   :  { %3120 = vmatpush2.bf16.msra.mxu1 %v6922_v41  ;;  %3130 = vmatprep.subr.bf16.mxu0 %v6927_v42  ;;  %v6982_v41 = vld [vmem:[%s9471_s4 + $0xb60] ss:$48 sps:$4 sm:$0xff]   ;;  %v6987_v42 = vld [vmem:[%s9471_s4 + $0x504] ss:$48 sps:$4 sm:$0xff]  }
 0x1b9   :  { %3171 = vmatprep.subr.bf16.mxu1 %v6930_v44  ;;  %v6990_v44 = vld [vmem:[%s9471_s4 + $0xb04] ss:$48 sps:$4 sm:$0xff]  }
 0x1ba   :  { %3081 = vmatmul.mubr.bf16.vlgmr.msra.gmra.mxu0 %v7782_v16  ;;  %v2836_v50 = vpop.f32.mrf.mxu0  ;;  %v2877_v51 = vpop.f32.mrf.mxu1 }
 0x1bb   :  { %3122 = vmatmul.mubr.bf16.vlgmr.msra.gmra.mxu1 %v7770_v9  ;;  %v2837_v53 = vadd.f32 %v2836_v50, %v825_v46  ;;  %3131 = vmatpush1.bf16.msra.mxu0 %v6925_v45  ;;  %v6985_v45 = vld [vmem:[%s9471_s4 + $0x500] ss:$48 sps:$4 sm:$0xff]  }
 0x1bc   :  { %3162 = vmatprep.mubr.bf16.mxu0 %v7772_v12  ;;  %3172 = vmatpush1.bf16.msra.mxu1 %v6928_v47  ;;  %v2838_v58 = vpop.f32.mrf.mxu0  ;;  %v2879_v61 = vpop.f32.mrf.mxu1  ;;  %v6988_v46 = vld [vmem:[%s9471_s4 + $0xb00] ss:$48 sps:$4 sm:$0xff]   ;;  %v6993_v47 = vld [vmem:[%s9471_s4 + $0x4a4] ss:$48 sps:$4 sm:$0xff]  }
 0x1bd   :  { %v8401_v0 = vadd.f32 %v2877_v51, %v2837_v53  ;;  %3203 = vmatprep.mubr.bf16.mxu1 %v7774_v13  ;;  %v2839_v1 = vadd.f32 %v2838_v58, %v829_v48  ;;  %3132 = vmatprep.subr.bf16.mxu0 %v6933_v49  ;;  %v6996_v48 = vld [vmem:[%s9471_s4 + $0xaa4] ss:$48 sps:$4 sm:$0xff]   ;;  %v6991_v49 = vld [vmem:[%s9471_s4 + $0x4a0] ss:$48 sps:$4 sm:$0xff]  }
 0x1be   :  { %3173 = vmatprep.subr.bf16.mxu1 %v6936_v52  ;;  %v2840_v3 = vpop.f32.mrf.mxu0  ;;  %v2881_v4 = vpop.f32.mrf.mxu1  ;;  %v6994_v50 = vld [vmem:[%s9471_s4 + $0xaa0] ss:$48 sps:$4 sm:$0xff]   ;;  %v6999_v51 = vld [vmem:[%s9471_s4 + $0x444] ss:$48 sps:$4 sm:$0xff]  }
 0x1bf   :  { %v8407_v5 = vadd.f32 %v2879_v61, %v2839_v1  ;;  %3133 = vmatpush1.bf16.msra.mxu0 %v6931_v54  ;;  %v7002_v52 = vld [vmem:[%s9471_s4 + $0xa44] ss:$48 sps:$4 sm:$0xff]   ;;  %v6997_v53 = vld [vmem:[%s9471_s4 + $0x440] ss:$48 sps:$4 sm:$0xff]  }
 0x1c0   :  { %3174 = vmatpush1.bf16.msra.mxu1 %v6934_v62  ;;  %v2841_v7 = vpop.f32.mrf.mxu0  ;;  %v2882_v8 = vpop.f32.mrf.mxu1  ;;  %3134 = vmatprep.subr.bf16.mxu0 %v6939_v63  ;;  %v7000_v54 = vld [vmem:[%s9471_s4 + $0xa40] ss:$48 sps:$4 sm:$0xff]   ;;  %v7005_v58 = vld [vmem:[%s9471_s4 + $0x3e4] ss:$48 sps:$4 sm:$0xff]  }
 0x1c1   :  { %3175 = vmatprep.subr.bf16.mxu1 %v6942_v2  ;;  %v7008_v61 = vld [vmem:[%s9471_s4 + $0x9e4] ss:$48 sps:$4 sm:$0xff]   ;;  %v7003_v62 = vld [vmem:[%s9471_s4 + $0x3e0] ss:$48 sps:$4 sm:$0xff]  }
 0x1c2   :  { %v7006_v63 = vld [vmem:[%s9471_s4 + $0x9e0] ss:$48 sps:$4 sm:$0xff]   ;;  %v7011_v1 = vld [vmem:[%s9471_s4 + $0x384] ss:$48 sps:$4 sm:$0xff]  }
 0x1c3   :  { %3135 = vmatpush1.bf16.msra.mxu0 %v6937_v6  ;;  %v7014_v2 = vld [vmem:[%s9471_s4 + $0x984] ss:$48 sps:$4 sm:$0xff]   ;;  %v7009_v3 = vld [vmem:[%s9471_s4 + $0x380] ss:$48 sps:$4 sm:$0xff]  }
 0x1c4   :  { %3176 = vmatpush1.bf16.msra.mxu1 %v6940_v10  ;;  %3136 = vmatprep.subr.bf16.mxu0 %v6945_v11  ;;  %v7012_v4 = vld [vmem:[%s9471_s4 + $0x980] ss:$48 sps:$4 sm:$0xff]   ;;  %v7017_v6 = vld [vmem:[%s9471_s4 + $0x324] ss:$48 sps:$4 sm:$0xff]   ;;  %v7023_v11 = vld [vmem:[%s9471_s4 + $0x2cc] ss:$48 sps:$4 sm:$0xff]  }
 0x1c5   :  { %3177 = vmatprep.subr.bf16.mxu1 %v6948_v14  ;;  %v7020_v7 = vld [vmem:[%s9471_s4 + $0x924] ss:$48 sps:$4 sm:$0xff]   ;;  %v7015_v8 = vld [vmem:[%s9471_s4 + $0x320] ss:$48 sps:$4 sm:$0xff]   ;;  %v7026_v14 = vld [vmem:[%s9471_s4 + $0x8cc] ss:$48 sps:$4 sm:$0xff]  }
 0x1c6   :  { %v7018_v10 = vld [vmem:[%s9471_s4 + $0x920] ss:$48 sps:$4 sm:$0xff]  }
 0x1c7   :  { %3137 = vmatpush1.bf16.msra.mxu0 %v6943_v15  ;;  %v833_v15 = vrot.slane %v8368_v43, %v7752_v56 }
 0x1c8   :  { %3178 = vmatpush1.bf16.msra.mxu1 %v6946_v17  ;;  %3138 = vmatprep.subr.bf16.mxu0 %v6951_v18  ;;  %v7021_v17 = vld [vmem:[%s9471_s4 + $0x2c8] ss:$48 sps:$4 sm:$0xff]  }
 0x1c9   :  { %3179 = vmatprep.subr.bf16.mxu1 %v6954_v19  ;;  %v7024_v18 = vld [vmem:[%s9471_s4 + $0x8c8] ss:$48 sps:$4 sm:$0xff]   ;;  %v837_v19 = vrot.slane %v8368_v43, %v7764_v60 }
 0x1cb   :  { %3139 = vmatpush1.bf16.msra.mxu0 %v6949_v20  ;;  %v7029_v20 = vld [vmem:[%s9471_s4 + $0x26c] ss:$48 sps:$4 sm:$0xff]  }
 0x1cc   :  { %3180 = vmatpush1.bf16.msra.mxu1 %v6952_v21  ;;  %3140 = vmatprep.subr.bf16.mxu0 %v6957_v22 }
 0x1cd   :  { %3181 = vmatprep.subr.bf16.mxu1 %v6960_v23  ;;  %v7032_v23 = vld [vmem:[%s9471_s4 + $0x86c] ss:$48 sps:$4 sm:$0xff]  }
 0x1cf   :  { %3141 = vmatpush1.bf16.msra.mxu0 %v6955_v24 }
 0x1d0   :  { %3182 = vmatpush1.bf16.msra.mxu1 %v6958_v25  ;;  %3142 = vmatprep.subr.bf16.mxu0 %v6963_v26  ;;  %v7027_v25 = vld [vmem:[%s9471_s4 + $0x268] ss:$48 sps:$4 sm:$0xff]  }
 0x1d1   :  { %3183 = vmatprep.subr.bf16.mxu1 %v6966_v27 }
 0x1d3   :  { %3143 = vmatpush1.bf16.msra.mxu0 %v6961_v28  ;;  %v7030_v28 = vld [vmem:[%s9471_s4 + $0x868] ss:$48 sps:$4 sm:$0xff]  }
 0x1d4   :  { %3184 = vmatpush1.bf16.msra.mxu1 %v6964_v29  ;;  %3144 = vmatprep.subr.bf16.mxu0 %v6969_v30  ;;  %v7035_v29 = vld [vmem:[%s9471_s4 + $0x20c] ss:$48 sps:$4 sm:$0xff]  }
 0x1d5   :  { %3185 = vmatprep.subr.bf16.mxu1 %v6972_v31 }
 0x1d7   :  { %3145 = vmatpush1.bf16.msra.mxu0 %v6967_v32 }
 0x1d8   :  { %3186 = vmatpush1.bf16.msra.mxu1 %v6970_v33  ;;  %3146 = vmatprep.subr.bf16.mxu0 %v6975_v34 }
 0x1d9   :  { %3187 = vmatprep.subr.bf16.mxu1 %v6978_v35  ;;  %v7033_v35 = vld [vmem:[%s9471_s4 + $0x208] ss:$48 sps:$4 sm:$0xff]  }
 0x1db   :  { %3147 = vmatpush2.bf16.msra.mxu0 %v6973_v36 }
 0x1dc   :  { %3188 = vmatpush2.bf16.msra.mxu1 %v6976_v37  ;;  %3148 = vmatprep.subr.bf16.mxu0 %v6981_v38  ;;  %v7041_v38 = vld [vmem:[%s9471_s4 + $0x1ac] ss:$48 sps:$4 sm:$0xff]  }
 0x1dd   :  { %3189 = vmatprep.subr.bf16.mxu1 %v6984_v39  ;;  %v7044_v39 = vld [vmem:[%s9471_s4 + $0x7ac] ss:$48 sps:$4 sm:$0xff]  }
 0x1df   :  { %3149 = vmatpush2.bf16.msra.mxu0 %v6979_v40  ;;  %v7039_v40 = vld [vmem:[%s9471_s4 + $0x1a8] ss:$48 sps:$4 sm:$0xff]  }
 0x1e0   :  { %3190 = vmatpush2.bf16.msra.mxu1 %v6982_v41  ;;  %3150 = vmatprep.subr.bf16.mxu0 %v6987_v42  ;;  %v7042_v41 = vld [vmem:[%s9471_s4 + $0x7a8] ss:$48 sps:$4 sm:$0xff]   ;;  %v7047_v42 = vld [vmem:[%s9471_s4 + $0x14c] ss:$48 sps:$4 sm:$0xff]  }
 0x1e1   :  { %3191 = vmatprep.subr.bf16.mxu1 %v6990_v44  ;;  %v7050_v44 = vld [vmem:[%s9471_s4 + $0x74c] ss:$48 sps:$4 sm:$0xff]  }
 0x1e3   :  { %3151 = vmatpush2.bf16.msra.mxu0 %v6985_v45  ;;  %v7045_v45 = vld [vmem:[%s9471_s4 + $0x148] ss:$48 sps:$4 sm:$0xff]  }
 0x1e4   :  { %3192 = vmatpush2.bf16.msra.mxu1 %v6988_v46  ;;  %3152 = vmatprep.subr.bf16.mxu0 %v6993_v47  ;;  %v7048_v46 = vld [vmem:[%s9471_s4 + $0x748] ss:$48 sps:$4 sm:$0xff]   ;;  %v7053_v47 = vld [vmem:[%s9471_s4 + $0xec] ss:$48 sps:$4 sm:$0xff]  }
 0x1e5   :  { %3193 = vmatprep.subr.bf16.mxu1 %v6996_v48  ;;  %v7056_v48 = vld [vmem:[%s9471_s4 + $0x6ec] ss:$48 sps:$4 sm:$0xff]  }
 0x1e7   :  { %3153 = vmatpush2.bf16.msra.mxu0 %v6991_v49  ;;  %v7051_v49 = vld [vmem:[%s9471_s4 + $0xe8] ss:$48 sps:$4 sm:$0xff]  }
 0x1e8   :  { %3194 = vmatpush2.bf16.msra.mxu1 %v6994_v50  ;;  %3154 = vmatprep.subr.bf16.mxu0 %v6999_v51  ;;  %v7054_v50 = vld [vmem:[%s9471_s4 + $0x6e8] ss:$48 sps:$4 sm:$0xff]   ;;  %v7059_v51 = vld [vmem:[%s9471_s4 + $0x8c] ss:$48 sps:$4 sm:$0xff]  }
 0x1e9   :  { %3195 = vmatprep.subr.bf16.mxu1 %v7002_v52  ;;  %v7062_v52 = vld [vmem:[%s9471_s4 + $0x68c] ss:$48 sps:$4 sm:$0xff]  }
 0x1eb   :  { %3155 = vmatpush2.bf16.msra.mxu0 %v6997_v53  ;;  %v7057_v53 = vld [vmem:[%s9471_s4 + $0x88] ss:$48 sps:$4 sm:$0xff]  }
 0x1ec   :  { %3196 = vmatpush2.bf16.msra.mxu1 %v7000_v54  ;;  %3156 = vmatprep.subr.bf16.mxu0 %v7005_v58  ;;  %v7060_v54 = vld [vmem:[%s9471_s4 + $0x688] ss:$48 sps:$4 sm:$0xff]   ;;  %v7065_v58 = vld [vmem:[%s9471_s4 + $0x2c] ss:$48 sps:$4 sm:$0xff]  }
 0x1ed   :  { %3197 = vmatprep.subr.bf16.mxu1 %v7008_v61  ;;  %v7068_v61 = vld [vmem:[%s9471_s4 + $0x62c] ss:$48 sps:$4 sm:$0xff]  }
 0x1ef   :  { %3157 = vmatpush2.bf16.msra.mxu0 %v7003_v62  ;;  %v7063_v62 = vld [vmem:[%s9471_s4 + $0x28] ss:$48 sps:$4 sm:$0xff]  }
 0x1f0   :  { %3198 = vmatpush2.bf16.msra.mxu1 %v7006_v63  ;;  %3158 = vmatprep.subr.bf16.mxu0 %v7011_v1  ;;  %v7066_v63 = vld [vmem:[%s9471_s4 + $0x628] ss:$48 sps:$4 sm:$0xff]   ;;  %v7071_v1 = vld [vmem:[%s9471_s4 + $0x5cc] ss:$48 sps:$4 sm:$0xff]  }
 0x1f1   :  { %3199 = vmatprep.subr.bf16.mxu1 %v7014_v2  ;;  %v7074_v2 = vld [vmem:[%s9471_s4 + $0xbcc] ss:$48 sps:$4 sm:$0xff]  }
 0x1f3   :  { %3159 = vmatpush2.bf16.msra.mxu0 %v7009_v3  ;;  %v7069_v3 = vld [vmem:[%s9471_s4 + $0x5c8] ss:$48 sps:$4 sm:$0xff]  }
 0x1f4   :  { %3200 = vmatpush2.bf16.msra.mxu1 %v7012_v4  ;;  %3160 = vmatprep.subr.bf16.mxu0 %v7017_v6  ;;  %v7072_v4 = vld [vmem:[%s9471_s4 + $0xbc8] ss:$48 sps:$4 sm:$0xff]   ;;  %v7077_v6 = vld [vmem:[%s9471_s4 + $0x56c] ss:$48 sps:$4 sm:$0xff]  }
 0x1f5   :  { %3201 = vmatprep.subr.bf16.mxu1 %v7020_v7  ;;  %v7080_v7 = vld [vmem:[%s9471_s4 + $0xb6c] ss:$48 sps:$4 sm:$0xff]  }
 0x1f7   :  { %3161 = vmatpush2.bf16.msra.mxu0 %v7015_v8  ;;  %v7075_v8 = vld [vmem:[%s9471_s4 + $0x568] ss:$48 sps:$4 sm:$0xff]  }
 0x1f8   :  { %3202 = vmatpush2.bf16.msra.mxu1 %v7018_v10  ;;  %3212 = vmatprep.subr.bf16.mxu0 %v7023_v11  ;;  %v7078_v10 = vld [vmem:[%s9471_s4 + $0xb68] ss:$48 sps:$4 sm:$0xff]   ;;  %v7083_v11 = vld [vmem:[%s9471_s4 + $0x50c] ss:$48 sps:$4 sm:$0xff]  }
 0x1f9   :  { %3253 = vmatprep.subr.bf16.mxu1 %v7026_v14  ;;  %v7086_v14 = vld [vmem:[%s9471_s4 + $0xb0c] ss:$48 sps:$4 sm:$0xff]  }
 0x1fa   :  { %v2918_v21 = vpop.f32.mrf.mxu0  ;;  %v2959_v22 = vpop.f32.mrf.mxu1  ;;  %3163 = vmatmul.mubr.bf16.vlgmr.msra.gmra.mxu0 %v7782_v16 }
 0x1fb   :  { %v2919_v24 = vadd.f32 %v2918_v21, %v833_v15  ;;  %3204 = vmatmul.mubr.bf16.vlgmr.msra.gmra.mxu1 %v7770_v9  ;;  %3213 = vmatpush1.bf16.msra.mxu0 %v7021_v17  ;;  %v7081_v15 = vld [vmem:[%s9471_s4 + $0x508] ss:$48 sps:$4 sm:$0xff]  }
 0x1fc   :  { %3244 = vmatprep.mubr.bf16.mxu0 %v7772_v12  ;;  %3254 = vmatpush1.bf16.msra.mxu1 %v7024_v18  ;;  %v2920_v26 = vpop.f32.mrf.mxu0  ;;  %v2961_v27 = vpop.f32.mrf.mxu1  ;;  %v7038_v12 = vld [vmem:[%s9471_s4 + $0x80c] ss:$48 sps:$4 sm:$0xff]   ;;  %v7084_v17 = vld [vmem:[%s9471_s4 + $0xb08] ss:$48 sps:$4 sm:$0xff]  }
 0x1fd   :  { %v8605_v30 = vadd.f32 %v2959_v22, %v2919_v24  ;;  %3285 = vmatprep.mubr.bf16.mxu1 %v7774_v13  ;;  %v2921_v31 = vadd.f32 %v2920_v26, %v837_v19  ;;  %3214 = vmatprep.subr.bf16.mxu0 %v7029_v20  ;;  %v7036_v13 = vld [vmem:[%s9471_s4 + $0x808] ss:$48 sps:$4 sm:$0xff]   ;;  %v7089_v18 = vld [vmem:[%s9471_s4 + $0x4ac] ss:$48 sps:$4 sm:$0xff]  }
 0x1fe   :  { %v2922_v32 = vpop.f32.mrf.mxu0  ;;  %v2963_v33 = vpop.f32.mrf.mxu1  ;;  %3255 = vmatprep.subr.bf16.mxu1 %v7032_v23  ;;  %v7092_v19 = vld [vmem:[%s9471_s4 + $0xaac] ss:$48 sps:$4 sm:$0xff]   ;;  %v7087_v20 = vld [vmem:[%s9471_s4 + $0x4a8] ss:$48 sps:$4 sm:$0xff]  }
 0x1ff   :  { %v8611_v34 = vadd.f32 %v2961_v27, %v2921_v31  ;;  %3215 = vmatpush1.bf16.msra.mxu0 %v7027_v25  ;;  %v7090_v21 = vld [vmem:[%s9471_s4 + $0xaa8] ss:$48 sps:$4 sm:$0xff]   ;;  %v7095_v22 = vld [vmem:[%s9471_s4 + $0x44c] ss:$48 sps:$4 sm:$0xff]  }
 0x200   :  { %3256 = vmatpush1.bf16.msra.mxu1 %v7030_v28  ;;  %v2923_v36 = vpop.f32.mrf.mxu0  ;;  %v2964_v37 = vpop.f32.mrf.mxu1  ;;  %3216 = vmatprep.subr.bf16.mxu0 %v7035_v29  ;;  %v7098_v23 = vld [vmem:[%s9471_s4 + $0xa4c] ss:$48 sps:$4 sm:$0xff]   ;;  %v7093_v24 = vld [vmem:[%s9471_s4 + $0x448] ss:$48 sps:$4 sm:$0xff]  }
 0x201   :  { %3257 = vmatprep.subr.bf16.mxu1 %v7038_v12  ;;  %v7096_v25 = vld [vmem:[%s9471_s4 + $0xa48] ss:$48 sps:$4 sm:$0xff]   ;;  %v7101_v26 = vld [vmem:[%s9471_s4 + $0x3ec] ss:$48 sps:$4 sm:$0xff]  }
 0x202   :  { %v7104_v27 = vld [vmem:[%s9471_s4 + $0x9ec] ss:$48 sps:$4 sm:$0xff]   ;;  %v7099_v28 = vld [vmem:[%s9471_s4 + $0x3e8] ss:$48 sps:$4 sm:$0xff]  }
 0x203   :  { %3217 = vmatpush1.bf16.msra.mxu0 %v7033_v35  ;;  %v7102_v29 = vld [vmem:[%s9471_s4 + $0x9e8] ss:$48 sps:$4 sm:$0xff]   ;;  %v7107_v31 = vld [vmem:[%s9471_s4 + $0x38c] ss:$48 sps:$4 sm:$0xff]  }
 0x204   :  { %3258 = vmatpush1.bf16.msra.mxu1 %v7036_v13  ;;  %3218 = vmatprep.subr.bf16.mxu0 %v7041_v38  ;;  %v7110_v12 = vld [vmem:[%s9471_s4 + $0x98c] ss:$48 sps:$4 sm:$0xff]   ;;  %v7105_v32 = vld [vmem:[%s9471_s4 + $0x388] ss:$48 sps:$4 sm:$0xff]   ;;  %v840_v13 = vsub.s32 4, %v7749_v55 }
 0x205   :  { %3259 = vmatprep.subr.bf16.mxu1 %v7044_v39  ;;  %v7108_v33 = vld [vmem:[%s9471_s4 + $0x988] ss:$48 sps:$4 sm:$0xff]   ;;  %v7113_v35 = vld [vmem:[%s9471_s4 + $0x32c] ss:$48 sps:$4 sm:$0xff]   ;;  %v844_v39 = vsub.s32 5, %v7749_v55 }
 0x206   :  { %v7116_v36 = vld [vmem:[%s9471_s4 + $0x92c] ss:$48 sps:$4 sm:$0xff]   ;;  %v7111_v37 = vld [vmem:[%s9471_s4 + $0x328] ss:$48 sps:$4 sm:$0xff]  }
 0x207   :  { %3219 = vmatpush1.bf16.msra.mxu0 %v7039_v40  ;;  %v7114_v38 = vld [vmem:[%s9471_s4 + $0x928] ss:$48 sps:$4 sm:$0xff]   ;;  %v841_v40 = vrot.slane %v8368_v43, %v840_v13  ;;  %s7352_s4 = smov 64  }
 0x208   :  { %3260 = vmatpush1.bf16.msra.mxu1 %v7042_v41  ;;  %3220 = vmatprep.subr.bf16.mxu0 %v7047_v42  ;;  %v7350_v41 = vmov 0.0   ;;  %v845_v42 = vrot.slane %v8368_v43, %v844_v39 }
 0x209   :  { %3261 = vmatprep.subr.bf16.mxu1 %v7050_v44 }
 0x20b   :  { %3221 = vmatpush1.bf16.msra.mxu0 %v7045_v45 }
 0x20c   :  { %3262 = vmatpush1.bf16.msra.mxu1 %v7048_v46  ;;  %3222 = vmatprep.subr.bf16.mxu0 %v7053_v47 }
 0x20d   :  { %3263 = vmatprep.subr.bf16.mxu1 %v7056_v48 }
 0x20f   :  { %3223 = vmatpush1.bf16.msra.mxu0 %v7051_v49 }
 0x210   :  { %3264 = vmatpush1.bf16.msra.mxu1 %v7054_v50  ;;  %3224 = vmatprep.subr.bf16.mxu0 %v7059_v51 }
 0x211   :  { %3265 = vmatprep.subr.bf16.mxu1 %v7062_v52 }
 0x213   :  { %3225 = vmatpush1.bf16.msra.mxu0 %v7057_v53 }
 0x214   :  { %3266 = vmatpush1.bf16.msra.mxu1 %v7060_v54  ;;  %3226 = vmatprep.subr.bf16.mxu0 %v7065_v58 }
 0x215   :  { %3267 = vmatprep.subr.bf16.mxu1 %v7068_v61  ;;  %v3294_v61 = vpack.c.bf16 %v8401_v0, %v8401_v0 }
 0x217   :  { %3227 = vmatpush1.bf16.msra.mxu0 %v7063_v62  ;;  %v848_v62 = vsub.s32 6, %v7749_v55 }
 0x218   :  { %3268 = vmatpush1.bf16.msra.mxu1 %v7066_v63  ;;  %3228 = vmatprep.subr.bf16.mxu0 %v7071_v1  ;;  %v852_v63 = vsub.s32 7, %v7749_v55 }
 0x219   :  { %3269 = vmatprep.subr.bf16.mxu1 %v7074_v2  ;;  %v849_v1 = vrot.slane %v8368_v43, %v848_v62 }
 0x21a   :  { %v853_v2 = vrot.slane %v8368_v43, %v852_v63  ;;  %v819_v43 = vld [vmem:[%s9473_s5 + $0x8] sm:$0xf] }
 0x21b   :  { %3229 = vmatpush2.bf16.msra.mxu0 %v7069_v3  ;;  %v865_v13 = vrot.slane %v819_v43, %v7752_v56 }
 0x21c   :  { %3270 = vmatpush2.bf16.msra.mxu1 %v7072_v4  ;;  %3230 = vmatprep.subr.bf16.mxu0 %v7077_v6 }
 0x21d   :  { %3271 = vmatprep.subr.bf16.mxu1 %v7080_v7 }
 0x21f   :  { %3231 = vmatpush2.bf16.msra.mxu0 %v7075_v8 }
 0x220   :  { %3272 = vmatpush2.bf16.msra.mxu1 %v7078_v10  ;;  %3232 = vmatprep.subr.bf16.mxu0 %v7083_v11 }
 0x221   :  { %3273 = vmatprep.subr.bf16.mxu1 %v7086_v14 }
 0x223   :  { %3233 = vmatpush2.bf16.msra.mxu0 %v7081_v15 }
 0x224   :  { %3274 = vmatpush2.bf16.msra.mxu1 %v7084_v17  ;;  %3234 = vmatprep.subr.bf16.mxu0 %v7089_v18 }
 0x225   :  { %3275 = vmatprep.subr.bf16.mxu1 %v7092_v19 }
 0x227   :  { %3235 = vmatpush2.bf16.msra.mxu0 %v7087_v20  ;;  %v857_v20 = vrot.slane %v819_v43, %v7755_v57 }
 0x228   :  { %3276 = vmatpush2.bf16.msra.mxu1 %v7090_v21  ;;  %3236 = vmatprep.subr.bf16.mxu0 %v7095_v22  ;;  %v861_v21 = vrot.slane %v819_v43, %v7761_v59 }
 0x229   :  { %3277 = vmatprep.subr.bf16.mxu1 %v7098_v23 }
 0x22b   :  { %3237 = vmatpush2.bf16.msra.mxu0 %v7093_v24 }
 0x22c   :  { %3278 = vmatpush2.bf16.msra.mxu1 %v7096_v25  ;;  %3238 = vmatprep.subr.bf16.mxu0 %v7101_v26 }
 0x22d   :  { %3279 = vmatprep.subr.bf16.mxu1 %v7104_v27 }
 0x22f   :  { %3239 = vmatpush2.bf16.msra.mxu0 %v7099_v28 }
 0x230   :  { %3280 = vmatpush2.bf16.msra.mxu1 %v7102_v29  ;;  %3240 = vmatprep.subr.bf16.mxu0 %v7107_v31 }
 0x231   :  { %3281 = vmatprep.subr.bf16.mxu1 %v7110_v12 }
 0x233   :  { %3241 = vmatpush2.bf16.msra.mxu0 %v7105_v32 }
 0x234   :  { %3282 = vmatpush2.bf16.msra.mxu1 %v7108_v33  ;;  %3242 = vmatprep.subr.bf16.mxu0 %v7113_v35 }
 0x235   :  { %3283 = vmatprep.subr.bf16.mxu1 %v7116_v36 }
 0x237   :  { %3243 = vmatpush2.bf16.msra.mxu0 %v7111_v37 }
 0x238   :  { %3284 = vmatpush2.bf16.msra.mxu1 %v7114_v38  ;;  %6369 = vmatprep.subr.bf16.mxu0 %v7350_v41  ;;  %v869_v38 = vrot.slane %v819_v43, %v7764_v60 }
 0x239   :  { %6375 = vmatprep.subr.bf16.mxu1 %v7350_v41 }
 0x23a   :  { %v3000_v44 = vpop.f32.mrf.mxu0  ;;  %3245 = vmatmul.mubr.bf16.vlgmr.msra.gmra.mxu0 %v7782_v16 }
 0x23b   :  { %v3001_v45 = vadd.f32 %v3000_v44, %v841_v40  ;;  %v3041_v46 = vpop.f32.mrf.mxu1  ;;  %3286 = vmatmul.mubr.bf16.vlgmr.msra.gmra.mxu1 %v7770_v9  ;;  %6371 = vmatprep.mubr.msk.bf16.mxu0 %vm7351_vm1, %v7350_v41 }
 0x23c   :  { %v3002_v47 = vpop.f32.mrf.mxu0  ;;  %6377 = vmatprep.mubr.msk.bf16.mxu1 %vm7351_vm1, %v7350_v41 }
 0x23d   :  { %v3042_v48 = vadd.f32 %v3041_v46, %v3001_v45  ;;  %v3003_v49 = vadd.f32 %v3002_v47, %v845_v42  ;;  %v3043_v50 = vpop.f32.mrf.mxu1 }
 0x23e   :  { %v3004_v51 = vpop.f32.mrf.mxu0 }
 0x23f   :  { %v3298_v52 = vpack.c.bf16 %v3042_v48, %v3042_v48  ;;  %v8787_v53 = vadd.f32 %v3043_v50, %v3003_v49  ;;  %v3045_v16 = vpop.f32.mrf.mxu1 }
 0x240   :  { %v3005_v54 = vpop.f32.mrf.mxu0 }
 0x241   :  { %v3439_v58 = vsel %vm344_vm0, %v3298_v52, 0  ;;  %v3046_v9 = vpop.f32.mrf.mxu1  ;;  %3548 = vrot.lane.b32.xlu0 %v3298_v52, %s7352_s4  ;;  %v8826_v54 = vld [vmem:[%s9474_s1] sm:$0xff] }
 0x242   :  { %6370 = vmatpush3.bf16.xpose.msra.mxu0 %v3439_v58 }
 0x243   :  { %6381 = vmatprep.subr.bf16.mxu0 %v7350_v41 }
 0x245   :  { %3545 = vrot.lane.b32.xlu0 %v3294_v61, %s7352_s4 }
 0x249   :  { %6372 = vmatmul.mubr.msk.bf16.vlgmr.msra.gmra.mxu0 %vm344_vm0, %v3294_v61 }
 0x24a   :  { %6383 = vmatprep.mubr.msk.bf16.mxu0 %vm7351_vm1, %v7350_v41 }
 0x27a   :  { %v3082_v3 = vpop.f32.mrf.mxu0 }
 0x27b   :  { %v3083_v4 = vadd.f32 %v3082_v3, %v849_v1  ;;  %v3123_v0 = vpop.f32.mrf.mxu1 }
 0x27c   :  { %v3084_v6 = vpop.f32.mrf.mxu0 }
 0x27d   :  { %v8802_v7 = vadd.f32 %v3123_v0, %v3083_v4  ;;  %v3085_v8 = vadd.f32 %v3084_v6, %v853_v2  ;;  %v3125_v10 = vpop.f32.mrf.mxu1 }
 0x27e   :  { %v3086_v11 = vpop.f32.mrf.mxu0 }
 0x27f   :  { %v8804_v14 = vadd.f32 %v3125_v10, %v3085_v8  ;;  %v3127_v15 = vpop.f32.mrf.mxu1 }
 0x280   :  { %v3087_v17 = vpop.f32.mrf.mxu0 }
 0x281   :  { %v3128_v18 = vpop.f32.mrf.mxu1 }
 0x2b3   :  { %v3549_v19 = vpop.permute.xlu0 %3548 }
 0x2b4   :  { %v3554_v55 = vsel %vm344_vm0, %v3549_v19, 0 }
 0x2b5   :  { %6382 = vmatpush3.bf16.xpose.msra.mxu0 %v3554_v55 }
 0x2b7   :  { %v3546_v23 = vpop.permute.xlu0 %3545 }
 0x2ba   :  { %v3164_v22 = vpop.f32.mrf.mxu0 }
 0x2bb   :  { %v3165_v24 = vadd.f32 %v3164_v22, %v857_v20  ;;  %v3205_v25 = vpop.f32.mrf.mxu1 }
 0x2bc   :  { %v3166_v26 = vpop.f32.mrf.mxu0  ;;  %6384 = vmatmul.mubr.msk.bf16.vlgmr.msra.gmra.mxu0 %vm344_vm0, %v3546_v23 }
 0x2bd   :  { %v3206_v27 = vadd.f32 %v3205_v25, %v3165_v24  ;;  %v3167_v28 = vadd.f32 %v3166_v26, %v861_v21  ;;  %v3207_v29 = vpop.f32.mrf.mxu1 }
 0x2be   :  { %v3168_v31 = vpop.f32.mrf.mxu0 }
 0x2bf   :  { %v3302_v12 = vpack.c.bf16 %v3206_v27, %v3206_v27  ;;  %v8813_v32 = vadd.f32 %v3207_v29, %v3167_v28  ;;  %v3209_v33 = vpop.f32.mrf.mxu1  ;;  %v7117_v27 = vld [vmem:[%s9475_s6 + $0xe0] ss:$16 sps:$4 sm:$0xff]   ;;  %v7119_v28 = vld [vmem:[%s9475_s6 + $0xe4] ss:$16 sps:$4 sm:$0xff]  }
 0x2c0   :  { %v3169_v35 = vpop.f32.mrf.mxu0  ;;  %3751 = vmatprep.subr.bf16.mxu0 %v7119_v28  ;;  %v7125_v29 = vld [vmem:[%s9475_s6 + $0xc4] ss:$16 sps:$4 sm:$0xff]   ;;  %v7123_v31 = vld [vmem:[%s9475_s6 + $0xc0] ss:$16 sps:$4 sm:$0xff]  }
 0x2c1   :  { %v3501_v36 = vsel %vm3499_vm2, %v3302_v12, 0  ;;  %v3210_v37 = vpop.f32.mrf.mxu1  ;;  %3752 = vmatpush1.bf16.msra.mxu0 %v7117_v27  ;;  %v7129_v33 = vld [vmem:[%s9475_s6 + $0xa0] ss:$16 sps:$4 sm:$0xff]   ;;  %v7137_v35 = vld [vmem:[%s9475_s6 + $0x84] ss:$16 sps:$4 sm:$0xff]   ;;  %v8946_v27 = vpack.c.bf16 %v8813_v32, %v8813_v32 }
 0x2c2   :  { %6376 = vmatpush3.bf16.msra.mxu1 %v3501_v36  ;;  %3753 = vmatprep.subr.bf16.mxu0 %v7125_v29  ;;  %v7135_v36 = vld [vmem:[%s9475_s6 + $0x80] ss:$16 sps:$4 sm:$0xff]  }
 0x2c3   :  { %6387 = vmatprep.subr.bf16.mxu1 %v7350_v41 }
 0x2c5   :  { %3754 = vmatpush1.bf16.msra.mxu0 %v7123_v31  ;;  %v4054_v31 = vsel %vm3499_vm2, %v8946_v27, 0 }
 0x2fa   :  { %v3246_v39 = vpop.f32.mrf.mxu0 }
 0x2fb   :  { %v3247_v40 = vadd.f32 %v3246_v39, %v865_v13  ;;  %v3287_v42 = vpop.f32.mrf.mxu1  ;;  %v7122_v13 = vld [vmem:[%s9475_s6 + $0xec] ss:$16 sps:$4 sm:$0xff]  }
 0x2fc   :  { %v3248_v44 = vpop.f32.mrf.mxu0 }
 0x2fd   :  { %v8819_v45 = vadd.f32 %v3287_v42, %v3247_v40  ;;  %v3249_v46 = vadd.f32 %v3248_v44, %v869_v38  ;;  %v3289_v47 = vpop.f32.mrf.mxu1  ;;  %v7120_v42 = vld [vmem:[%s9475_s6 + $0xe8] ss:$16 sps:$4 sm:$0xff]  }
 0x2fe   :  { %v3250_v48 = vpop.f32.mrf.mxu0 }
 0x2ff   :  { %v8821_v49 = vadd.f32 %v3289_v47, %v3249_v46  ;;  %v3291_v50 = vpop.f32.mrf.mxu1  ;;  %v7128_v46 = vld [vmem:[%s9475_s6 + $0xcc] ss:$16 sps:$4 sm:$0xff]   ;;  %v7126_v48 = vld [vmem:[%s9475_s6 + $0xc8] ss:$16 sps:$4 sm:$0xff]  }
 0x300   :  { %v3251_v51 = vpop.f32.mrf.mxu0  ;;  %v7134_v50 = vld [vmem:[%s9475_s6 + $0xac] ss:$16 sps:$4 sm:$0xff]  }
 0x301   :  { %v3292_v52 = vpop.f32.mrf.mxu1  ;;  %v7132_v51 = vld [vmem:[%s9475_s6 + $0xa8] ss:$16 sps:$4 sm:$0xff]  }
 0x302   :  { %v7140_v52 = vld [vmem:[%s9475_s6 + $0x8c] ss:$16 sps:$4 sm:$0xff]  }
 0x309   :  { %v3475_v16 = vpop.f32.mrf.mxu0 }
 0x30a   :  { %v3481_v58 = vmul.f32 0.125, %v3475_v16  ;;  %v7138_v16 = vld [vmem:[%s9475_s6 + $0x88] ss:$16 sps:$4 sm:$0xff]  }
 0x30b   :  { %v6373_v9 = vpop.f32.mrf.mxu0 }
 0x30c   :  { %v3482_v61 = vadd.f32 %v3481_v58, %v8826_v54  ;;  %v7143_v58 = vld [vmem:[%s9475_s6 + $0x64] ss:$16 sps:$4 sm:$0xff]   ;;  %v7353_v9 = vmov 0  }
 0x30d   :  { %v3478_v62 = vpop.f32.mrf.mxu0  ;;  %3775 = vmatprep.mubr.bf16.mxu0 %v7353_v9 }
 0x30e   :  { %v3484_v63 = vsel %vm3483_vm3, %v3482_v61, -inf }
 0x30f   :  { %3485 = vmax.xlane.f32.xlu1 %v3484_v63  ;;  %v6374_v1 = vpop.f32.mrf.mxu0 }
 0x37c   :  { %v3590_v2 = vpop.f32.mrf.mxu0 }
 0x37d   :  { %v3596_v3 = vmul.f32 0.125, %v3590_v2 }
 0x37e   :  { %v6385_v4 = vpop.f32.mrf.mxu0 }
 0x37f   :  { %v3597_v0 = vadd.f32 %v3596_v3, %v8826_v54  ;;  %v7141_v4 = vld [vmem:[%s9475_s6 + $0x60] ss:$16 sps:$4 sm:$0xff]  }
 0x380   :  { %v3593_v6 = vpop.f32.mrf.mxu0 }
 0x381   :  { %v3598_v8 = vsel %vm3483_vm3, %v3597_v0, -inf }
 0x382   :  { %3599 = vmax.xlane.f32.xlu1 %v3598_v8  ;;  %v6386_v10 = vpop.f32.mrf.mxu0  ;;  %v7149_v8 = vld [vmem:[%s9475_s6 + $0x44] ss:$16 sps:$4 sm:$0xff]  }
 0x383   :  { %v7152_v10 = vld [vmem:[%s9475_s6 + $0x4c] ss:$16 sps:$4 sm:$0xff]  }
 0x398   :  { %v3486_v11 = vpop.xlane.xlu1 %3485 }
 0x399   :  { %v3487_v15 = vsub.f32 %v3482_v61, %v3486_v11  ;;  %v7146_v61 = vld [vmem:[%s9475_s6 + $0x6c] ss:$16 sps:$4 sm:$0xff]  }
 0x39b   :  { %v3488_v17 = vmul.f32 1.442695, %v3487_v15 }
 0x39d   :  { %7309 = vpow2.f32 %v3488_v17  ;;  %v7147_v17 = vld [vmem:[%s9475_s6 + $0x40] ss:$16 sps:$4 sm:$0xff]  }
 0x3aa   :  { %v7310_v18 = vpop.eup %7309 }
 0x3ab   :  { %v3490_v19 = vsel %vm3483_vm3, %v7310_v18, 0.0 }
 0x3ac   :  { %3491 = vadd.xlane.f32.xlu0 %v3490_v19  ;;  %v7155_v19 = vld [vmem:[%s9475_s6 + $0x24] ss:$16 sps:$4 sm:$0xff]  }
 0x40b   :  { %v3600_v55 = vpop.xlane.xlu1 %3599 }
 0x40c   :  { %v3601_v43 = vsub.f32 %v3597_v0, %v3600_v55  ;;  %v7144_v0 = vld [vmem:[%s9475_s6 + $0x68] ss:$16 sps:$4 sm:$0xff]   ;;  %v7158_v55 = vld [vmem:[%s9475_s6 + $0x2c] ss:$16 sps:$4 sm:$0xff]  }
 0x40e   :  { %v3602_v20 = vmul.f32 1.442695, %v3601_v43 }
 0x410   :  { %7311 = vpow2.f32 %v3602_v20  ;;  %v7153_v20 = vld [vmem:[%s9475_s6 + $0x20] ss:$16 sps:$4 sm:$0xff]  }
 0x41d   :  { %v7312_v21 = vpop.eup %7311 }
 0x41e   :  { %v3604_v22 = vsel %vm3483_vm3, %v7312_v21, 0.0 }
 0x41f   :  { %3605 = vadd.xlane.f32.xlu1 %v3604_v22  ;;  %v7161_v22 = vld [vmem:[%s9475_s6 + $0x4] ss:$16 sps:$4 sm:$0xff]  }
 0x430   :  { %3611 = vrot.lane.b32.xlu1 %v3302_v12, %s7352_s4  ;;  %v7131_v12 = vld [vmem:[%s9475_s6 + $0xa4] ss:$16 sps:$4 sm:$0xff]  }
 0x431   :  { %3755 = vmatprep.subr.bf16.mxu0 %v7131_v12 }
 0x432   :  { %3756 = vmatpush1.bf16.msra.mxu0 %v7129_v33 }
 0x433   :  { %3757 = vmatprep.subr.bf16.mxu0 %v7137_v35 }
 0x435   :  { %v3492_v23 = vpop.xlane.xlu0 %3491 }
 0x436   :  { %7313 = vrcp.f32 %v3492_v23  ;;  %3758 = vmatpush1.bf16.msra.mxu0 %v7135_v36  ;;  %v7164_v23 = vld [vmem:[%s9475_s6 + $0xc] ss:$16 sps:$4 sm:$0xff]  }
 0x437   :  { %3916 = vmatprep.subr.bf16.mxu0 %v7143_v58 }
 0x443   :  { %v7314_v24 = vpop.eup %7313 }
 0x444   :  { %v3494_v25 = vmul.f32 %v7314_v24, %v7310_v18  ;;  %v7150_v18 = vld [vmem:[%s9475_s6 + $0x48] ss:$16 sps:$4 sm:$0xff]   ;;  %v7159_v24 = vld [vmem:[%s9475_s6] ss:$16 sps:$4 sm:$0xff]  }
 0x446   :  { %v3495_v26 = vpack.c.bf16 %v3494_v25, %v3494_v25  ;;  %v7162_v25 = vld [vmem:[%s9475_s6 + $0x8] ss:$16 sps:$4 sm:$0xff]  }
 0x448   :  { %6378 = vmatmul.mubr.msk.bf16.vlgmr.msra.gmra.mxu1 %vm3483_vm3, %v3495_v26  ;;  %v3299_v26 = vpack.c.bf16 %v8787_v53, %v8787_v53  ;;  %v3295_v53 = vpack.c.bf16 %v8407_v5, %v8407_v5 }
 0x449   :  { %6389 = vmatprep.mubr.msk.bf16.mxu1 %vm7351_vm1, %v7350_v41 }
 0x44a   :  { %v3994_v29 = vsel %vm344_vm0, %v3299_v26, 0 }
 0x4a8   :  { %v3606_v37 = vpop.xlane.xlu1 %3605 }
 0x4a9   :  { %7315 = vrcp.f32 %v3606_v37 }
 0x4ac   :  { %v3612_v38 = vpop.permute.xlu1 %3611 }
 0x4ad   :  { %v3617_v39 = vsel %vm3499_vm2, %v3612_v38, 0 }
 0x4ae   :  { %6388 = vmatpush3.bf16.msra.mxu1 %v3617_v39 }
 0x4af   :  { %3792 = vmatprep.subr.bf16.mxu1 %v7122_v13 }
 0x4b6   :  { %v7316_v40 = vpop.eup %7315 }
 0x4b7   :  { %v3608_v44 = vmul.f32 %v7316_v40, %v7312_v21  ;;  %v7156_v21 = vld [vmem:[%s9475_s6 + $0x28] ss:$16 sps:$4 sm:$0xff]  }
 0x4b9   :  { %v3609_v47 = vpack.c.bf16 %v3608_v44, %v3608_v44 }
 0x4bb   :  { %6390 = vmatmul.mubr.msk.bf16.vlgmr.msra.gmra.mxu1 %vm3483_vm3, %v3609_v47 }
 0x4bc   :  { %3793 = vmatpush1.bf16.msra.mxu1 %v7120_v42  ;;  %3816 = vmatprep.mubr.bf16.mxu1 %v7353_v9 }
 0x4bd   :  { %3794 = vmatprep.subr.bf16.mxu1 %v7128_v46 }
 0x4c0   :  { %3795 = vmatpush1.bf16.msra.mxu1 %v7126_v48 }
 0x4c1   :  { %3796 = vmatprep.subr.bf16.mxu1 %v7134_v50 }
 0x4c4   :  { %3797 = vmatpush1.bf16.msra.mxu1 %v7132_v51 }
 0x4c5   :  { %3798 = vmatprep.subr.bf16.mxu1 %v7140_v52 }
 0x4c8   :  { %3799 = vmatpush1.bf16.msra.mxu1 %v7138_v16 }
 0x4c9   :  { %3957 = vmatprep.subr.bf16.mxu1 %v7146_v61 }
 0x508   :  { %v3537_v62 = vpop.f32.mrf.mxu1 }
 0x509   :  { %v3543_v28 = vpack.c.bf16 %v3537_v62, %v3537_v62 }
 0x50a   :  { %v6379_v63 = vpop.f32.mrf.mxu1 }
 0x50c   :  { %v3540_v1 = vpop.f32.mrf.mxu1 }
 0x50e   :  { %v6380_v2 = vpop.f32.mrf.mxu1 }
 0x57b   :  { %v3653_v3 = vpop.f32.mrf.mxu1 }
 0x57c   :  { %v3659_v6 = vpack.c.bf16 %v3653_v3, %v3653_v3 }
 0x57d   :  { %v6391_v11 = vpop.f32.mrf.mxu1 }
 0x57e   :  { %6197 = vmatmul.mubr.msk.bf16.vlgmr.msra.gmra.mxu0 %vm344_vm0, %v3659_v6  ;;  %6198 = vmatmul.mubr.msk.bf16.vlgmr.msra.gmra.mxu1 %vm344_vm0, %v3659_v6  ;;  %v7165_v11 = vld [vmem:[%s9475_s6 + $0x160] ss:$16 sps:$4 sm:$0xff]  }
 0x57f   :  { %3917 = vmatpush1.bf16.msra.mxu0 %v7141_v4  ;;  %3958 = vmatpush1.bf16.msra.mxu1 %v7144_v0  ;;  %v3656_v15 = vpop.f32.mrf.mxu1 }
 0x580   :  { %3918 = vmatprep.subr.bf16.mxu0 %v7149_v8  ;;  %3959 = vmatprep.subr.bf16.mxu1 %v7152_v10  ;;  %v7167_v15 = vld [vmem:[%s9475_s6 + $0x164] ss:$16 sps:$4 sm:$0xff]  }
 0x581   :  { %v6392_v43 = vpop.f32.mrf.mxu1  ;;  %3940 = vmatprep.mubr.bf16.mxu0 %v7353_v9  ;;  %3981 = vmatprep.mubr.bf16.mxu1 %v7353_v9 }
 0x582   :  { %v7177_v43 = vld [vmem:[%s9475_s6 + $0x120] ss:$16 sps:$4 sm:$0xff]  }
 0x583   :  { %3919 = vmatpush1.bf16.msra.mxu0 %v7147_v17  ;;  %3960 = vmatpush1.bf16.msra.mxu1 %v7150_v18  ;;  %v7170_v17 = vld [vmem:[%s9475_s6 + $0x16c] ss:$16 sps:$4 sm:$0xff]   ;;  %v7173_v18 = vld [vmem:[%s9475_s6 + $0x144] ss:$16 sps:$4 sm:$0xff]  }
 0x584   :  { %3920 = vmatprep.subr.bf16.mxu0 %v7155_v19  ;;  %3961 = vmatprep.subr.bf16.mxu1 %v7158_v55  ;;  %v7171_v19 = vld [vmem:[%s9475_s6 + $0x140] ss:$16 sps:$4 sm:$0xff]   ;;  %v7179_v55 = vld [vmem:[%s9475_s6 + $0x124] ss:$16 sps:$4 sm:$0xff]  }
 0x587   :  { %3921 = vmatpush1.bf16.msra.mxu0 %v7153_v20  ;;  %3962 = vmatpush1.bf16.msra.mxu1 %v7156_v21  ;;  %v7185_v20 = vld [vmem:[%s9475_s6 + $0x104] ss:$16 sps:$4 sm:$0xff]   ;;  %v7183_v21 = vld [vmem:[%s9475_s6 + $0x100] ss:$16 sps:$4 sm:$0xff]  }
 0x588   :  { %3922 = vmatprep.subr.bf16.mxu0 %v7161_v22  ;;  %3963 = vmatprep.subr.bf16.mxu1 %v7164_v23 }
 0x58b   :  { %3923 = vmatpush1.bf16.msra.mxu0 %v7159_v24  ;;  %3964 = vmatpush1.bf16.msra.mxu1 %v7162_v25  ;;  %v7168_v25 = vld [vmem:[%s9475_s6 + $0x168] ss:$16 sps:$4 sm:$0xff]  }
 0x58c   :  { %6393 = vmatprep.subr.bf16.mxu0 %v7350_v41  ;;  %6399 = vmatprep.subr.bf16.mxu1 %v7350_v41 }
 0x58e   :  { %6215 = vmatmul.mubr.msk.bf16.vlgmr.msra.gmra.mxu0 %vm344_vm0, %v3543_v28  ;;  %6216 = vmatmul.mubr.msk.bf16.vlgmr.msra.gmra.mxu1 %vm344_vm0, %v3543_v28  ;;  %v7176_v28 = vld [vmem:[%s9475_s6 + $0x14c] ss:$16 sps:$4 sm:$0xff]  }
 0x58f   :  { %6394 = vmatpush3.bf16.xpose.msra.mxu0 %v3994_v29  ;;  %6400 = vmatpush3.bf16.msra.mxu1 %v4054_v31  ;;  %v7174_v29 = vld [vmem:[%s9475_s6 + $0x148] ss:$16 sps:$4 sm:$0xff]   ;;  %v7182_v31 = vld [vmem:[%s9475_s6 + $0x12c] ss:$16 sps:$4 sm:$0xff]  }
 0x590   :  { %6395 = vmatprep.mubr.msk.bf16.mxu0 %vm7351_vm1, %v7350_v41  ;;  %6401 = vmatprep.mubr.msk.bf16.mxu1 %vm7351_vm1, %v7350_v41 }
 0x591   :  { %4188 = vmatprep.subr.bf16.mxu0 %v7167_v15  ;;  %4229 = vmatprep.subr.bf16.mxu1 %v7170_v17 }
 0x596   :  { %6396 = vmatmul.mubr.msk.bf16.vlgmr.msra.gmra.mxu0 %vm344_vm0, %v3295_v53 }
 0x597   :  { %4212 = vmatprep.mubr.bf16.mxu0 %v7353_v9  ;;  %4189 = vmatpush1.bf16.msra.mxu0 %v7165_v11 }
 0x598   :  { %4190 = vmatprep.subr.bf16.mxu0 %v7173_v18 }
 0x59b   :  { %4191 = vmatpush1.bf16.msra.mxu0 %v7171_v19  ;;  %v7189_v19 = vld [vmem:[%s9475_s6 + $0x1e0] ss:$16 sps:$4 sm:$0xff]  }
 0x59c   :  { %4192 = vmatprep.subr.bf16.mxu0 %v7179_v55  ;;  %v7194_v55 = vld [vmem:[%s9475_s6 + $0x1ec] ss:$16 sps:$4 sm:$0xff]  }
 0x59f   :  { %4193 = vmatpush1.bf16.msra.mxu0 %v7177_v43  ;;  %v7197_v43 = vld [vmem:[%s9475_s6 + $0x1c4] ss:$16 sps:$4 sm:$0xff]  }
 0x5a0   :  { %4194 = vmatprep.subr.bf16.mxu0 %v7185_v20  ;;  %v7195_v20 = vld [vmem:[%s9475_s6 + $0x1c0] ss:$16 sps:$4 sm:$0xff]  }
 0x5a3   :  { %4195 = vmatpush1.bf16.msra.mxu0 %v7183_v21  ;;  %v7203_v21 = vld [vmem:[%s9475_s6 + $0x1a4] ss:$16 sps:$4 sm:$0xff]  }
 0x5a4   :  { %6405 = vmatprep.subr.bf16.mxu0 %v7350_v41 }
 0x63e   :  { %v3777_v32 = vpop.f32.mrf.mxu0  ;;  %v3818_v12 = vpop.f32.mrf.mxu1 }
 0x640   :  { %v3779_v33 = vpop.f32.mrf.mxu0  ;;  %v3820_v35 = vpop.f32.mrf.mxu1 }
 0x642   :  { %v3781_v36 = vpop.f32.mrf.mxu0  ;;  %v3822_v37 = vpop.f32.mrf.mxu1 }
 0x644   :  { %v3782_v13 = vpop.f32.mrf.mxu0  ;;  %v3823_v38 = vpop.f32.mrf.mxu1 }
 0x64e   :  { %v3942_v39 = vpop.f32.mrf.mxu0  ;;  %v3983_v40 = vpop.f32.mrf.mxu1 }
 0x64f   :  { %v8963_v42 = vadd.f32 %v3942_v39, %v3777_v32  ;;  %v8965_v44 = vadd.f32 %v3983_v40, %v3818_v12  ;;  %v7188_v32 = vld [vmem:[%s9475_s6 + $0x10c] ss:$16 sps:$4 sm:$0xff]   ;;  %v7186_v12 = vld [vmem:[%s9475_s6 + $0x108] ss:$16 sps:$4 sm:$0xff]  }
 0x650   :  { %v3944_v46 = vpop.f32.mrf.mxu0  ;;  %v3985_v5 = vpop.f32.mrf.mxu1 }
 0x651   :  { %v8967_v47 = vadd.f32 %v3944_v46, %v3779_v33  ;;  %v8969_v48 = vadd.f32 %v3985_v5, %v3820_v35 }
 0x652   :  { %v3946_v50 = vpop.f32.mrf.mxu0  ;;  %v3987_v51 = vpop.f32.mrf.mxu1 }
 0x654   :  { %v3947_v52 = vpop.f32.mrf.mxu0  ;;  %v3988_v16 = vpop.f32.mrf.mxu1 }
 0x656   :  { %v4030_v58 = vpop.f32.mrf.mxu0 }
 0x657   :  { %v4036_v61 = vmul.f32 0.125, %v4030_v58 }
 0x658   :  { %v6397_v62 = vpop.f32.mrf.mxu0 }
 0x659   :  { %v4037_v63 = vadd.f32 %v4036_v61, %v8826_v54 }
 0x65a   :  { %v4033_v1 = vpop.f32.mrf.mxu0 }
 0x65b   :  { %v4038_v2 = vsel %vm3483_vm3, %v4037_v63, -inf }
 0x65c   :  { %4039 = vmax.xlane.f32.xlu1 %v4038_v2  ;;  %v6398_v3 = vpop.f32.mrf.mxu0 }
 0x6e5   :  { %v4040_v4 = vpop.xlane.xlu1 %4039 }
 0x6e6   :  { %v4041_v0 = vsub.f32 %v4037_v63, %v4040_v4 }
 0x6e8   :  { %v4042_v6 = vmul.f32 1.442695, %v4041_v0 }
 0x6ea   :  { %7317 = vpow2.f32 %v4042_v6 }
 0x6f7   :  { %v7318_v8 = vpop.eup %7317 }
 0x6f8   :  { %v4044_v10 = vsel %vm3483_vm3, %v7318_v8, 0.0 }
 0x6f9   :  { %4045 = vadd.xlane.f32.xlu0 %v4044_v10 }
 0x70f   :  { %4270 = vrot.lane.b32.xlu0 %v3299_v26, %s7352_s4 }
 0x713   :  { %4267 = vrot.lane.b32.xlu0 %v3295_v53, %s7352_s4  ;;  %v7180_v53 = vld [vmem:[%s9475_s6 + $0x128] ss:$16 sps:$4 sm:$0xff]  }
 0x782   :  { %v4046_v22 = vpop.xlane.xlu0 %4045 }
 0x783   :  { %7319 = vrcp.f32 %v4046_v22  ;;  %v7201_v22 = vld [vmem:[%s9475_s6 + $0x1a0] ss:$16 sps:$4 sm:$0xff]  }
 0x786   :  { %v4271_v33 = vpop.permute.xlu0 %4270 }
 0x787   :  { %v4276_v13 = vsel %vm344_vm0, %v4271_v33, 0  ;;  %v7204_v33 = vld [vmem:[%s9475_s6 + $0x1a8] ss:$16 sps:$4 sm:$0xff]  }
 0x78a   :  { %v4268_v40 = vpop.permute.xlu0 %4267 }
 0x790   :  { %v7320_v23 = vpop.eup %7319 }
 0x791   :  { %v4048_v24 = vmul.f32 %v7320_v23, %v7318_v8  ;;  %v7209_v23 = vld [vmem:[%s9475_s6 + $0x184] ss:$16 sps:$4 sm:$0xff]  }
 0x793   :  { %v4049_v26 = vpack.c.bf16 %v4048_v24, %v4048_v24  ;;  %v7207_v24 = vld [vmem:[%s9475_s6 + $0x180] ss:$16 sps:$4 sm:$0xff]  }
 0x795   :  { %6402 = vmatmul.mubr.msk.bf16.vlgmr.msra.gmra.mxu1 %vm3483_vm3, %v4049_v26 }
 0x796   :  { %4230 = vmatpush1.bf16.msra.mxu1 %v7168_v25  ;;  %4253 = vmatprep.mubr.bf16.mxu1 %v7353_v9 }
 0x797   :  { %4231 = vmatprep.subr.bf16.mxu1 %v7176_v28 }
 0x79a   :  { %4232 = vmatpush1.bf16.msra.mxu1 %v7174_v29  ;;  %v7192_v29 = vld [vmem:[%s9475_s6 + $0x1e8] ss:$16 sps:$4 sm:$0xff]  }
 0x79b   :  { %4233 = vmatprep.subr.bf16.mxu1 %v7182_v31 }
 0x79e   :  { %4234 = vmatpush1.bf16.msra.mxu1 %v7180_v53  ;;  %v7200_v53 = vld [vmem:[%s9475_s6 + $0x1cc] ss:$16 sps:$4 sm:$0xff]  }
 0x79f   :  { %4235 = vmatprep.subr.bf16.mxu1 %v7188_v32  ;;  %v7198_v32 = vld [vmem:[%s9475_s6 + $0x1c8] ss:$16 sps:$4 sm:$0xff]  }
 0x7a2   :  { %4236 = vmatpush1.bf16.msra.mxu1 %v7186_v12  ;;  %v7206_v12 = vld [vmem:[%s9475_s6 + $0x1ac] ss:$16 sps:$4 sm:$0xff]  }
 0x7a3   :  { %6411 = vmatprep.subr.bf16.mxu1 %v7350_v41 }
 0x855   :  { %v4090_v35 = vpop.f32.mrf.mxu1 }
 0x856   :  { %v4096_v36 = vpack.c.bf16 %v4090_v35, %v4090_v35  ;;  %v7212_v35 = vld [vmem:[%s9475_s6 + $0x18c] ss:$16 sps:$4 sm:$0xff]  }
 0x857   :  { %v6403_v37 = vpop.f32.mrf.mxu1 }
 0x858   :  { %6235 = vmatmul.mubr.msk.bf16.vlgmr.msra.gmra.mxu0 %vm344_vm0, %v4096_v36  ;;  %6236 = vmatmul.mubr.msk.bf16.vlgmr.msra.gmra.mxu1 %vm344_vm0, %v4096_v36  ;;  %v7210_v36 = vld [vmem:[%s9475_s6 + $0x188] ss:$16 sps:$4 sm:$0xff]   ;;  %v3300_v37 = vpack.c.bf16 %v8802_v7, %v8802_v7 }
 0x859   :  { %6406 = vmatpush3.bf16.xpose.msra.mxu0 %v4276_v13  ;;  %v4093_v38 = vpop.f32.mrf.mxu1  ;;  %6407 = vmatprep.mubr.msk.bf16.mxu0 %vm7351_vm1, %v7350_v41  ;;  %v9111_v13 = vpack.c.bf16 %v8819_v45, %v8819_v45  ;;  %v3296_v45 = vpack.c.bf16 %v8605_v30, %v8605_v30 }
 0x85a   :  { %6413 = vmatprep.mubr.msk.bf16.mxu1 %vm7351_vm1, %v7350_v41 }
 0x85b   :  { %v6404_v39 = vpop.f32.mrf.mxu1 }
 0x860   :  { %6408 = vmatmul.mubr.msk.bf16.vlgmr.msra.gmra.mxu0 %vm344_vm0, %v4268_v40 }
 0x861   :  { %4497 = vmatprep.mubr.bf16.mxu0 %v7353_v9 }
 0x918   :  { %v4214_v46 = vpop.f32.mrf.mxu0  ;;  %v4255_v5 = vpop.f32.mrf.mxu1 }
 0x919   :  { %v9038_v50 = vadd.f32 %v4214_v46, %v8963_v42  ;;  %v9041_v51 = vadd.f32 %v4255_v5, %v8965_v44  ;;  %v4555_v46 = vsel %vm344_vm0, %v3300_v37, 0  ;;  %v4615_v5 = vsel %vm3499_vm2, %v9111_v13, 0 }
 0x91a   :  { %v4216_v52 = vpop.f32.mrf.mxu0  ;;  %v4257_v16 = vpop.f32.mrf.mxu1 }
 0x91b   :  { %v9044_v58 = vadd.f32 %v4216_v52, %v8967_v47  ;;  %v9047_v61 = vadd.f32 %v4257_v16, %v8969_v48 }
 0x91c   :  { %v4218_v62 = vpop.f32.mrf.mxu0  ;;  %v4259_v63 = vpop.f32.mrf.mxu1 }
 0x91e   :  { %v4219_v1 = vpop.f32.mrf.mxu0  ;;  %v4260_v2 = vpop.f32.mrf.mxu1 }
 0x920   :  { %v4312_v3 = vpop.f32.mrf.mxu0 }
 0x921   :  { %v4318_v4 = vmul.f32 0.125, %v4312_v3 }
 0x922   :  { %v6409_v0 = vpop.f32.mrf.mxu0 }
 0x923   :  { %v4319_v42 = vadd.f32 %v4318_v4, %v8826_v54 }
 0x924   :  { %v4315_v6 = vpop.f32.mrf.mxu0 }
 0x925   :  { %v4320_v44 = vsel %vm3483_vm3, %v4319_v42, -inf }
 0x926   :  { %4321 = vmax.xlane.f32.xlu1 %v4320_v44  ;;  %v6410_v8 = vpop.f32.mrf.mxu0 }
 0x937   :  { %4333 = vrot.lane.b32.xlu1 %v8946_v27, %s7352_s4  ;;  %v7191_v27 = vld [vmem:[%s9475_s6 + $0x1e4] ss:$16 sps:$4 sm:$0xff]  }
 0x938   :  { %4473 = vmatprep.subr.bf16.mxu0 %v7191_v27  ;;  %v7218_v27 = vld [vmem:[%s9475_s6 + $0x26c] ss:$16 sps:$4 sm:$0xff]  }
 0x939   :  { %4474 = vmatpush1.bf16.msra.mxu0 %v7189_v19  ;;  %v7215_v19 = vld [vmem:[%s9475_s6 + $0x264] ss:$16 sps:$4 sm:$0xff]  }
 0x93a   :  { %4475 = vmatprep.subr.bf16.mxu0 %v7197_v43  ;;  %v7219_v43 = vld [vmem:[%s9475_s6 + $0x240] ss:$16 sps:$4 sm:$0xff]  }
 0x93d   :  { %4476 = vmatpush1.bf16.msra.mxu0 %v7195_v20  ;;  %v7227_v20 = vld [vmem:[%s9475_s6 + $0x224] ss:$16 sps:$4 sm:$0xff]  }
 0x93e   :  { %4477 = vmatprep.subr.bf16.mxu0 %v7203_v21  ;;  %v7225_v21 = vld [vmem:[%s9475_s6 + $0x220] ss:$16 sps:$4 sm:$0xff]  }
 0x941   :  { %4478 = vmatpush1.bf16.msra.mxu0 %v7201_v22  ;;  %v7233_v22 = vld [vmem:[%s9475_s6 + $0x204] ss:$16 sps:$4 sm:$0xff]  }
 0x942   :  { %4479 = vmatprep.subr.bf16.mxu0 %v7209_v23  ;;  %v7231_v23 = vld [vmem:[%s9475_s6 + $0x200] ss:$16 sps:$4 sm:$0xff]  }
 0x945   :  { %4480 = vmatpush1.bf16.msra.mxu0 %v7207_v24 }
 0x946   :  { %6417 = vmatprep.subr.bf16.mxu0 %v7350_v41 }
 0x9af   :  { %v4322_v47 = vpop.xlane.xlu1 %4321 }
 0x9b0   :  { %v4323_v48 = vsub.f32 %v4319_v42, %v4322_v47 }
 0x9b2   :  { %v4324_v10 = vmul.f32 1.442695, %v4323_v48 }
 0x9b3   :  { %v4334_v11 = vpop.permute.xlu1 %4333 }
 0x9b4   :  { %7321 = vpow2.f32 %v4324_v10  ;;  %v4339_v15 = vsel %vm3499_vm2, %v4334_v11, 0 }
 0x9b5   :  { %6412 = vmatpush3.bf16.msra.mxu1 %v4339_v15 }
 0x9b6   :  { %4514 = vmatprep.subr.bf16.mxu1 %v7194_v55  ;;  %v7221_v55 = vld [vmem:[%s9475_s6 + $0x244] ss:$16 sps:$4 sm:$0xff]  }
 0x9c1   :  { %v7322_v17 = vpop.eup %7321 }
 0x9c2   :  { %v4326_v18 = vsel %vm3483_vm3, %v7322_v17, 0.0 }
 0x9c3   :  { %4327 = vadd.xlane.f32.xlu0 %v4326_v18 }
 0xa4c   :  { %v4328_v25 = vpop.xlane.xlu0 %4327 }
 0xa4d   :  { %7323 = vrcp.f32 %v4328_v25 }
 0xa5a   :  { %v7324_v26 = vpop.eup %7323 }
 0xa5b   :  { %v4330_v28 = vmul.f32 %v7324_v26, %v7322_v17 }
 0xa5d   :  { %v4331_v31 = vpack.c.bf16 %v4330_v28, %v4330_v28  ;;  %v7216_v28 = vld [vmem:[%s9475_s6 + $0x268] ss:$16 sps:$4 sm:$0xff]  }
 0xa5f   :  { %6414 = vmatmul.mubr.msk.bf16.vlgmr.msra.gmra.mxu1 %vm3483_vm3, %v4331_v31  ;;  %v7224_v31 = vld [vmem:[%s9475_s6 + $0x24c] ss:$16 sps:$4 sm:$0xff]  }
 0xa60   :  { %4515 = vmatpush1.bf16.msra.mxu1 %v7192_v29  ;;  %4538 = vmatprep.mubr.bf16.mxu1 %v7353_v9 }
 0xa61   :  { %4516 = vmatprep.subr.bf16.mxu1 %v7200_v53  ;;  %v7222_v53 = vld [vmem:[%s9475_s6 + $0x248] ss:$16 sps:$4 sm:$0xff]  }
 0xa64   :  { %4517 = vmatpush1.bf16.msra.mxu1 %v7198_v32  ;;  %v7230_v32 = vld [vmem:[%s9475_s6 + $0x22c] ss:$16 sps:$4 sm:$0xff]  }
 0xa65   :  { %4518 = vmatprep.subr.bf16.mxu1 %v7206_v12  ;;  %v7228_v12 = vld [vmem:[%s9475_s6 + $0x228] ss:$16 sps:$4 sm:$0xff]  }
 0xa68   :  { %4519 = vmatpush1.bf16.msra.mxu1 %v7204_v33  ;;  %v7236_v33 = vld [vmem:[%s9475_s6 + $0x20c] ss:$16 sps:$4 sm:$0xff]  }
 0xa69   :  { %4520 = vmatprep.subr.bf16.mxu1 %v7212_v35  ;;  %v7234_v35 = vld [vmem:[%s9475_s6 + $0x208] ss:$16 sps:$4 sm:$0xff]  }
 0xa6c   :  { %4521 = vmatpush1.bf16.msra.mxu1 %v7210_v36 }
 0xa6d   :  { %6423 = vmatprep.subr.bf16.mxu1 %v7350_v41 }
 0xb1f   :  { %v4375_v38 = vpop.f32.mrf.mxu1 }
 0xb20   :  { %v4381_v39 = vpack.c.bf16 %v4375_v38, %v4375_v38 }
 0xb21   :  { %v6415_v40 = vpop.f32.mrf.mxu1 }
 0xb22   :  { %6255 = vmatmul.mubr.msk.bf16.vlgmr.msra.gmra.mxu0 %vm344_vm0, %v4381_v39  ;;  %6256 = vmatmul.mubr.msk.bf16.vlgmr.msra.gmra.mxu1 %vm344_vm0, %v4381_v39 }
 0xb23   :  { %6418 = vmatpush3.bf16.xpose.msra.mxu0 %v4555_v46  ;;  %6424 = vmatpush3.bf16.msra.mxu1 %v4615_v5  ;;  %v4378_v52 = vpop.f32.mrf.mxu1 }
 0xb24   :  { %6419 = vmatprep.mubr.msk.bf16.mxu0 %vm7351_vm1, %v7350_v41  ;;  %6425 = vmatprep.mubr.msk.bf16.mxu1 %vm7351_vm1, %v7350_v41 }
 0xb25   :  { %v6416_v7 = vpop.f32.mrf.mxu1  ;;  %4749 = vmatprep.subr.bf16.mxu0 %v7215_v19  ;;  %4790 = vmatprep.subr.bf16.mxu1 %v7218_v27  ;;  %v7237_v19 = vld [vmem:[%s9475_s6 + $0x2e0] ss:$16 sps:$4 sm:$0xff]   ;;  %v7242_v27 = vld [vmem:[%s9475_s6 + $0x2ec] ss:$16 sps:$4 sm:$0xff]  }
 0xb2a   :  { %6420 = vmatmul.mubr.msk.bf16.vlgmr.msra.gmra.mxu0 %vm344_vm0, %v3296_v45 }
 0xb2b   :  { %4773 = vmatprep.mubr.bf16.mxu0 %v7353_v9 }
 0xbe2   :  { %v4499_v16 = vpop.f32.mrf.mxu0  ;;  %v4540_v62 = vpop.f32.mrf.mxu1 }
 0xbe3   :  { %v9127_v63 = vadd.f32 %v4499_v16, %v9038_v50  ;;  %v9130_v1 = vadd.f32 %v4540_v62, %v9041_v51 }
 0xbe4   :  { %v4501_v2 = vpop.f32.mrf.mxu0  ;;  %v4542_v3 = vpop.f32.mrf.mxu1 }
 0xbe5   :  { %v9133_v4 = vadd.f32 %v4501_v2, %v9044_v58  ;;  %v9136_v0 = vadd.f32 %v4542_v3, %v9047_v61 }
 0xbe6   :  { %v4503_v30 = vpop.f32.mrf.mxu0  ;;  %v4544_v42 = vpop.f32.mrf.mxu1 }
 0xbe8   :  { %v4504_v6 = vpop.f32.mrf.mxu0  ;;  %v4545_v44 = vpop.f32.mrf.mxu1 }
 0xbea   :  { %v4591_v8 = vpop.f32.mrf.mxu0 }
 0xbeb   :  { %v4597_v47 = vmul.f32 0.125, %v4591_v8 }
 0xbec   :  { %v6421_v48 = vpop.f32.mrf.mxu0 }
 0xbed   :  { %v4598_v50 = vadd.f32 %v4597_v47, %v8826_v54  ;;  %v7213_v54 = vld [vmem:[%s9475_s6 + $0x260] ss:$16 sps:$4 sm:$0xff]  }
 0xbee   :  { %v4594_v10 = vpop.f32.mrf.mxu0  ;;  %4750 = vmatpush1.bf16.msra.mxu0 %v7213_v54 }
 0xbef   :  { %v4599_v51 = vsel %vm3483_vm3, %v4598_v50, -inf  ;;  %4751 = vmatprep.subr.bf16.mxu0 %v7221_v55  ;;  %v7245_v55 = vld [vmem:[%s9475_s6 + $0x2c4] ss:$16 sps:$4 sm:$0xff]  }
 0xbf0   :  { %4600 = vmax.xlane.f32.xlu1 %v4599_v51  ;;  %v6422_v11 = vpop.f32.mrf.mxu0 }
 0xbf2   :  { %4752 = vmatpush1.bf16.msra.mxu0 %v7219_v43  ;;  %v7243_v43 = vld [vmem:[%s9475_s6 + $0x2c0] ss:$16 sps:$4 sm:$0xff]  }
 0xbf3   :  { %4753 = vmatprep.subr.bf16.mxu0 %v7227_v20  ;;  %v7251_v20 = vld [vmem:[%s9475_s6 + $0x2a4] ss:$16 sps:$4 sm:$0xff]  }
 0xbf6   :  { %4754 = vmatpush1.bf16.msra.mxu0 %v7225_v21  ;;  %v7249_v21 = vld [vmem:[%s9475_s6 + $0x2a0] ss:$16 sps:$4 sm:$0xff]  }
 0xbf7   :  { %4755 = vmatprep.subr.bf16.mxu0 %v7233_v22  ;;  %v7257_v22 = vld [vmem:[%s9475_s6 + $0x284] ss:$16 sps:$4 sm:$0xff]  }
 0xbfa   :  { %4756 = vmatpush1.bf16.msra.mxu0 %v7231_v23  ;;  %v7255_v23 = vld [vmem:[%s9475_s6 + $0x280] ss:$16 sps:$4 sm:$0xff]  }
 0xbfb   :  { %6429 = vmatprep.subr.bf16.mxu0 %v7350_v41 }
 0xc01   :  { %4828 = vrot.lane.b32.xlu1 %v3296_v45, %s7352_s4 }
 0xc79   :  { %v4601_v58 = vpop.xlane.xlu1 %4600 }
 0xc7a   :  { %v4602_v15 = vsub.f32 %v4598_v50, %v4601_v58 }
 0xc7c   :  { %v4603_v61 = vmul.f32 1.442695, %v4602_v15 }
 0xc7d   :  { %v4829_v52 = vpop.permute.xlu1 %4828 }
 0xc7e   :  { %7325 = vpow2.f32 %v4603_v61 }
 0xc8b   :  { %v7326_v17 = vpop.eup %7325 }
 0xc8c   :  { %v4605_v18 = vsel %vm3483_vm3, %v7326_v17, 0.0 }
 0xc8d   :  { %4606 = vadd.xlane.f32.xlu0 %v4605_v18 }
 0xca3   :  { %4831 = vrot.lane.b32.xlu0 %v3300_v37, %s7352_s4 }
 0xd16   :  { %v4607_v24 = vpop.xlane.xlu0 %4606 }
 0xd17   :  { %7327 = vrcp.f32 %v4607_v24 }
 0xd1a   :  { %v4832_v36 = vpop.permute.xlu0 %4831 }
 0xd1b   :  { %v4837_v40 = vsel %vm344_vm0, %v4832_v36, 0  ;;  %v3301_v36 = vpack.c.bf16 %v8804_v14, %v8804_v14 }
 0xd24   :  { %v7328_v25 = vpop.eup %7327 }
 0xd25   :  { %v4609_v26 = vmul.f32 %v7328_v25, %v7326_v17 }
 0xd27   :  { %v4610_v29 = vpack.c.bf16 %v4609_v26, %v4609_v26 }
 0xd29   :  { %6426 = vmatmul.mubr.msk.bf16.vlgmr.msra.gmra.mxu1 %vm3483_vm3, %v4610_v29 }
 0xd2a   :  { %4791 = vmatpush1.bf16.msra.mxu1 %v7216_v28  ;;  %4814 = vmatprep.mubr.bf16.mxu1 %v7353_v9  ;;  %v7240_v28 = vld [vmem:[%s9475_s6 + $0x2e8] ss:$16 sps:$4 sm:$0xff]  }
 0xd2b   :  { %4792 = vmatprep.subr.bf16.mxu1 %v7224_v31  ;;  %v7248_v31 = vld [vmem:[%s9475_s6 + $0x2cc] ss:$16 sps:$4 sm:$0xff]  }
 0xd2e   :  { %4793 = vmatpush1.bf16.msra.mxu1 %v7222_v53  ;;  %v7246_v53 = vld [vmem:[%s9475_s6 + $0x2c8] ss:$16 sps:$4 sm:$0xff]  }
 0xd2f   :  { %4794 = vmatprep.subr.bf16.mxu1 %v7230_v32  ;;  %v7254_v32 = vld [vmem:[%s9475_s6 + $0x2ac] ss:$16 sps:$4 sm:$0xff]  }
 0xd32   :  { %4795 = vmatpush1.bf16.msra.mxu1 %v7228_v12  ;;  %v7252_v12 = vld [vmem:[%s9475_s6 + $0x2a8] ss:$16 sps:$4 sm:$0xff]  }
 0xd33   :  { %4796 = vmatprep.subr.bf16.mxu1 %v7236_v33  ;;  %v7260_v33 = vld [vmem:[%s9475_s6 + $0x28c] ss:$16 sps:$4 sm:$0xff]  }
 0xd36   :  { %4797 = vmatpush1.bf16.msra.mxu1 %v7234_v35  ;;  %v7258_v35 = vld [vmem:[%s9475_s6 + $0x288] ss:$16 sps:$4 sm:$0xff]  }
 0xd37   :  { %6435 = vmatprep.subr.bf16.mxu1 %v7350_v41 }
 0xde9   :  { %v4651_v37 = vpop.f32.mrf.mxu1 }
 0xdea   :  { %v4657_v38 = vpack.c.bf16 %v4651_v37, %v4651_v37  ;;  %v9283_v37 = vpack.c.bf16 %v8821_v49, %v8821_v49  ;;  %v3297_v49 = vpack.c.bf16 %v8611_v34, %v8611_v34 }
 0xdeb   :  { %v6427_v39 = vpop.f32.mrf.mxu1 }
 0xdec   :  { %6275 = vmatmul.mubr.msk.bf16.vlgmr.msra.gmra.mxu0 %vm344_vm0, %v4657_v38  ;;  %6276 = vmatmul.mubr.msk.bf16.vlgmr.msra.gmra.mxu1 %vm344_vm0, %v4657_v38 }
 0xded   :  { %6430 = vmatpush3.bf16.xpose.msra.mxu0 %v4837_v40  ;;  %v4654_v46 = vpop.f32.mrf.mxu1  ;;  %6431 = vmatprep.mubr.msk.bf16.mxu0 %vm7351_vm1, %v7350_v41 }
 0xdee   :  { %6437 = vmatprep.mubr.msk.bf16.mxu1 %vm7351_vm1, %v7350_v41  ;;  %v5116_v46 = vsel %vm344_vm0, %v3301_v36, 0 }
 0xdef   :  { %v6428_v5 = vpop.f32.mrf.mxu1 }
 0xdf0   :  { %v5176_v5 = vsel %vm3499_vm2, %v9283_v37, 0 }
 0xdf4   :  { %6432 = vmatmul.mubr.msk.bf16.vlgmr.msra.gmra.mxu0 %vm344_vm0, %v4829_v52 }
 0xdf5   :  { %5058 = vmatprep.mubr.bf16.mxu0 %v7353_v9 }
 0xeac   :  { %v4775_v7 = vpop.f32.mrf.mxu0  ;;  %v4816_v45 = vpop.f32.mrf.mxu1 }
 0xead   :  { %v9205_v16 = vadd.f32 %v4775_v7, %v9127_v63  ;;  %v9208_v62 = vadd.f32 %v4816_v45, %v9130_v1  ;;  %v9219_v63 = vld [vmem:[%s9474_s1] sm:$0xff] }
 0xeae   :  { %v4777_v2 = vpop.f32.mrf.mxu0  ;;  %v4818_v3 = vpop.f32.mrf.mxu1 }
 0xeaf   :  { %v9211_v30 = vadd.f32 %v4777_v2, %v9133_v4  ;;  %v9214_v42 = vadd.f32 %v4818_v3, %v9136_v0 }
 0xeb0   :  { %v4779_v6 = vpop.f32.mrf.mxu0  ;;  %v4820_v44 = vpop.f32.mrf.mxu1 }
 0xeb2   :  { %v4780_v8 = vpop.f32.mrf.mxu0  ;;  %v4821_v47 = vpop.f32.mrf.mxu1 }
 0xeb4   :  { %v4873_v48 = vpop.f32.mrf.mxu0 }
 0xeb5   :  { %v4879_v50 = vmul.f32 0.125, %v4873_v48 }
 0xeb6   :  { %v6433_v10 = vpop.f32.mrf.mxu0 }
 0xeb7   :  { %v4880_v1 = vadd.f32 %v9219_v63, %v4879_v50 }
 0xeb8   :  { %v4876_v51 = vpop.f32.mrf.mxu0 }
 0xeb9   :  { %v4881_v4 = vsel %vm3483_vm3, %v4880_v1, -inf }
 0xeba   :  { %4882 = vmax.xlane.f32.xlu0 %v4881_v4  ;;  %v6434_v0 = vpop.f32.mrf.mxu0 }
 0xed0   :  { %4894 = vrot.lane.b32.xlu0 %v9111_v13, %s7352_s4  ;;  %v7239_v13 = vld [vmem:[%s9475_s6 + $0x2e4] ss:$16 sps:$4 sm:$0xff]  }
 0xed1   :  { %5034 = vmatprep.subr.bf16.mxu0 %v7239_v13  ;;  %v7267_v13 = vld [vmem:[%s9475_s6 + $0x340] ss:$16 sps:$4 sm:$0xff]  }
 0xed2   :  { %5035 = vmatpush1.bf16.msra.mxu0 %v7237_v19  ;;  %v7269_v19 = vld [vmem:[%s9475_s6 + $0x344] ss:$16 sps:$4 sm:$0xff]  }
 0xed3   :  { %5036 = vmatprep.subr.bf16.mxu0 %v7245_v55  ;;  %v7273_v55 = vld [vmem:[%s9475_s6 + $0x320] ss:$16 sps:$4 sm:$0xff]  }
 0xed6   :  { %5037 = vmatpush1.bf16.msra.mxu0 %v7243_v43  ;;  %v7281_v43 = vld [vmem:[%s9475_s6 + $0x304] ss:$16 sps:$4 sm:$0xff]  }
 0xed7   :  { %5038 = vmatprep.subr.bf16.mxu0 %v7251_v20  ;;  %v7279_v20 = vld [vmem:[%s9475_s6 + $0x300] ss:$16 sps:$4 sm:$0xff]  }
 0xeda   :  { %5039 = vmatpush1.bf16.msra.mxu0 %v7249_v21 }
 0xedb   :  { %5040 = vmatprep.subr.bf16.mxu0 %v7257_v22 }
 0xede   :  { %5041 = vmatpush1.bf16.msra.mxu0 %v7255_v23 }
 0xedf   :  { %6441 = vmatprep.subr.bf16.mxu0 %v7350_v41 }
 0xf43   :  { %v4883_v11 = vpop.xlane.xlu0 %4882 }
 0xf44   :  { %v4884_v58 = vsub.f32 %v4880_v1, %v4883_v11 }
 0xf46   :  { %v4885_v15 = vmul.f32 1.442695, %v4884_v58 }
 0xf47   :  { %v4895_v61 = vpop.permute.xlu0 %4894 }
 0xf48   :  { %7329 = vpow2.f32 %v4885_v15  ;;  %v4900_v17 = vsel %vm3499_vm2, %v4895_v61, 0 }
 0xf49   :  { %6436 = vmatpush3.bf16.msra.mxu1 %v4900_v17  ;;  %v7261_v17 = vld [vmem:[%s9475_s6 + $0x360] ss:$16 sps:$4 sm:$0xff]  }
 0xf4a   :  { %5075 = vmatprep.subr.bf16.mxu1 %v7242_v27  ;;  %v7275_v27 = vld [vmem:[%s9475_s6 + $0x324] ss:$16 sps:$4 sm:$0xff]  }
 0xf55   :  { %v7330_v18 = vpop.eup %7329 }
 0xf56   :  { %v4887_v54 = vsel %vm3483_vm3, %v7330_v18, 0.0 }
 0xf57   :  { %4888 = vadd.xlane.f32.xlu1 %v4887_v54  ;;  %v7266_v54 = vld [vmem:[%s9475_s6 + $0x36c] ss:$16 sps:$4 sm:$0xff]  }
 0xfe0   :  { %v4889_v24 = vpop.xlane.xlu1 %4888 }
 0xfe1   :  { %7331 = vrcp.f32 %v4889_v24  ;;  %v7264_v24 = vld [vmem:[%s9475_s6 + $0x368] ss:$16 sps:$4 sm:$0xff]  }
 0xfee   :  { %v7332_v25 = vpop.eup %7331 }
 0xfef   :  { %v4891_v26 = vmul.f32 %v7332_v25, %v7330_v18  ;;  %v7263_v18 = vld [vmem:[%s9475_s6 + $0x364] ss:$16 sps:$4 sm:$0xff]  }
 0xff1   :  { %v4892_v29 = vpack.c.bf16 %v4891_v26, %v4891_v26  ;;  %v7272_v26 = vld [vmem:[%s9475_s6 + $0x34c] ss:$16 sps:$4 sm:$0xff]  }
 0xff3   :  { %6438 = vmatmul.mubr.msk.bf16.vlgmr.msra.gmra.mxu1 %vm3483_vm3, %v4892_v29  ;;  %v7278_v29 = vld [vmem:[%s9475_s6 + $0x32c] ss:$16 sps:$4 sm:$0xff]  }
 0xff4   :  { %5076 = vmatpush1.bf16.msra.mxu1 %v7240_v28  ;;  %5099 = vmatprep.mubr.bf16.mxu1 %v7353_v9  ;;  %v7270_v28 = vld [vmem:[%s9475_s6 + $0x348] ss:$16 sps:$4 sm:$0xff]  }
 0xff5   :  { %5077 = vmatprep.subr.bf16.mxu1 %v7248_v31  ;;  %v7276_v31 = vld [vmem:[%s9475_s6 + $0x328] ss:$16 sps:$4 sm:$0xff]  }
 0xff8   :  { %5078 = vmatpush1.bf16.msra.mxu1 %v7246_v53  ;;  %v7284_v53 = vld [vmem:[%s9475_s6 + $0x30c] ss:$16 sps:$4 sm:$0xff]  }
 0xff9   :  { %5079 = vmatprep.subr.bf16.mxu1 %v7254_v32  ;;  %v7282_v32 = vld [vmem:[%s9475_s6 + $0x308] ss:$16 sps:$4 sm:$0xff]  }
 0xffc   :  { %5080 = vmatpush1.bf16.msra.mxu1 %v7252_v12 }
 0xffd   :  { %5081 = vmatprep.subr.bf16.mxu1 %v7260_v33 }
0x1000   :  { %5082 = vmatpush1.bf16.msra.mxu1 %v7258_v35 }
0x1001   :  { %6447 = vmatprep.subr.bf16.mxu1 %v7350_v41 }
0x10b3   :  { %v4936_v38 = vpop.f32.mrf.mxu1 }
0x10b4   :  { %v4942_v39 = vpack.c.bf16 %v4936_v38, %v4936_v38 }
0x10b5   :  { %v6439_v40 = vpop.f32.mrf.mxu1 }
0x10b6   :  { %6295 = vmatmul.mubr.msk.bf16.vlgmr.msra.gmra.mxu0 %vm344_vm0, %v4942_v39  ;;  %6296 = vmatmul.mubr.msk.bf16.vlgmr.msra.gmra.mxu1 %vm344_vm0, %v4942_v39 }
0x10b7   :  { %6442 = vmatpush3.bf16.xpose.msra.mxu0 %v5116_v46  ;;  %6448 = vmatpush3.bf16.msra.mxu1 %v5176_v5  ;;  %v4939_v52 = vpop.f32.mrf.mxu1 }
0x10b8   :  { %6443 = vmatprep.mubr.msk.bf16.mxu0 %vm7351_vm1, %v7350_v41  ;;  %6449 = vmatprep.mubr.msk.bf16.mxu1 %vm7351_vm1, %v7350_v41 }
0x10b9   :  { %v6440_v14 = vpop.f32.mrf.mxu1  ;;  %5310 = vmatprep.subr.bf16.mxu0 %v7263_v18  ;;  %5351 = vmatprep.subr.bf16.mxu1 %v7266_v54  ;;  %v7290_v54 = vld [vmem:[%s9475_s6 + $0x3ec] ss:$16 sps:$4 sm:$0xff]  }
0x10be   :  { %6444 = vmatmul.mubr.msk.bf16.vlgmr.msra.gmra.mxu0 %vm344_vm0, %v3297_v49 }
0x10bf   :  { %5334 = vmatprep.mubr.bf16.mxu0 %v7353_v9  ;;  %5311 = vmatpush1.bf16.msra.mxu0 %v7261_v17  ;;  %v7303_v17 = vld [vmem:[%s9475_s6 + $0x380] ss:$16 sps:$4 sm:$0xff]  }
0x10c0   :  { %5312 = vmatprep.subr.bf16.mxu0 %v7269_v19 }
0x10c3   :  { %5313 = vmatpush1.bf16.msra.mxu0 %v7267_v13 }
0x10c4   :  { %5314 = vmatprep.subr.bf16.mxu0 %v7275_v27 }
0x10c7   :  { %5315 = vmatpush1.bf16.msra.mxu0 %v7273_v55 }
0x10c8   :  { %5316 = vmatprep.subr.bf16.mxu0 %v7281_v43  ;;  %v7288_v43 = vld [vmem:[%s9475_s6 + $0x3e8] ss:$16 sps:$4 sm:$0xff]  }
0x10cb   :  { %5317 = vmatpush1.bf16.msra.mxu0 %v7279_v20 }
0x10cc   :  { %6453 = vmatprep.subr.bf16.mxu0 %v7350_v41 }
0x1176   :  { %v5060_v7 = vpop.f32.mrf.mxu0  ;;  %v5101_v45 = vpop.f32.mrf.mxu1 }
0x1177   :  { %v9299_v2 = vadd.f32 %v5060_v7, %v9205_v16  ;;  %v9302_v3 = vadd.f32 %v5101_v45, %v9208_v62 }
0x1178   :  { %v5062_v6 = vpop.f32.mrf.mxu0  ;;  %v5103_v44 = vpop.f32.mrf.mxu1 }
0x1179   :  { %v9305_v8 = vadd.f32 %v5062_v6, %v9211_v30  ;;  %v9308_v47 = vadd.f32 %v5103_v44, %v9214_v42 }
0x117a   :  { %v5064_v34 = vpop.f32.mrf.mxu0  ;;  %v5105_v48 = vpop.f32.mrf.mxu1 }
0x117c   :  { %v5065_v50 = vpop.f32.mrf.mxu0  ;;  %v5106_v10 = vpop.f32.mrf.mxu1 }
0x117e   :  { %v5152_v1 = vpop.f32.mrf.mxu0 }
0x117f   :  { %v5158_v51 = vmul.f32 0.125, %v5152_v1 }
0x1180   :  { %v6445_v4 = vpop.f32.mrf.mxu0 }
0x1181   :  { %v5159_v16 = vadd.f32 %v9219_v63, %v5158_v51 }
0x1182   :  { %v5155_v0 = vpop.f32.mrf.mxu0 }
0x1183   :  { %v5160_v62 = vsel %vm3483_vm3, %v5159_v16, -inf }
0x1184   :  { %5161 = vmax.xlane.f32.xlu1 %v5160_v62  ;;  %v6446_v11 = vpop.f32.mrf.mxu0 }
0x1195   :  { %5392 = vrot.lane.b32.xlu1 %v3301_v36, %s7352_s4 }
0x1199   :  { %5389 = vrot.lane.b32.xlu1 %v3297_v49, %s7352_s4 }
0x120d   :  { %v5162_v30 = vpop.xlane.xlu1 %5161 }
0x120e   :  { %v5163_v42 = vsub.f32 %v5159_v16, %v5162_v30  ;;  %v7287_v30 = vld [vmem:[%s9475_s6 + $0x3e4] ss:$16 sps:$4 sm:$0xff]  }
0x1210   :  { %v5164_v58 = vmul.f32 1.442695, %v5163_v42  ;;  %v7293_v42 = vld [vmem:[%s9475_s6 + $0x3c4] ss:$16 sps:$4 sm:$0xff]  }
0x1211   :  { %v5393_v12 = vpop.permute.xlu1 %5392 }
0x1212   :  { %7333 = vpow2.f32 %v5164_v58  ;;  %v5398_v38 = vsel %vm344_vm0, %v5393_v12, 0  ;;  %v7291_v58 = vld [vmem:[%s9475_s6 + $0x3c0] ss:$16 sps:$4 sm:$0xff]  }
0x1215   :  { %v5390_v46 = vpop.permute.xlu1 %5389 }
0x121f   :  { %v7334_v15 = vpop.eup %7333 }
0x1220   :  { %v5166_v61 = vsel %vm3483_vm3, %v7334_v15, 0.0 }
0x1221   :  { %5167 = vadd.xlane.f32.xlu0 %v5166_v61  ;;  %v7305_v61 = vld [vmem:[%s9475_s6 + $0x384] ss:$16 sps:$4 sm:$0xff]  }
0x12aa   :  { %v5168_v21 = vpop.xlane.xlu0 %5167 }
0x12ab   :  { %7335 = vrcp.f32 %v5168_v21  ;;  %v7296_v21 = vld [vmem:[%s9475_s6 + $0x3cc] ss:$16 sps:$4 sm:$0xff]  }
0x12b8   :  { %v7336_v22 = vpop.eup %7335 }
0x12b9   :  { %v5170_v23 = vmul.f32 %v7336_v22, %v7334_v15  ;;  %v7297_v15 = vld [vmem:[%s9475_s6 + $0x3a0] ss:$16 sps:$4 sm:$0xff]   ;;  %v7294_v22 = vld [vmem:[%s9475_s6 + $0x3c8] ss:$16 sps:$4 sm:$0xff]  }
0x12bb   :  { %v5171_v25 = vpack.c.bf16 %v5170_v23, %v5170_v23  ;;  %v7302_v23 = vld [vmem:[%s9475_s6 + $0x3ac] ss:$16 sps:$4 sm:$0xff]  }
0x12bd   :  { %6450 = vmatmul.mubr.msk.bf16.vlgmr.msra.gmra.mxu1 %vm3483_vm3, %v5171_v25  ;;  %v7308_v25 = vld [vmem:[%s9475_s6 + $0x38c] ss:$16 sps:$4 sm:$0xff]  }
0x12be   :  { %5352 = vmatpush1.bf16.msra.mxu1 %v7264_v24  ;;  %5375 = vmatprep.mubr.bf16.mxu1 %v7353_v9  ;;  %v7300_v24 = vld [vmem:[%s9475_s6 + $0x3a8] ss:$16 sps:$4 sm:$0xff]  }
0x12bf   :  { %5353 = vmatprep.subr.bf16.mxu1 %v7272_v26 }
0x12c2   :  { %5354 = vmatpush1.bf16.msra.mxu1 %v7270_v28 }
0x12c3   :  { %5355 = vmatprep.subr.bf16.mxu1 %v7278_v29 }
0x12c6   :  { %5356 = vmatpush1.bf16.msra.mxu1 %v7276_v31 }
0x12c7   :  { %5357 = vmatprep.subr.bf16.mxu1 %v7284_v53 }
0x12ca   :  { %5358 = vmatpush1.bf16.msra.mxu1 %v7282_v32  ;;  %v5673_v32 = vld [vmem:[%s9476_s7] sm:$0xf] }
0x12cb   :  { %6459 = vmatprep.subr.bf16.mxu1 %v7350_v41  ;;  %v5678_v12 = vrot.slane %v5673_v32, %v7755_v57 }
0x137d   :  { %v5212_v33 = vpop.f32.mrf.mxu1 }
0x137e   :  { %v5218_v35 = vpack.c.bf16 %v5212_v33, %v5212_v33  ;;  %v5686_v33 = vrot.slane %v5673_v32, %v7752_v56 }
0x137f   :  { %v6451_v36 = vpop.f32.mrf.mxu1 }
0x1380   :  { %6315 = vmatmul.mubr.msk.bf16.vlgmr.msra.gmra.mxu0 %vm344_vm0, %v5218_v35  ;;  %6316 = vmatmul.mubr.msk.bf16.vlgmr.msra.gmra.mxu1 %vm344_vm0, %v5218_v35 }
0x1381   :  { %6454 = vmatpush3.bf16.xpose.msra.mxu0 %v5398_v38  ;;  %v5215_v39 = vpop.f32.mrf.mxu1  ;;  %6455 = vmatprep.mubr.msk.bf16.mxu0 %vm7351_vm1, %v7350_v41 }
0x1382   :  { %6461 = vmatprep.mubr.msk.bf16.mxu1 %vm7351_vm1, %v7350_v41  ;;  %5595 = vmatprep.subr.bf16.mxu0 %v7287_v30 }
0x1383   :  { %v6452_v40 = vpop.f32.mrf.mxu1 }
0x1388   :  { %6456 = vmatmul.mubr.msk.bf16.vlgmr.msra.gmra.mxu0 %vm344_vm0, %v5390_v46  ;;  %v5682_v46 = vrot.slane %v5673_v32, %v7761_v59 }
0x1389   :  { %5619 = vmatprep.mubr.bf16.mxu0 %v7353_v9 }
0x1440   :  { %v5336_v5 = vpop.f32.mrf.mxu0  ;;  %v5377_v52 = vpop.f32.mrf.mxu1 }
0x1441   :  { %v9377_v14 = vadd.f32 %v5336_v5, %v9299_v2  ;;  %v9380_v49 = vadd.f32 %v5377_v52, %v9302_v3  ;;  %v5690_v52 = vrot.slane %v5673_v32, %v7764_v60 }
0x1442   :  { %v5338_v7 = vpop.f32.mrf.mxu0  ;;  %v5379_v45 = vpop.f32.mrf.mxu1 }
0x1443   :  { %v9383_v6 = vadd.f32 %v5338_v7, %v9305_v8  ;;  %v9386_v41 = vadd.f32 %v5379_v45, %v9308_v47 }
0x1444   :  { %v5340_v44 = vpop.f32.mrf.mxu0  ;;  %v5381_v34 = vpop.f32.mrf.mxu1 }
0x1446   :  { %v5341_v48 = vpop.f32.mrf.mxu0  ;;  %v5382_v50 = vpop.f32.mrf.mxu1 }
0x1448   :  { %v5434_v10 = vpop.f32.mrf.mxu0 }
0x1449   :  { %v5440_v1 = vmul.f32 0.125, %v5434_v10 }
0x144a   :  { %v6457_v51 = vpop.f32.mrf.mxu0 }
0x144b   :  { %v5441_v2 = vadd.f32 %v9219_v63, %v5440_v1  ;;  %v7285_v63 = vld [vmem:[%s9475_s6 + $0x3e0] ss:$16 sps:$4 sm:$0xff]  }
0x144c   :  { %v5437_v4 = vpop.f32.mrf.mxu0  ;;  %5596 = vmatpush1.bf16.msra.mxu0 %v7285_v63 }
0x144d   :  { %v5442_v3 = vsel %vm3483_vm3, %v5441_v2, -inf  ;;  %5597 = vmatprep.subr.bf16.mxu0 %v7293_v42 }
0x144e   :  { %5443 = vmax.xlane.f32.xlu1 %v5442_v3  ;;  %v6458_v16 = vpop.f32.mrf.mxu0 }
0x1450   :  { %5598 = vmatpush1.bf16.msra.mxu0 %v7291_v58 }
0x14d7   :  { %v5444_v0 = vpop.xlane.xlu1 %5443 }
0x14d8   :  { %v5445_v8 = vsub.f32 %v5441_v2, %v5444_v0 }
0x14da   :  { %v5446_v62 = vmul.f32 1.442695, %v5445_v8 }
0x14dc   :  { %7337 = vpow2.f32 %v5446_v62 }
0x14e9   :  { %v7338_v47 = vpop.eup %7337 }
0x14ea   :  { %v5448_v11 = vsel %vm3483_vm3, %v7338_v47, 0.0 }
0x14eb   :  { %5449 = vadd.xlane.f32.xlu0 %v5448_v11 }
0x1501   :  { %5455 = vrot.lane.b32.xlu0 %v9283_v37, %s7352_s4  ;;  %v7299_v37 = vld [vmem:[%s9475_s6 + $0x3a4] ss:$16 sps:$4 sm:$0xff]  }
0x1502   :  { %5599 = vmatprep.subr.bf16.mxu0 %v7299_v37 }
0x1503   :  { %5600 = vmatpush1.bf16.msra.mxu0 %v7297_v15 }
0x1504   :  { %5601 = vmatprep.subr.bf16.mxu0 %v7305_v61 }
0x1507   :  { %5602 = vmatpush1.bf16.msra.mxu0 %v7303_v17 }
0x1574   :  { %v5450_v18 = vpop.xlane.xlu0 %5449 }
0x1575   :  { %7339 = vrcp.f32 %v5450_v18 }
0x1578   :  { %v5456_v19 = vpop.permute.xlu0 %5455 }
0x1579   :  { %v5461_v13 = vsel %vm3499_vm2, %v5456_v19, 0 }
0x157a   :  { %6460 = vmatpush3.bf16.msra.mxu1 %v5461_v13 }
0x157b   :  { %5636 = vmatprep.subr.bf16.mxu1 %v7290_v54 }
0x1582   :  { %v7340_v27 = vpop.eup %7339 }
0x1583   :  { %v5452_v55 = vmul.f32 %v7340_v27, %v7338_v47 }
0x1585   :  { %v5453_v20 = vpack.c.bf16 %v5452_v55, %v5452_v55 }
0x1587   :  { %6462 = vmatmul.mubr.msk.bf16.vlgmr.msra.gmra.mxu1 %vm3483_vm3, %v5453_v20 }
0x1588   :  { %5637 = vmatpush1.bf16.msra.mxu1 %v7288_v43  ;;  %5660 = vmatprep.mubr.bf16.mxu1 %v7353_v9  ;;  %v7306_v9 = vld [vmem:[%s9475_s6 + $0x388] ss:$16 sps:$4 sm:$0xff]  }
0x1589   :  { %5638 = vmatprep.subr.bf16.mxu1 %v7296_v21 }
0x158c   :  { %5639 = vmatpush1.bf16.msra.mxu1 %v7294_v22 }
0x158d   :  { %5640 = vmatprep.subr.bf16.mxu1 %v7302_v23 }
0x1590   :  { %5641 = vmatpush1.bf16.msra.mxu1 %v7300_v24 }
0x1591   :  { %5642 = vmatprep.subr.bf16.mxu1 %v7308_v25 }
0x1594   :  { %5643 = vmatpush1.bf16.msra.mxu1 %v7306_v9 }
0x1647   :  { %v5497_v26 = vpop.f32.mrf.mxu1 }
0x1648   :  { %v5503_v28 = vpack.c.bf16 %v5497_v26, %v5497_v26 }
0x1649   :  { %v6463_v29 = vpop.f32.mrf.mxu1 }
0x164a   :  { %6335 = vmatmul.mubr.msk.bf16.vlgmr.msra.gmra.mxu0 %vm344_vm0, %v5503_v28  ;;  %6336 = vmatmul.mubr.msk.bf16.vlgmr.msra.gmra.mxu1 %vm344_vm0, %v5503_v28 }
0x164b   :  { %v5500_v31 = vpop.f32.mrf.mxu1 }
0x164d   :  { %v6464_v53 = vpop.f32.mrf.mxu1 }
0x170a   :  { %v5621_v35 = vpop.f32.mrf.mxu0  ;;  %v5662_v36 = vpop.f32.mrf.mxu1 }
0x170b   :  { %v5669_v38 = vadd.f32 %v5621_v35, %v9377_v14  ;;  %v5671_v39 = vadd.f32 %v5662_v36, %v9380_v49 }
0x170c   :  { %v5623_v40 = vpop.f32.mrf.mxu0  ;;  %v5664_v5 = vpop.f32.mrf.mxu1 }
0x170d   :  { %v5695_v7 = vadd.f32 %v5678_v12, %v5669_v38  ;;  %v5697_v45 = vadd.f32 %v5686_v33, %v5671_v39  ;;  %v5670_v44 = vadd.f32 %v5623_v40, %v9383_v6  ;;  %v5672_v57 = vadd.f32 %v5664_v5, %v9386_v41 }
0x170e   :  { %v5625_v34 = vpop.f32.mrf.mxu0  ;;  %v5666_v56 = vpop.f32.mrf.mxu1 }
0x170f   :  { %v5703_v48 = vmul.f32 0.044715, %v5695_v7  ;;  %v5705_v50 = vmul.f32 0.044715, %v5697_v45  ;;  %v5696_v10 = vadd.f32 %v5682_v46, %v5670_v44  ;;  %v5698_v14 = vadd.f32 %v5690_v52, %v5672_v57 }
0x1710   :  { %v5626_v1 = vpop.f32.mrf.mxu0  ;;  %v5667_v49 = vpop.f32.mrf.mxu1  ;;  %v5699_v61 = vmul.f32 0.5, %v5695_v7  ;;  %v5701_v18 = vmul.f32 0.5, %v5697_v45 }
0x1711   :  { %v5707_v51 = vmul.f32 %v5703_v48, %v5695_v7  ;;  %v5709_v2 = vmul.f32 %v5705_v50, %v5697_v45  ;;  %v5704_v59 = vmul.f32 0.044715, %v5696_v10  ;;  %v5706_v4 = vmul.f32 0.044715, %v5698_v14 }
0x1712   :  { %v5700_v43 = vmul.f32 0.5, %v5696_v10  ;;  %v5702_v21 = vmul.f32 0.5, %v5698_v14 }
0x1713   :  { %v5711_v3 = vmul.f32 %v5707_v51, %v5695_v7  ;;  %v5713_v60 = vmul.f32 %v5709_v2, %v5697_v45  ;;  %v5708_v16 = vmul.f32 %v5704_v59, %v5696_v10  ;;  %v5710_v0 = vmul.f32 %v5706_v4, %v5698_v14 }
0x1715   :  { %v5715_v8 = vadd.f32 %v5711_v3, %v5695_v7  ;;  %v5717_v6 = vadd.f32 %v5713_v60, %v5697_v45  ;;  %v5712_v62 = vmul.f32 %v5708_v16, %v5696_v10  ;;  %v5714_v41 = vmul.f32 %v5710_v0, %v5698_v14 }
0x1717   :  { %v5719_v47 = vmul.f32 0.7978846, %v5715_v8  ;;  %v5721_v11 = vmul.f32 0.7978846, %v5717_v6  ;;  %v5716_v63 = vadd.f32 %v5712_v62, %v5696_v10  ;;  %v5718_v30 = vadd.f32 %v5714_v41, %v5698_v14 }
0x1719   :  { %7341 = vtanh.f32 %v5719_v47  ;;  %v5720_v42 = vmul.f32 0.7978846, %v5716_v63  ;;  %v5722_v58 = vmul.f32 0.7978846, %v5718_v30 }
0x171a   :  { %7343 = vtanh.f32 %v5721_v11 }
0x171b   :  { %7345 = vtanh.f32 %v5720_v42 }
0x171c   :  { %7347 = vtanh.f32 %v5722_v58 }
0x1726   :  { %v7342_v37 = vpop.eup %7341 }
0x1727   :  { %v7344_v15 = vpop.eup %7343  ;;  %v5727_v17 = vadd.f32 1.0, %v7342_v37 }
0x1728   :  { %v5729_v54 = vadd.f32 1.0, %v7344_v15  ;;  %v7346_v19 = vpop.eup %7345 }
0x1729   :  { %v5731_v13 = vmul.f32 %v5727_v17, %v5699_v61  ;;  %v7348_v27 = vpop.eup %7347  ;;  %v5728_v20 = vadd.f32 1.0, %v7346_v19 }
0x172a   :  { %v5733_v55 = vmul.f32 %v5729_v54, %v5701_v18  ;;  %v5730_v22 = vadd.f32 1.0, %v7348_v27 }
0x172b   :  { %5735 = vst [vmem:[%s9477_s8] sm:$0xff] %v5731_v13  ;;  %v5732_v23 = vmul.f32 %v5728_v20, %v5700_v43 }
0x172c   :  { %5737 = vst [vmem:[%s9477_s8 + $0x10] sm:$0xff] %v5733_v55  ;;  %v5734_v24 = vmul.f32 %v5730_v22, %v5702_v21 }
0x172d   :  { %5736 = vst [vmem:[%s9477_s8 + $0x8] sm:$0xff] %v5732_v23 }
0x172e   :  { %5738 = vst [vmem:[%s9477_s8 + $0x18] sm:$0xff] %v5734_v24 }

</bundles_post_ra>
